<compile_context>
chip_gen: v7x
topology: tpu7x:2x2x1
jax: 0.10.0
libtpu: 0.0.40
codegen_flags: <defaults>
</compile_context>

<pallas_src>
import numpy as np

import jax
import jax.numpy as jnp
from jax.experimental import pallas as pl
from jax.experimental.pallas import tpu as pltpu

_VMEM_LIMIT = 32 * 1024 * 1024  # ~3.1 MB resident bf16 weights + small buffers; safe on v5e/v6e/v7x


# ---------------------------------------------------------------------------
# Host-side (init-time) weight packing.
#
# Convention inside the kernel (per image):
#   input  XT[w, ci*32 + h]          = x[ci, h, w]                 (32, 96)
#   conv1  P1mat[q, ci2*14 + p]      = pool1[ci2, p, q]            (14, 84), split by q parity
#   conv2  P2mat[s, co2*5 + r]       = pool2[co2, r, s]            (5, 80)
#
# Pooled-corner Toeplitz matrices:
#   A1[da,kw][(ci*32+h), (co*14+p)]  = W1[co, ci, h-(2p+da), kw]   (96, 84) (0 outside [0,5))
#   A2[da,kw][(ci*14+p), (co*5+r)]   = W2[co, ci, p-(2r+da), kw]   (84, 80)
# so that  conv_out[co, 2p+da, 2q+db] = sum_kw XT[2q+db+kw, :] @ A1[da,kw][:, co*14+p], etc.
# ---------------------------------------------------------------------------
def _pack_conv1(w1, b1):
    w1 = np.asarray(w1, np.float32)                      # (6, 3, 5, 5)
    a = np.zeros((10, 96, 84), np.float32)
    for da in range(2):
        for kw in range(5):
            for co in range(6):
                for ci in range(3):
                    for p in range(14):
                        for kh in range(5):
                            h = 2 * p + da + kh
                            a[da * 5 + kw, ci * 32 + h, co * 14 + p] = w1[co, ci, kh, kw]
    bias_col = np.repeat(np.asarray(b1, np.float32), 14)[None, :]   # (1, 84), index co*14+p
    return jnp.asarray(a, jnp.bfloat16), jnp.asarray(bias_col, jnp.float32)


def _pack_conv2(w2, b2):
    w2 = np.asarray(w2, np.float32)                      # (16, 6, 5, 5)
    a = np.zeros((10, 84, 80), np.float32)
    for da in range(2):
        for kw in range(5):
            for co in range(16):
                for ci in range(6):
                    for r in range(5):
                        for kh in range(5):
                            p = 2 * r + da + kh
                            a[da * 5 + kw, ci * 14 + p, co * 5 + r] = w2[co, ci, kh, kw]
    bias_col = np.repeat(np.asarray(b2, np.float32), 5)[None, :]    # (1, 80), index co*5+r
    return jnp.asarray(a, jnp.bfloat16), jnp.asarray(bias_col, jnp.float32)


def pack_params(params):
    """Torch-layout f32 params -> ordered kernel operands (bf16 weights, f32 biases)."""
    a1, b1c = _pack_conv1(*params["conv1"])
    a2, b2c = _pack_conv2(*params["conv2"])

    # mlp0_0 consumes the flattened conv output f = co*25 + r*5 + s.  The kernel
    # holds P2 as (s, co*5+r), so regroup the 400 weight rows as (s, co*5+r):
    w, b = params["mlp0_0"]                              # (400, 800), (800,)
    w1g = (np.asarray(w, np.float32).reshape(16, 5, 5, 800)
           .transpose(2, 0, 1, 3).reshape(5, 80, 800))
    ops = [a1, b1c, a2, b2c,
           jnp.asarray(w1g, jnp.bfloat16), jnp.asarray(b, jnp.float32)[None, :]]

    for name in ("mlp0_1", "mlp0_2", "cls0_0", "cls0_1"):
        w, b = params[name]
        ops += [jnp.asarray(w, jnp.bfloat16), jnp.asarray(b, jnp.float32)[None, :]]

    # Final classifier padded 10 -> 128 output columns (unmasked lane-dense store).
    w, b = params["cls0_2"]                              # (100, 10), (10,)
    wp = np.zeros((100, 128), np.float32)
    wp[:, :10] = np.asarray(w, np.float32)
    bp = np.zeros((1, 128), np.float32)
    bp[0, :10] = np.asarray(b, np.float32)
    ops += [jnp.asarray(wp, jnp.bfloat16), jnp.asarray(bp, jnp.float32)]
    return ops


# ---------------------------------------------------------------------------
# The single fused kernel: one image per grid step, all weights VMEM-resident.
# ---------------------------------------------------------------------------
def _prosi_fused_kernel(x_ref, a1_ref, b1_ref, a2_ref, b2_ref,
                        w1_ref, c1_ref, w2_ref, c2_ref, w3_ref, c3_ref,
                        w4_ref, c4_ref, w5_ref, c5_ref, w6_ref, c6_ref,
                        out_ref):
    xq = x_ref[0]                                      # (4, 8, 96) f32: [w%4, w//4, ci*32+h]

    # ---- Conv2d(3,6,5) + bias + ReLU + MaxPool2d(2,2) ----------------------
    # Output kept as two pooled-column-parity slabs p1e/p1o of shape (7, 84).
    p1 = []
    for par in range(2):                               # parity of pooled column q
        slab = {}
        for c in range(2 * par, 2 * par + 6):          # needed input cols: w = 4t + c
            lhs = xq[c % 4, c // 4:c // 4 + 7, :]      # (7, 96) contiguous rows
            slab[c] = lhs.astype(jnp.bfloat16)
        corners = []
        for da in range(2):                            # pool corner along h
            for db in range(2):                        # pool corner along w
                acc = None
                for kw in range(5):
                    t = jnp.dot(slab[2 * par + db + kw], a1_ref[da * 5 + kw],
                                preferred_element_type=jnp.float32)      # (7, 84)
                    acc = t if acc is None else acc + t
                corners.append(acc)
        y = jnp.maximum(jnp.maximum(corners[0], corners[1]),
                        jnp.maximum(corners[2], corners[3]))
        p1.append(jnp.maximum(y + b1_ref[...], 0.0))   # (7, 84) f32
    p1e, p1o = p1

    # ---- Conv2d(6,16,5) + bias + ReLU + MaxPool2d(2,2) ---------------------
    slab2 = {}
    for c in range(6):                                 # needed P1 rows: q = 2s + c
        src = p1e if c % 2 == 0 else p1o
        slab2[c] = src[c // 2:c // 2 + 5, :].astype(jnp.bfloat16)        # (5, 84)
    corners = []
    for da in range(2):
        for db in range(2):
            acc = None
            for kw in range(5):
                t = jnp.dot(slab2[db + kw], a2_ref[da * 5 + kw],
                            preferred_element_type=jnp.float32)          # (5, 80)
                acc = t if acc is None else acc + t
            corners.append(acc)
    y = jnp.maximum(jnp.maximum(corners[0], corners[1]),
                    jnp.maximum(corners[2], corners[3]))
    p2 = jnp.maximum(y + b2_ref[...], 0.0)             # (5, 80) f32: [s, co*5+r]

    # ---- mlp0 + cls0 (all 6 Linear layers; Dropout is eval-mode identity) --
    # TODO(synk): Dropout(p=0.2) uses eval-mode (identity) semantics; train-mode masking not implemented.
    h = None
    for s in range(5):                                 # flatten folded into 5 partial GEMMs
        t = jnp.dot(p2[s:s + 1, :].astype(jnp.bfloat16), w1_ref[s],
                    preferred_element_type=jnp.float32)                  # (1, 800)
        h = t if h is None else h + t
    h = jnp.maximum(h + c1_ref[...], 0.0)                                # mlp0_0 + ReLU
    h = jnp.maximum(jnp.dot(h.astype(jnp.bfloat16), w2_ref[...],
                            preferred_element_type=jnp.float32) + c2_ref[...], 0.0)   # mlp0_1 + ReLU
    h = jnp.dot(h.astype(jnp.bfloat16), w3_ref[...],
                preferred_element_type=jnp.float32) + c3_ref[...]                      # mlp0_2
    h = jnp.maximum(jnp.dot(h.astype(jnp.bfloat16), w4_ref[...],
                            preferred_element_type=jnp.float32) + c4_ref[...], 0.0)   # cls0_0 + ReLU
    h = jnp.maximum(jnp.dot(h.astype(jnp.bfloat16), w5_ref[...],
                            preferred_element_type=jnp.float32) + c5_ref[...], 0.0)   # cls0_1 + ReLU
    h = jnp.dot(h.astype(jnp.bfloat16), w6_ref[...],
                preferred_element_type=jnp.float32) + c6_ref[...]                      # cls0_2, (1, 128)
    out_ref[0] = h


def _const_spec(arr):
    nd = arr.ndim
    return pl.BlockSpec(arr.shape, lambda *_: (0,) * nd)   # whole array, loaded once


def prosi_single_nn_forward(packed, x):
    """x: (B, 3, 32, 32) float32 NCHW -> logits (B, 10)."""
    B = x.shape[0]
    assert x.shape[1:] == (3, 32, 32), "kernel is specialized to the 3x32x32 LeNet geometry"

    # Only host glue: per-image transpose to (w, ci*32+h) and group rows by w mod 4
    # so every pooled-corner conv GEMM in-kernel reads a contiguous slice.
    xt = jnp.transpose(x, (0, 3, 1, 2)).reshape(B, 32, 96)
    xp = xt.reshape(B, 8, 4, 96).transpose(0, 2, 1, 3)     # (B, 4, 8, 96): [b, w%4, w//4, ci*32+h]

    out = pl.pallas_call(
        _prosi_fused_kernel,
        out_shape=jax.ShapeDtypeStruct((B, 1, 128), jnp.float32),
        grid=(B,),
        in_specs=[pl.BlockSpec((1, 4, 8, 96), lambda b: (b, 0, 0, 0))]
                 + [_const_spec(a) for a in packed],
        out_specs=pl.BlockSpec((1, 1, 128), lambda b: (b, 0, 0)),
        compiler_params=pltpu.CompilerParams(
            dimension_semantics=("parallel",),             # v7x: shard batch over both TCs
            vmem_limit_bytes=_VMEM_LIMIT),
    )(xp, *packed)
    return out[:, 0, :10]


# ---------------------------------------------------------------------------
# Parameters (deterministic, synthetic), torch-style layout.
# ---------------------------------------------------------------------------
def init_params(key):
    def rnd(k, shape):
        return jax.random.normal(k, shape, jnp.float32) * 0.05

    ks = jax.random.split(key, 16)
    p = {
        "conv1": (rnd(ks[0], (6, 3, 5, 5)), rnd(ks[1], (6,))),
        "conv2": (rnd(ks[2], (16, 6, 5, 5)), rnd(ks[3], (16,))),
        "mlp0_0": (rnd(ks[4], (400, 800)), rnd(ks[5], (800,))),
        "mlp0_1": (rnd(ks[6], (800, 800)), rnd(ks[7], (800,))),
        "mlp0_2": (rnd(ks[8], (800, 400)), rnd(ks[9], (400,))),
        "cls0_0": (rnd(ks[10], (400, 200)), rnd(ks[11], (200,))),
        "cls0_1": (rnd(ks[12], (200, 100)), rnd(ks[13], (100,))),
        "cls0_2": (rnd(ks[14], (100, 10)), rnd(ks[15], (10,))),
    }
    # Round through bf16 so the bf16 kernel weights and the f32 reference use
    # numerically identical weight values (isolates accumulation/cast error).
    return jax.tree_util.tree_map(lambda a: a.astype(jnp.bfloat16).astype(jnp.float32), p)


# ---------------------------------------------------------------------------
# Pure-JAX f32 reference (independent of the kernel's packing / layout tricks).
# ---------------------------------------------------------------------------
def _ref_forward(params, x):
    def conv(z, w, b):
        y = jax.lax.conv_general_dilated(
            z, w, window_strides=(1, 1), padding="VALID",
            dimension_numbers=("NCHW", "OIHW", "NCHW"),
            precision=jax.lax.Precision.HIGHEST)
        return y + b.reshape(1, -1, 1, 1)

    def pool(z):
        return jnp.maximum(jnp.maximum(z[:, :, 0::2, 0::2], z[:, :, 0::2, 1::2]),
                           jnp.maximum(z[:, :, 1::2, 0::2], z[:, :, 1::2, 1::2]))

    z = pool(jnp.maximum(conv(x, *params["conv1"]), 0.0))
    z = pool(jnp.maximum(conv(z, *params["conv2"]), 0.0))
    z = z.reshape(x.shape[0], -1)
    for name, relu in (("mlp0_0", True), ("mlp0_1", True), ("mlp0_2", False),
                       ("cls0_0", True), ("cls0_1", True), ("cls0_2", False)):
        w, b = params[name]
        z = jnp.dot(z, w, precision=jax.lax.Precision.HIGHEST) + b
        if relu:
            z = jnp.maximum(z, 0.0)
    return z


# ---------------------------------------------------------------------------
if __name__ == "__main__":
    key = jax.random.PRNGKey(0)
    pkey, xkey = jax.random.split(key)
    params = init_params(pkey)
    packed = pack_params(params)

    # Input must be (B, 3, 32, 32) so flatten yields 400 features (LeNet-style).
    x = jax.random.normal(xkey, (2, 3, 32, 32), jnp.float32)

    fwd = jax.jit(prosi_single_nn_forward)
    logits = fwd(packed, x)
    jax.block_until_ready(logits)

    assert logits.shape == (2, 10) and logits.dtype == jnp.float32

    ref = _ref_forward(params, x)
    max_err = float(jnp.max(jnp.abs(logits - ref)))
    assert max_err < 5e-2, f"mismatch vs reference: max abs err {max_err}"

    print("KERNEL_OK")
</pallas_src>

<mosaic_0001>
module attributes {stable_mosaic.version = 11 : i64} {
  func.func @_prosi_fused_kernel(%arg0: i32, %arg1: memref<1x4x8x96xf32, #tpu.memory_space<vmem>>, %arg2: memref<10x96x84xbf16, #tpu.memory_space<vmem>>, %arg3: memref<1x84xf32, #tpu.memory_space<vmem>>, %arg4: memref<10x84x80xbf16, #tpu.memory_space<vmem>>, %arg5: memref<1x80xf32, #tpu.memory_space<vmem>>, %arg6: memref<5x80x800xbf16, #tpu.memory_space<vmem>>, %arg7: memref<1x800xf32, #tpu.memory_space<vmem>>, %arg8: memref<800x800xbf16, #tpu.memory_space<vmem>>, %arg9: memref<1x800xf32, #tpu.memory_space<vmem>>, %arg10: memref<800x400xbf16, #tpu.memory_space<vmem>>, %arg11: memref<1x400xf32, #tpu.memory_space<vmem>>, %arg12: memref<400x200xbf16, #tpu.memory_space<vmem>>, %arg13: memref<1x200xf32, #tpu.memory_space<vmem>>, %arg14: memref<200x100xbf16, #tpu.memory_space<vmem>>, %arg15: memref<1x100xf32, #tpu.memory_space<vmem>>, %arg16: memref<100x128xbf16, #tpu.memory_space<vmem>>, %arg17: memref<1x128xf32, #tpu.memory_space<vmem>>, %arg18: memref<1x1x128xf32, #tpu.memory_space<vmem>>) attributes {dimension_semantics = [#tpu.dimension_semantics<parallel>], iteration_bounds = array<i64: 2>, scalar_prefetch = 0 : i64, scratch_operands = 0 : i64, tpu.core_type = #tpu.core_type<tc>, window_params = [{transform_indices = @transform_0, window_bounds = array<i64: 1, 4, 8, 96>}, {pipeline_mode = #tpu.pipeline_mode<synchronous>, transform_indices = @transform_1, window_bounds = array<i64: 10, 96, 84>}, {pipeline_mode = #tpu.pipeline_mode<synchronous>, transform_indices = @transform_2, window_bounds = array<i64: 1, 84>}, {pipeline_mode = #tpu.pipeline_mode<synchronous>, transform_indices = @transform_3, window_bounds = array<i64: 10, 84, 80>}, {pipeline_mode = #tpu.pipeline_mode<synchronous>, transform_indices = @transform_4, window_bounds = array<i64: 1, 80>}, {pipeline_mode = #tpu.pipeline_mode<synchronous>, transform_indices = @transform_5, window_bounds = array<i64: 5, 80, 800>}, {pipeline_mode = #tpu.pipeline_mode<synchronous>, transform_indices = @transform_6, window_bounds = array<i64: 1, 800>}, {pipeline_mode = #tpu.pipeline_mode<synchronous>, transform_indices = @transform_7, window_bounds = array<i64: 800, 800>}, {pipeline_mode = #tpu.pipeline_mode<synchronous>, transform_indices = @transform_8, window_bounds = array<i64: 1, 800>}, {pipeline_mode = #tpu.pipeline_mode<synchronous>, transform_indices = @transform_9, window_bounds = array<i64: 800, 400>}, {pipeline_mode = #tpu.pipeline_mode<synchronous>, transform_indices = @transform_10, window_bounds = array<i64: 1, 400>}, {pipeline_mode = #tpu.pipeline_mode<synchronous>, transform_indices = @transform_11, window_bounds = array<i64: 400, 200>}, {pipeline_mode = #tpu.pipeline_mode<synchronous>, transform_indices = @transform_12, window_bounds = array<i64: 1, 200>}, {pipeline_mode = #tpu.pipeline_mode<synchronous>, transform_indices = @transform_13, window_bounds = array<i64: 200, 100>}, {pipeline_mode = #tpu.pipeline_mode<synchronous>, transform_indices = @transform_14, window_bounds = array<i64: 1, 100>}, {pipeline_mode = #tpu.pipeline_mode<synchronous>, transform_indices = @transform_15, window_bounds = array<i64: 100, 128>}, {pipeline_mode = #tpu.pipeline_mode<synchronous>, transform_indices = @transform_16, window_bounds = array<i64: 1, 128>}, {transform_indices = @transform_17, window_bounds = array<i64: 1, 1, 128>}]} {
    %c0 = arith.constant 0 : index
    %c0_0 = arith.constant 0 : index
    %c0_1 = arith.constant 0 : index
    %c0_2 = arith.constant 0 : index
    %0 = vector.load %arg1[%c0, %c0_0, %c0_1, %c0_2] : memref<1x4x8x96xf32, #tpu.memory_space<vmem>>, vector<1x4x8x96xf32>
    %1 = vector.shape_cast %0 : vector<1x4x8x96xf32> to vector<4x8x96xf32>
    %2 = vector.extract_strided_slice %1 {offsets = [0, 0, 0], sizes = [1, 7, 96], strides = [1, 1, 1]} : vector<4x8x96xf32> to vector<1x7x96xf32>
    %3 = vector.shape_cast %2 : vector<1x7x96xf32> to vector<7x96xf32>
    %4 = arith.truncf %3 : vector<7x96xf32> to vector<7x96xbf16>
    %5 = vector.extract_strided_slice %1 {offsets = [1, 0, 0], sizes = [1, 7, 96], strides = [1, 1, 1]} : vector<4x8x96xf32> to vector<1x7x96xf32>
    %6 = vector.shape_cast %5 : vector<1x7x96xf32> to vector<7x96xf32>
    %7 = arith.truncf %6 : vector<7x96xf32> to vector<7x96xbf16>
    %8 = vector.extract_strided_slice %1 {offsets = [2, 0, 0], sizes = [1, 7, 96], strides = [1, 1, 1]} : vector<4x8x96xf32> to vector<1x7x96xf32>
    %9 = vector.shape_cast %8 : vector<1x7x96xf32> to vector<7x96xf32>
    %10 = arith.truncf %9 : vector<7x96xf32> to vector<7x96xbf16>
    %11 = vector.extract_strided_slice %1 {offsets = [3, 0, 0], sizes = [1, 7, 96], strides = [1, 1, 1]} : vector<4x8x96xf32> to vector<1x7x96xf32>
    %12 = vector.shape_cast %11 : vector<1x7x96xf32> to vector<7x96xf32>
    %13 = arith.truncf %12 : vector<7x96xf32> to vector<7x96xbf16>
    %14 = vector.extract_strided_slice %1 {offsets = [0, 1, 0], sizes = [1, 7, 96], strides = [1, 1, 1]} : vector<4x8x96xf32> to vector<1x7x96xf32>
    %15 = vector.shape_cast %14 : vector<1x7x96xf32> to vector<7x96xf32>
    %16 = arith.truncf %15 : vector<7x96xf32> to vector<7x96xbf16>
    %17 = vector.extract_strided_slice %1 {offsets = [1, 1, 0], sizes = [1, 7, 96], strides = [1, 1, 1]} : vector<4x8x96xf32> to vector<1x7x96xf32>
    %18 = vector.shape_cast %17 : vector<1x7x96xf32> to vector<7x96xf32>
    %19 = arith.truncf %18 : vector<7x96xf32> to vector<7x96xbf16>
    %c0_3 = arith.constant 0 : index
    %c0_4 = arith.constant 0 : index
    %c0_5 = arith.constant 0 : index
    %20 = vector.load %arg2[%c0_3, %c0_4, %c0_5] : memref<10x96x84xbf16, #tpu.memory_space<vmem>>, vector<1x96x84xbf16>
    %21 = vector.shape_cast %20 : vector<1x96x84xbf16> to vector<96x84xbf16>
    %cst = arith.constant dense<0.000000e+00> : vector<7x84xf32>
    %22 = tpu.matmul %4, %21, %cst {dimension_numbers = #tpu.dot_dimension_numbers<[1], [0], [0], [1], [0, 0, 1, 1], [], []>} : vector<7x96xbf16>, vector<96x84xbf16>, vector<7x84xf32> -> vector<7x84xf32>
    %c1 = arith.constant 1 : index
    %c0_6 = arith.constant 0 : index
    %c0_7 = arith.constant 0 : index
    %23 = vector.load %arg2[%c1, %c0_6, %c0_7] : memref<10x96x84xbf16, #tpu.memory_space<vmem>>, vector<1x96x84xbf16>
    %24 = vector.shape_cast %23 : vector<1x96x84xbf16> to vector<96x84xbf16>
    %cst_8 = arith.constant dense<0.000000e+00> : vector<7x84xf32>
    %25 = tpu.matmul %7, %24, %cst_8 {dimension_numbers = #tpu.dot_dimension_numbers<[1], [0], [0], [1], [0, 0, 1, 1], [], []>} : vector<7x96xbf16>, vector<96x84xbf16>, vector<7x84xf32> -> vector<7x84xf32>
    %26 = arith.addf %22, %25 : vector<7x84xf32>
    %c2 = arith.constant 2 : index
    %c0_9 = arith.constant 0 : index
    %c0_10 = arith.constant 0 : index
    %27 = vector.load %arg2[%c2, %c0_9, %c0_10] : memref<10x96x84xbf16, #tpu.memory_space<vmem>>, vector<1x96x84xbf16>
    %28 = vector.shape_cast %27 : vector<1x96x84xbf16> to vector<96x84xbf16>
    %cst_11 = arith.constant dense<0.000000e+00> : vector<7x84xf32>
    %29 = tpu.matmul %10, %28, %cst_11 {dimension_numbers = #tpu.dot_dimension_numbers<[1], [0], [0], [1], [0, 0, 1, 1], [], []>} : vector<7x96xbf16>, vector<96x84xbf16>, vector<7x84xf32> -> vector<7x84xf32>
    %30 = arith.addf %26, %29 : vector<7x84xf32>
    %c3 = arith.constant 3 : index
    %c0_12 = arith.constant 0 : index
    %c0_13 = arith.constant 0 : index
    %31 = vector.load %arg2[%c3, %c0_12, %c0_13] : memref<10x96x84xbf16, #tpu.memory_space<vmem>>, vector<1x96x84xbf16>
    %32 = vector.shape_cast %31 : vector<1x96x84xbf16> to vector<96x84xbf16>
    %cst_14 = arith.constant dense<0.000000e+00> : vector<7x84xf32>
    %33 = tpu.matmul %13, %32, %cst_14 {dimension_numbers = #tpu.dot_dimension_numbers<[1], [0], [0], [1], [0, 0, 1, 1], [], []>} : vector<7x96xbf16>, vector<96x84xbf16>, vector<7x84xf32> -> vector<7x84xf32>
    %34 = arith.addf %30, %33 : vector<7x84xf32>
    %c4 = arith.constant 4 : index
    %c0_15 = arith.constant 0 : index
    %c0_16 = arith.constant 0 : index
    %35 = vector.load %arg2[%c4, %c0_15, %c0_16] : memref<10x96x84xbf16, #tpu.memory_space<vmem>>, vector<1x96x84xbf16>
    %36 = vector.shape_cast %35 : vector<1x96x84xbf16> to vector<96x84xbf16>
    %cst_17 = arith.constant dense<0.000000e+00> : vector<7x84xf32>
    %37 = tpu.matmul %16, %36, %cst_17 {dimension_numbers = #tpu.dot_dimension_numbers<[1], [0], [0], [1], [0, 0, 1, 1], [], []>} : vector<7x96xbf16>, vector<96x84xbf16>, vector<7x84xf32> -> vector<7x84xf32>
    %38 = arith.addf %34, %37 : vector<7x84xf32>
    %c0_18 = arith.constant 0 : index
    %c0_19 = arith.constant 0 : index
    %c0_20 = arith.constant 0 : index
    %39 = vector.load %arg2[%c0_18, %c0_19, %c0_20] : memref<10x96x84xbf16, #tpu.memory_space<vmem>>, vector<1x96x84xbf16>
    %40 = vector.shape_cast %39 : vector<1x96x84xbf16> to vector<96x84xbf16>
    %cst_21 = arith.constant dense<0.000000e+00> : vector<7x84xf32>
    %41 = tpu.matmul %7, %40, %cst_21 {dimension_numbers = #tpu.dot_dimension_numbers<[1], [0], [0], [1], [0, 0, 1, 1], [], []>} : vector<7x96xbf16>, vector<96x84xbf16>, vector<7x84xf32> -> vector<7x84xf32>
    %c1_22 = arith.constant 1 : index
    %c0_23 = arith.constant 0 : index
    %c0_24 = arith.constant 0 : index
    %42 = vector.load %arg2[%c1_22, %c0_23, %c0_24] : memref<10x96x84xbf16, #tpu.memory_space<vmem>>, vector<1x96x84xbf16>
    %43 = vector.shape_cast %42 : vector<1x96x84xbf16> to vector<96x84xbf16>
    %cst_25 = arith.constant dense<0.000000e+00> : vector<7x84xf32>
    %44 = tpu.matmul %10, %43, %cst_25 {dimension_numbers = #tpu.dot_dimension_numbers<[1], [0], [0], [1], [0, 0, 1, 1], [], []>} : vector<7x96xbf16>, vector<96x84xbf16>, vector<7x84xf32> -> vector<7x84xf32>
    %45 = arith.addf %41, %44 : vector<7x84xf32>
    %c2_26 = arith.constant 2 : index
    %c0_27 = arith.constant 0 : index
    %c0_28 = arith.constant 0 : index
    %46 = vector.load %arg2[%c2_26, %c0_27, %c0_28] : memref<10x96x84xbf16, #tpu.memory_space<vmem>>, vector<1x96x84xbf16>
    %47 = vector.shape_cast %46 : vector<1x96x84xbf16> to vector<96x84xbf16>
    %cst_29 = arith.constant dense<0.000000e+00> : vector<7x84xf32>
    %48 = tpu.matmul %13, %47, %cst_29 {dimension_numbers = #tpu.dot_dimension_numbers<[1], [0], [0], [1], [0, 0, 1, 1], [], []>} : vector<7x96xbf16>, vector<96x84xbf16>, vector<7x84xf32> -> vector<7x84xf32>
    %49 = arith.addf %45, %48 : vector<7x84xf32>
    %c3_30 = arith.constant 3 : index
    %c0_31 = arith.constant 0 : index
    %c0_32 = arith.constant 0 : index
    %50 = vector.load %arg2[%c3_30, %c0_31, %c0_32] : memref<10x96x84xbf16, #tpu.memory_space<vmem>>, vector<1x96x84xbf16>
    %51 = vector.shape_cast %50 : vector<1x96x84xbf16> to vector<96x84xbf16>
    %cst_33 = arith.constant dense<0.000000e+00> : vector<7x84xf32>
    %52 = tpu.matmul %16, %51, %cst_33 {dimension_numbers = #tpu.dot_dimension_numbers<[1], [0], [0], [1], [0, 0, 1, 1], [], []>} : vector<7x96xbf16>, vector<96x84xbf16>, vector<7x84xf32> -> vector<7x84xf32>
    %53 = arith.addf %49, %52 : vector<7x84xf32>
    %c4_34 = arith.constant 4 : index
    %c0_35 = arith.constant 0 : index
    %c0_36 = arith.constant 0 : index
    %54 = vector.load %arg2[%c4_34, %c0_35, %c0_36] : memref<10x96x84xbf16, #tpu.memory_space<vmem>>, vector<1x96x84xbf16>
    %55 = vector.shape_cast %54 : vector<1x96x84xbf16> to vector<96x84xbf16>
    %cst_37 = arith.constant dense<0.000000e+00> : vector<7x84xf32>
    %56 = tpu.matmul %19, %55, %cst_37 {dimension_numbers = #tpu.dot_dimension_numbers<[1], [0], [0], [1], [0, 0, 1, 1], [], []>} : vector<7x96xbf16>, vector<96x84xbf16>, vector<7x84xf32> -> vector<7x84xf32>
    %57 = arith.addf %53, %56 : vector<7x84xf32>
    %c5 = arith.constant 5 : index
    %c0_38 = arith.constant 0 : index
    %c0_39 = arith.constant 0 : index
    %58 = vector.load %arg2[%c5, %c0_38, %c0_39] : memref<10x96x84xbf16, #tpu.memory_space<vmem>>, vector<1x96x84xbf16>
    %59 = vector.shape_cast %58 : vector<1x96x84xbf16> to vector<96x84xbf16>
    %cst_40 = arith.constant dense<0.000000e+00> : vector<7x84xf32>
    %60 = tpu.matmul %4, %59, %cst_40 {dimension_numbers = #tpu.dot_dimension_numbers<[1], [0], [0], [1], [0, 0, 1, 1], [], []>} : vector<7x96xbf16>, vector<96x84xbf16>, vector<7x84xf32> -> vector<7x84xf32>
    %c6 = arith.constant 6 : index
    %c0_41 = arith.constant 0 : index
    %c0_42 = arith.constant 0 : index
    %61 = vector.load %arg2[%c6, %c0_41, %c0_42] : memref<10x96x84xbf16, #tpu.memory_space<vmem>>, vector<1x96x84xbf16>
    %62 = vector.shape_cast %61 : vector<1x96x84xbf16> to vector<96x84xbf16>
    %cst_43 = arith.constant dense<0.000000e+00> : vector<7x84xf32>
    %63 = tpu.matmul %7, %62, %cst_43 {dimension_numbers = #tpu.dot_dimension_numbers<[1], [0], [0], [1], [0, 0, 1, 1], [], []>} : vector<7x96xbf16>, vector<96x84xbf16>, vector<7x84xf32> -> vector<7x84xf32>
    %64 = arith.addf %60, %63 : vector<7x84xf32>
    %c7 = arith.constant 7 : index
    %c0_44 = arith.constant 0 : index
    %c0_45 = arith.constant 0 : index
    %65 = vector.load %arg2[%c7, %c0_44, %c0_45] : memref<10x96x84xbf16, #tpu.memory_space<vmem>>, vector<1x96x84xbf16>
    %66 = vector.shape_cast %65 : vector<1x96x84xbf16> to vector<96x84xbf16>
    %cst_46 = arith.constant dense<0.000000e+00> : vector<7x84xf32>
    %67 = tpu.matmul %10, %66, %cst_46 {dimension_numbers = #tpu.dot_dimension_numbers<[1], [0], [0], [1], [0, 0, 1, 1], [], []>} : vector<7x96xbf16>, vector<96x84xbf16>, vector<7x84xf32> -> vector<7x84xf32>
    %68 = arith.addf %64, %67 : vector<7x84xf32>
    %c8 = arith.constant 8 : index
    %c0_47 = arith.constant 0 : index
    %c0_48 = arith.constant 0 : index
    %69 = vector.load %arg2[%c8, %c0_47, %c0_48] : memref<10x96x84xbf16, #tpu.memory_space<vmem>>, vector<1x96x84xbf16>
    %70 = vector.shape_cast %69 : vector<1x96x84xbf16> to vector<96x84xbf16>
    %cst_49 = arith.constant dense<0.000000e+00> : vector<7x84xf32>
    %71 = tpu.matmul %13, %70, %cst_49 {dimension_numbers = #tpu.dot_dimension_numbers<[1], [0], [0], [1], [0, 0, 1, 1], [], []>} : vector<7x96xbf16>, vector<96x84xbf16>, vector<7x84xf32> -> vector<7x84xf32>
    %72 = arith.addf %68, %71 : vector<7x84xf32>
    %c9 = arith.constant 9 : index
    %c0_50 = arith.constant 0 : index
    %c0_51 = arith.constant 0 : index
    %73 = vector.load %arg2[%c9, %c0_50, %c0_51] : memref<10x96x84xbf16, #tpu.memory_space<vmem>>, vector<1x96x84xbf16>
    %74 = vector.shape_cast %73 : vector<1x96x84xbf16> to vector<96x84xbf16>
    %cst_52 = arith.constant dense<0.000000e+00> : vector<7x84xf32>
    %75 = tpu.matmul %16, %74, %cst_52 {dimension_numbers = #tpu.dot_dimension_numbers<[1], [0], [0], [1], [0, 0, 1, 1], [], []>} : vector<7x96xbf16>, vector<96x84xbf16>, vector<7x84xf32> -> vector<7x84xf32>
    %76 = arith.addf %72, %75 : vector<7x84xf32>
    %c5_53 = arith.constant 5 : index
    %c0_54 = arith.constant 0 : index
    %c0_55 = arith.constant 0 : index
    %77 = vector.load %arg2[%c5_53, %c0_54, %c0_55] : memref<10x96x84xbf16, #tpu.memory_space<vmem>>, vector<1x96x84xbf16>
    %78 = vector.shape_cast %77 : vector<1x96x84xbf16> to vector<96x84xbf16>
    %cst_56 = arith.constant dense<0.000000e+00> : vector<7x84xf32>
    %79 = tpu.matmul %7, %78, %cst_56 {dimension_numbers = #tpu.dot_dimension_numbers<[1], [0], [0], [1], [0, 0, 1, 1], [], []>} : vector<7x96xbf16>, vector<96x84xbf16>, vector<7x84xf32> -> vector<7x84xf32>
    %c6_57 = arith.constant 6 : index
    %c0_58 = arith.constant 0 : index
    %c0_59 = arith.constant 0 : index
    %80 = vector.load %arg2[%c6_57, %c0_58, %c0_59] : memref<10x96x84xbf16, #tpu.memory_space<vmem>>, vector<1x96x84xbf16>
    %81 = vector.shape_cast %80 : vector<1x96x84xbf16> to vector<96x84xbf16>
    %cst_60 = arith.constant dense<0.000000e+00> : vector<7x84xf32>
    %82 = tpu.matmul %10, %81, %cst_60 {dimension_numbers = #tpu.dot_dimension_numbers<[1], [0], [0], [1], [0, 0, 1, 1], [], []>} : vector<7x96xbf16>, vector<96x84xbf16>, vector<7x84xf32> -> vector<7x84xf32>
    %83 = arith.addf %79, %82 : vector<7x84xf32>
    %c7_61 = arith.constant 7 : index
    %c0_62 = arith.constant 0 : index
    %c0_63 = arith.constant 0 : index
    %84 = vector.load %arg2[%c7_61, %c0_62, %c0_63] : memref<10x96x84xbf16, #tpu.memory_space<vmem>>, vector<1x96x84xbf16>
    %85 = vector.shape_cast %84 : vector<1x96x84xbf16> to vector<96x84xbf16>
    %cst_64 = arith.constant dense<0.000000e+00> : vector<7x84xf32>
    %86 = tpu.matmul %13, %85, %cst_64 {dimension_numbers = #tpu.dot_dimension_numbers<[1], [0], [0], [1], [0, 0, 1, 1], [], []>} : vector<7x96xbf16>, vector<96x84xbf16>, vector<7x84xf32> -> vector<7x84xf32>
    %87 = arith.addf %83, %86 : vector<7x84xf32>
    %c8_65 = arith.constant 8 : index
    %c0_66 = arith.constant 0 : index
    %c0_67 = arith.constant 0 : index
    %88 = vector.load %arg2[%c8_65, %c0_66, %c0_67] : memref<10x96x84xbf16, #tpu.memory_space<vmem>>, vector<1x96x84xbf16>
    %89 = vector.shape_cast %88 : vector<1x96x84xbf16> to vector<96x84xbf16>
    %cst_68 = arith.constant dense<0.000000e+00> : vector<7x84xf32>
    %90 = tpu.matmul %16, %89, %cst_68 {dimension_numbers = #tpu.dot_dimension_numbers<[1], [0], [0], [1], [0, 0, 1, 1], [], []>} : vector<7x96xbf16>, vector<96x84xbf16>, vector<7x84xf32> -> vector<7x84xf32>
    %91 = arith.addf %87, %90 : vector<7x84xf32>
    %c9_69 = arith.constant 9 : index
    %c0_70 = arith.constant 0 : index
    %c0_71 = arith.constant 0 : index
    %92 = vector.load %arg2[%c9_69, %c0_70, %c0_71] : memref<10x96x84xbf16, #tpu.memory_space<vmem>>, vector<1x96x84xbf16>
    %93 = vector.shape_cast %92 : vector<1x96x84xbf16> to vector<96x84xbf16>
    %cst_72 = arith.constant dense<0.000000e+00> : vector<7x84xf32>
    %94 = tpu.matmul %19, %93, %cst_72 {dimension_numbers = #tpu.dot_dimension_numbers<[1], [0], [0], [1], [0, 0, 1, 1], [], []>} : vector<7x96xbf16>, vector<96x84xbf16>, vector<7x84xf32> -> vector<7x84xf32>
    %95 = arith.addf %91, %94 : vector<7x84xf32>
    %96 = arith.maximumf %38, %57 : vector<7x84xf32>
    %97 = arith.maximumf %76, %95 : vector<7x84xf32>
    %98 = arith.maximumf %96, %97 : vector<7x84xf32>
    %c0_73 = arith.constant 0 : index
    %c0_74 = arith.constant 0 : index
    %99 = vector.load %arg3[%c0_73, %c0_74] : memref<1x84xf32, #tpu.memory_space<vmem>>, vector<1x84xf32>
    %100 = vector.broadcast %99 : vector<1x84xf32> to vector<7x84xf32>
    %101 = arith.addf %98, %100 : vector<7x84xf32>
    %cst_75 = arith.constant 0.000000e+00 : f32
    %102 = vector.broadcast %cst_75 : f32 to vector<7x84xf32>
    %103 = arith.maximumf %101, %102 : vector<7x84xf32>
    %104 = vector.extract_strided_slice %1 {offsets = [2, 0, 0], sizes = [1, 7, 96], strides = [1, 1, 1]} : vector<4x8x96xf32> to vector<1x7x96xf32>
    %105 = vector.shape_cast %104 : vector<1x7x96xf32> to vector<7x96xf32>
    %106 = arith.truncf %105 : vector<7x96xf32> to vector<7x96xbf16>
    %107 = vector.extract_strided_slice %1 {offsets = [3, 0, 0], sizes = [1, 7, 96], strides = [1, 1, 1]} : vector<4x8x96xf32> to vector<1x7x96xf32>
    %108 = vector.shape_cast %107 : vector<1x7x96xf32> to vector<7x96xf32>
    %109 = arith.truncf %108 : vector<7x96xf32> to vector<7x96xbf16>
    %110 = vector.extract_strided_slice %1 {offsets = [0, 1, 0], sizes = [1, 7, 96], strides = [1, 1, 1]} : vector<4x8x96xf32> to vector<1x7x96xf32>
    %111 = vector.shape_cast %110 : vector<1x7x96xf32> to vector<7x96xf32>
    %112 = arith.truncf %111 : vector<7x96xf32> to vector<7x96xbf16>
    %113 = vector.extract_strided_slice %1 {offsets = [1, 1, 0], sizes = [1, 7, 96], strides = [1, 1, 1]} : vector<4x8x96xf32> to vector<1x7x96xf32>
    %114 = vector.shape_cast %113 : vector<1x7x96xf32> to vector<7x96xf32>
    %115 = arith.truncf %114 : vector<7x96xf32> to vector<7x96xbf16>
    %116 = vector.extract_strided_slice %1 {offsets = [2, 1, 0], sizes = [1, 7, 96], strides = [1, 1, 1]} : vector<4x8x96xf32> to vector<1x7x96xf32>
    %117 = vector.shape_cast %116 : vector<1x7x96xf32> to vector<7x96xf32>
    %118 = arith.truncf %117 : vector<7x96xf32> to vector<7x96xbf16>
    %119 = vector.extract_strided_slice %1 {offsets = [3, 1, 0], sizes = [1, 7, 96], strides = [1, 1, 1]} : vector<4x8x96xf32> to vector<1x7x96xf32>
    %120 = vector.shape_cast %119 : vector<1x7x96xf32> to vector<7x96xf32>
    %121 = arith.truncf %120 : vector<7x96xf32> to vector<7x96xbf16>
    %c0_76 = arith.constant 0 : index
    %c0_77 = arith.constant 0 : index
    %c0_78 = arith.constant 0 : index
    %122 = vector.load %arg2[%c0_76, %c0_77, %c0_78] : memref<10x96x84xbf16, #tpu.memory_space<vmem>>, vector<1x96x84xbf16>
    %123 = vector.shape_cast %122 : vector<1x96x84xbf16> to vector<96x84xbf16>
    %cst_79 = arith.constant dense<0.000000e+00> : vector<7x84xf32>
    %124 = tpu.matmul %106, %123, %cst_79 {dimension_numbers = #tpu.dot_dimension_numbers<[1], [0], [0], [1], [0, 0, 1, 1], [], []>} : vector<7x96xbf16>, vector<96x84xbf16>, vector<7x84xf32> -> vector<7x84xf32>
    %c1_80 = arith.constant 1 : index
    %c0_81 = arith.constant 0 : index
    %c0_82 = arith.constant 0 : index
    %125 = vector.load %arg2[%c1_80, %c0_81, %c0_82] : memref<10x96x84xbf16, #tpu.memory_space<vmem>>, vector<1x96x84xbf16>
    %126 = vector.shape_cast %125 : vector<1x96x84xbf16> to vector<96x84xbf16>
    %cst_83 = arith.constant dense<0.000000e+00> : vector<7x84xf32>
    %127 = tpu.matmul %109, %126, %cst_83 {dimension_numbers = #tpu.dot_dimension_numbers<[1], [0], [0], [1], [0, 0, 1, 1], [], []>} : vector<7x96xbf16>, vector<96x84xbf16>, vector<7x84xf32> -> vector<7x84xf32>
    %128 = arith.addf %124, %127 : vector<7x84xf32>
    %c2_84 = arith.constant 2 : index
    %c0_85 = arith.constant 0 : index
    %c0_86 = arith.constant 0 : index
    %129 = vector.load %arg2[%c2_84, %c0_85, %c0_86] : memref<10x96x84xbf16, #tpu.memory_space<vmem>>, vector<1x96x84xbf16>
    %130 = vector.shape_cast %129 : vector<1x96x84xbf16> to vector<96x84xbf16>
    %cst_87 = arith.constant dense<0.000000e+00> : vector<7x84xf32>
    %131 = tpu.matmul %112, %130, %cst_87 {dimension_numbers = #tpu.dot_dimension_numbers<[1], [0], [0], [1], [0, 0, 1, 1], [], []>} : vector<7x96xbf16>, vector<96x84xbf16>, vector<7x84xf32> -> vector<7x84xf32>
    %132 = arith.addf %128, %131 : vector<7x84xf32>
    %c3_88 = arith.constant 3 : index
    %c0_89 = arith.constant 0 : index
    %c0_90 = arith.constant 0 : index
    %133 = vector.load %arg2[%c3_88, %c0_89, %c0_90] : memref<10x96x84xbf16, #tpu.memory_space<vmem>>, vector<1x96x84xbf16>
    %134 = vector.shape_cast %133 : vector<1x96x84xbf16> to vector<96x84xbf16>
    %cst_91 = arith.constant dense<0.000000e+00> : vector<7x84xf32>
    %135 = tpu.matmul %115, %134, %cst_91 {dimension_numbers = #tpu.dot_dimension_numbers<[1], [0], [0], [1], [0, 0, 1, 1], [], []>} : vector<7x96xbf16>, vector<96x84xbf16>, vector<7x84xf32> -> vector<7x84xf32>
    %136 = arith.addf %132, %135 : vector<7x84xf32>
    %c4_92 = arith.constant 4 : index
    %c0_93 = arith.constant 0 : index
    %c0_94 = arith.constant 0 : index
    %137 = vector.load %arg2[%c4_92, %c0_93, %c0_94] : memref<10x96x84xbf16, #tpu.memory_space<vmem>>, vector<1x96x84xbf16>
    %138 = vector.shape_cast %137 : vector<1x96x84xbf16> to vector<96x84xbf16>
    %cst_95 = arith.constant dense<0.000000e+00> : vector<7x84xf32>
    %139 = tpu.matmul %118, %138, %cst_95 {dimension_numbers = #tpu.dot_dimension_numbers<[1], [0], [0], [1], [0, 0, 1, 1], [], []>} : vector<7x96xbf16>, vector<96x84xbf16>, vector<7x84xf32> -> vector<7x84xf32>
    %140 = arith.addf %136, %139 : vector<7x84xf32>
    %c0_96 = arith.constant 0 : index
    %c0_97 = arith.constant 0 : index
    %c0_98 = arith.constant 0 : index
    %141 = vector.load %arg2[%c0_96, %c0_97, %c0_98] : memref<10x96x84xbf16, #tpu.memory_space<vmem>>, vector<1x96x84xbf16>
    %142 = vector.shape_cast %141 : vector<1x96x84xbf16> to vector<96x84xbf16>
    %cst_99 = arith.constant dense<0.000000e+00> : vector<7x84xf32>
    %143 = tpu.matmul %109, %142, %cst_99 {dimension_numbers = #tpu.dot_dimension_numbers<[1], [0], [0], [1], [0, 0, 1, 1], [], []>} : vector<7x96xbf16>, vector<96x84xbf16>, vector<7x84xf32> -> vector<7x84xf32>
    %c1_100 = arith.constant 1 : index
    %c0_101 = arith.constant 0 : index
    %c0_102 = arith.constant 0 : index
    %144 = vector.load %arg2[%c1_100, %c0_101, %c0_102] : memref<10x96x84xbf16, #tpu.memory_space<vmem>>, vector<1x96x84xbf16>
    %145 = vector.shape_cast %144 : vector<1x96x84xbf16> to vector<96x84xbf16>
    %cst_103 = arith.constant dense<0.000000e+00> : vector<7x84xf32>
    %146 = tpu.matmul %112, %145, %cst_103 {dimension_numbers = #tpu.dot_dimension_numbers<[1], [0], [0], [1], [0, 0, 1, 1], [], []>} : vector<7x96xbf16>, vector<96x84xbf16>, vector<7x84xf32> -> vector<7x84xf32>
    %147 = arith.addf %143, %146 : vector<7x84xf32>
    %c2_104 = arith.constant 2 : index
    %c0_105 = arith.constant 0 : index
    %c0_106 = arith.constant 0 : index
    %148 = vector.load %arg2[%c2_104, %c0_105, %c0_106] : memref<10x96x84xbf16, #tpu.memory_space<vmem>>, vector<1x96x84xbf16>
    %149 = vector.shape_cast %148 : vector<1x96x84xbf16> to vector<96x84xbf16>
    %cst_107 = arith.constant dense<0.000000e+00> : vector<7x84xf32>
    %150 = tpu.matmul %115, %149, %cst_107 {dimension_numbers = #tpu.dot_dimension_numbers<[1], [0], [0], [1], [0, 0, 1, 1], [], []>} : vector<7x96xbf16>, vector<96x84xbf16>, vector<7x84xf32> -> vector<7x84xf32>
    %151 = arith.addf %147, %150 : vector<7x84xf32>
    %c3_108 = arith.constant 3 : index
    %c0_109 = arith.constant 0 : index
    %c0_110 = arith.constant 0 : index
    %152 = vector.load %arg2[%c3_108, %c0_109, %c0_110] : memref<10x96x84xbf16, #tpu.memory_space<vmem>>, vector<1x96x84xbf16>
    %153 = vector.shape_cast %152 : vector<1x96x84xbf16> to vector<96x84xbf16>
    %cst_111 = arith.constant dense<0.000000e+00> : vector<7x84xf32>
    %154 = tpu.matmul %118, %153, %cst_111 {dimension_numbers = #tpu.dot_dimension_numbers<[1], [0], [0], [1], [0, 0, 1, 1], [], []>} : vector<7x96xbf16>, vector<96x84xbf16>, vector<7x84xf32> -> vector<7x84xf32>
    %155 = arith.addf %151, %154 : vector<7x84xf32>
    %c4_112 = arith.constant 4 : index
    %c0_113 = arith.constant 0 : index
    %c0_114 = arith.constant 0 : index
    %156 = vector.load %arg2[%c4_112, %c0_113, %c0_114] : memref<10x96x84xbf16, #tpu.memory_space<vmem>>, vector<1x96x84xbf16>
    %157 = vector.shape_cast %156 : vector<1x96x84xbf16> to vector<96x84xbf16>
    %cst_115 = arith.constant dense<0.000000e+00> : vector<7x84xf32>
    %158 = tpu.matmul %121, %157, %cst_115 {dimension_numbers = #tpu.dot_dimension_numbers<[1], [0], [0], [1], [0, 0, 1, 1], [], []>} : vector<7x96xbf16>, vector<96x84xbf16>, vector<7x84xf32> -> vector<7x84xf32>
    %159 = arith.addf %155, %158 : vector<7x84xf32>
    %c5_116 = arith.constant 5 : index
    %c0_117 = arith.constant 0 : index
    %c0_118 = arith.constant 0 : index
    %160 = vector.load %arg2[%c5_116, %c0_117, %c0_118] : memref<10x96x84xbf16, #tpu.memory_space<vmem>>, vector<1x96x84xbf16>
    %161 = vector.shape_cast %160 : vector<1x96x84xbf16> to vector<96x84xbf16>
    %cst_119 = arith.constant dense<0.000000e+00> : vector<7x84xf32>
    %162 = tpu.matmul %106, %161, %cst_119 {dimension_numbers = #tpu.dot_dimension_numbers<[1], [0], [0], [1], [0, 0, 1, 1], [], []>} : vector<7x96xbf16>, vector<96x84xbf16>, vector<7x84xf32> -> vector<7x84xf32>
    %c6_120 = arith.constant 6 : index
    %c0_121 = arith.constant 0 : index
    %c0_122 = arith.constant 0 : index
    %163 = vector.load %arg2[%c6_120, %c0_121, %c0_122] : memref<10x96x84xbf16, #tpu.memory_space<vmem>>, vector<1x96x84xbf16>
    %164 = vector.shape_cast %163 : vector<1x96x84xbf16> to vector<96x84xbf16>
    %cst_123 = arith.constant dense<0.000000e+00> : vector<7x84xf32>
    %165 = tpu.matmul %109, %164, %cst_123 {dimension_numbers = #tpu.dot_dimension_numbers<[1], [0], [0], [1], [0, 0, 1, 1], [], []>} : vector<7x96xbf16>, vector<96x84xbf16>, vector<7x84xf32> -> vector<7x84xf32>
    %166 = arith.addf %162, %165 : vector<7x84xf32>
    %c7_124 = arith.constant 7 : index
    %c0_125 = arith.constant 0 : index
    %c0_126 = arith.constant 0 : index
    %167 = vector.load %arg2[%c7_124, %c0_125, %c0_126] : memref<10x96x84xbf16, #tpu.memory_space<vmem>>, vector<1x96x84xbf16>
    %168 = vector.shape_cast %167 : vector<1x96x84xbf16> to vector<96x84xbf16>
    %cst_127 = arith.constant dense<0.000000e+00> : vector<7x84xf32>
    %169 = tpu.matmul %112, %168, %cst_127 {dimension_numbers = #tpu.dot_dimension_numbers<[1], [0], [0], [1], [0, 0, 1, 1], [], []>} : vector<7x96xbf16>, vector<96x84xbf16>, vector<7x84xf32> -> vector<7x84xf32>
    %170 = arith.addf %166, %169 : vector<7x84xf32>
    %c8_128 = arith.constant 8 : index
    %c0_129 = arith.constant 0 : index
    %c0_130 = arith.constant 0 : index
    %171 = vector.load %arg2[%c8_128, %c0_129, %c0_130] : memref<10x96x84xbf16, #tpu.memory_space<vmem>>, vector<1x96x84xbf16>
    %172 = vector.shape_cast %171 : vector<1x96x84xbf16> to vector<96x84xbf16>
    %cst_131 = arith.constant dense<0.000000e+00> : vector<7x84xf32>
    %173 = tpu.matmul %115, %172, %cst_131 {dimension_numbers = #tpu.dot_dimension_numbers<[1], [0], [0], [1], [0, 0, 1, 1], [], []>} : vector<7x96xbf16>, vector<96x84xbf16>, vector<7x84xf32> -> vector<7x84xf32>
    %174 = arith.addf %170, %173 : vector<7x84xf32>
    %c9_132 = arith.constant 9 : index
    %c0_133 = arith.constant 0 : index
    %c0_134 = arith.constant 0 : index
    %175 = vector.load %arg2[%c9_132, %c0_133, %c0_134] : memref<10x96x84xbf16, #tpu.memory_space<vmem>>, vector<1x96x84xbf16>
    %176 = vector.shape_cast %175 : vector<1x96x84xbf16> to vector<96x84xbf16>
    %cst_135 = arith.constant dense<0.000000e+00> : vector<7x84xf32>
    %177 = tpu.matmul %118, %176, %cst_135 {dimension_numbers = #tpu.dot_dimension_numbers<[1], [0], [0], [1], [0, 0, 1, 1], [], []>} : vector<7x96xbf16>, vector<96x84xbf16>, vector<7x84xf32> -> vector<7x84xf32>
    %178 = arith.addf %174, %177 : vector<7x84xf32>
    %c5_136 = arith.constant 5 : index
    %c0_137 = arith.constant 0 : index
    %c0_138 = arith.constant 0 : index
    %179 = vector.load %arg2[%c5_136, %c0_137, %c0_138] : memref<10x96x84xbf16, #tpu.memory_space<vmem>>, vector<1x96x84xbf16>
    %180 = vector.shape_cast %179 : vector<1x96x84xbf16> to vector<96x84xbf16>
    %cst_139 = arith.constant dense<0.000000e+00> : vector<7x84xf32>
    %181 = tpu.matmul %109, %180, %cst_139 {dimension_numbers = #tpu.dot_dimension_numbers<[1], [0], [0], [1], [0, 0, 1, 1], [], []>} : vector<7x96xbf16>, vector<96x84xbf16>, vector<7x84xf32> -> vector<7x84xf32>
    %c6_140 = arith.constant 6 : index
    %c0_141 = arith.constant 0 : index
    %c0_142 = arith.constant 0 : index
    %182 = vector.load %arg2[%c6_140, %c0_141, %c0_142] : memref<10x96x84xbf16, #tpu.memory_space<vmem>>, vector<1x96x84xbf16>
    %183 = vector.shape_cast %182 : vector<1x96x84xbf16> to vector<96x84xbf16>
    %cst_143 = arith.constant dense<0.000000e+00> : vector<7x84xf32>
    %184 = tpu.matmul %112, %183, %cst_143 {dimension_numbers = #tpu.dot_dimension_numbers<[1], [0], [0], [1], [0, 0, 1, 1], [], []>} : vector<7x96xbf16>, vector<96x84xbf16>, vector<7x84xf32> -> vector<7x84xf32>
    %185 = arith.addf %181, %184 : vector<7x84xf32>
    %c7_144 = arith.constant 7 : index
    %c0_145 = arith.constant 0 : index
    %c0_146 = arith.constant 0 : index
    %186 = vector.load %arg2[%c7_144, %c0_145, %c0_146] : memref<10x96x84xbf16, #tpu.memory_space<vmem>>, vector<1x96x84xbf16>
    %187 = vector.shape_cast %186 : vector<1x96x84xbf16> to vector<96x84xbf16>
    %cst_147 = arith.constant dense<0.000000e+00> : vector<7x84xf32>
    %188 = tpu.matmul %115, %187, %cst_147 {dimension_numbers = #tpu.dot_dimension_numbers<[1], [0], [0], [1], [0, 0, 1, 1], [], []>} : vector<7x96xbf16>, vector<96x84xbf16>, vector<7x84xf32> -> vector<7x84xf32>
    %189 = arith.addf %185, %188 : vector<7x84xf32>
    %c8_148 = arith.constant 8 : index
    %c0_149 = arith.constant 0 : index
    %c0_150 = arith.constant 0 : index
    %190 = vector.load %arg2[%c8_148, %c0_149, %c0_150] : memref<10x96x84xbf16, #tpu.memory_space<vmem>>, vector<1x96x84xbf16>
    %191 = vector.shape_cast %190 : vector<1x96x84xbf16> to vector<96x84xbf16>
    %cst_151 = arith.constant dense<0.000000e+00> : vector<7x84xf32>
    %192 = tpu.matmul %118, %191, %cst_151 {dimension_numbers = #tpu.dot_dimension_numbers<[1], [0], [0], [1], [0, 0, 1, 1], [], []>} : vector<7x96xbf16>, vector<96x84xbf16>, vector<7x84xf32> -> vector<7x84xf32>
    %193 = arith.addf %189, %192 : vector<7x84xf32>
    %c9_152 = arith.constant 9 : index
    %c0_153 = arith.constant 0 : index
    %c0_154 = arith.constant 0 : index
    %194 = vector.load %arg2[%c9_152, %c0_153, %c0_154] : memref<10x96x84xbf16, #tpu.memory_space<vmem>>, vector<1x96x84xbf16>
    %195 = vector.shape_cast %194 : vector<1x96x84xbf16> to vector<96x84xbf16>
    %cst_155 = arith.constant dense<0.000000e+00> : vector<7x84xf32>
    %196 = tpu.matmul %121, %195, %cst_155 {dimension_numbers = #tpu.dot_dimension_numbers<[1], [0], [0], [1], [0, 0, 1, 1], [], []>} : vector<7x96xbf16>, vector<96x84xbf16>, vector<7x84xf32> -> vector<7x84xf32>
    %197 = arith.addf %193, %196 : vector<7x84xf32>
    %198 = arith.maximumf %140, %159 : vector<7x84xf32>
    %199 = arith.maximumf %178, %197 : vector<7x84xf32>
    %200 = arith.maximumf %198, %199 : vector<7x84xf32>
    %c0_156 = arith.constant 0 : index
    %c0_157 = arith.constant 0 : index
    %201 = vector.load %arg3[%c0_156, %c0_157] : memref<1x84xf32, #tpu.memory_space<vmem>>, vector<1x84xf32>
    %202 = vector.broadcast %201 : vector<1x84xf32> to vector<7x84xf32>
    %203 = arith.addf %200, %202 : vector<7x84xf32>
    %cst_158 = arith.constant 0.000000e+00 : f32
    %204 = vector.broadcast %cst_158 : f32 to vector<7x84xf32>
    %205 = arith.maximumf %203, %204 : vector<7x84xf32>
    %206 = vector.extract_strided_slice %103 {offsets = [0, 0], sizes = [5, 84], strides = [1, 1]} : vector<7x84xf32> to vector<5x84xf32>
    %207 = arith.truncf %206 : vector<5x84xf32> to vector<5x84xbf16>
    %208 = vector.extract_strided_slice %205 {offsets = [0, 0], sizes = [5, 84], strides = [1, 1]} : vector<7x84xf32> to vector<5x84xf32>
    %209 = arith.truncf %208 : vector<5x84xf32> to vector<5x84xbf16>
    %210 = vector.extract_strided_slice %103 {offsets = [1, 0], sizes = [5, 84], strides = [1, 1]} : vector<7x84xf32> to vector<5x84xf32>
    %211 = arith.truncf %210 : vector<5x84xf32> to vector<5x84xbf16>
    %212 = vector.extract_strided_slice %205 {offsets = [1, 0], sizes = [5, 84], strides = [1, 1]} : vector<7x84xf32> to vector<5x84xf32>
    %213 = arith.truncf %212 : vector<5x84xf32> to vector<5x84xbf16>
    %214 = vector.extract_strided_slice %103 {offsets = [2, 0], sizes = [5, 84], strides = [1, 1]} : vector<7x84xf32> to vector<5x84xf32>
    %215 = arith.truncf %214 : vector<5x84xf32> to vector<5x84xbf16>
    %216 = vector.extract_strided_slice %205 {offsets = [2, 0], sizes = [5, 84], strides = [1, 1]} : vector<7x84xf32> to vector<5x84xf32>
    %217 = arith.truncf %216 : vector<5x84xf32> to vector<5x84xbf16>
    %c0_159 = arith.constant 0 : index
    %c0_160 = arith.constant 0 : index
    %c0_161 = arith.constant 0 : index
    %218 = vector.load %arg4[%c0_159, %c0_160, %c0_161] : memref<10x84x80xbf16, #tpu.memory_space<vmem>>, vector<1x84x80xbf16>
    %219 = vector.shape_cast %218 : vector<1x84x80xbf16> to vector<84x80xbf16>
    %cst_162 = arith.constant dense<0.000000e+00> : vector<5x80xf32>
    %220 = tpu.matmul %207, %219, %cst_162 {dimension_numbers = #tpu.dot_dimension_numbers<[1], [0], [0], [1], [0, 0, 1, 1], [], []>} : vector<5x84xbf16>, vector<84x80xbf16>, vector<5x80xf32> -> vector<5x80xf32>
    %c1_163 = arith.constant 1 : index
    %c0_164 = arith.constant 0 : index
    %c0_165 = arith.constant 0 : index
    %221 = vector.load %arg4[%c1_163, %c0_164, %c0_165] : memref<10x84x80xbf16, #tpu.memory_space<vmem>>, vector<1x84x80xbf16>
    %222 = vector.shape_cast %221 : vector<1x84x80xbf16> to vector<84x80xbf16>
    %cst_166 = arith.constant dense<0.000000e+00> : vector<5x80xf32>
    %223 = tpu.matmul %209, %222, %cst_166 {dimension_numbers = #tpu.dot_dimension_numbers<[1], [0], [0], [1], [0, 0, 1, 1], [], []>} : vector<5x84xbf16>, vector<84x80xbf16>, vector<5x80xf32> -> vector<5x80xf32>
    %224 = arith.addf %220, %223 : vector<5x80xf32>
    %c2_167 = arith.constant 2 : index
    %c0_168 = arith.constant 0 : index
    %c0_169 = arith.constant 0 : index
    %225 = vector.load %arg4[%c2_167, %c0_168, %c0_169] : memref<10x84x80xbf16, #tpu.memory_space<vmem>>, vector<1x84x80xbf16>
    %226 = vector.shape_cast %225 : vector<1x84x80xbf16> to vector<84x80xbf16>
    %cst_170 = arith.constant dense<0.000000e+00> : vector<5x80xf32>
    %227 = tpu.matmul %211, %226, %cst_170 {dimension_numbers = #tpu.dot_dimension_numbers<[1], [0], [0], [1], [0, 0, 1, 1], [], []>} : vector<5x84xbf16>, vector<84x80xbf16>, vector<5x80xf32> -> vector<5x80xf32>
    %228 = arith.addf %224, %227 : vector<5x80xf32>
    %c3_171 = arith.constant 3 : index
    %c0_172 = arith.constant 0 : index
    %c0_173 = arith.constant 0 : index
    %229 = vector.load %arg4[%c3_171, %c0_172, %c0_173] : memref<10x84x80xbf16, #tpu.memory_space<vmem>>, vector<1x84x80xbf16>
    %230 = vector.shape_cast %229 : vector<1x84x80xbf16> to vector<84x80xbf16>
    %cst_174 = arith.constant dense<0.000000e+00> : vector<5x80xf32>
    %231 = tpu.matmul %213, %230, %cst_174 {dimension_numbers = #tpu.dot_dimension_numbers<[1], [0], [0], [1], [0, 0, 1, 1], [], []>} : vector<5x84xbf16>, vector<84x80xbf16>, vector<5x80xf32> -> vector<5x80xf32>
    %232 = arith.addf %228, %231 : vector<5x80xf32>
    %c4_175 = arith.constant 4 : index
    %c0_176 = arith.constant 0 : index
    %c0_177 = arith.constant 0 : index
    %233 = vector.load %arg4[%c4_175, %c0_176, %c0_177] : memref<10x84x80xbf16, #tpu.memory_space<vmem>>, vector<1x84x80xbf16>
    %234 = vector.shape_cast %233 : vector<1x84x80xbf16> to vector<84x80xbf16>
    %cst_178 = arith.constant dense<0.000000e+00> : vector<5x80xf32>
    %235 = tpu.matmul %215, %234, %cst_178 {dimension_numbers = #tpu.dot_dimension_numbers<[1], [0], [0], [1], [0, 0, 1, 1], [], []>} : vector<5x84xbf16>, vector<84x80xbf16>, vector<5x80xf32> -> vector<5x80xf32>
    %236 = arith.addf %232, %235 : vector<5x80xf32>
    %c0_179 = arith.constant 0 : index
    %c0_180 = arith.constant 0 : index
    %c0_181 = arith.constant 0 : index
    %237 = vector.load %arg4[%c0_179, %c0_180, %c0_181] : memref<10x84x80xbf16, #tpu.memory_space<vmem>>, vector<1x84x80xbf16>
    %238 = vector.shape_cast %237 : vector<1x84x80xbf16> to vector<84x80xbf16>
    %cst_182 = arith.constant dense<0.000000e+00> : vector<5x80xf32>
    %239 = tpu.matmul %209, %238, %cst_182 {dimension_numbers = #tpu.dot_dimension_numbers<[1], [0], [0], [1], [0, 0, 1, 1], [], []>} : vector<5x84xbf16>, vector<84x80xbf16>, vector<5x80xf32> -> vector<5x80xf32>
    %c1_183 = arith.constant 1 : index
    %c0_184 = arith.constant 0 : index
    %c0_185 = arith.constant 0 : index
    %240 = vector.load %arg4[%c1_183, %c0_184, %c0_185] : memref<10x84x80xbf16, #tpu.memory_space<vmem>>, vector<1x84x80xbf16>
    %241 = vector.shape_cast %240 : vector<1x84x80xbf16> to vector<84x80xbf16>
    %cst_186 = arith.constant dense<0.000000e+00> : vector<5x80xf32>
    %242 = tpu.matmul %211, %241, %cst_186 {dimension_numbers = #tpu.dot_dimension_numbers<[1], [0], [0], [1], [0, 0, 1, 1], [], []>} : vector<5x84xbf16>, vector<84x80xbf16>, vector<5x80xf32> -> vector<5x80xf32>
    %243 = arith.addf %239, %242 : vector<5x80xf32>
    %c2_187 = arith.constant 2 : index
    %c0_188 = arith.constant 0 : index
    %c0_189 = arith.constant 0 : index
    %244 = vector.load %arg4[%c2_187, %c0_188, %c0_189] : memref<10x84x80xbf16, #tpu.memory_space<vmem>>, vector<1x84x80xbf16>
    %245 = vector.shape_cast %244 : vector<1x84x80xbf16> to vector<84x80xbf16>
    %cst_190 = arith.constant dense<0.000000e+00> : vector<5x80xf32>
    %246 = tpu.matmul %213, %245, %cst_190 {dimension_numbers = #tpu.dot_dimension_numbers<[1], [0], [0], [1], [0, 0, 1, 1], [], []>} : vector<5x84xbf16>, vector<84x80xbf16>, vector<5x80xf32> -> vector<5x80xf32>
    %247 = arith.addf %243, %246 : vector<5x80xf32>
    %c3_191 = arith.constant 3 : index
    %c0_192 = arith.constant 0 : index
    %c0_193 = arith.constant 0 : index
    %248 = vector.load %arg4[%c3_191, %c0_192, %c0_193] : memref<10x84x80xbf16, #tpu.memory_space<vmem>>, vector<1x84x80xbf16>
    %249 = vector.shape_cast %248 : vector<1x84x80xbf16> to vector<84x80xbf16>
    %cst_194 = arith.constant dense<0.000000e+00> : vector<5x80xf32>
    %250 = tpu.matmul %215, %249, %cst_194 {dimension_numbers = #tpu.dot_dimension_numbers<[1], [0], [0], [1], [0, 0, 1, 1], [], []>} : vector<5x84xbf16>, vector<84x80xbf16>, vector<5x80xf32> -> vector<5x80xf32>
    %251 = arith.addf %247, %250 : vector<5x80xf32>
    %c4_195 = arith.constant 4 : index
    %c0_196 = arith.constant 0 : index
    %c0_197 = arith.constant 0 : index
    %252 = vector.load %arg4[%c4_195, %c0_196, %c0_197] : memref<10x84x80xbf16, #tpu.memory_space<vmem>>, vector<1x84x80xbf16>
    %253 = vector.shape_cast %252 : vector<1x84x80xbf16> to vector<84x80xbf16>
    %cst_198 = arith.constant dense<0.000000e+00> : vector<5x80xf32>
    %254 = tpu.matmul %217, %253, %cst_198 {dimension_numbers = #tpu.dot_dimension_numbers<[1], [0], [0], [1], [0, 0, 1, 1], [], []>} : vector<5x84xbf16>, vector<84x80xbf16>, vector<5x80xf32> -> vector<5x80xf32>
    %255 = arith.addf %251, %254 : vector<5x80xf32>
    %c5_199 = arith.constant 5 : index
    %c0_200 = arith.constant 0 : index
    %c0_201 = arith.constant 0 : index
    %256 = vector.load %arg4[%c5_199, %c0_200, %c0_201] : memref<10x84x80xbf16, #tpu.memory_space<vmem>>, vector<1x84x80xbf16>
    %257 = vector.shape_cast %256 : vector<1x84x80xbf16> to vector<84x80xbf16>
    %cst_202 = arith.constant dense<0.000000e+00> : vector<5x80xf32>
    %258 = tpu.matmul %207, %257, %cst_202 {dimension_numbers = #tpu.dot_dimension_numbers<[1], [0], [0], [1], [0, 0, 1, 1], [], []>} : vector<5x84xbf16>, vector<84x80xbf16>, vector<5x80xf32> -> vector<5x80xf32>
    %c6_203 = arith.constant 6 : index
    %c0_204 = arith.constant 0 : index
    %c0_205 = arith.constant 0 : index
    %259 = vector.load %arg4[%c6_203, %c0_204, %c0_205] : memref<10x84x80xbf16, #tpu.memory_space<vmem>>, vector<1x84x80xbf16>
    %260 = vector.shape_cast %259 : vector<1x84x80xbf16> to vector<84x80xbf16>
    %cst_206 = arith.constant dense<0.000000e+00> : vector<5x80xf32>
    %261 = tpu.matmul %209, %260, %cst_206 {dimension_numbers = #tpu.dot_dimension_numbers<[1], [0], [0], [1], [0, 0, 1, 1], [], []>} : vector<5x84xbf16>, vector<84x80xbf16>, vector<5x80xf32> -> vector<5x80xf32>
    %262 = arith.addf %258, %261 : vector<5x80xf32>
    %c7_207 = arith.constant 7 : index
    %c0_208 = arith.constant 0 : index
    %c0_209 = arith.constant 0 : index
    %263 = vector.load %arg4[%c7_207, %c0_208, %c0_209] : memref<10x84x80xbf16, #tpu.memory_space<vmem>>, vector<1x84x80xbf16>
    %264 = vector.shape_cast %263 : vector<1x84x80xbf16> to vector<84x80xbf16>
    %cst_210 = arith.constant dense<0.000000e+00> : vector<5x80xf32>
    %265 = tpu.matmul %211, %264, %cst_210 {dimension_numbers = #tpu.dot_dimension_numbers<[1], [0], [0], [1], [0, 0, 1, 1], [], []>} : vector<5x84xbf16>, vector<84x80xbf16>, vector<5x80xf32> -> vector<5x80xf32>
    %266 = arith.addf %262, %265 : vector<5x80xf32>
    %c8_211 = arith.constant 8 : index
    %c0_212 = arith.constant 0 : index
    %c0_213 = arith.constant 0 : index
    %267 = vector.load %arg4[%c8_211, %c0_212, %c0_213] : memref<10x84x80xbf16, #tpu.memory_space<vmem>>, vector<1x84x80xbf16>
    %268 = vector.shape_cast %267 : vector<1x84x80xbf16> to vector<84x80xbf16>
    %cst_214 = arith.constant dense<0.000000e+00> : vector<5x80xf32>
    %269 = tpu.matmul %213, %268, %cst_214 {dimension_numbers = #tpu.dot_dimension_numbers<[1], [0], [0], [1], [0, 0, 1, 1], [], []>} : vector<5x84xbf16>, vector<84x80xbf16>, vector<5x80xf32> -> vector<5x80xf32>
    %270 = arith.addf %266, %269 : vector<5x80xf32>
    %c9_215 = arith.constant 9 : index
    %c0_216 = arith.constant 0 : index
    %c0_217 = arith.constant 0 : index
    %271 = vector.load %arg4[%c9_215, %c0_216, %c0_217] : memref<10x84x80xbf16, #tpu.memory_space<vmem>>, vector<1x84x80xbf16>
    %272 = vector.shape_cast %271 : vector<1x84x80xbf16> to vector<84x80xbf16>
    %cst_218 = arith.constant dense<0.000000e+00> : vector<5x80xf32>
    %273 = tpu.matmul %215, %272, %cst_218 {dimension_numbers = #tpu.dot_dimension_numbers<[1], [0], [0], [1], [0, 0, 1, 1], [], []>} : vector<5x84xbf16>, vector<84x80xbf16>, vector<5x80xf32> -> vector<5x80xf32>
    %274 = arith.addf %270, %273 : vector<5x80xf32>
    %c5_219 = arith.constant 5 : index
    %c0_220 = arith.constant 0 : index
    %c0_221 = arith.constant 0 : index
    %275 = vector.load %arg4[%c5_219, %c0_220, %c0_221] : memref<10x84x80xbf16, #tpu.memory_space<vmem>>, vector<1x84x80xbf16>
    %276 = vector.shape_cast %275 : vector<1x84x80xbf16> to vector<84x80xbf16>
    %cst_222 = arith.constant dense<0.000000e+00> : vector<5x80xf32>
    %277 = tpu.matmul %209, %276, %cst_222 {dimension_numbers = #tpu.dot_dimension_numbers<[1], [0], [0], [1], [0, 0, 1, 1], [], []>} : vector<5x84xbf16>, vector<84x80xbf16>, vector<5x80xf32> -> vector<5x80xf32>
    %c6_223 = arith.constant 6 : index
    %c0_224 = arith.constant 0 : index
    %c0_225 = arith.constant 0 : index
    %278 = vector.load %arg4[%c6_223, %c0_224, %c0_225] : memref<10x84x80xbf16, #tpu.memory_space<vmem>>, vector<1x84x80xbf16>
    %279 = vector.shape_cast %278 : vector<1x84x80xbf16> to vector<84x80xbf16>
    %cst_226 = arith.constant dense<0.000000e+00> : vector<5x80xf32>
    %280 = tpu.matmul %211, %279, %cst_226 {dimension_numbers = #tpu.dot_dimension_numbers<[1], [0], [0], [1], [0, 0, 1, 1], [], []>} : vector<5x84xbf16>, vector<84x80xbf16>, vector<5x80xf32> -> vector<5x80xf32>
    %281 = arith.addf %277, %280 : vector<5x80xf32>
    %c7_227 = arith.constant 7 : index
    %c0_228 = arith.constant 0 : index
    %c0_229 = arith.constant 0 : index
    %282 = vector.load %arg4[%c7_227, %c0_228, %c0_229] : memref<10x84x80xbf16, #tpu.memory_space<vmem>>, vector<1x84x80xbf16>
    %283 = vector.shape_cast %282 : vector<1x84x80xbf16> to vector<84x80xbf16>
    %cst_230 = arith.constant dense<0.000000e+00> : vector<5x80xf32>
    %284 = tpu.matmul %213, %283, %cst_230 {dimension_numbers = #tpu.dot_dimension_numbers<[1], [0], [0], [1], [0, 0, 1, 1], [], []>} : vector<5x84xbf16>, vector<84x80xbf16>, vector<5x80xf32> -> vector<5x80xf32>
    %285 = arith.addf %281, %284 : vector<5x80xf32>
    %c8_231 = arith.constant 8 : index
    %c0_232 = arith.constant 0 : index
    %c0_233 = arith.constant 0 : index
    %286 = vector.load %arg4[%c8_231, %c0_232, %c0_233] : memref<10x84x80xbf16, #tpu.memory_space<vmem>>, vector<1x84x80xbf16>
    %287 = vector.shape_cast %286 : vector<1x84x80xbf16> to vector<84x80xbf16>
    %cst_234 = arith.constant dense<0.000000e+00> : vector<5x80xf32>
    %288 = tpu.matmul %215, %287, %cst_234 {dimension_numbers = #tpu.dot_dimension_numbers<[1], [0], [0], [1], [0, 0, 1, 1], [], []>} : vector<5x84xbf16>, vector<84x80xbf16>, vector<5x80xf32> -> vector<5x80xf32>
    %289 = arith.addf %285, %288 : vector<5x80xf32>
    %c9_235 = arith.constant 9 : index
    %c0_236 = arith.constant 0 : index
    %c0_237 = arith.constant 0 : index
    %290 = vector.load %arg4[%c9_235, %c0_236, %c0_237] : memref<10x84x80xbf16, #tpu.memory_space<vmem>>, vector<1x84x80xbf16>
    %291 = vector.shape_cast %290 : vector<1x84x80xbf16> to vector<84x80xbf16>
    %cst_238 = arith.constant dense<0.000000e+00> : vector<5x80xf32>
    %292 = tpu.matmul %217, %291, %cst_238 {dimension_numbers = #tpu.dot_dimension_numbers<[1], [0], [0], [1], [0, 0, 1, 1], [], []>} : vector<5x84xbf16>, vector<84x80xbf16>, vector<5x80xf32> -> vector<5x80xf32>
    %293 = arith.addf %289, %292 : vector<5x80xf32>
    %294 = arith.maximumf %236, %255 : vector<5x80xf32>
    %295 = arith.maximumf %274, %293 : vector<5x80xf32>
    %296 = arith.maximumf %294, %295 : vector<5x80xf32>
    %c0_239 = arith.constant 0 : index
    %c0_240 = arith.constant 0 : index
    %297 = vector.load %arg5[%c0_239, %c0_240] : memref<1x80xf32, #tpu.memory_space<vmem>>, vector<1x80xf32>
    %298 = vector.broadcast %297 : vector<1x80xf32> to vector<5x80xf32>
    %299 = arith.addf %296, %298 : vector<5x80xf32>
    %cst_241 = arith.constant 0.000000e+00 : f32
    %300 = vector.broadcast %cst_241 : f32 to vector<5x80xf32>
    %301 = arith.maximumf %299, %300 : vector<5x80xf32>
    %302 = vector.extract_strided_slice %301 {offsets = [0, 0], sizes = [1, 80], strides = [1, 1]} : vector<5x80xf32> to vector<1x80xf32>
    %303 = arith.truncf %302 : vector<1x80xf32> to vector<1x80xbf16>
    %c0_242 = arith.constant 0 : index
    %c0_243 = arith.constant 0 : index
    %c0_244 = arith.constant 0 : index
    %304 = vector.load %arg6[%c0_242, %c0_243, %c0_244] : memref<5x80x800xbf16, #tpu.memory_space<vmem>>, vector<1x80x800xbf16>
    %305 = vector.shape_cast %304 : vector<1x80x800xbf16> to vector<80x800xbf16>
    %cst_245 = arith.constant dense<0.000000e+00> : vector<1x800xf32>
    %306 = tpu.matmul %303, %305, %cst_245 {dimension_numbers = #tpu.dot_dimension_numbers<[1], [0], [0], [1], [0, 0, 1, 1], [], []>} : vector<1x80xbf16>, vector<80x800xbf16>, vector<1x800xf32> -> vector<1x800xf32>
    %307 = vector.extract_strided_slice %301 {offsets = [1, 0], sizes = [1, 80], strides = [1, 1]} : vector<5x80xf32> to vector<1x80xf32>
    %308 = arith.truncf %307 : vector<1x80xf32> to vector<1x80xbf16>
    %c1_246 = arith.constant 1 : index
    %c0_247 = arith.constant 0 : index
    %c0_248 = arith.constant 0 : index
    %309 = vector.load %arg6[%c1_246, %c0_247, %c0_248] : memref<5x80x800xbf16, #tpu.memory_space<vmem>>, vector<1x80x800xbf16>
    %310 = vector.shape_cast %309 : vector<1x80x800xbf16> to vector<80x800xbf16>
    %cst_249 = arith.constant dense<0.000000e+00> : vector<1x800xf32>
    %311 = tpu.matmul %308, %310, %cst_249 {dimension_numbers = #tpu.dot_dimension_numbers<[1], [0], [0], [1], [0, 0, 1, 1], [], []>} : vector<1x80xbf16>, vector<80x800xbf16>, vector<1x800xf32> -> vector<1x800xf32>
    %312 = arith.addf %306, %311 : vector<1x800xf32>
    %313 = vector.extract_strided_slice %301 {offsets = [2, 0], sizes = [1, 80], strides = [1, 1]} : vector<5x80xf32> to vector<1x80xf32>
    %314 = arith.truncf %313 : vector<1x80xf32> to vector<1x80xbf16>
    %c2_250 = arith.constant 2 : index
    %c0_251 = arith.constant 0 : index
    %c0_252 = arith.constant 0 : index
    %315 = vector.load %arg6[%c2_250, %c0_251, %c0_252] : memref<5x80x800xbf16, #tpu.memory_space<vmem>>, vector<1x80x800xbf16>
    %316 = vector.shape_cast %315 : vector<1x80x800xbf16> to vector<80x800xbf16>
    %cst_253 = arith.constant dense<0.000000e+00> : vector<1x800xf32>
    %317 = tpu.matmul %314, %316, %cst_253 {dimension_numbers = #tpu.dot_dimension_numbers<[1], [0], [0], [1], [0, 0, 1, 1], [], []>} : vector<1x80xbf16>, vector<80x800xbf16>, vector<1x800xf32> -> vector<1x800xf32>
    %318 = arith.addf %312, %317 : vector<1x800xf32>
    %319 = vector.extract_strided_slice %301 {offsets = [3, 0], sizes = [1, 80], strides = [1, 1]} : vector<5x80xf32> to vector<1x80xf32>
    %320 = arith.truncf %319 : vector<1x80xf32> to vector<1x80xbf16>
    %c3_254 = arith.constant 3 : index
    %c0_255 = arith.constant 0 : index
    %c0_256 = arith.constant 0 : index
    %321 = vector.load %arg6[%c3_254, %c0_255, %c0_256] : memref<5x80x800xbf16, #tpu.memory_space<vmem>>, vector<1x80x800xbf16>
    %322 = vector.shape_cast %321 : vector<1x80x800xbf16> to vector<80x800xbf16>
    %cst_257 = arith.constant dense<0.000000e+00> : vector<1x800xf32>
    %323 = tpu.matmul %320, %322, %cst_257 {dimension_numbers = #tpu.dot_dimension_numbers<[1], [0], [0], [1], [0, 0, 1, 1], [], []>} : vector<1x80xbf16>, vector<80x800xbf16>, vector<1x800xf32> -> vector<1x800xf32>
    %324 = arith.addf %318, %323 : vector<1x800xf32>
    %325 = vector.extract_strided_slice %301 {offsets = [4, 0], sizes = [1, 80], strides = [1, 1]} : vector<5x80xf32> to vector<1x80xf32>
    %326 = arith.truncf %325 : vector<1x80xf32> to vector<1x80xbf16>
    %c4_258 = arith.constant 4 : index
    %c0_259 = arith.constant 0 : index
    %c0_260 = arith.constant 0 : index
    %327 = vector.load %arg6[%c4_258, %c0_259, %c0_260] : memref<5x80x800xbf16, #tpu.memory_space<vmem>>, vector<1x80x800xbf16>
    %328 = vector.shape_cast %327 : vector<1x80x800xbf16> to vector<80x800xbf16>
    %cst_261 = arith.constant dense<0.000000e+00> : vector<1x800xf32>
    %329 = tpu.matmul %326, %328, %cst_261 {dimension_numbers = #tpu.dot_dimension_numbers<[1], [0], [0], [1], [0, 0, 1, 1], [], []>} : vector<1x80xbf16>, vector<80x800xbf16>, vector<1x800xf32> -> vector<1x800xf32>
    %330 = arith.addf %324, %329 : vector<1x800xf32>
    %c0_262 = arith.constant 0 : index
    %c0_263 = arith.constant 0 : index
    %331 = vector.load %arg7[%c0_262, %c0_263] : memref<1x800xf32, #tpu.memory_space<vmem>>, vector<1x800xf32>
    %332 = arith.addf %330, %331 : vector<1x800xf32>
    %cst_264 = arith.constant 0.000000e+00 : f32
    %333 = vector.broadcast %cst_264 : f32 to vector<1x800xf32>
    %334 = arith.maximumf %332, %333 : vector<1x800xf32>
    %335 = arith.truncf %334 : vector<1x800xf32> to vector<1x800xbf16>
    %c0_265 = arith.constant 0 : index
    %c0_266 = arith.constant 0 : index
    %336 = vector.load %arg8[%c0_265, %c0_266] : memref<800x800xbf16, #tpu.memory_space<vmem>>, vector<800x800xbf16>
    %cst_267 = arith.constant dense<0.000000e+00> : vector<1x800xf32>
    %337 = tpu.matmul %335, %336, %cst_267 {dimension_numbers = #tpu.dot_dimension_numbers<[1], [0], [0], [1], [0, 0, 1, 1], [], []>} : vector<1x800xbf16>, vector<800x800xbf16>, vector<1x800xf32> -> vector<1x800xf32>
    %c0_268 = arith.constant 0 : index
    %c0_269 = arith.constant 0 : index
    %338 = vector.load %arg9[%c0_268, %c0_269] : memref<1x800xf32, #tpu.memory_space<vmem>>, vector<1x800xf32>
    %339 = arith.addf %337, %338 : vector<1x800xf32>
    %cst_270 = arith.constant 0.000000e+00 : f32
    %340 = vector.broadcast %cst_270 : f32 to vector<1x800xf32>
    %341 = arith.maximumf %339, %340 : vector<1x800xf32>
    %342 = arith.truncf %341 : vector<1x800xf32> to vector<1x800xbf16>
    %c0_271 = arith.constant 0 : index
    %c0_272 = arith.constant 0 : index
    %343 = vector.load %arg10[%c0_271, %c0_272] : memref<800x400xbf16, #tpu.memory_space<vmem>>, vector<800x400xbf16>
    %cst_273 = arith.constant dense<0.000000e+00> : vector<1x400xf32>
    %344 = tpu.matmul %342, %343, %cst_273 {dimension_numbers = #tpu.dot_dimension_numbers<[1], [0], [0], [1], [0, 0, 1, 1], [], []>} : vector<1x800xbf16>, vector<800x400xbf16>, vector<1x400xf32> -> vector<1x400xf32>
    %c0_274 = arith.constant 0 : index
    %c0_275 = arith.constant 0 : index
    %345 = vector.load %arg11[%c0_274, %c0_275] : memref<1x400xf32, #tpu.memory_space<vmem>>, vector<1x400xf32>
    %346 = arith.addf %344, %345 : vector<1x400xf32>
    %347 = arith.truncf %346 : vector<1x400xf32> to vector<1x400xbf16>
    %c0_276 = arith.constant 0 : index
    %c0_277 = arith.constant 0 : index
    %348 = vector.load %arg12[%c0_276, %c0_277] : memref<400x200xbf16, #tpu.memory_space<vmem>>, vector<400x200xbf16>
    %cst_278 = arith.constant dense<0.000000e+00> : vector<1x200xf32>
    %349 = tpu.matmul %347, %348, %cst_278 {dimension_numbers = #tpu.dot_dimension_numbers<[1], [0], [0], [1], [0, 0, 1, 1], [], []>} : vector<1x400xbf16>, vector<400x200xbf16>, vector<1x200xf32> -> vector<1x200xf32>
    %c0_279 = arith.constant 0 : index
    %c0_280 = arith.constant 0 : index
    %350 = vector.load %arg13[%c0_279, %c0_280] : memref<1x200xf32, #tpu.memory_space<vmem>>, vector<1x200xf32>
    %351 = arith.addf %349, %350 : vector<1x200xf32>
    %cst_281 = arith.constant 0.000000e+00 : f32
    %352 = vector.broadcast %cst_281 : f32 to vector<1x200xf32>
    %353 = arith.maximumf %351, %352 : vector<1x200xf32>
    %354 = arith.truncf %353 : vector<1x200xf32> to vector<1x200xbf16>
    %c0_282 = arith.constant 0 : index
    %c0_283 = arith.constant 0 : index
    %355 = vector.load %arg14[%c0_282, %c0_283] : memref<200x100xbf16, #tpu.memory_space<vmem>>, vector<200x100xbf16>
    %cst_284 = arith.constant dense<0.000000e+00> : vector<1x100xf32>
    %356 = tpu.matmul %354, %355, %cst_284 {dimension_numbers = #tpu.dot_dimension_numbers<[1], [0], [0], [1], [0, 0, 1, 1], [], []>} : vector<1x200xbf16>, vector<200x100xbf16>, vector<1x100xf32> -> vector<1x100xf32>
    %c0_285 = arith.constant 0 : index
    %c0_286 = arith.constant 0 : index
    %357 = vector.load %arg15[%c0_285, %c0_286] : memref<1x100xf32, #tpu.memory_space<vmem>>, vector<1x100xf32>
    %358 = arith.addf %356, %357 : vector<1x100xf32>
    %cst_287 = arith.constant 0.000000e+00 : f32
    %359 = vector.broadcast %cst_287 : f32 to vector<1x100xf32>
    %360 = arith.maximumf %358, %359 : vector<1x100xf32>
    %361 = arith.truncf %360 : vector<1x100xf32> to vector<1x100xbf16>
    %c0_288 = arith.constant 0 : index
    %c0_289 = arith.constant 0 : index
    %362 = vector.load %arg16[%c0_288, %c0_289] : memref<100x128xbf16, #tpu.memory_space<vmem>>, vector<100x128xbf16>
    %cst_290 = arith.constant dense<0.000000e+00> : vector<1x128xf32>
    %363 = tpu.matmul %361, %362, %cst_290 {dimension_numbers = #tpu.dot_dimension_numbers<[1], [0], [0], [1], [0, 0, 1, 1], [], []>} : vector<1x100xbf16>, vector<100x128xbf16>, vector<1x128xf32> -> vector<1x128xf32>
    %c0_291 = arith.constant 0 : index
    %c0_292 = arith.constant 0 : index
    %364 = vector.load %arg17[%c0_291, %c0_292] : memref<1x128xf32, #tpu.memory_space<vmem>>, vector<1x128xf32>
    %365 = arith.addf %363, %364 : vector<1x128xf32>
    %c0_293 = arith.constant 0 : index
    %c0_294 = arith.constant 0 : index
    %c0_295 = arith.constant 0 : index
    %366 = vector.load %arg18[%c0_293, %c0_294, %c0_295] : memref<1x1x128xf32, #tpu.memory_space<vmem>>, vector<1x1x128xf32>
    %367 = vector.shape_cast %366 : vector<1x1x128xf32> to vector<1x128xf32>
    %368 = vector.shape_cast %365 : vector<1x128xf32> to vector<1x1x128xf32>
    tpu.vector_store %arg18[%c0_293, %c0_294, %c0_295], %368 {strides = array<i32>} : memref<1x1x128xf32, #tpu.memory_space<vmem>>, vector<1x1x128xf32>,
    return
  }
  func.func @transform_0(%arg0: i32) -> (i32, i32, i32, i32) {
    %c0_i32 = arith.constant 0 : i32
    %c0_i32_0 = arith.constant 0 : i32
    %c0_i32_1 = arith.constant 0 : i32
    %c0_i32_2 = arith.constant 0 : i32
    return %arg0, %c0_i32, %c0_i32_0, %c0_i32_1 : i32, i32, i32, i32
  }
  func.func @transform_1(%arg0: i32) -> (i32, i32, i32) {
    %c0_i32 = arith.constant 0 : i32
    %c0_i32_0 = arith.constant 0 : i32
    %c0_i32_1 = arith.constant 0 : i32
    %c0_i32_2 = arith.constant 0 : i32
    return %c0_i32, %c0_i32_0, %c0_i32_1 : i32, i32, i32
  }
  func.func @transform_2(%arg0: i32) -> (i32, i32) {
    %c0_i32 = arith.constant 0 : i32
    %c0_i32_0 = arith.constant 0 : i32
    %c0_i32_1 = arith.constant 0 : i32
    return %c0_i32, %c0_i32_0 : i32, i32
  }
  func.func @transform_3(%arg0: i32) -> (i32, i32, i32) {
    %c0_i32 = arith.constant 0 : i32
    %c0_i32_0 = arith.constant 0 : i32
    %c0_i32_1 = arith.constant 0 : i32
    %c0_i32_2 = arith.constant 0 : i32
    return %c0_i32, %c0_i32_0, %c0_i32_1 : i32, i32, i32
  }
  func.func @transform_4(%arg0: i32) -> (i32, i32) {
    %c0_i32 = arith.constant 0 : i32
    %c0_i32_0 = arith.constant 0 : i32
    %c0_i32_1 = arith.constant 0 : i32
    return %c0_i32, %c0_i32_0 : i32, i32
  }
  func.func @transform_5(%arg0: i32) -> (i32, i32, i32) {
    %c0_i32 = arith.constant 0 : i32
    %c0_i32_0 = arith.constant 0 : i32
    %c0_i32_1 = arith.constant 0 : i32
    %c0_i32_2 = arith.constant 0 : i32
    return %c0_i32, %c0_i32_0, %c0_i32_1 : i32, i32, i32
  }
  func.func @transform_6(%arg0: i32) -> (i32, i32) {
    %c0_i32 = arith.constant 0 : i32
    %c0_i32_0 = arith.constant 0 : i32
    %c0_i32_1 = arith.constant 0 : i32
    return %c0_i32, %c0_i32_0 : i32, i32
  }
  func.func @transform_7(%arg0: i32) -> (i32, i32) {
    %c0_i32 = arith.constant 0 : i32
    %c0_i32_0 = arith.constant 0 : i32
    %c0_i32_1 = arith.constant 0 : i32
    return %c0_i32, %c0_i32_0 : i32, i32
  }
  func.func @transform_8(%arg0: i32) -> (i32, i32) {
    %c0_i32 = arith.constant 0 : i32
    %c0_i32_0 = arith.constant 0 : i32
    %c0_i32_1 = arith.constant 0 : i32
    return %c0_i32, %c0_i32_0 : i32, i32
  }
  func.func @transform_9(%arg0: i32) -> (i32, i32) {
    %c0_i32 = arith.constant 0 : i32
    %c0_i32_0 = arith.constant 0 : i32
    %c0_i32_1 = arith.constant 0 : i32
    return %c0_i32, %c0_i32_0 : i32, i32
  }
  func.func @transform_10(%arg0: i32) -> (i32, i32) {
    %c0_i32 = arith.constant 0 : i32
    %c0_i32_0 = arith.constant 0 : i32
    %c0_i32_1 = arith.constant 0 : i32
    return %c0_i32, %c0_i32_0 : i32, i32
  }
  func.func @transform_11(%arg0: i32) -> (i32, i32) {
    %c0_i32 = arith.constant 0 : i32
    %c0_i32_0 = arith.constant 0 : i32
    %c0_i32_1 = arith.constant 0 : i32
    return %c0_i32, %c0_i32_0 : i32, i32
  }
  func.func @transform_12(%arg0: i32) -> (i32, i32) {
    %c0_i32 = arith.constant 0 : i32
    %c0_i32_0 = arith.constant 0 : i32
    %c0_i32_1 = arith.constant 0 : i32
    return %c0_i32, %c0_i32_0 : i32, i32
  }
  func.func @transform_13(%arg0: i32) -> (i32, i32) {
    %c0_i32 = arith.constant 0 : i32
    %c0_i32_0 = arith.constant 0 : i32
    %c0_i32_1 = arith.constant 0 : i32
    return %c0_i32, %c0_i32_0 : i32, i32
  }
  func.func @transform_14(%arg0: i32) -> (i32, i32) {
    %c0_i32 = arith.constant 0 : i32
    %c0_i32_0 = arith.constant 0 : i32
    %c0_i32_1 = arith.constant 0 : i32
    return %c0_i32, %c0_i32_0 : i32, i32
  }
  func.func @transform_15(%arg0: i32) -> (i32, i32) {
    %c0_i32 = arith.constant 0 : i32
    %c0_i32_0 = arith.constant 0 : i32
    %c0_i32_1 = arith.constant 0 : i32
    return %c0_i32, %c0_i32_0 : i32, i32
  }
  func.func @transform_16(%arg0: i32) -> (i32, i32) {
    %c0_i32 = arith.constant 0 : i32
    %c0_i32_0 = arith.constant 0 : i32
    %c0_i32_1 = arith.constant 0 : i32
    return %c0_i32, %c0_i32_0 : i32, i32
  }
  func.func @transform_17(%arg0: i32) -> (i32, i32, i32) {
    %c0_i32 = arith.constant 0 : i32
    %c0_i32_0 = arith.constant 0 : i32
    %c0_i32_1 = arith.constant 0 : i32
    return %arg0, %c0_i32, %c0_i32_0 : i32, i32, i32
  }
}

</mosaic_0001>

<bundles_post_ra>
// kernel: prosi_single_nn_forward.1
= control target key start
LH: loop header
LB: loop body
LE: loop exit
PB: predicated region body
PF: predicated region fallthrough
CT: control target
= control target key end

     0   :  { %s20041_s0 = inlined_call_operand.vmem [shape: f32[2,4,8,96], index: 0, kind: input, shape index: {}]   ;;  %s20042_s1 = inlined_call_operand.vmem [shape: bf16[10,96,84], index: 1, kind: input, shape index: {}]   ;;  %s20043_s2 = inlined_call_operand.vmem [shape: f32[1,84], index: 2, kind: input, shape index: {}]   ;;  %s20044_s3 = inlined_call_operand.vmem [shape: bf16[10,84,80], index: 3, kind: input, shape index: {}]   ;;  %s20045_s4 = inlined_call_operand.vmem [shape: f32[1,80], index: 4, kind: input, shape index: {}]   ;;  %s20046_s5 = inlined_call_operand.vmem [shape: bf16[5,80,800], index: 5, kind: input, shape index: {}]   ;;  %s20047_s6 = inlined_call_operand.vmem [shape: f32[1,800], index: 6, kind: input, shape index: {}]   ;;  %s20048_s7 = inlined_call_operand.vmem [shape: bf16[800,800], index: 7, kind: input, shape index: {}]   ;;  %s20049_s8 = inlined_call_operand.vmem [shape: f32[1,800], index: 8, kind: input, shape index: {}]   ;;  %s20050_s9 = inlined_call_operand.vmem [shape: bf16[800,400], index: 9, kind: input, shape index: {}]   ;;  %s20051_s10 = inlined_call_operand.vmem [shape: f32[1,400], index: 10, kind: input, shape index: {}]   ;;  %s20052_s11 = inlined_call_operand.hbm [shape: bf16[400,200], index: 11, kind: input, shape index: {}]   ;;  %s20053_s12 = inlined_call_operand.vmem [shape: f32[1,200], index: 12, kind: input, shape index: {}]   ;;  %s20054_s13 = inlined_call_operand.hbm [shape: bf16[200,100], index: 13, kind: input, shape index: {}]   ;;  %s20055_s14 = inlined_call_operand.vmem [shape: f32[1,100], index: 14, kind: input, shape index: {}]   ;;  %s20056_s15 = inlined_call_operand.vmem [shape: bf16[100,128], index: 15, kind: input, shape index: {}]   ;;  %s20057_s16 = inlined_call_operand.vmem [shape: f32[1,128], index: 16, kind: input, shape index: {}]   ;;  %s20058_s17 = inlined_call_operand.hbm [shape: f32[2,1,128], index: 17, kind: output, shape index: {}]  }
   0x1   :  { %20072 = sst [smem:[#allocation18_spill]] %s20041_s0 }
   0x2   :  { %20073 = sst [smem:[#allocation19_spill]] %s20042_s1 }
   0x3   :  { %20074 = sst [smem:[#allocation20_spill]] %s20057_s16 }
   0x4   :  { %20075 = sst [smem:[#allocation21_spill]] %s20058_s17 }
   0x5   :  { %22 = vsyncpa [#allocation3], 0 }
   0x6   :  { %23 = vsyncpa [#allocation6], 0 }
   0x7   :  { %24 = vsyncpa [#allocation4], 0 }
   0x8   :  { %26 = vsyncpa [#allocation4 + $0x1], 0  ;;  %s16190_s24 = smov 0   ;;  %s16192_s25 = smov 0  }
   0x9   :  { %s16194_s26 = smov 0   ;;  %s16196_s27 = smov 0  }
   0xa LB: > { %20076 = sst [smem:[#allocation11_spill]] %s16076_s24  ;;  %s16211_s28 = sadd.s32 4294967295, %s16088_s27   ;;  %s16088_s27 = sphi %s16196_s27, %s20102_s27   ;;  %s16084_s26 = sphi %s16194_s26, %s20104_s26   ;;  %s16080_s25 = sphi %s16192_s25, %s20106_s25   ;;  %s16076_s24 = sphi %s16190_s24, %s20105_s24  }
   0xb   : > { %20077 = sst [smem:[#allocation12_spill]] %s16084_s26  ;;  %s11334_s29 = sadd.s32 4294967294, %s16088_s27  }
   0xc   : > { %20078 = sst [smem:[#allocation13_spill]] %s16088_s27  ;;  %s16215_s0 = sadd.s32 1, %s16088_s27  }
   0xd   : > { %20079 = sst [smem:[#allocation14_spill]] %s16215_s0  ;;  %s401_s30 = sadd.s32 1, %s16084_s26 }
   0xe   : > { %s398_s18 = ssub.s32 %s16088_s27, %s16215_s0  ;;  %p411_p0 = scmp.ne.s32.totalorder %s16084_s26, %s16080_s25 }
   0xf   : > { %p399_p1 = scmp.eq.s32.totalorder %s398_s18, 0  ;;  %p412_p2 = scmp.eq.s32.totalorder %s16211_s28, 1 }
  0x10   : > { %p417_p3 = scmp.ne.s32.totalorder %s16080_s25, %s16076_s24  ;;  %p418_p4 = scmp.eq.s32.totalorder %s11334_s29, 1 }
  0x11   : > { %s16226_s19 = scalar_select %p399_p1, %s16084_s26, %s401_s30  }
  0x12   : > { %p16228_p5 = por %p412_p2, %p411_p0  ;;  %p16232_p6 = por %p418_p4, %p417_p3 }
  0x13   : > { %20080 = sst [smem:[#allocation15_spill]] %s16226_s19  ;;  %p11335_p7 = scmp.ge.s32.totalorder %s16088_s27, 1 }
  0x14   : > { %s20081_s1 = scalar_select %p16228_p5, 1, 0 }
  0x15   : > { %s20083_s20 = scalar_select %p16232_p6, 1, 0 }
  0x16   : > { %20082 = sst [smem:[#allocation16_spill]] %s20081_s1  ;;  %p425_p8 = scmp.lt.s32.totalorder %s16088_s27, 3 }
  0x17   : > { %20084 = sst [smem:[#allocation17_spill]] %s20083_s20  ;;  %p20066_p9 = scmp.eq.s32.totalorder %s16211_s28, 0 }
  0x18   : > { %p16239_p10 = pnand %p11335_p7, %p425_p8  ;;  %s16090_s22 = smov [#allocation2]  }
  0x19   : > { %s467_s23 = sshll.u32 %s16090_s22, 4  ;;  %s16091_s30 = smov [#allocation5]   ;;  %s468_s23 = int_to_ptr.vmem [resolvable:$true] %s467_s23 }
  0x1a   : > { %s20085_s21 = scalar_select %p16239_p10, 1, 0 }
  0x1b   : > { %p14580_p11 = pneg %p16239_p10  ;;  %s483_s18 = sshll.u32 %s16091_s30, 4  ;;  %s16251_s18 = int_to_ptr.vmem [resolvable:$true] %s483_s18 }
  0x1c   : > { %s15962_s0 = scalar_lea.hbm %s20052_s11, 6400 }
  0x1d   : > { %p16247_p12 = pnand %p20066_p9, %p14580_p11  ;;  %p15963_p13 = scmp.ne.s32.totalorder %s20052_s11, %s15962_s0 }
  0x1e   : > { %p15969_p3 = scmp.lt.u32.totalorder %s15962_s0, %s20052_s11 }
  0x1f   : > { %p15964_p0 = pneg %p16247_p12 }
  0x21   : > { %p15965_p1 = pnand %p15964_p0, %p15963_p13 }
  0x23   : > { %p15966_p2 = pneg %p15965_p1 }
  0x25   : > { %p15971_p4 = pnand %p15969_p3, %p15966_p2 }
  0x27   : > { %15974 = shalt.err (!%p15971_p4)
}
  0x28   : > { %s15975_s30 = scalar_lea.vmem %s468_s23, 6400  ;;  %p15983_p9 = scmp.lt.s32.totalorder %s468_s23, %s468_s23 }
  0x29   : > { %p15976_p7 = scmp.ne.s32.totalorder %s468_s23, %s15975_s30  ;;  %p15984_p6 = scmp.lt.s32.totalorder %s15975_s30, %s15975_s30 }
  0x2b   : > { %p15978_p8 = pnand %p15976_p7, %p15964_p0  ;;  %p15985_p5 = por %p15984_p6, %p15983_p9 }
  0x2d   : > { %p15979_p11 = pneg %p15978_p8 }
  0x2f   : > { %p15986_p10 = pnand %p15985_p5, %p15979_p11 }
  0x31   : > { %15989 = shalt.err (!%p15986_p10)
}
  0x32   : > { %s16092_s26 = smov 128   ;;  %s16093_s19 = smov 8  }
  0x33   : > { %14583 = dma.hbm_to_vmem [thread:$0]  (!%p16247_p12), %s20052_s11, 6400, %s468_s23, [#allocation3], %s16092_s26, %s16092_s26, %s16093_s19  }
  0x34   : > { %s15990_s22 = scalar_lea.hbm %s20054_s13, 1600 }
  0x35   : > { %p15991_p13 = scmp.ne.s32.totalorder %s20054_s13, %s15990_s22  ;;  %p15997_p9 = scmp.lt.u32.totalorder %s15990_s22, %s20054_s13 }
  0x37   : > { %p15993_p5 = pnand %p15991_p13, %p15964_p0 }
  0x39   : > { %p15994_p6 = pneg %p15993_p5 }
  0x3b   : > { %p15999_p10 = pnand %p15997_p9, %p15994_p6 }
  0x3d   : > { %16002 = shalt.err (!%p15999_p10)
}
  0x3e   : > { %s16003_s23 = scalar_lea.vmem %s16251_s18, 1600  ;;  %p16011_p4 = scmp.lt.s32.totalorder %s16251_s18, %s16251_s18 }
  0x3f   : > { %p16004_p1 = scmp.ne.s32.totalorder %s16251_s18, %s16003_s23  ;;  %p16012_p7 = scmp.lt.s32.totalorder %s16003_s23, %s16003_s23 }
  0x41   : > { %p16006_p2 = pnand %p16004_p1, %p15964_p0  ;;  %p16013_p8 = por %p16012_p7, %p16011_p4 }
  0x43   : > { %p16007_p3 = pneg %p16006_p2 }
  0x45   : > { %p16014_p11 = pnand %p16013_p8, %p16007_p3 }
  0x47   : > { %16017 = shalt.err (!%p16014_p11)
}
  0x48   : > { %s16094_s16 = smov 64   ;;  %s16095_s17 = smov 4  }
  0x49   : > { %14586 = dma.hbm_to_vmem [thread:$0]  (!%p16247_p12), %s20054_s13, 1600, %s16251_s18, [#allocation6], %s16094_s16, %s16094_s16, %s16095_s17  }
  0x4a   : > { %p20087_p13 = scmp.ne.s32.totalorder %s20085_s21, 0 }
  0x4b   : > { %p20088_p0 = scmp.eq.s32.totalorder (!%p20087_p13), %s16211_s28, 0 }
  0x4c   : > { %516 = sbr.rel (%p20087_p13) target bundleno = 3101 (0xc1d), region = 88 }
  0x53   : > { %16063 = dma.done.wait (%p20088_p0), [#allocation3], 6400   ;;  %p20089_p5 = pmov %p20088_p0 }
  0x54   : > { %p20090_p6 = pmov %p20088_p0 }
  0x55   : > { %16065 = vsyncadd (%p20089_p5), [#allocation3], 4294960896 }
  0x56   : > { %16067 = dma.done.wait (%p20090_p6), [#allocation6], 1600   ;;  %p20091_p9 = pmov %p20088_p0 }
  0x57   : > { %v16096_v0 = vmov 0.0   ;;  %vm16097_vm0 = vmmov 0   ;;  %s20092_s18 = sld [smem:[#allocation19_spill]]  ;;  %p571_p12 = scmp.lt.s32.totalorder %s16211_s28, 1  ;;  %vm646_vm1 = vcmask 785408   ;;  %vm2826_vm2 = vcmask 1041408  }
  0x58   : > { %16069 = vsyncadd (%p20091_p9), [#allocation6], 4294965696  ;;  %13248 = vmatprep.subr.bf16.mxu0 %v16096_v0  ;;  %13328 = vmatprep.subr.bf16.mxu1 %v16096_v0  ;;  %s20093_s1 = sld [smem:[#allocation18_spill]]  ;;  %vm2822_vm3 = vcmask 687104   ;;  %vm4370_vm4 = vcmask 654336   ;;  %vm8363_vm5 = vcmask 261120  }
  0x59   : > { %13260 = vmatprep.mubr.msk.bf16.mxu0 %vm16097_vm0, %v16096_v0  ;;  %13340 = vmatprep.mubr.msk.bf16.mxu1 %vm16097_vm0, %v16096_v0  ;;  %s572_s20 = scalar_select %p571_p12, %s16211_s28, 1  ;;  %vm10902_vm6 = vcmask 130048   ;;  %vm11097_vm7 = vcmask 1043456   ;;  %vm11093_vm8 = vcmask 588800   ;;  %vm11196_vm9 = vcmask 818176  }
  0x5a   : > { %s569_s17 = sand.u32 1, %s16080_s25   ;;  %s20094_s29 = sld [smem:[#allocation20_spill]] }
  0x5b   : > { %s12720_s23 = sshll.u32 %s572_s20, 5  ;;  %s20095_s19 = sld [smem:[#allocation16_spill]] }
  0x5c   : > { %s12717_s24 = sshll.u32 %s16211_s28, 4  ;;  %s20096_s22 = sld [smem:[#allocation21_spill]] }
  0x5d   : > { %v14637_v1 = vld [vmem:[%s20092_s18 + $0x30] sm:$0xff]   ;;  %v14638_v2 = vld [vmem:[%s20092_s18 + $0x38] sm:$0xff]   ;;  %v14639_v3 = vld [vmem:[%s20092_s18 + $0x40] sm:$0xff]   ;;  %s16099_s16 = smov [#allocation7]  }
  0x5e   : > { %13249 = vmatpush3.bf16.msra.mxu0 %v14637_v1  ;;  %13329 = vmatpush3.bf16.msra.mxu1 %v14637_v1  ;;  %v14640_v4 = vld [vmem:[%s20092_s18 + $0x48] sm:$0xff]   ;;  %s16339_s26 = scalar_lea.vmem %s20093_s1, %s12720_s23  ;;  %v14641_v5 = vld [vmem:[%s20092_s18 + $0x50] sm:$0xff]   ;;  %v14642_v6 = vld [vmem:[%s20092_s18 + $0x58] sm:$0xff]   ;;  %s11245_s23 = scalar_lea.sflag [#allocation4], %s569_s17 }
  0x5f   : > { %13250 = vmatprep.subr.bf16.mxu0 %v16096_v0  ;;  %13330 = vmatprep.subr.bf16.mxu1 %v16096_v0  ;;  %v578_v7 = vld [vmem:[%s16339_s26 + $0x8] sm:$0xff]  ;;  %v579_v8 = vld [vmem:[%s16339_s26 + $0x10] sm:$0xff]  ;;  %v14643_v11 = vld [vmem:[%s20092_s18] sm:$0xff]   ;;  %s16022_s1 = sshll.u32 %s16099_s16, 4  ;;  %s16023_s1 = int_to_ptr.vmem [resolvable:$false] %s16022_s1 }
  0x60   : > { %v16353_v9 = vpack.c.bf16 %v578_v7, %v578_v7  ;;  %v16355_v10 = vpack.c.bf16 %v579_v8, %v579_v8  ;;  %v14644_v12 = vld [vmem:[%s20092_s18 + $0x8] sm:$0xff]   ;;  %v14645_v13 = vld [vmem:[%s20092_s18 + $0x10] sm:$0xff]   ;;  %v14646_v14 = vld [vmem:[%s20092_s18 + $0x18] sm:$0xff]   ;;  %s16024_s21 = scalar_lea.vmem %s16023_s1, 32 }
  0x61   : > { %v14647_v15 = vld [vmem:[%s20092_s18 + $0x20] sm:$0xff]   ;;  %v14648_v16 = vld [vmem:[%s20092_s18 + $0x28] sm:$0xff]   ;;  %v14651_v21 = vld [vmem:[%s20092_s18 + $0x70] sm:$0xff]   ;;  %p20097_p1 = scmp.ne.s32.totalorder %s20095_s19, 0 }
  0x62   : > { %13251 = vmatpush3.bf16.msra.mxu0 %v14638_v2  ;;  %13331 = vmatpush3.bf16.msra.mxu1 %v14638_v2  ;;  %v577_v17 = vld [vmem:[%s16339_s26] sm:$0xff]  ;;  %v14650_v20 = vld [vmem:[%s20092_s18 + $0x68] sm:$0xff]   ;;  %v14652_v22 = vld [vmem:[%s20092_s18 + $0x78] sm:$0xff]   ;;  %v1218_v42 = vshll.u32 %v16353_v9, 16  ;;  %v1216_v44 = vshrl.u32 %v16353_v9, 16  ;;  %s19999_s30 = scalar_lea.hbm %s20096_s22, %s12717_s24 }
  0x63   : > { %13252 = vmatprep.subr.bf16.mxu0 %v16096_v0  ;;  %13332 = vmatprep.subr.bf16.mxu1 %v16096_v0  ;;  %v16396_v18 = vpack.c.bf16 %v577_v17, %v577_v17  ;;  %v14649_v19 = vld [vmem:[%s20092_s18 + $0x60] sm:$0xff]   ;;  %v580_v24 = vld [vmem:[%s16339_s26 + $0x18] sm:$0xff]  ;;  %v14654_v25 = vld [vmem:[%s20092_s18 + $0x88] sm:$0xff]   ;;  %s570_s26 = scalar_lea.vmem [#allocation7], %s569_s17 }
  0x64   : > { %v14653_v23 = vld [vmem:[%s20092_s18 + $0x80] sm:$0xff]   ;;  %v14655_v26 = vld [vmem:[%s20092_s18 + $0x90] sm:$0xff]   ;;  %v16440_v27 = vpack.c.bf16 %v580_v24, %v580_v24  ;;  %v14656_v28 = vld [vmem:[%s20092_s18 + $0x98] sm:$0xff]   ;;  %v1220_v45 = vrot.slane %v1218_v42, 1  ;;  %s11257_s27 = sshll.u32 %s570_s26, 4  ;;  %s20001_s27 = int_to_ptr.vmem [resolvable:$true] %s11257_s27 }
  0x65   : > { %v14657_v29 = vld [vmem:[%s20092_s18 + $0xa0] sm:$0xff]   ;;  %v14658_v30 = vld [vmem:[%s20092_s18 + $0xa8] sm:$0xff]   ;;  %v968_v31 = vshrl.u32 %v16396_v18, 16  ;;  %v970_v32 = vshll.u32 %v16396_v18, 16  ;;  %v14659_v33 = vld [vmem:[%s20092_s18 + $0xb0] sm:$0xff]   ;;  %s16018_s28 = scalar_lea.vmem %s20001_s27, 16  ;;  %p16025_p4 = scmp.lt.s32.totalorder %s20001_s27, %s16023_s1 }
  0x66   : > { %13253 = vmatpush3.bf16.msra.mxu0 %v14639_v3  ;;  %13333 = vmatpush3.bf16.msra.mxu1 %v14639_v3  ;;  %v14660_v35 = vld [vmem:[%s20092_s18 + $0xb8] sm:$0xff]   ;;  %v14661_v36 = vld [vmem:[%s20092_s18 + $0xc0] sm:$0xff]   ;;  %v14662_v38 = vld [vmem:[%s20092_s18 + $0xc8] sm:$0xff]   ;;  %v16524_v47 = vor.u32 %v1220_v45, %v1216_v44  ;;  %p16019_p10 = scmp.ne.s32.totalorder %s20001_s27, %s16018_s28  ;;  %p16026_p7 = scmp.lt.s32.totalorder %s16024_s21, %s16018_s28 }
  0x67   : > { %13254 = vmatprep.subr.bf16.mxu0 %v16096_v0  ;;  %13334 = vmatprep.subr.bf16.mxu1 %v16096_v0  ;;  %v972_v34 = vrot.slane %v970_v32, 1  ;;  %v14663_v39 = vld [vmem:[%s20092_s18 + $0xd0] sm:$0xff]   ;;  %v14664_v40 = vld [vmem:[%s20092_s18 + $0xd8] sm:$0xff]   ;;  %v14665_v41 = vld [vmem:[%s20092_s18 + $0xe0] sm:$0xff]  }
  0x68   : > { %v14666_v43 = vld [vmem:[%s20092_s18 + $0xe8] sm:$0xff]   ;;  %v14667_v46 = vld [vmem:[%s20092_s18 + $0x120] sm:$0xff]   ;;  %v14669_v49 = vld [vmem:[%s20092_s18 + $0x130] sm:$0xff]   ;;  %p16020_p2 = pnand %p16019_p10, %p20097_p1  ;;  %p16027_p8 = por %p16026_p7, %p16025_p4 }
  0x69   : > { %v16482_v37 = vor.u32 %v972_v34, %v968_v31  ;;  %v14668_v48 = vld [vmem:[%s20092_s18 + $0x128] sm:$0xff]   ;;  %v14670_v50 = vld [vmem:[%s20092_s18 + $0x138] sm:$0xff]   ;;  %v14671_v51 = vld [vmem:[%s20092_s18 + $0x140] sm:$0xff]  }
  0x6a   : > { %13255 = vmatpush3.bf16.msra.mxu0 %v14640_v4  ;;  %13335 = vmatpush3.bf16.msra.mxu1 %v14640_v4  ;;  %v14672_v52 = vld [vmem:[%s20092_s18 + $0x148] sm:$0xff]   ;;  %v14673_v53 = vld [vmem:[%s20092_s18 + $0xf0] sm:$0xff]   ;;  %v14674_v54 = vld [vmem:[%s20092_s18 + $0xf8] sm:$0xff]   ;;  %p16021_p3 = pneg %p16020_p2 }
  0x6b   : > { %13256 = vmatprep.subr.bf16.mxu0 %v16096_v0  ;;  %13336 = vmatprep.subr.bf16.mxu1 %v16096_v0  ;;  %v14675_v55 = vld [vmem:[%s20092_s18 + $0x100] sm:$0xff]   ;;  %v14676_v56 = vld [vmem:[%s20092_s18 + $0x108] sm:$0xff]   ;;  %v14677_v57 = vld [vmem:[%s20092_s18 + $0x110] sm:$0xff]  }
  0x6c   : > { %v14678_v58 = vld [vmem:[%s20092_s18 + $0x118] sm:$0xff]   ;;  %v14679_v59 = vld [vmem:[%s20092_s18 + $0x150] sm:$0xff]   ;;  %v14681_v61 = vld [vmem:[%s20092_s18 + $0x160] sm:$0xff]   ;;  %p16028_p11 = pnand %p16027_p8, %p16021_p3 }
  0x6d   : > { %v14680_v60 = vld [vmem:[%s20092_s18 + $0x158] sm:$0xff]   ;;  %v14682_v62 = vld [vmem:[%s20092_s18 + $0x168] sm:$0xff]   ;;  %v14683_v63 = vld [vmem:[%s20092_s18 + $0x170] sm:$0xff]  }
  0x6e   : > { %13257 = vmatpush3.bf16.msra.mxu0 %v14641_v5  ;;  %13337 = vmatpush3.bf16.msra.mxu1 %v14641_v5  ;;  %v14684_v1 = vld [vmem:[%s20092_s18 + $0x178] sm:$0xff]   ;;  %v14685_v2 = vld [vmem:[%s20092_s18 + $0x180] sm:$0xff]   ;;  %v14686_v3 = vld [vmem:[%s20092_s18 + $0x188] sm:$0xff]  }
  0x6f   : > { %13258 = vmatprep.subr.bf16.mxu0 %v16096_v0  ;;  %13338 = vmatprep.subr.bf16.mxu1 %v16096_v0  ;;  %v14687_v4 = vld [vmem:[%s20092_s18 + $0x190] sm:$0xff]   ;;  %v14688_v5 = vld [vmem:[%s20092_s18 + $0x198] sm:$0xff]   ;;  %v14690_v7 = vld [vmem:[%s20092_s18 + $0x1a8] sm:$0xff]  }
  0x70   : > { %v14691_v8 = vld [vmem:[%s20092_s18 + $0x1b0] sm:$0xff]   ;;  %v15904_v17 = vld [vmem:[%s20092_s18 + $0x40] sm:$0xff]   ;;  %v15911_v24 = vld [vmem:[%s20092_s18 + $0x18] sm:$0xff]  }
  0x71   : > { %v15917_v31 = vld [vmem:[%s20092_s18 + $0x78] sm:$0xff]   ;;  %v15918_v32 = vld [vmem:[%s20092_s18 + $0x80] sm:$0xff]   ;;  %v15920_v34 = vld [vmem:[%s20092_s18 + $0x90] sm:$0xff]  }
  0x72   : > { %13259 = vmatpush3.bf16.msra.mxu0 %v14642_v6  ;;  %13339 = vmatpush3.bf16.msra.mxu1 %v14642_v6  ;;  %v14689_v6 = vld [vmem:[%s20092_s18 + $0x1a0] sm:$0xff]   ;;  %v15924_v42 = vld [vmem:[%s20092_s18 + $0xb0] sm:$0xff]  }
  0x73   : > { %13264 = vmatprep.subr.bf16.mxu0 %v16096_v0  ;;  %13344 = vmatprep.subr.bf16.mxu1 %v16096_v0 }
  0x75   : > { %13261 = vmatmul.mubr.msk.bf16.vlgmr.msra.gmra.mrb[0].mxu0 %vm646_vm1, %v16353_v9  ;;  %13341 = vmatmul.mubr.msk.bf16.vlgmr.msra.gmra.mrb[0].mxu1 %vm646_vm1, %v16355_v10 }
  0x76   : > { %13265 = vmatpush3.bf16.msra.mxu0 %v14643_v11  ;;  %13345 = vmatpush3.bf16.msra.mxu1 %v14643_v11  ;;  %v14693_v11 = vld [vmem:[%s20092_s18 + $0x1c0] sm:$0xff]  }
  0x77   : > { %13266 = vmatprep.subr.bf16.mxu0 %v16096_v0  ;;  %13346 = vmatprep.subr.bf16.mxu1 %v16096_v0 }
  0x78   : > { %13276 = vmatprep.mubr.msk.bf16.mxu0 %vm16097_vm0, %v16096_v0  ;;  %13356 = vmatprep.mubr.msk.bf16.mxu1 %vm16097_vm0, %v16096_v0 }
  0x7a   : > { %13267 = vmatpush3.bf16.msra.mxu0 %v14644_v12  ;;  %13347 = vmatpush3.bf16.msra.mxu1 %v14644_v12  ;;  %v14694_v12 = vld [vmem:[%s20092_s18 + $0x1c8] sm:$0xff]  }
  0x7b   : > { %13268 = vmatprep.subr.bf16.mxu0 %v16096_v0  ;;  %13348 = vmatprep.subr.bf16.mxu1 %v16096_v0 }
  0x7e   : > { %13269 = vmatpush3.bf16.msra.mxu0 %v14645_v13  ;;  %13349 = vmatpush3.bf16.msra.mxu1 %v14645_v13  ;;  %v14695_v13 = vld [vmem:[%s20092_s18 + $0x1d0] sm:$0xff]  }
  0x7f   : > { %13270 = vmatprep.subr.bf16.mxu0 %v16096_v0  ;;  %13350 = vmatprep.subr.bf16.mxu1 %v16096_v0 }
  0x82   : > { %13271 = vmatpush3.bf16.msra.mxu0 %v14646_v14  ;;  %13351 = vmatpush3.bf16.msra.mxu1 %v14646_v14  ;;  %v14696_v14 = vld [vmem:[%s20092_s18 + $0x1d8] sm:$0xff]  }
  0x83   : > { %13272 = vmatprep.subr.bf16.mxu0 %v16096_v0  ;;  %13352 = vmatprep.subr.bf16.mxu1 %v16096_v0 }
  0x86   : > { %13273 = vmatpush3.bf16.msra.mxu0 %v14647_v15  ;;  %13353 = vmatpush3.bf16.msra.mxu1 %v14647_v15  ;;  %v15902_v15 = vld [vmem:[%s20092_s18 + $0x30] sm:$0xff]  }
  0x87   : > { %13274 = vmatprep.subr.bf16.mxu0 %v16096_v0  ;;  %13354 = vmatprep.subr.bf16.mxu1 %v16096_v0 }
  0x8a   : > { %13275 = vmatpush3.bf16.msra.mxu0 %v14648_v16  ;;  %13355 = vmatpush3.bf16.msra.mxu1 %v14648_v16  ;;  %v15903_v16 = vld [vmem:[%s20092_s18 + $0x38] sm:$0xff]  }
  0x8b   : > { %13280 = vmatprep.subr.bf16.mxu0 %v16096_v0  ;;  %13360 = vmatprep.subr.bf16.mxu1 %v16096_v0 }
  0x8d   : > { %13277 = vmatmul.mubr.msk.bf16.vlgmr.msra.gmra.mrb[0].mxu0 %vm646_vm1, %v16396_v18  ;;  %13357 = vmatmul.mubr.msk.bf16.vlgmr.msra.gmra.mrb[0].mxu1 %vm646_vm1, %v16353_v9 }
  0x8e   : > { %13281 = vmatpush3.bf16.msra.mxu0 %v14649_v19  ;;  %13361 = vmatpush3.bf16.msra.mxu1 %v14649_v19  ;;  %v15906_v19 = vld [vmem:[%s20092_s18 + $0x50] sm:$0xff]  }
  0x8f   : > { %13282 = vmatprep.subr.bf16.mxu0 %v16096_v0  ;;  %13362 = vmatprep.subr.bf16.mxu1 %v16096_v0 }
  0x90   : > { %13292 = vmatprep.mubr.msk.bf16.mxu0 %vm16097_vm0, %v16096_v0  ;;  %13372 = vmatprep.mubr.msk.bf16.mxu1 %vm16097_vm0, %v16096_v0 }
  0x92   : > { %13283 = vmatpush3.bf16.msra.mxu0 %v14650_v20  ;;  %13363 = vmatpush3.bf16.msra.mxu1 %v14650_v20  ;;  %v15907_v20 = vld [vmem:[%s20092_s18 + $0x58] sm:$0xff]  }
  0x93   : > { %13284 = vmatprep.subr.bf16.mxu0 %v16096_v0  ;;  %13364 = vmatprep.subr.bf16.mxu1 %v16096_v0 }
  0x96   : > { %13285 = vmatpush3.bf16.msra.mxu0 %v14651_v21  ;;  %13365 = vmatpush3.bf16.msra.mxu1 %v14651_v21  ;;  %v15908_v21 = vld [vmem:[%s20092_s18] sm:$0xff]  }
  0x97   : > { %13286 = vmatprep.subr.bf16.mxu0 %v16096_v0  ;;  %13366 = vmatprep.subr.bf16.mxu1 %v16096_v0 }
  0x9a   : > { %13287 = vmatpush3.bf16.msra.mxu0 %v14652_v22  ;;  %13367 = vmatpush3.bf16.msra.mxu1 %v14652_v22  ;;  %v15909_v22 = vld [vmem:[%s20092_s18 + $0x8] sm:$0xff]  }
  0x9b   : > { %13288 = vmatprep.subr.bf16.mxu0 %v16096_v0  ;;  %13368 = vmatprep.subr.bf16.mxu1 %v16096_v0 }
  0x9e   : > { %13289 = vmatpush3.bf16.msra.mxu0 %v14653_v23  ;;  %13369 = vmatpush3.bf16.msra.mxu1 %v14653_v23  ;;  %v15910_v23 = vld [vmem:[%s20092_s18 + $0x10] sm:$0xff]  }
  0x9f   : > { %13290 = vmatprep.subr.bf16.mxu0 %v16096_v0  ;;  %13370 = vmatprep.subr.bf16.mxu1 %v16096_v0 }
  0xa2   : > { %13291 = vmatpush3.bf16.msra.mxu0 %v14654_v25  ;;  %13371 = vmatpush3.bf16.msra.mxu1 %v14654_v25  ;;  %v15912_v25 = vld [vmem:[%s20092_s18 + $0x20] sm:$0xff]  }
  0xa3   : > { %13296 = vmatprep.subr.bf16.mxu0 %v16096_v0  ;;  %13376 = vmatprep.subr.bf16.mxu1 %v16096_v0 }
  0xa5   : > { %13293 = vmatmul.mubr.msk.bf16.vlgmr.msra.gmra.mrb[0].mxu0 %vm646_vm1, %v16355_v10  ;;  %13373 = vmatmul.mubr.msk.bf16.vlgmr.msra.gmra.mrb[0].mxu1 %vm646_vm1, %v16440_v27 }
  0xa6   : > { %13297 = vmatpush3.bf16.msra.mxu0 %v14655_v26  ;;  %13377 = vmatpush3.bf16.msra.mxu1 %v14655_v26  ;;  %v15913_v26 = vld [vmem:[%s20092_s18 + $0x28] sm:$0xff]  }
  0xa7   : > { %13298 = vmatprep.subr.bf16.mxu0 %v16096_v0  ;;  %13378 = vmatprep.subr.bf16.mxu1 %v16096_v0 }
  0xa8   : > { %13308 = vmatprep.mubr.msk.bf16.mxu0 %vm16097_vm0, %v16096_v0  ;;  %13388 = vmatprep.mubr.msk.bf16.mxu1 %vm16097_vm0, %v16096_v0 }
  0xaa   : > { %13299 = vmatpush3.bf16.msra.mxu0 %v14656_v28  ;;  %13379 = vmatpush3.bf16.msra.mxu1 %v14656_v28  ;;  %v15914_v28 = vld [vmem:[%s20092_s18 + $0x60] sm:$0xff]  }
  0xab   : > { %13300 = vmatprep.subr.bf16.mxu0 %v16096_v0  ;;  %13380 = vmatprep.subr.bf16.mxu1 %v16096_v0 }
  0xae   : > { %13301 = vmatpush3.bf16.msra.mxu0 %v14657_v29  ;;  %13381 = vmatpush3.bf16.msra.mxu1 %v14657_v29  ;;  %v15915_v29 = vld [vmem:[%s20092_s18 + $0x68] sm:$0xff]  }
  0xaf   : > { %13302 = vmatprep.subr.bf16.mxu0 %v16096_v0  ;;  %13382 = vmatprep.subr.bf16.mxu1 %v16096_v0 }
  0xb2   : > { %13303 = vmatpush3.bf16.msra.mxu0 %v14658_v30  ;;  %13383 = vmatpush3.bf16.msra.mxu1 %v14658_v30  ;;  %v15916_v30 = vld [vmem:[%s20092_s18 + $0x70] sm:$0xff]  }
  0xb3   : > { %13304 = vmatprep.subr.bf16.mxu0 %v16096_v0  ;;  %13384 = vmatprep.subr.bf16.mxu1 %v16096_v0 }
  0xb6   : > { %13305 = vmatpush3.bf16.msra.mxu0 %v14659_v33  ;;  %13385 = vmatpush3.bf16.msra.mxu1 %v14659_v33  ;;  %v15919_v33 = vld [vmem:[%s20092_s18 + $0x88] sm:$0xff]  }
  0xb7   : > { %13306 = vmatprep.subr.bf16.mxu0 %v16096_v0  ;;  %13386 = vmatprep.subr.bf16.mxu1 %v16096_v0 }
  0xba   : > { %13307 = vmatpush3.bf16.msra.mxu0 %v14660_v35  ;;  %13387 = vmatpush3.bf16.msra.mxu1 %v14660_v35  ;;  %v15921_v35 = vld [vmem:[%s20092_s18 + $0x98] sm:$0xff]  }
  0xbb   : > { %13312 = vmatprep.subr.bf16.mxu0 %v16096_v0  ;;  %13392 = vmatprep.subr.bf16.mxu1 %v16096_v0 }
  0xbd   : > { %13309 = vmatmul.mubr.msk.bf16.vlgmr.msra.gmra.mrb[0].mxu0 %vm646_vm1, %v16440_v27  ;;  %13389 = vmatmul.mubr.msk.bf16.vlgmr.msra.gmra.mrb[0].mxu1 %vm646_vm1, %v16482_v37 }
  0xbe   : > { %13313 = vmatpush3.bf16.msra.mxu0 %v14661_v36  ;;  %13393 = vmatpush3.bf16.msra.mxu1 %v14661_v36  ;;  %v15922_v36 = vld [vmem:[%s20092_s18 + $0xa0] sm:$0xff]  }
  0xbf   : > { %13314 = vmatprep.subr.bf16.mxu0 %v16096_v0  ;;  %13394 = vmatprep.subr.bf16.mxu1 %v16096_v0 }
  0xc0   : > { %13324 = vmatprep.mubr.msk.bf16.mxu0 %vm16097_vm0, %v16096_v0  ;;  %13404 = vmatprep.mubr.msk.bf16.mxu1 %vm16097_vm0, %v16096_v0 }
  0xc2   : > { %13315 = vmatpush3.bf16.msra.mxu0 %v14662_v38  ;;  %13395 = vmatpush3.bf16.msra.mxu1 %v14662_v38  ;;  %v2093_v38 = vshll.u32 %v16355_v10, 16 }
  0xc3   : > { %13316 = vmatprep.subr.bf16.mxu0 %v16096_v0  ;;  %13396 = vmatprep.subr.bf16.mxu1 %v16096_v0 }
  0xc6   : > { %13317 = vmatpush3.bf16.msra.mxu0 %v14663_v39  ;;  %13397 = vmatpush3.bf16.msra.mxu1 %v14663_v39  ;;  %v15923_v39 = vld [vmem:[%s20092_s18 + $0xa8] sm:$0xff]  }
  0xc7   : > { %13318 = vmatprep.subr.bf16.mxu0 %v16096_v0  ;;  %13398 = vmatprep.subr.bf16.mxu1 %v16096_v0 }
  0xca   : > { %13319 = vmatpush3.bf16.msra.mxu0 %v14664_v40  ;;  %13399 = vmatpush3.bf16.msra.mxu1 %v14664_v40  ;;  %v2091_v40 = vshrl.u32 %v16355_v10, 16 }
  0xcb   : > { %13320 = vmatprep.subr.bf16.mxu0 %v16096_v0  ;;  %13400 = vmatprep.subr.bf16.mxu1 %v16096_v0 }
  0xce   : > { %13321 = vmatpush3.bf16.msra.mxu0 %v14665_v41  ;;  %13401 = vmatpush3.bf16.msra.mxu1 %v14665_v41  ;;  %v2095_v41 = vrot.slane %v2093_v38, 1  ;;  %v15959_v38 = vld [vmem:[%s20092_s18 + $0x1c8] sm:$0xff]  }
  0xcf   : > { %13322 = vmatprep.subr.bf16.mxu0 %v16096_v0  ;;  %13402 = vmatprep.subr.bf16.mxu1 %v16096_v0 }
  0xd2   : > { %13323 = vmatpush3.bf16.msra.mxu0 %v14666_v43  ;;  %13403 = vmatpush3.bf16.msra.mxu1 %v14666_v43 }
  0xd3   : > { %13408 = vmatprep.subr.bf16.mxu0 %v16096_v0  ;;  %13488 = vmatprep.subr.bf16.mxu1 %v16096_v0 }
  0xd5   : > { %13325 = vmatmul.mubr.msk.bf16.vlgmr.msra.gmra.mrb[0].mxu0 %vm646_vm1, %v16482_v37  ;;  %13405 = vmatmul.mubr.msk.bf16.vlgmr.msra.gmra.mrb[0].mxu1 %vm646_vm1, %v16524_v47 }
  0xd6   : > { %13409 = vmatpush3.bf16.msra.mxu0 %v14667_v46  ;;  %13489 = vmatpush3.bf16.msra.mxu1 %v14667_v46 }
  0xd7   : > { %13410 = vmatprep.subr.bf16.mxu0 %v16096_v0  ;;  %13490 = vmatprep.subr.bf16.mxu1 %v16096_v0 }
  0xd8   : > { %13420 = vmatprep.mubr.msk.bf16.mxu0 %vm16097_vm0, %v16096_v0  ;;  %13500 = vmatprep.mubr.msk.bf16.mxu1 %vm16097_vm0, %v16096_v0 }
  0xda   : > { %13411 = vmatpush3.bf16.msra.mxu0 %v14668_v48  ;;  %13491 = vmatpush3.bf16.msra.mxu1 %v14668_v48 }
  0xdb   : > { %13412 = vmatprep.subr.bf16.mxu0 %v16096_v0  ;;  %13492 = vmatprep.subr.bf16.mxu1 %v16096_v0 }
  0xde   : > { %13413 = vmatpush3.bf16.msra.mxu0 %v14669_v49  ;;  %13493 = vmatpush3.bf16.msra.mxu1 %v14669_v49  ;;  %v16870_v49 = vor.u32 %v2095_v41, %v2091_v40  ;;  %v15961_v40 = vld [vmem:[%s20092_s18 + $0x1d8] sm:$0xff]   ;;  %v14697_v41 = vld [vmem:[%s20044_s3 + $0x2c] sm:$0xff]  }
  0xdf   : > { %13414 = vmatprep.subr.bf16.mxu0 %v16096_v0  ;;  %13494 = vmatprep.subr.bf16.mxu1 %v16096_v0 }
  0xe2   : > { %13415 = vmatpush3.bf16.msra.mxu0 %v14670_v50  ;;  %13495 = vmatpush3.bf16.msra.mxu1 %v14670_v50 }
  0xe3   : > { %13416 = vmatprep.subr.bf16.mxu0 %v16096_v0  ;;  %13496 = vmatprep.subr.bf16.mxu1 %v16096_v0 }
  0xe6   : > { %13417 = vmatpush3.bf16.msra.mxu0 %v14671_v51  ;;  %13497 = vmatpush3.bf16.msra.mxu1 %v14671_v51 }
  0xe7   : > { %13418 = vmatprep.subr.bf16.mxu0 %v16096_v0  ;;  %13498 = vmatprep.subr.bf16.mxu1 %v16096_v0 }
  0xea   : > { %13419 = vmatpush3.bf16.msra.mxu0 %v14672_v52  ;;  %13499 = vmatpush3.bf16.msra.mxu1 %v14672_v52  ;;  %v15925_v52 = vld [vmem:[%s20092_s18 + $0xb8] sm:$0xff]  }
  0xeb   : > { %13424 = vmatprep.subr.bf16.mxu0 %v16096_v0  ;;  %13504 = vmatprep.subr.bf16.mxu1 %v16096_v0 }
  0xed   : > { %13421 = vmatmul.mubr.msk.bf16.vlgmr.msra.gmra.mrb[4].mxu0 %vm646_vm1, %v16353_v9  ;;  %13501 = vmatmul.mubr.msk.bf16.vlgmr.msra.gmra.mrb[4].mxu1 %vm646_vm1, %v16355_v10 }
  0xee   : > { %13425 = vmatpush3.bf16.msra.mxu0 %v14673_v53  ;;  %13505 = vmatpush3.bf16.msra.mxu1 %v14673_v53 }
  0xef   : > { %13426 = vmatprep.subr.bf16.mxu0 %v16096_v0  ;;  %13506 = vmatprep.subr.bf16.mxu1 %v16096_v0 }
  0xf0   : > { %13436 = vmatprep.mubr.msk.bf16.mxu0 %vm16097_vm0, %v16096_v0  ;;  %13516 = vmatprep.mubr.msk.bf16.mxu1 %vm16097_vm0, %v16096_v0 }
  0xf2   : > { %13427 = vmatpush3.bf16.msra.mxu0 %v14674_v54  ;;  %13507 = vmatpush3.bf16.msra.mxu1 %v14674_v54 }
  0xf3   : > { %13428 = vmatprep.subr.bf16.mxu0 %v16096_v0  ;;  %13508 = vmatprep.subr.bf16.mxu1 %v16096_v0 }
  0xf6   : > { %13429 = vmatpush3.bf16.msra.mxu0 %v14675_v55  ;;  %13509 = vmatpush3.bf16.msra.mxu1 %v14675_v55  ;;  %v15926_v55 = vld [vmem:[%s20092_s18 + $0xc0] sm:$0xff]  }
  0xf7   : > { %13430 = vmatprep.subr.bf16.mxu0 %v16096_v0  ;;  %13510 = vmatprep.subr.bf16.mxu1 %v16096_v0 }
  0xfa   : > { %13431 = vmatpush3.bf16.msra.mxu0 %v14676_v56  ;;  %13511 = vmatpush3.bf16.msra.mxu1 %v14676_v56  ;;  %v15927_v56 = vld [vmem:[%s20092_s18 + $0xc8] sm:$0xff]  }
  0xfb   : > { %13432 = vmatprep.subr.bf16.mxu0 %v16096_v0  ;;  %13512 = vmatprep.subr.bf16.mxu1 %v16096_v0 }
  0xfe   : > { %13433 = vmatpush3.bf16.msra.mxu0 %v14677_v57  ;;  %13513 = vmatpush3.bf16.msra.mxu1 %v14677_v57  ;;  %v15928_v57 = vld [vmem:[%s20092_s18 + $0xd0] sm:$0xff]  }
  0xff   : > { %13434 = vmatprep.subr.bf16.mxu0 %v16096_v0  ;;  %13514 = vmatprep.subr.bf16.mxu1 %v16096_v0 }
 0x102   : > { %13435 = vmatpush3.bf16.msra.mxu0 %v14678_v58  ;;  %13515 = vmatpush3.bf16.msra.mxu1 %v14678_v58  ;;  %v2305_v58 = vshll.u32 %v16440_v27, 16 }
 0x103   : > { %13440 = vmatprep.subr.bf16.mxu0 %v16096_v0  ;;  %13520 = vmatprep.subr.bf16.mxu1 %v16096_v0 }
 0x105   : > { %13437 = vmatmul.mubr.msk.bf16.vlgmr.msra.gmra.mrb[4].mxu0 %vm646_vm1, %v16396_v18  ;;  %13517 = vmatmul.mubr.msk.bf16.vlgmr.msra.gmra.mrb[4].mxu1 %vm646_vm1, %v16353_v9  ;;  %v14692_v9 = vld [vmem:[%s20092_s18 + $0x1b8] sm:$0xff]   ;;  %v15905_v18 = vld [vmem:[%s20092_s18 + $0x48] sm:$0xff]  }
 0x106   : > { %13441 = vmatpush3.bf16.msra.mxu0 %v14679_v59  ;;  %13521 = vmatpush3.bf16.msra.mxu1 %v14679_v59  ;;  %v15929_v59 = vld [vmem:[%s20092_s18 + $0xd8] sm:$0xff]  }
 0x107   : > { %13442 = vmatprep.subr.bf16.mxu0 %v16096_v0  ;;  %13522 = vmatprep.subr.bf16.mxu1 %v16096_v0 }
 0x108   : > { %13452 = vmatprep.mubr.msk.bf16.mxu0 %vm16097_vm0, %v16096_v0  ;;  %13532 = vmatprep.mubr.msk.bf16.mxu1 %vm16097_vm0, %v16096_v0 }
 0x10a   : > { %13443 = vmatpush3.bf16.msra.mxu0 %v14680_v60  ;;  %13523 = vmatpush3.bf16.msra.mxu1 %v14680_v60  ;;  %v2303_v60 = vshrl.u32 %v16440_v27, 16 }
 0x10b   : > { %13444 = vmatprep.subr.bf16.mxu0 %v16096_v0  ;;  %13524 = vmatprep.subr.bf16.mxu1 %v16096_v0 }
 0x10e   : > { %13445 = vmatpush3.bf16.msra.mxu0 %v14681_v61  ;;  %13525 = vmatpush3.bf16.msra.mxu1 %v14681_v61  ;;  %v2307_v61 = vrot.slane %v2305_v58, 1  ;;  %v14704_v58 = vld [vmem:[%s20044_s3 + $0x8] sm:$0xff]  }
 0x10f   : > { %13446 = vmatprep.subr.bf16.mxu0 %v16096_v0  ;;  %13526 = vmatprep.subr.bf16.mxu1 %v16096_v0 }
 0x112   : > { %13447 = vmatpush3.bf16.msra.mxu0 %v14682_v62  ;;  %13527 = vmatpush3.bf16.msra.mxu1 %v14682_v62  ;;  %v15930_v62 = vld [vmem:[%s20092_s18 + $0xe0] sm:$0xff]  }
 0x113   : > { %13448 = vmatprep.subr.bf16.mxu0 %v16096_v0  ;;  %13528 = vmatprep.subr.bf16.mxu1 %v16096_v0 }
 0x116   : > { %13449 = vmatpush3.bf16.msra.mxu0 %v14683_v63  ;;  %13529 = vmatpush3.bf16.msra.mxu1 %v14683_v63  ;;  %v16912_v63 = vor.u32 %v2307_v61, %v2303_v60  ;;  %v14706_v60 = vld [vmem:[%s20044_s3 + $0x18] sm:$0xff]   ;;  %v14707_v61 = vld [vmem:[%s20044_s3 + $0x20] sm:$0xff]  }
 0x117   : > { %13450 = vmatprep.subr.bf16.mxu0 %v16096_v0  ;;  %13530 = vmatprep.subr.bf16.mxu1 %v16096_v0 }
 0x11a   : > { %13451 = vmatpush3.bf16.msra.mxu0 %v14684_v1  ;;  %13531 = vmatpush3.bf16.msra.mxu1 %v14684_v1  ;;  %v15931_v1 = vld [vmem:[%s20092_s18 + $0xe8] sm:$0xff]  }
 0x11b   : > { %13456 = vmatprep.subr.bf16.mxu0 %v16096_v0  ;;  %13536 = vmatprep.subr.bf16.mxu1 %v16096_v0 }
 0x11d   : > { %13453 = vmatmul.mubr.msk.bf16.vlgmr.msra.gmra.mrb[4].mxu0 %vm646_vm1, %v16355_v10  ;;  %13533 = vmatmul.mubr.msk.bf16.vlgmr.msra.gmra.mrb[4].mxu1 %vm646_vm1, %v16440_v27 }
 0x11e   : > { %13457 = vmatpush3.bf16.msra.mxu0 %v14685_v2  ;;  %13537 = vmatpush3.bf16.msra.mxu1 %v14685_v2  ;;  %v15932_v2 = vld [vmem:[%s20092_s18 + $0x120] sm:$0xff]  }
 0x11f   : > { %13458 = vmatprep.subr.bf16.mxu0 %v16096_v0  ;;  %13538 = vmatprep.subr.bf16.mxu1 %v16096_v0 }
 0x120   : > { %13468 = vmatprep.mubr.msk.bf16.mxu0 %vm16097_vm0, %v16096_v0  ;;  %13548 = vmatprep.mubr.msk.bf16.mxu1 %vm16097_vm0, %v16096_v0 }
 0x122   : > { %13459 = vmatpush3.bf16.msra.mxu0 %v14686_v3  ;;  %13539 = vmatpush3.bf16.msra.mxu1 %v14686_v3  ;;  %v15933_v3 = vld [vmem:[%s20092_s18 + $0x128] sm:$0xff]  }
 0x123   : > { %13460 = vmatprep.subr.bf16.mxu0 %v16096_v0  ;;  %13540 = vmatprep.subr.bf16.mxu1 %v16096_v0 }
 0x126   : > { %13461 = vmatpush3.bf16.msra.mxu0 %v14687_v4  ;;  %13541 = vmatpush3.bf16.msra.mxu1 %v14687_v4  ;;  %v15934_v4 = vld [vmem:[%s20092_s18 + $0x130] sm:$0xff]  }
 0x127   : > { %13462 = vmatprep.subr.bf16.mxu0 %v16096_v0  ;;  %13542 = vmatprep.subr.bf16.mxu1 %v16096_v0 }
 0x12a   : > { %13463 = vmatpush3.bf16.msra.mxu0 %v14688_v5  ;;  %13543 = vmatpush3.bf16.msra.mxu1 %v14688_v5  ;;  %v15935_v5 = vld [vmem:[%s20092_s18 + $0x138] sm:$0xff]  }
 0x12b   : > { %13464 = vmatprep.subr.bf16.mxu0 %v16096_v0  ;;  %13544 = vmatprep.subr.bf16.mxu1 %v16096_v0 }
 0x12e   : > { %13465 = vmatpush3.bf16.msra.mxu0 %v14689_v6  ;;  %13545 = vmatpush3.bf16.msra.mxu1 %v14689_v6  ;;  %v15936_v6 = vld [vmem:[%s20092_s18 + $0x140] sm:$0xff]  }
 0x12f   : > { %13466 = vmatprep.subr.bf16.mxu0 %v16096_v0  ;;  %13546 = vmatprep.subr.bf16.mxu1 %v16096_v0 }
 0x132   : > { %13467 = vmatpush3.bf16.msra.mxu0 %v14690_v7  ;;  %13547 = vmatpush3.bf16.msra.mxu1 %v14690_v7  ;;  %v15937_v7 = vld [vmem:[%s20092_s18 + $0x148] sm:$0xff]  }
 0x133   : > { %13472 = vmatprep.subr.bf16.mxu0 %v16096_v0  ;;  %13552 = vmatprep.subr.bf16.mxu1 %v16096_v0 }
 0x135   : > { %13469 = vmatmul.mubr.msk.bf16.vlgmr.msra.gmra.mrb[4].mxu0 %vm646_vm1, %v16440_v27  ;;  %13549 = vmatmul.mubr.msk.bf16.vlgmr.msra.gmra.mrb[4].mxu1 %vm646_vm1, %v16482_v37 }
 0x136   : > { %13473 = vmatpush3.bf16.msra.mxu0 %v14691_v8  ;;  %13553 = vmatpush3.bf16.msra.mxu1 %v14691_v8  ;;  %v15938_v8 = vld [vmem:[%s20092_s18 + $0xf0] sm:$0xff]  }
 0x137   : > { %13474 = vmatprep.subr.bf16.mxu0 %v16096_v0  ;;  %13554 = vmatprep.subr.bf16.mxu1 %v16096_v0 }
 0x138   : > { %13484 = vmatprep.mubr.msk.bf16.mxu0 %vm16097_vm0, %v16096_v0  ;;  %13564 = vmatprep.mubr.msk.bf16.mxu1 %vm16097_vm0, %v16096_v0 }
 0x13a   : > { %13475 = vmatpush3.bf16.msra.mxu0 %v14692_v9  ;;  %13555 = vmatpush3.bf16.msra.mxu1 %v14692_v9  ;;  %v15939_v9 = vld [vmem:[%s20092_s18 + $0xf8] sm:$0xff]  }
 0x13b   : > { %13476 = vmatprep.subr.bf16.mxu0 %v16096_v0  ;;  %13556 = vmatprep.subr.bf16.mxu1 %v16096_v0 }
 0x13e   : > { %13477 = vmatpush3.bf16.msra.mxu0 %v14693_v11  ;;  %13557 = vmatpush3.bf16.msra.mxu1 %v14693_v11  ;;  %v15940_v11 = vld [vmem:[%s20092_s18 + $0x100] sm:$0xff]  }
 0x13f   : > { %13478 = vmatprep.subr.bf16.mxu0 %v16096_v0  ;;  %13558 = vmatprep.subr.bf16.mxu1 %v16096_v0 }
 0x142   : > { %13479 = vmatpush3.bf16.msra.mxu0 %v14694_v12  ;;  %13559 = vmatpush3.bf16.msra.mxu1 %v14694_v12  ;;  %v15941_v12 = vld [vmem:[%s20092_s18 + $0x108] sm:$0xff]  }
 0x143   : > { %13480 = vmatprep.subr.bf16.mxu0 %v16096_v0  ;;  %13560 = vmatprep.subr.bf16.mxu1 %v16096_v0 }
 0x146   : > { %13481 = vmatpush3.bf16.msra.mxu0 %v14695_v13  ;;  %13561 = vmatpush3.bf16.msra.mxu1 %v14695_v13  ;;  %v15942_v13 = vld [vmem:[%s20092_s18 + $0x110] sm:$0xff]  }
 0x147   : > { %13482 = vmatprep.subr.bf16.mxu0 %v16096_v0  ;;  %13562 = vmatprep.subr.bf16.mxu1 %v16096_v0 }
 0x14a   : > { %13483 = vmatpush3.bf16.msra.mxu0 %v14696_v14  ;;  %13563 = vmatpush3.bf16.msra.mxu1 %v14696_v14  ;;  %v15943_v14 = vld [vmem:[%s20092_s18 + $0x118] sm:$0xff]  }
 0x14b   : > { %13568 = vmatprep.subr.bf16.mxu0 %v16096_v0  ;;  %13648 = vmatprep.subr.bf16.mxu1 %v16096_v0 }
 0x14d   : > { %13485 = vmatmul.mubr.msk.bf16.vlgmr.msra.gmra.mrb[4].mxu0 %vm646_vm1, %v16482_v37  ;;  %13565 = vmatmul.mubr.msk.bf16.vlgmr.msra.gmra.mrb[4].mxu1 %vm646_vm1, %v16524_v47 }
 0x14e   : > { %13569 = vmatpush3.bf16.msra.mxu0 %v15902_v15  ;;  %13649 = vmatpush3.bf16.msra.mxu1 %v15902_v15  ;;  %v15944_v15 = vld [vmem:[%s20092_s18 + $0x150] sm:$0xff]  }
 0x14f   : > { %13570 = vmatprep.subr.bf16.mxu0 %v16096_v0  ;;  %13650 = vmatprep.subr.bf16.mxu1 %v16096_v0 }
 0x150   : > { %13580 = vmatprep.mubr.msk.bf16.mxu0 %vm16097_vm0, %v16096_v0  ;;  %13660 = vmatprep.mubr.msk.bf16.mxu1 %vm16097_vm0, %v16096_v0 }
 0x152   : > { %13571 = vmatpush3.bf16.msra.mxu0 %v15903_v16  ;;  %13651 = vmatpush3.bf16.msra.mxu1 %v15903_v16  ;;  %v15947_v16 = vld [vmem:[%s20092_s18 + $0x168] sm:$0xff]  }
 0x153   : > { %13572 = vmatprep.subr.bf16.mxu0 %v16096_v0  ;;  %13652 = vmatprep.subr.bf16.mxu1 %v16096_v0 }
 0x156   : > { %13573 = vmatpush3.bf16.msra.mxu0 %v15904_v17  ;;  %13653 = vmatpush3.bf16.msra.mxu1 %v15904_v17  ;;  %v15948_v17 = vld [vmem:[%s20092_s18 + $0x170] sm:$0xff]  }
 0x157   : > { %13574 = vmatprep.subr.bf16.mxu0 %v16096_v0  ;;  %13654 = vmatprep.subr.bf16.mxu1 %v16096_v0 }
 0x15a   : > { %13575 = vmatpush3.bf16.msra.mxu0 %v15905_v18  ;;  %13655 = vmatpush3.bf16.msra.mxu1 %v15905_v18  ;;  %v15949_v18 = vld [vmem:[%s20092_s18 + $0x178] sm:$0xff]  }
 0x15b   : > { %13576 = vmatprep.subr.bf16.mxu0 %v16096_v0  ;;  %13656 = vmatprep.subr.bf16.mxu1 %v16096_v0 }
 0x15e   : > { %13577 = vmatpush3.bf16.msra.mxu0 %v15906_v19  ;;  %13657 = vmatpush3.bf16.msra.mxu1 %v15906_v19  ;;  %v15950_v19 = vld [vmem:[%s20092_s18 + $0x180] sm:$0xff]  }
 0x15f   : > { %13578 = vmatprep.subr.bf16.mxu0 %v16096_v0  ;;  %13658 = vmatprep.subr.bf16.mxu1 %v16096_v0 }
 0x162   : > { %13579 = vmatpush3.bf16.msra.mxu0 %v15907_v20  ;;  %13659 = vmatpush3.bf16.msra.mxu1 %v15907_v20  ;;  %v15952_v20 = vld [vmem:[%s20092_s18 + $0x190] sm:$0xff]  }
 0x163   : > { %13584 = vmatprep.subr.bf16.mxu0 %v16096_v0  ;;  %13664 = vmatprep.subr.bf16.mxu1 %v16096_v0 }
 0x165   : > { %13581 = vmatmul.mubr.msk.bf16.vlgmr.msra.gmra.mrb[8].mxu0 %vm646_vm1, %v16440_v27  ;;  %13661 = vmatmul.mubr.msk.bf16.vlgmr.msra.gmra.mrb[8].mxu1 %vm646_vm1, %v16482_v37 }
 0x166   : > { %13585 = vmatpush3.bf16.msra.mxu0 %v15908_v21  ;;  %13665 = vmatpush3.bf16.msra.mxu1 %v15908_v21  ;;  %v15953_v21 = vld [vmem:[%s20092_s18 + $0x198] sm:$0xff]  }
 0x167   : > { %13586 = vmatprep.subr.bf16.mxu0 %v16096_v0  ;;  %13666 = vmatprep.subr.bf16.mxu1 %v16096_v0 }
 0x168   : > { %13596 = vmatprep.mubr.msk.bf16.mxu0 %vm16097_vm0, %v16096_v0  ;;  %13676 = vmatprep.mubr.msk.bf16.mxu1 %vm16097_vm0, %v16096_v0 }
 0x16a   : > { %13587 = vmatpush3.bf16.msra.mxu0 %v15909_v22  ;;  %13667 = vmatpush3.bf16.msra.mxu1 %v15909_v22  ;;  %v15954_v22 = vld [vmem:[%s20092_s18 + $0x1a0] sm:$0xff]  }
 0x16b   : > { %13588 = vmatprep.subr.bf16.mxu0 %v16096_v0  ;;  %13668 = vmatprep.subr.bf16.mxu1 %v16096_v0 }
 0x16e   : > { %13589 = vmatpush3.bf16.msra.mxu0 %v15910_v23  ;;  %13669 = vmatpush3.bf16.msra.mxu1 %v15910_v23 }
 0x16f   : > { %13590 = vmatprep.subr.bf16.mxu0 %v16096_v0  ;;  %13670 = vmatprep.subr.bf16.mxu1 %v16096_v0 }
 0x172   : > { %13591 = vmatpush3.bf16.msra.mxu0 %v15911_v24  ;;  %13671 = vmatpush3.bf16.msra.mxu1 %v15911_v24 }
 0x173   : > { %13592 = vmatprep.subr.bf16.mxu0 %v16096_v0  ;;  %13672 = vmatprep.subr.bf16.mxu1 %v16096_v0 }
 0x176   : > { %13593 = vmatpush3.bf16.msra.mxu0 %v15912_v25  ;;  %13673 = vmatpush3.bf16.msra.mxu1 %v15912_v25 }
 0x177   : > { %13594 = vmatprep.subr.bf16.mxu0 %v16096_v0  ;;  %13674 = vmatprep.subr.bf16.mxu1 %v16096_v0 }
 0x17a   : > { %13595 = vmatpush3.bf16.msra.mxu0 %v15913_v26  ;;  %13675 = vmatpush3.bf16.msra.mxu1 %v15913_v26 }
 0x17b   : > { %13600 = vmatprep.subr.bf16.mxu0 %v16096_v0  ;;  %13680 = vmatprep.subr.bf16.mxu1 %v16096_v0 }
 0x17d   : > { %13597 = vmatmul.mubr.msk.bf16.vlgmr.msra.gmra.mrb[8].mxu0 %vm646_vm1, %v16355_v10  ;;  %13677 = vmatmul.mubr.msk.bf16.vlgmr.msra.gmra.mrb[8].mxu1 %vm646_vm1, %v16440_v27 }
 0x17e   : > { %13601 = vmatpush3.bf16.msra.mxu0 %v15914_v28  ;;  %13681 = vmatpush3.bf16.msra.mxu1 %v15914_v28 }
 0x17f   : > { %13602 = vmatprep.subr.bf16.mxu0 %v16096_v0  ;;  %13682 = vmatprep.subr.bf16.mxu1 %v16096_v0 }
 0x180   : > { %13612 = vmatprep.mubr.msk.bf16.mxu0 %vm16097_vm0, %v16096_v0  ;;  %13692 = vmatprep.mubr.msk.bf16.mxu1 %vm16097_vm0, %v16096_v0 }
 0x182   : > { %13603 = vmatpush3.bf16.msra.mxu0 %v15915_v29  ;;  %13683 = vmatpush3.bf16.msra.mxu1 %v15915_v29 }
 0x183   : > { %13604 = vmatprep.subr.bf16.mxu0 %v16096_v0  ;;  %13684 = vmatprep.subr.bf16.mxu1 %v16096_v0 }
 0x186   : > { %13605 = vmatpush3.bf16.msra.mxu0 %v15916_v30  ;;  %13685 = vmatpush3.bf16.msra.mxu1 %v15916_v30 }
 0x187   : > { %13606 = vmatprep.subr.bf16.mxu0 %v16096_v0  ;;  %13686 = vmatprep.subr.bf16.mxu1 %v16096_v0 }
 0x18a   : > { %13607 = vmatpush3.bf16.msra.mxu0 %v15917_v31  ;;  %13687 = vmatpush3.bf16.msra.mxu1 %v15917_v31  ;;  %v15955_v31 = vld [vmem:[%s20092_s18 + $0x1a8] sm:$0xff]  }
 0x18b   : > { %13608 = vmatprep.subr.bf16.mxu0 %v16096_v0  ;;  %13688 = vmatprep.subr.bf16.mxu1 %v16096_v0 }
 0x18e   : > { %13609 = vmatpush3.bf16.msra.mxu0 %v15918_v32  ;;  %13689 = vmatpush3.bf16.msra.mxu1 %v15918_v32 }
 0x18f   : > { %13610 = vmatprep.subr.bf16.mxu0 %v16096_v0  ;;  %13690 = vmatprep.subr.bf16.mxu1 %v16096_v0 }
 0x192   : > { %13611 = vmatpush3.bf16.msra.mxu0 %v15919_v33  ;;  %13691 = vmatpush3.bf16.msra.mxu1 %v15919_v33 }
 0x193   : > { %13616 = vmatprep.subr.bf16.mxu0 %v16096_v0  ;;  %13696 = vmatprep.subr.bf16.mxu1 %v16096_v0 }
 0x195   : > { %13613 = vmatmul.mubr.msk.bf16.vlgmr.msra.gmra.mrb[8].mxu0 %vm646_vm1, %v16482_v37  ;;  %13693 = vmatmul.mubr.msk.bf16.vlgmr.msra.gmra.mrb[8].mxu1 %vm646_vm1, %v16524_v47 }
 0x196   : > { %13617 = vmatpush3.bf16.msra.mxu0 %v15920_v34  ;;  %13697 = vmatpush3.bf16.msra.mxu1 %v15920_v34 }
 0x197   : > { %13618 = vmatprep.subr.bf16.mxu0 %v16096_v0  ;;  %13698 = vmatprep.subr.bf16.mxu1 %v16096_v0 }
 0x198   : > { %13628 = vmatprep.mubr.msk.bf16.mxu0 %vm16097_vm0, %v16096_v0  ;;  %13708 = vmatprep.mubr.msk.bf16.mxu1 %vm16097_vm0, %v16096_v0 }
 0x19a   : > { %13619 = vmatpush3.bf16.msra.mxu0 %v15921_v35  ;;  %13699 = vmatpush3.bf16.msra.mxu1 %v15921_v35  ;;  %v15956_v35 = vld [vmem:[%s20092_s18 + $0x1b0] sm:$0xff]  }
 0x19b   : > { %13620 = vmatprep.subr.bf16.mxu0 %v16096_v0  ;;  %13700 = vmatprep.subr.bf16.mxu1 %v16096_v0 }
 0x19e   : > { %13621 = vmatpush3.bf16.msra.mxu0 %v15922_v36  ;;  %13701 = vmatpush3.bf16.msra.mxu1 %v15922_v36  ;;  %v15958_v36 = vld [vmem:[%s20092_s18 + $0x1c0] sm:$0xff]  }
 0x19f   : > { %13622 = vmatprep.subr.bf16.mxu0 %v16096_v0  ;;  %13702 = vmatprep.subr.bf16.mxu1 %v16096_v0 }
 0x1a2   : > { %13623 = vmatpush3.bf16.msra.mxu0 %v15923_v39  ;;  %13703 = vmatpush3.bf16.msra.mxu1 %v15923_v39  ;;  %v15960_v39 = vld [vmem:[%s20092_s18 + $0x1d0] sm:$0xff]  }
 0x1a3   : > { %13624 = vmatprep.subr.bf16.mxu0 %v16096_v0  ;;  %13704 = vmatprep.subr.bf16.mxu1 %v16096_v0 }
 0x1a6   : > { %13625 = vmatpush3.bf16.msra.mxu0 %v15924_v42  ;;  %13705 = vmatpush3.bf16.msra.mxu1 %v15924_v42  ;;  %v17118_v42 = vld [vmem:[%s20043_s2] ss:$0 sm:$0xff] }
 0x1a7   : > { %13626 = vmatprep.subr.bf16.mxu0 %v16096_v0  ;;  %13706 = vmatprep.subr.bf16.mxu1 %v16096_v0 }
 0x1a8   : > { %v16864_v43 = vpop.f32.mrb[0].mxu0  ;;  %v16866_v44 = vpop.f32.mrb[0].mxu1 }
 0x1a9   : > { %v1917_v45 = vmax.f32 %v16864_v43, %v16866_v44  ;;  %v13326_v46 = vpop.f32.mrb[1].mxu0  ;;  %v13406_v48 = vpop.f32.mrb[1].mxu1  ;;  %v14698_v43 = vld [vmem:[%s20044_s3 + $0x34] sm:$0xff]  }
 0x1aa   : > { %v1050_v50 = vpop.f32.mrb[2].mxu0  ;;  %v1262_v51 = vpop.f32.mrb[2].mxu1  ;;  %13627 = vmatpush3.bf16.msra.mxu0 %v15925_v52  ;;  %13707 = vmatpush3.bf16.msra.mxu1 %v15925_v52  ;;  %v14700_v48 = vld [vmem:[%s20044_s3 + $0x44] sm:$0xff]  }
 0x1ab   : > { %v13327_v53 = vpop.f32.mrb[3].mxu0  ;;  %v13407_v54 = vpop.f32.mrb[3].mxu1  ;;  %13632 = vmatprep.subr.bf16.mxu0 %v16096_v0  ;;  %13712 = vmatprep.subr.bf16.mxu1 %v16096_v0  ;;  %v14701_v50 = vld [vmem:[%s20044_s3 + $0x4c] sm:$0xff]   ;;  %v14702_v51 = vld [vmem:[%s20044_s3 + $0x54] ss:$0 sps:$4 sm:$0x33]  }
 0x1ac   : > { %v2828_v53 = vsel %vm2826_vm2, %v14702_v51, 0 }
 0x1ad   : > { %13629 = vmatmul.mubr.msk.bf16.vlgmr.msra.gmra.mrb[8].mxu0 %vm646_vm1, %v16524_v47  ;;  %13709 = vmatmul.mubr.msk.bf16.vlgmr.msra.gmra.mrb[8].mxu1 %vm646_vm1, %v16870_v49 }
 0x1ae   : > { %13633 = vmatpush3.bf16.msra.mxu0 %v15926_v55  ;;  %13713 = vmatpush3.bf16.msra.mxu1 %v15926_v55 }
 0x1af   : > { %13634 = vmatprep.subr.bf16.mxu0 %v16096_v0  ;;  %13714 = vmatprep.subr.bf16.mxu1 %v16096_v0 }
 0x1b0   : > { %13644 = vmatprep.mubr.msk.bf16.mxu0 %vm16097_vm0, %v16096_v0  ;;  %13724 = vmatprep.mubr.msk.bf16.mxu1 %vm16097_vm0, %v16096_v0 }
 0x1b2   : > { %13635 = vmatpush3.bf16.msra.mxu0 %v15927_v56  ;;  %13715 = vmatpush3.bf16.msra.mxu1 %v15927_v56  ;;  %v14703_v56 = vld [vmem:[%s20044_s3] sm:$0xff]  }
 0x1b3   : > { %13636 = vmatprep.subr.bf16.mxu0 %v16096_v0  ;;  %13716 = vmatprep.subr.bf16.mxu1 %v16096_v0 }
 0x1b6   : > { %13637 = vmatpush3.bf16.msra.mxu0 %v15928_v57  ;;  %13717 = vmatpush3.bf16.msra.mxu1 %v15928_v57 }
 0x1b7   : > { %13638 = vmatprep.subr.bf16.mxu0 %v16096_v0  ;;  %13718 = vmatprep.subr.bf16.mxu1 %v16096_v0 }
 0x1ba   : > { %13639 = vmatpush3.bf16.msra.mxu0 %v15929_v59  ;;  %13719 = vmatpush3.bf16.msra.mxu1 %v15929_v59  ;;  %v14705_v59 = vld [vmem:[%s20044_s3 + $0x10] sm:$0xff]  }
 0x1bb   : > { %13640 = vmatprep.subr.bf16.mxu0 %v16096_v0  ;;  %13720 = vmatprep.subr.bf16.mxu1 %v16096_v0 }
 0x1be   : > { %13641 = vmatpush3.bf16.msra.mxu0 %v15930_v62  ;;  %13721 = vmatpush3.bf16.msra.mxu1 %v15930_v62  ;;  %v14708_v62 = vld [vmem:[%s20044_s3 + $0x28] ss:$0 sps:$4 sm:$0x33]  }
 0x1bf   : > { %13642 = vmatprep.subr.bf16.mxu0 %v16096_v0  ;;  %13722 = vmatprep.subr.bf16.mxu1 %v16096_v0 }
 0x1c2   : > { %13643 = vmatpush3.bf16.msra.mxu0 %v15931_v1  ;;  %13723 = vmatpush3.bf16.msra.mxu1 %v15931_v1 }
 0x1c3   : > { %13728 = vmatprep.subr.bf16.mxu0 %v16096_v0  ;;  %13808 = vmatprep.subr.bf16.mxu1 %v16096_v0 }
 0x1c5   : > { %13645 = vmatmul.mubr.msk.bf16.vlgmr.msra.gmra.mrb[8].mxu0 %vm646_vm1, %v16870_v49  ;;  %13725 = vmatmul.mubr.msk.bf16.vlgmr.msra.gmra.mrb[8].mxu1 %vm646_vm1, %v16912_v63 }
 0x1c6   : > { %13729 = vmatpush3.bf16.msra.mxu0 %v15932_v2  ;;  %13809 = vmatpush3.bf16.msra.mxu1 %v15932_v2 }
 0x1c7   : > { %13730 = vmatprep.subr.bf16.mxu0 %v16096_v0  ;;  %13810 = vmatprep.subr.bf16.mxu1 %v16096_v0 }
 0x1c8   : > { %13740 = vmatprep.mubr.msk.bf16.mxu0 %vm16097_vm0, %v16096_v0  ;;  %13820 = vmatprep.mubr.msk.bf16.mxu1 %vm16097_vm0, %v16096_v0 }
 0x1ca   : > { %13731 = vmatpush3.bf16.msra.mxu0 %v15933_v3  ;;  %13811 = vmatpush3.bf16.msra.mxu1 %v15933_v3 }
 0x1cb   : > { %13732 = vmatprep.subr.bf16.mxu0 %v16096_v0  ;;  %13812 = vmatprep.subr.bf16.mxu1 %v16096_v0 }
 0x1ce   : > { %13733 = vmatpush3.bf16.msra.mxu0 %v15934_v4  ;;  %13813 = vmatpush3.bf16.msra.mxu1 %v15934_v4 }
 0x1cf   : > { %13734 = vmatprep.subr.bf16.mxu0 %v16096_v0  ;;  %13814 = vmatprep.subr.bf16.mxu1 %v16096_v0 }
 0x1d2   : > { %13735 = vmatpush3.bf16.msra.mxu0 %v15935_v5  ;;  %13815 = vmatpush3.bf16.msra.mxu1 %v15935_v5 }
 0x1d3   : > { %13736 = vmatprep.subr.bf16.mxu0 %v16096_v0  ;;  %13816 = vmatprep.subr.bf16.mxu1 %v16096_v0 }
 0x1d6   : > { %13737 = vmatpush3.bf16.msra.mxu0 %v15936_v6  ;;  %13817 = vmatpush3.bf16.msra.mxu1 %v15936_v6 }
 0x1d7   : > { %13738 = vmatprep.subr.bf16.mxu0 %v16096_v0  ;;  %13818 = vmatprep.subr.bf16.mxu1 %v16096_v0 }
 0x1da   : > { %13739 = vmatpush3.bf16.msra.mxu0 %v15937_v7  ;;  %13819 = vmatpush3.bf16.msra.mxu1 %v15937_v7 }
 0x1db   : > { %13744 = vmatprep.subr.bf16.mxu0 %v16096_v0  ;;  %13824 = vmatprep.subr.bf16.mxu1 %v16096_v0 }
 0x1dd   : > { %13741 = vmatmul.mubr.msk.bf16.vlgmr.msra.gmra.mrb[12].mxu0 %vm646_vm1, %v16440_v27  ;;  %13821 = vmatmul.mubr.msk.bf16.vlgmr.msra.gmra.mrb[12].mxu1 %vm646_vm1, %v16482_v37 }
 0x1de   : > { %13745 = vmatpush3.bf16.msra.mxu0 %v15938_v8  ;;  %13825 = vmatpush3.bf16.msra.mxu1 %v15938_v8 }
 0x1df   : > { %13746 = vmatprep.subr.bf16.mxu0 %v16096_v0  ;;  %13826 = vmatprep.subr.bf16.mxu1 %v16096_v0 }
 0x1e0   : > { %13756 = vmatprep.mubr.msk.bf16.mxu0 %vm16097_vm0, %v16096_v0  ;;  %13836 = vmatprep.mubr.msk.bf16.mxu1 %vm16097_vm0, %v16096_v0 }
 0x1e2   : > { %13747 = vmatpush3.bf16.msra.mxu0 %v15939_v9  ;;  %13827 = vmatpush3.bf16.msra.mxu1 %v15939_v9 }
 0x1e3   : > { %13748 = vmatprep.subr.bf16.mxu0 %v16096_v0  ;;  %13828 = vmatprep.subr.bf16.mxu1 %v16096_v0 }
 0x1e6   : > { %13749 = vmatpush3.bf16.msra.mxu0 %v15940_v11  ;;  %13829 = vmatpush3.bf16.msra.mxu1 %v15940_v11 }
 0x1e7   : > { %13750 = vmatprep.subr.bf16.mxu0 %v16096_v0  ;;  %13830 = vmatprep.subr.bf16.mxu1 %v16096_v0 }
 0x1ea   : > { %13751 = vmatpush3.bf16.msra.mxu0 %v15941_v12  ;;  %13831 = vmatpush3.bf16.msra.mxu1 %v15941_v12 }
 0x1eb   : > { %13752 = vmatprep.subr.bf16.mxu0 %v16096_v0  ;;  %13832 = vmatprep.subr.bf16.mxu1 %v16096_v0 }
 0x1ee   : > { %13753 = vmatpush3.bf16.msra.mxu0 %v15942_v13  ;;  %13833 = vmatpush3.bf16.msra.mxu1 %v15942_v13 }
 0x1ef   : > { %13754 = vmatprep.subr.bf16.mxu0 %v16096_v0  ;;  %13834 = vmatprep.subr.bf16.mxu1 %v16096_v0 }
 0x1f2   : > { %13755 = vmatpush3.bf16.msra.mxu0 %v15943_v14  ;;  %13835 = vmatpush3.bf16.msra.mxu1 %v15943_v14 }
 0x1f3   : > { %13760 = vmatprep.subr.bf16.mxu0 %v16096_v0  ;;  %13840 = vmatprep.subr.bf16.mxu1 %v16096_v0 }
 0x1f5   : > { %13757 = vmatmul.mubr.msk.bf16.vlgmr.msra.gmra.mrb[12].mxu0 %vm646_vm1, %v16355_v10  ;;  %13837 = vmatmul.mubr.msk.bf16.vlgmr.msra.gmra.mrb[12].mxu1 %vm646_vm1, %v16440_v27  ;;  %v15945_v10 = vld [vmem:[%s20092_s18 + $0x158] sm:$0xff]   ;;  %v15946_v27 = vld [vmem:[%s20092_s18 + $0x160] sm:$0xff]  }
 0x1f6   : > { %13761 = vmatpush3.bf16.msra.mxu0 %v15944_v15  ;;  %13841 = vmatpush3.bf16.msra.mxu1 %v15944_v15 }
 0x1f7   : > { %13762 = vmatprep.subr.bf16.mxu0 %v16096_v0  ;;  %13842 = vmatprep.subr.bf16.mxu1 %v16096_v0 }
 0x1f8   : > { %13772 = vmatprep.mubr.msk.bf16.mxu0 %vm16097_vm0, %v16096_v0  ;;  %13852 = vmatprep.mubr.msk.bf16.mxu1 %vm16097_vm0, %v16096_v0 }
 0x1fa   : > { %13763 = vmatpush3.bf16.msra.mxu0 %v15945_v10  ;;  %13843 = vmatpush3.bf16.msra.mxu1 %v15945_v10 }
 0x1fb   : > { %13764 = vmatprep.subr.bf16.mxu0 %v16096_v0  ;;  %13844 = vmatprep.subr.bf16.mxu1 %v16096_v0 }
 0x1fe   : > { %13765 = vmatpush3.bf16.msra.mxu0 %v15946_v27  ;;  %13845 = vmatpush3.bf16.msra.mxu1 %v15946_v27 }
 0x1ff   : > { %13766 = vmatprep.subr.bf16.mxu0 %v16096_v0  ;;  %13846 = vmatprep.subr.bf16.mxu1 %v16096_v0 }
 0x202   : > { %13767 = vmatpush3.bf16.msra.mxu0 %v15947_v16  ;;  %13847 = vmatpush3.bf16.msra.mxu1 %v15947_v16 }
 0x203   : > { %13768 = vmatprep.subr.bf16.mxu0 %v16096_v0  ;;  %13848 = vmatprep.subr.bf16.mxu1 %v16096_v0 }
 0x206   : > { %13769 = vmatpush3.bf16.msra.mxu0 %v15948_v17  ;;  %13849 = vmatpush3.bf16.msra.mxu1 %v15948_v17 }
 0x207   : > { %13770 = vmatprep.subr.bf16.mxu0 %v16096_v0  ;;  %13850 = vmatprep.subr.bf16.mxu1 %v16096_v0 }
 0x20a   : > { %13771 = vmatpush3.bf16.msra.mxu0 %v15949_v18  ;;  %13851 = vmatpush3.bf16.msra.mxu1 %v15949_v18 }
 0x20b   : > { %13776 = vmatprep.subr.bf16.mxu0 %v16096_v0  ;;  %13856 = vmatprep.subr.bf16.mxu1 %v16096_v0 }
 0x20d   : > { %13773 = vmatmul.mubr.msk.bf16.vlgmr.msra.gmra.mrb[12].mxu0 %vm646_vm1, %v16482_v37  ;;  %13853 = vmatmul.mubr.msk.bf16.vlgmr.msra.gmra.mrb[12].mxu1 %vm646_vm1, %v16524_v47  ;;  %v15951_v37 = vld [vmem:[%s20092_s18 + $0x188] sm:$0xff]  }
 0x20e   : > { %13777 = vmatpush3.bf16.msra.mxu0 %v15950_v19  ;;  %13857 = vmatpush3.bf16.msra.mxu1 %v15950_v19 }
 0x20f   : > { %13778 = vmatprep.subr.bf16.mxu0 %v16096_v0  ;;  %13858 = vmatprep.subr.bf16.mxu1 %v16096_v0 }
 0x210   : > { %13788 = vmatprep.mubr.msk.bf16.mxu0 %vm16097_vm0, %v16096_v0  ;;  %13868 = vmatprep.mubr.msk.bf16.mxu1 %vm16097_vm0, %v16096_v0 }
 0x212   : > { %13779 = vmatpush3.bf16.msra.mxu0 %v15951_v37  ;;  %13859 = vmatpush3.bf16.msra.mxu1 %v15951_v37 }
 0x213   : > { %13780 = vmatprep.subr.bf16.mxu0 %v16096_v0  ;;  %13860 = vmatprep.subr.bf16.mxu1 %v16096_v0 }
 0x216   : > { %13781 = vmatpush3.bf16.msra.mxu0 %v15952_v20  ;;  %13861 = vmatpush3.bf16.msra.mxu1 %v15952_v20  ;;  %v14709_v20 = vld [vmem:[%s20044_s3 + $0x58] sm:$0xff]  }
 0x217   : > { %13782 = vmatprep.subr.bf16.mxu0 %v16096_v0  ;;  %13862 = vmatprep.subr.bf16.mxu1 %v16096_v0 }
 0x21a   : > { %13783 = vmatpush3.bf16.msra.mxu0 %v15953_v21  ;;  %13863 = vmatpush3.bf16.msra.mxu1 %v15953_v21 }
 0x21b   : > { %13784 = vmatprep.subr.bf16.mxu0 %v16096_v0  ;;  %13864 = vmatprep.subr.bf16.mxu1 %v16096_v0 }
 0x21e   : > { %13785 = vmatpush3.bf16.msra.mxu0 %v15954_v22  ;;  %13865 = vmatpush3.bf16.msra.mxu1 %v15954_v22  ;;  %v14710_v22 = vld [vmem:[%s20044_s3 + $0x60] sm:$0xff]  }
 0x21f   : > { %13786 = vmatprep.subr.bf16.mxu0 %v16096_v0  ;;  %13866 = vmatprep.subr.bf16.mxu1 %v16096_v0 }
 0x220   : > { %v1707_v23 = vpop.f32.mrb[4].mxu0  ;;  %v1910_v24 = vpop.f32.mrb[4].mxu1 }
 0x221   : > { %v1918_v25 = vmax.f32 %v1707_v23, %v1910_v24  ;;  %v13486_v26 = vpop.f32.mrb[5].mxu0  ;;  %v13566_v28 = vpop.f32.mrb[5].mxu1  ;;  %v14711_v23 = vld [vmem:[%s20044_s3 + $0x68] sm:$0xff]   ;;  %v14712_v24 = vld [vmem:[%s20044_s3 + $0x70] sm:$0xff]  }
 0x222   : > { %v1710_v29 = vpop.f32.mrb[6].mxu0  ;;  %v1913_v30 = vpop.f32.mrb[6].mxu1  ;;  %13787 = vmatpush3.bf16.msra.mxu0 %v15955_v31  ;;  %13867 = vmatpush3.bf16.msra.mxu1 %v15955_v31  ;;  %v14714_v26 = vld [vmem:[%s20044_s3 + $0x80] ss:$0 sps:$4 sm:$0x33]  }
 0x223   : > { %v1919_v32 = vmax.f32 %v1917_v45, %v1918_v25  ;;  %v13487_v33 = vpop.f32.mrb[7].mxu0  ;;  %v13567_v34 = vpop.f32.mrb[7].mxu1  ;;  %13792 = vmatprep.subr.bf16.mxu0 %v16096_v0  ;;  %13872 = vmatprep.subr.bf16.mxu1 %v16096_v0  ;;  %v14699_v45 = vld [vmem:[%s20044_s3 + $0x3c] sm:$0xff]   ;;  %v3004_v29 = vsel %vm2826_vm2, %v14714_v26, 0  ;;  %v14763_v26 = vld [vmem:[%s20046_s5 + $0x150] ss:$28 sps:$4 sm:$0xff]  }
 0x224   : > { %v14713_v25 = vld [vmem:[%s20044_s3 + $0x78] sm:$0xff]   ;;  %v14716_v34 = vld [vmem:[%s20044_s3 + $0x8c] sm:$0xff]  }
 0x225   : > { %13789 = vmatmul.mubr.msk.bf16.vlgmr.msra.gmra.mrb[12].mxu0 %vm646_vm1, %v16524_v47  ;;  %13869 = vmatmul.mubr.msk.bf16.vlgmr.msra.gmra.mrb[12].mxu1 %vm646_vm1, %v16870_v49  ;;  %v15957_v47 = vld [vmem:[%s20092_s18 + $0x1b8] sm:$0xff]   ;;  %v1927_v44 = vadd.f32 %v17118_v42, %v1919_v32  ;;  %v14715_v32 = vld [vmem:[%s20044_s3 + $0x84] sm:$0xff]  }
 0x226   : > { %13793 = vmatpush3.bf16.msra.mxu0 %v15956_v35  ;;  %13873 = vmatpush3.bf16.msra.mxu1 %v15956_v35  ;;  %v14717_v35 = vld [vmem:[%s20044_s3 + $0x94] sm:$0xff]  }
 0x227   : > { %13794 = vmatprep.subr.bf16.mxu0 %v16096_v0  ;;  %13874 = vmatprep.subr.bf16.mxu1 %v16096_v0  ;;  %v1928_v46 = vmax.f32 %v1927_v44, 0.0  ;;  %v14724_v44 = vld [vmem:[%s20044_s3 + $0xc8] sm:$0xff]  }
 0x228   : > { %13804 = vmatprep.mubr.msk.bf16.mxu0 %vm16097_vm0, %v16096_v0  ;;  %13884 = vmatprep.mubr.msk.bf16.mxu1 %vm16097_vm0, %v16096_v0 }
 0x22a   : > { %13795 = vmatpush3.bf16.msra.mxu0 %v15957_v47  ;;  %13875 = vmatpush3.bf16.msra.mxu1 %v15957_v47  ;;  %v14718_v47 = vld [vmem:[%s20044_s3 + $0x9c] sm:$0xff]  }
 0x22b   : > { %13796 = vmatprep.subr.bf16.mxu0 %v16096_v0  ;;  %13876 = vmatprep.subr.bf16.mxu1 %v16096_v0 }
 0x22e   : > { %13797 = vmatpush3.bf16.msra.mxu0 %v15958_v36  ;;  %13877 = vmatpush3.bf16.msra.mxu1 %v15958_v36  ;;  %v14719_v36 = vld [vmem:[%s20044_s3 + $0xa4] sm:$0xff]  }
 0x22f   : > { %13798 = vmatprep.subr.bf16.mxu0 %v16096_v0  ;;  %13878 = vmatprep.subr.bf16.mxu1 %v16096_v0 }
 0x232   : > { %13799 = vmatpush3.bf16.msra.mxu0 %v15959_v38  ;;  %13879 = vmatpush3.bf16.msra.mxu1 %v15959_v38  ;;  %v14720_v38 = vld [vmem:[%s20044_s3 + $0xac] ss:$0 sps:$4 sm:$0x33]  }
 0x233   : > { %13800 = vmatprep.subr.bf16.mxu0 %v16096_v0  ;;  %13880 = vmatprep.subr.bf16.mxu1 %v16096_v0 }
 0x236   : > { %13801 = vmatpush3.bf16.msra.mxu0 %v15960_v39  ;;  %13881 = vmatpush3.bf16.msra.mxu1 %v15960_v39  ;;  %v3102_v39 = vsel %vm2826_vm2, %v14720_v38, 0  ;;  %v14780_v38 = vld [vmem:[%s20046_s5 + $0x1cc] ss:$28 sps:$4 sm:$0xff]  }
 0x237   : > { %13802 = vmatprep.subr.bf16.mxu0 %v16096_v0  ;;  %13882 = vmatprep.subr.bf16.mxu1 %v16096_v0 }
 0x23a   : > { %13803 = vmatpush3.bf16.msra.mxu0 %v15961_v40  ;;  %13883 = vmatpush3.bf16.msra.mxu1 %v15961_v40  ;;  %v14721_v40 = vld [vmem:[%s20044_s3 + $0xb0] sm:$0xff]  }
 0x23b   : > { %13968 = vmatprep.subr.bf16.mxu1 %v16096_v0  ;;  %13888 = vmatprep.subr.bf16.mxu0 %v16096_v0 }
 0x23d   : > { %13805 = vmatmul.mubr.msk.bf16.vlgmr.msra.gmra.mrb[12].mxu0 %vm646_vm1, %v16870_v49  ;;  %13885 = vmatmul.mubr.msk.bf16.vlgmr.msra.gmra.mrb[12].mxu1 %vm646_vm1, %v16912_v63  ;;  %v17142_v49 = vpack.c.bf16 %v1928_v46, %v1928_v46  ;;  %v2907_v63 = vsel %vm2826_vm2, %v14708_v62, 0  ;;  %v14726_v46 = vld [vmem:[%s20044_s3 + $0xd8] ss:$0 sps:$4 sm:$0x33]  }
 0x23e   : > { %13969 = vmatpush3.bf16.msra.mxu1 %v14697_v41  ;;  %13980 = vmatprep.mubr.msk.bf16.mxu1 %vm16097_vm0, %v16096_v0  ;;  %v14736_v62 = vld [vmem:[%s20044_s3 + $0xf4] sm:$0xff]  }
 0x23f   : > { %13970 = vmatprep.subr.bf16.mxu1 %v16096_v0  ;;  %13889 = vmatpush3.bf16.msra.mxu0 %v14697_v41  ;;  %v2963_v52 = vshll.u32 %v17142_v49, 16  ;;  %v2961_v55 = vshrl.u32 %v17142_v49, 16  ;;  %v17280_v41 = vrot.slane %v17142_v49, 1 }
 0x240   : > { %13890 = vmatprep.subr.bf16.mxu0 %v16096_v0  ;;  %13900 = vmatprep.mubr.msk.bf16.mxu0 %vm16097_vm0, %v16096_v0 }
 0x241   : > { %v2965_v54 = vrot.slane %v2963_v52, 1  ;;  %v14728_v52 = vld [vmem:[%s20044_s3 + $0x110] sm:$0xff]  }
 0x242   : > { %13971 = vmatpush3.bf16.msra.mxu1 %v14698_v43 }
 0x243   : > { %13972 = vmatprep.subr.bf16.mxu1 %v16096_v0  ;;  %13891 = vmatpush3.bf16.msra.mxu0 %v14698_v43  ;;  %v17162_v57 = vor.u32 %v2965_v54, %v2961_v55  ;;  %v14723_v43 = vld [vmem:[%s20044_s3 + $0xc0] sm:$0xff]   ;;  %v14731_v55 = vld [vmem:[%s20044_s3 + $0x128] sm:$0xff]  }
 0x244   : > { %13892 = vmatprep.subr.bf16.mxu0 %v16096_v0  ;;  %v14730_v54 = vld [vmem:[%s20044_s3 + $0x120] sm:$0xff]  }
 0x246   : > { %13973 = vmatpush3.bf16.msra.mxu1 %v14699_v45 }
 0x247   : > { %13974 = vmatprep.subr.bf16.mxu1 %v16096_v0  ;;  %13893 = vmatpush3.bf16.msra.mxu0 %v14699_v45  ;;  %v14725_v45 = vld [vmem:[%s20044_s3 + $0xd0] sm:$0xff]  }
 0x248   : > { %13894 = vmatprep.subr.bf16.mxu0 %v16096_v0 }
 0x24a   : > { %13975 = vmatpush3.bf16.msra.mxu1 %v14700_v48 }
 0x24b   : > { %13976 = vmatprep.subr.bf16.mxu1 %v16096_v0  ;;  %13895 = vmatpush3.bf16.msra.mxu0 %v14700_v48  ;;  %v3196_v48 = vsel %vm2826_vm2, %v14726_v46, 0 }
 0x24c   : > { %13896 = vmatprep.subr.bf16.mxu0 %v16096_v0 }
 0x24e   : > { %13977 = vmatpush3.bf16.msra.mxu1 %v14701_v50 }
 0x24f   : > { %13978 = vmatprep.subr.bf16.mxu1 %v16096_v0  ;;  %13897 = vmatpush3.bf16.msra.mxu0 %v14701_v50  ;;  %v14727_v50 = vld [vmem:[%s20044_s3 + $0x108] sm:$0xff]  }
 0x250   : > { %13898 = vmatprep.subr.bf16.mxu0 %v16096_v0 }
 0x252   : > { %13979 = vmatpush3.bf16.msra.mxu1 %v2828_v53 }
 0x253   : > { %13984 = vmatprep.subr.bf16.mxu1 %v16096_v0  ;;  %13899 = vmatpush3.bf16.msra.mxu0 %v2828_v53  ;;  %v14729_v53 = vld [vmem:[%s20044_s3 + $0x118] sm:$0xff]  }
 0x254   : > { %13904 = vmatprep.subr.bf16.mxu0 %v16096_v0 }
 0x255   : > { %13981 = vmatmul.mubr.msk.bf16.vlgmr.msra.gmra.mrb[16].mxu1 %vm2822_vm3, %v17162_v57 }
 0x256   : > { %13985 = vmatpush3.bf16.msra.mxu1 %v14703_v56  ;;  %13996 = vmatprep.mubr.msk.bf16.mxu1 %vm16097_vm0, %v16096_v0 }
 0x257   : > { %13986 = vmatprep.subr.bf16.mxu1 %v16096_v0 }
 0x25a   : > { %13987 = vmatpush3.bf16.msra.mxu1 %v14704_v58 }
 0x25b   : > { %13988 = vmatprep.subr.bf16.mxu1 %v16096_v0 }
 0x25e   : > { %13989 = vmatpush3.bf16.msra.mxu1 %v14705_v59 }
 0x25f   : > { %13990 = vmatprep.subr.bf16.mxu1 %v16096_v0 }
 0x262   : > { %13991 = vmatpush3.bf16.msra.mxu1 %v14706_v60 }
 0x263   : > { %13992 = vmatprep.subr.bf16.mxu1 %v16096_v0 }
 0x266   : > { %13993 = vmatpush3.bf16.msra.mxu1 %v14707_v61 }
 0x267   : > { %13994 = vmatprep.subr.bf16.mxu1 %v16096_v0 }
 0x26a   : > { %13995 = vmatpush3.bf16.msra.mxu1 %v2907_v63 }
 0x26b   : > { %14000 = vmatprep.subr.bf16.mxu1 %v16096_v0 }
 0x298   : > { %v2134_v1 = vpop.f32.mrb[8].mxu0  ;;  %v2346_v2 = vpop.f32.mrb[8].mxu1 }
 0x299   : > { %v2759_v3 = vmax.f32 %v2134_v1, %v2346_v2  ;;  %v13646_v4 = vpop.f32.mrb[9].mxu0  ;;  %v13726_v5 = vpop.f32.mrb[9].mxu1  ;;  %v14738_v1 = vld [vmem:[%s20044_s3 + $0x104] ss:$0 sps:$4 sm:$0x33]  }
 0x29a   : > { %v2137_v6 = vpop.f32.mrb[10].mxu0  ;;  %v2349_v7 = vpop.f32.mrb[10].mxu1  ;;  %v3581_v2 = vsel %vm2826_vm2, %v14738_v1, 0  ;;  %v14740_v4 = vld [vmem:[%s20044_s3 + $0x13c] sm:$0xff]   ;;  %v14741_v5 = vld [vmem:[%s20044_s3 + $0x144] sm:$0xff]  }
 0x29b   : > { %v13647_v8 = vpop.f32.mrb[11].mxu0  ;;  %v13727_v9 = vpop.f32.mrb[11].mxu1  ;;  %v14742_v6 = vld [vmem:[%s20044_s3 + $0x14c] sm:$0xff]   ;;  %v14743_v7 = vld [vmem:[%s20044_s3 + $0x154] sm:$0xff]  }
 0x29c   : > { %v14744_v8 = vld [vmem:[%s20044_s3 + $0x15c] ss:$0 sps:$4 sm:$0x33]  }
 0x29d   : > { %v3669_v9 = vsel %vm2826_vm2, %v14744_v8, 0 }
 0x310   : > { %v2549_v11 = vpop.f32.mrb[12].mxu0  ;;  %v2752_v12 = vpop.f32.mrb[12].mxu1 }
 0x311   : > { %v2760_v13 = vmax.f32 %v2549_v11, %v2752_v12  ;;  %v13806_v14 = vpop.f32.mrb[13].mxu0  ;;  %v13886_v15 = vpop.f32.mrb[13].mxu1  ;;  %v14745_v11 = vld [vmem:[%s20044_s3 + $0x160] sm:$0xff]   ;;  %v14746_v12 = vld [vmem:[%s20044_s3 + $0x168] sm:$0xff]  }
 0x312   : > { %v2552_v10 = vpop.f32.mrb[14].mxu0  ;;  %v2755_v27 = vpop.f32.mrb[14].mxu1  ;;  %v14749_v14 = vld [vmem:[%s20044_s3 + $0x180] sm:$0xff]   ;;  %v14750_v15 = vld [vmem:[%s20044_s3 + $0x188] ss:$0 sps:$4 sm:$0x33]  }
 0x313   : > { %v2761_v16 = vmax.f32 %v2759_v3, %v2760_v13  ;;  %v13807_v17 = vpop.f32.mrb[15].mxu0  ;;  %v13887_v18 = vpop.f32.mrb[15].mxu1  ;;  %v14739_v3 = vld [vmem:[%s20044_s3 + $0x134] sm:$0xff]   ;;  %v3758_v10 = vsel %vm2826_vm2, %v14750_v15, 0  ;;  %v14751_v27 = vld [vmem:[%s20044_s3 + $0x18c] sm:$0xff]  }
 0x314   : > { %v14748_v13 = vld [vmem:[%s20044_s3 + $0x178] sm:$0xff]   ;;  %v14754_v17 = vld [vmem:[%s20044_s3 + $0x1a4] sm:$0xff]   ;;  %v14755_v18 = vld [vmem:[%s20044_s3 + $0x1ac] sm:$0xff]  }
 0x315   : > { %v2762_v19 = vadd.f32 %v17118_v42, %v2761_v16  ;;  %v14722_v42 = vld [vmem:[%s20044_s3 + $0xb8] sm:$0xff]   ;;  %v14801_v15 = vld [vmem:[%s20046_s5 + $0x1d4] ss:$28 sps:$4 sm:$0xff]  }
 0x316   : > { %v14752_v16 = vld [vmem:[%s20044_s3 + $0x194] sm:$0xff]  }
 0x317   : > { %v2763_v37 = vmax.f32 %v2762_v19, 0.0  ;;  %v14756_v19 = vld [vmem:[%s20044_s3 + $0x1b4] ss:$0 sps:$4 sm:$0x33]  }
 0x319   : > { %v17196_v21 = vpack.c.bf16 %v2763_v37, %v2763_v37  ;;  %v3847_v37 = vsel %vm2826_vm2, %v14756_v19, 0  ;;  %v14812_v19 = vld [vmem:[%s20046_s5 + $0xc] ss:$28 sps:$4 sm:$0xff]  }
 0x31b   : > { %13901 = vmatmul.mubr.msk.bf16.vlgmr.msra.gmra.mrb[16].mxu0 %vm2822_vm3, %v17196_v21  ;;  %13997 = vmatmul.mubr.msk.bf16.vlgmr.msra.gmra.mrb[16].mxu1 %vm2822_vm3, %v17196_v21  ;;  %v3061_v28 = vshll.u32 %v17196_v21, 16  ;;  %v3059_v31 = vshrl.u32 %v17196_v21, 16  ;;  %v3402_v51 = vrot.slane %v17196_v21, 1 }
 0x31c   : > { %13905 = vmatpush3.bf16.msra.mxu0 %v14703_v56  ;;  %14001 = vmatpush3.bf16.msra.mxu1 %v14709_v20  ;;  %v14732_v56 = vld [vmem:[%s20044_s3 + $0x130] ss:$0 sps:$4 sm:$0x33]  }
 0x31d   : > { %13906 = vmatprep.subr.bf16.mxu0 %v16096_v0  ;;  %14002 = vmatprep.subr.bf16.mxu1 %v16096_v0  ;;  %v3063_v30 = vrot.slane %v3061_v28, 1  ;;  %v14766_v28 = vld [vmem:[%s20046_s5 + $0x158] ss:$28 sps:$4 sm:$0xff]  }
 0x31e   : > { %13916 = vmatprep.mubr.msk.bf16.mxu0 %vm16097_vm0, %v16096_v0  ;;  %14012 = vmatprep.mubr.msk.bf16.mxu1 %vm16097_vm0, %v16096_v0 }
 0x31f   : > { %v17238_v33 = vor.u32 %v3063_v30, %v3059_v31 }
 0x320   : > { %13907 = vmatpush3.bf16.msra.mxu0 %v14704_v58  ;;  %14003 = vmatpush3.bf16.msra.mxu1 %v14710_v22  ;;  %v3505_v58 = vsel %vm2826_vm2, %v14732_v56, 0 }
 0x321   : > { %13908 = vmatprep.subr.bf16.mxu0 %v16096_v0  ;;  %14004 = vmatprep.subr.bf16.mxu1 %v16096_v0 }
 0x324   : > { %13909 = vmatpush3.bf16.msra.mxu0 %v14705_v59  ;;  %14005 = vmatpush3.bf16.msra.mxu1 %v14711_v23  ;;  %v14733_v59 = vld [vmem:[%s20044_s3 + $0xdc] sm:$0xff]  }
 0x325   : > { %13910 = vmatprep.subr.bf16.mxu0 %v16096_v0  ;;  %14006 = vmatprep.subr.bf16.mxu1 %v16096_v0 }
 0x328   : > { %13911 = vmatpush3.bf16.msra.mxu0 %v14706_v60  ;;  %14007 = vmatpush3.bf16.msra.mxu1 %v14712_v24  ;;  %v14734_v60 = vld [vmem:[%s20044_s3 + $0xe4] sm:$0xff]  }
 0x329   : > { %13912 = vmatprep.subr.bf16.mxu0 %v16096_v0  ;;  %14008 = vmatprep.subr.bf16.mxu1 %v16096_v0 }
 0x32c   : > { %13913 = vmatpush3.bf16.msra.mxu0 %v14707_v61  ;;  %14009 = vmatpush3.bf16.msra.mxu1 %v14713_v25  ;;  %v14735_v61 = vld [vmem:[%s20044_s3 + $0xec] sm:$0xff]  }
 0x32d   : > { %13914 = vmatprep.subr.bf16.mxu0 %v16096_v0  ;;  %14010 = vmatprep.subr.bf16.mxu1 %v16096_v0 }
 0x330   : > { %13915 = vmatpush3.bf16.msra.mxu0 %v2907_v63  ;;  %14011 = vmatpush3.bf16.msra.mxu1 %v3004_v29  ;;  %v14737_v63 = vld [vmem:[%s20044_s3 + $0xfc] sm:$0xff]  }
 0x331   : > { %13920 = vmatprep.subr.bf16.mxu0 %v16096_v0  ;;  %14016 = vmatprep.subr.bf16.mxu1 %v16096_v0 }
 0x333   : > { %13917 = vmatmul.mubr.msk.bf16.vlgmr.msra.gmra.mrb[16].mxu0 %vm2822_vm3, %v17142_v49  ;;  %14013 = vmatmul.mubr.msk.bf16.vlgmr.msra.gmra.mrb[16].mxu1 %vm2822_vm3, %v17238_v33 }
 0x334   : > { %13921 = vmatpush3.bf16.msra.mxu0 %v14709_v20  ;;  %14017 = vmatpush3.bf16.msra.mxu1 %v14715_v32  ;;  %v14757_v20 = vld [vmem:[%s20046_s5 + $0x118] ss:$28 sps:$4 sm:$0xff]  }
 0x335   : > { %13922 = vmatprep.subr.bf16.mxu0 %v16096_v0  ;;  %14018 = vmatprep.subr.bf16.mxu1 %v16096_v0 }
 0x336   : > { %13932 = vmatprep.mubr.msk.bf16.mxu0 %vm16097_vm0, %v16096_v0  ;;  %14028 = vmatprep.mubr.msk.bf16.mxu1 %vm16097_vm0, %v16096_v0 }
 0x338   : > { %13923 = vmatpush3.bf16.msra.mxu0 %v14710_v22  ;;  %14019 = vmatpush3.bf16.msra.mxu1 %v14716_v34  ;;  %v14760_v22 = vld [vmem:[%s20046_s5 + $0x120] ss:$28 sps:$4 sm:$0xff]  }
 0x339   : > { %13924 = vmatprep.subr.bf16.mxu0 %v16096_v0  ;;  %14020 = vmatprep.subr.bf16.mxu1 %v16096_v0 }
 0x33c   : > { %13925 = vmatpush3.bf16.msra.mxu0 %v14711_v23  ;;  %14021 = vmatpush3.bf16.msra.mxu1 %v14717_v35  ;;  %v14762_v23 = vld [vmem:[%s20046_s5 + $0x124] ss:$28 sps:$4 sm:$0xff]  }
 0x33d   : > { %13926 = vmatprep.subr.bf16.mxu0 %v16096_v0  ;;  %14022 = vmatprep.subr.bf16.mxu1 %v16096_v0 }
 0x340   : > { %13927 = vmatpush3.bf16.msra.mxu0 %v14712_v24  ;;  %14023 = vmatpush3.bf16.msra.mxu1 %v14718_v47  ;;  %v14765_v24 = vld [vmem:[%s20046_s5 + $0x154] ss:$28 sps:$4 sm:$0xff]  }
 0x341   : > { %13928 = vmatprep.subr.bf16.mxu0 %v16096_v0  ;;  %14024 = vmatprep.subr.bf16.mxu1 %v16096_v0 }
 0x344   : > { %13929 = vmatpush3.bf16.msra.mxu0 %v14713_v25  ;;  %14025 = vmatpush3.bf16.msra.mxu1 %v14719_v36  ;;  %v14768_v25 = vld [vmem:[%s20046_s5 + $0x15c] ss:$28 sps:$4 sm:$0xff]  }
 0x345   : > { %13930 = vmatprep.subr.bf16.mxu0 %v16096_v0  ;;  %14026 = vmatprep.subr.bf16.mxu1 %v16096_v0 }
 0x348   : > { %13931 = vmatpush3.bf16.msra.mxu0 %v3004_v29  ;;  %14027 = vmatpush3.bf16.msra.mxu1 %v3102_v39 }
 0x349   : > { %13936 = vmatprep.subr.bf16.mxu0 %v16096_v0  ;;  %14032 = vmatprep.subr.bf16.mxu1 %v16096_v0 }
 0x34b   : > { %13933 = vmatmul.mubr.msk.bf16.vlgmr.msra.gmra.mrb[16].mxu0 %vm2822_vm3, %v17162_v57  ;;  %14029 = vmatmul.mubr.msk.bf16.vlgmr.msra.gmra.mrb[16].mxu1 %vm2822_vm3, %v17280_v41 }
 0x34c   : > { %13937 = vmatpush3.bf16.msra.mxu0 %v14715_v32  ;;  %14033 = vmatpush3.bf16.msra.mxu1 %v14721_v40 }
 0x34d   : > { %13938 = vmatprep.subr.bf16.mxu0 %v16096_v0  ;;  %14034 = vmatprep.subr.bf16.mxu1 %v16096_v0 }
 0x34e   : > { %13948 = vmatprep.mubr.msk.bf16.mxu0 %vm16097_vm0, %v16096_v0  ;;  %14044 = vmatprep.mubr.msk.bf16.mxu1 %vm16097_vm0, %v16096_v0 }
 0x350   : > { %13939 = vmatpush3.bf16.msra.mxu0 %v14716_v34  ;;  %14035 = vmatpush3.bf16.msra.mxu1 %v14722_v42  ;;  %v14774_v34 = vld [vmem:[%s20046_s5 + $0x194] ss:$28 sps:$4 sm:$0xff]  }
 0x351   : > { %13940 = vmatprep.subr.bf16.mxu0 %v16096_v0  ;;  %14036 = vmatprep.subr.bf16.mxu1 %v16096_v0 }
 0x354   : > { %13941 = vmatpush3.bf16.msra.mxu0 %v14717_v35  ;;  %14037 = vmatpush3.bf16.msra.mxu1 %v14723_v43  ;;  %v14769_v35 = vld [vmem:[%s20046_s5 + $0x188] ss:$28 sps:$4 sm:$0xff]  }
 0x355   : > { %13942 = vmatprep.subr.bf16.mxu0 %v16096_v0  ;;  %14038 = vmatprep.subr.bf16.mxu1 %v16096_v0 }
 0x358   : > { %13943 = vmatpush3.bf16.msra.mxu0 %v14718_v47  ;;  %14039 = vmatpush3.bf16.msra.mxu1 %v14724_v44  ;;  %v14772_v47 = vld [vmem:[%s20046_s5 + $0x190] ss:$28 sps:$4 sm:$0xff]  }
 0x359   : > { %13944 = vmatprep.subr.bf16.mxu0 %v16096_v0  ;;  %14040 = vmatprep.subr.bf16.mxu1 %v16096_v0 }
 0x35c   : > { %13945 = vmatpush3.bf16.msra.mxu0 %v14719_v36  ;;  %14041 = vmatpush3.bf16.msra.mxu1 %v14725_v45  ;;  %v14777_v36 = vld [vmem:[%s20046_s5 + $0x1c4] ss:$28 sps:$4 sm:$0xff]  }
 0x35d   : > { %13946 = vmatprep.subr.bf16.mxu0 %v16096_v0  ;;  %14042 = vmatprep.subr.bf16.mxu1 %v16096_v0 }
 0x360   : > { %13947 = vmatpush3.bf16.msra.mxu0 %v3102_v39  ;;  %14043 = vmatpush3.bf16.msra.mxu1 %v3196_v48  ;;  %v14775_v39 = vld [vmem:[%s20046_s5 + $0x1c0] ss:$28 sps:$4 sm:$0xff]  }
 0x361   : > { %13952 = vmatprep.subr.bf16.mxu0 %v16096_v0  ;;  %14128 = vmatprep.subr.bf16.mxu1 %v16096_v0 }
 0x363   : > { %13949 = vmatmul.mubr.msk.bf16.vlgmr.msra.gmra.mrb[16].mxu0 %vm2822_vm3, %v17238_v33  ;;  %14045 = vmatmul.mubr.msk.bf16.vlgmr.msra.gmra.mrb[16].mxu1 %vm2822_vm3, %v3402_v51 }
 0x364   : > { %13953 = vmatpush3.bf16.msra.mxu0 %v14721_v40  ;;  %14129 = vmatpush3.bf16.msra.mxu1 %v14727_v50  ;;  %v14778_v40 = vld [vmem:[%s20046_s5 + $0x1c8] ss:$28 sps:$4 sm:$0xff]  }
 0x365   : > { %13954 = vmatprep.subr.bf16.mxu0 %v16096_v0  ;;  %14130 = vmatprep.subr.bf16.mxu1 %v16096_v0 }
 0x366   : > { %13964 = vmatprep.mubr.msk.bf16.mxu0 %vm16097_vm0, %v16096_v0  ;;  %14140 = vmatprep.mubr.msk.bf16.mxu1 %vm16097_vm0, %v16096_v0 }
 0x368   : > { %13955 = vmatpush3.bf16.msra.mxu0 %v14722_v42  ;;  %14131 = vmatpush3.bf16.msra.mxu1 %v14728_v52  ;;  %v14786_v42 = vld [vmem:[%s20046_s5 + $0x204] ss:$28 sps:$4 sm:$0xff]  }
 0x369   : > { %13956 = vmatprep.subr.bf16.mxu0 %v16096_v0  ;;  %14132 = vmatprep.subr.bf16.mxu1 %v16096_v0 }
 0x36c   : > { %13957 = vmatpush3.bf16.msra.mxu0 %v14723_v43  ;;  %14133 = vmatpush3.bf16.msra.mxu1 %v14729_v53  ;;  %v14781_v43 = vld [vmem:[%s20046_s5 + $0x1f8] ss:$28 sps:$4 sm:$0xff]  }
 0x36d   : > { %13958 = vmatprep.subr.bf16.mxu0 %v16096_v0  ;;  %14134 = vmatprep.subr.bf16.mxu1 %v16096_v0 }
 0x370   : > { %13959 = vmatpush3.bf16.msra.mxu0 %v14724_v44  ;;  %14135 = vmatpush3.bf16.msra.mxu1 %v14730_v54  ;;  %v14784_v44 = vld [vmem:[%s20046_s5 + $0x200] ss:$28 sps:$4 sm:$0xff]  }
 0x371   : > { %13960 = vmatprep.subr.bf16.mxu0 %v16096_v0  ;;  %14136 = vmatprep.subr.bf16.mxu1 %v16096_v0 }
 0x374   : > { %13961 = vmatpush3.bf16.msra.mxu0 %v14725_v45  ;;  %14137 = vmatpush3.bf16.msra.mxu1 %v14731_v55 }
 0x375   : > { %13962 = vmatprep.subr.bf16.mxu0 %v16096_v0  ;;  %14138 = vmatprep.subr.bf16.mxu1 %v16096_v0 }
 0x378   : > { %13963 = vmatpush3.bf16.msra.mxu0 %v3196_v48  ;;  %14139 = vmatpush3.bf16.msra.mxu1 %v3505_v58 }
 0x379   : > { %14048 = vmatprep.subr.bf16.mxu0 %v16096_v0  ;;  %14144 = vmatprep.subr.bf16.mxu1 %v16096_v0 }
 0x37b   : > { %13965 = vmatmul.mubr.msk.bf16.vlgmr.msra.gmra.mrb[16].mxu0 %vm2822_vm3, %v17280_v41  ;;  %14141 = vmatmul.mubr.msk.bf16.vlgmr.msra.gmra.mrb[20].mxu1 %vm2822_vm3, %v17162_v57 }
 0x37c   : > { %14049 = vmatpush3.bf16.msra.mxu0 %v14727_v50  ;;  %14145 = vmatpush3.bf16.msra.mxu1 %v14733_v59  ;;  %v14789_v50 = vld [vmem:[%s20046_s5 + $0x12c] ss:$28 sps:$4 sm:$0xff]  }
 0x37d   : > { %14050 = vmatprep.subr.bf16.mxu0 %v16096_v0  ;;  %14146 = vmatprep.subr.bf16.mxu1 %v16096_v0 }
 0x37e   : > { %14060 = vmatprep.mubr.msk.bf16.mxu0 %vm16097_vm0, %v16096_v0  ;;  %14156 = vmatprep.mubr.msk.bf16.mxu1 %vm16097_vm0, %v16096_v0 }
 0x380   : > { %14051 = vmatpush3.bf16.msra.mxu0 %v14728_v52  ;;  %14147 = vmatpush3.bf16.msra.mxu1 %v14734_v60  ;;  %v16098_v52 = vmov 0  }
 0x381   : > { %14052 = vmatprep.subr.bf16.mxu0 %v16096_v0  ;;  %14148 = vmatprep.subr.bf16.mxu1 %v16096_v0 }
 0x384   : > { %14053 = vmatpush3.bf16.msra.mxu0 %v14729_v53  ;;  %14149 = vmatpush3.bf16.msra.mxu1 %v14735_v61 }
 0x385   : > { %14054 = vmatprep.subr.bf16.mxu0 %v16096_v0  ;;  %14150 = vmatprep.subr.bf16.mxu1 %v16096_v0 }
 0x388   : > { %14055 = vmatpush3.bf16.msra.mxu0 %v14730_v54  ;;  %14151 = vmatpush3.bf16.msra.mxu1 %v14736_v62 }
 0x389   : > { %14056 = vmatprep.subr.bf16.mxu0 %v16096_v0  ;;  %14152 = vmatprep.subr.bf16.mxu1 %v16096_v0 }
 0x38c   : > { %14057 = vmatpush3.bf16.msra.mxu0 %v14731_v55  ;;  %14153 = vmatpush3.bf16.msra.mxu1 %v14737_v63 }
 0x38d   : > { %14058 = vmatprep.subr.bf16.mxu0 %v16096_v0  ;;  %14154 = vmatprep.subr.bf16.mxu1 %v16096_v0 }
 0x390   : > { %14059 = vmatpush3.bf16.msra.mxu0 %v3505_v58  ;;  %14155 = vmatpush3.bf16.msra.mxu1 %v3581_v2 }
 0x391   : > { %14064 = vmatprep.subr.bf16.mxu0 %v16096_v0  ;;  %14160 = vmatprep.subr.bf16.mxu1 %v16096_v0 }
 0x393   : > { %14061 = vmatmul.mubr.msk.bf16.vlgmr.msra.gmra.mrb[20].mxu0 %vm2822_vm3, %v17196_v21  ;;  %14157 = vmatmul.mubr.msk.bf16.vlgmr.msra.gmra.mrb[20].mxu1 %vm2822_vm3, %v17196_v21  ;;  %v14759_v21 = vld [vmem:[%s20046_s5 + $0x11c] ss:$28 sps:$4 sm:$0xff]  }
 0x394   : > { %14065 = vmatpush3.bf16.msra.mxu0 %v14733_v59  ;;  %14161 = vmatpush3.bf16.msra.mxu1 %v14739_v3 }
 0x395   : > { %14066 = vmatprep.subr.bf16.mxu0 %v16096_v0  ;;  %14162 = vmatprep.subr.bf16.mxu1 %v16096_v0 }
 0x396   : > { %14076 = vmatprep.mubr.msk.bf16.mxu0 %vm16097_vm0, %v16096_v0  ;;  %14172 = vmatprep.mubr.msk.bf16.mxu1 %vm16097_vm0, %v16096_v0 }
 0x398   : > { %14067 = vmatpush3.bf16.msra.mxu0 %v14734_v60  ;;  %14163 = vmatpush3.bf16.msra.mxu1 %v14740_v4 }
 0x399   : > { %14068 = vmatprep.subr.bf16.mxu0 %v16096_v0  ;;  %14164 = vmatprep.subr.bf16.mxu1 %v16096_v0 }
 0x39c   : > { %14069 = vmatpush3.bf16.msra.mxu0 %v14735_v61  ;;  %14165 = vmatpush3.bf16.msra.mxu1 %v14741_v5 }
 0x39d   : > { %14070 = vmatprep.subr.bf16.mxu0 %v16096_v0  ;;  %14166 = vmatprep.subr.bf16.mxu1 %v16096_v0 }
 0x3a0   : > { %14071 = vmatpush3.bf16.msra.mxu0 %v14736_v62  ;;  %14167 = vmatpush3.bf16.msra.mxu1 %v14742_v6  ;;  %v11732_v62 = vld [vmem:[%s20045_s4] ss:$0 sm:$0xff] }
 0x3a1   : > { %14072 = vmatprep.subr.bf16.mxu0 %v16096_v0  ;;  %14168 = vmatprep.subr.bf16.mxu1 %v16096_v0 }
 0x3a4   : > { %14073 = vmatpush3.bf16.msra.mxu0 %v14737_v63  ;;  %14169 = vmatpush3.bf16.msra.mxu1 %v14743_v7 }
 0x3a5   : > { %14074 = vmatprep.subr.bf16.mxu0 %v16096_v0  ;;  %14170 = vmatprep.subr.bf16.mxu1 %v16096_v0 }
 0x3a8   : > { %14075 = vmatpush3.bf16.msra.mxu0 %v3581_v2  ;;  %14171 = vmatpush3.bf16.msra.mxu1 %v3669_v9 }
 0x3a9   : > { %14080 = vmatprep.subr.bf16.mxu0 %v16096_v0  ;;  %14176 = vmatprep.subr.bf16.mxu1 %v16096_v0 }
 0x3ab   : > { %14077 = vmatmul.mubr.msk.bf16.vlgmr.msra.gmra.mrb[20].mxu0 %vm2822_vm3, %v17142_v49  ;;  %14173 = vmatmul.mubr.msk.bf16.vlgmr.msra.gmra.mrb[20].mxu1 %vm2822_vm3, %v17238_v33  ;;  %v14747_v49 = vld [vmem:[%s20044_s3 + $0x170] sm:$0xff]  }
 0x3ac   : > { %14081 = vmatpush3.bf16.msra.mxu0 %v14739_v3  ;;  %14177 = vmatpush3.bf16.msra.mxu1 %v14745_v11 }
 0x3ad   : > { %14082 = vmatprep.subr.bf16.mxu0 %v16096_v0  ;;  %14178 = vmatprep.subr.bf16.mxu1 %v16096_v0 }
 0x3ae   : > { %14092 = vmatprep.mubr.msk.bf16.mxu0 %vm16097_vm0, %v16096_v0  ;;  %14188 = vmatprep.mubr.msk.bf16.mxu1 %vm16097_vm0, %v16096_v0 }
 0x3b0   : > { %14083 = vmatpush3.bf16.msra.mxu0 %v14740_v4  ;;  %14179 = vmatpush3.bf16.msra.mxu1 %v14746_v12 }
 0x3b1   : > { %14084 = vmatprep.subr.bf16.mxu0 %v16096_v0  ;;  %14180 = vmatprep.subr.bf16.mxu1 %v16096_v0 }
 0x3b4   : > { %14085 = vmatpush3.bf16.msra.mxu0 %v14741_v5  ;;  %14181 = vmatpush3.bf16.msra.mxu1 %v14747_v49 }
 0x3b5   : > { %14086 = vmatprep.subr.bf16.mxu0 %v16096_v0  ;;  %14182 = vmatprep.subr.bf16.mxu1 %v16096_v0 }
 0x3b8   : > { %14087 = vmatpush3.bf16.msra.mxu0 %v14742_v6  ;;  %14183 = vmatpush3.bf16.msra.mxu1 %v14748_v13  ;;  %v14787_v6 = vld [vmem:[%s20046_s5 + $0x128] ss:$28 sps:$4 sm:$0xff]  }
 0x3b9   : > { %14088 = vmatprep.subr.bf16.mxu0 %v16096_v0  ;;  %14184 = vmatprep.subr.bf16.mxu1 %v16096_v0 }
 0x3bc   : > { %14089 = vmatpush3.bf16.msra.mxu0 %v14743_v7  ;;  %14185 = vmatpush3.bf16.msra.mxu1 %v14749_v14  ;;  %v14790_v7 = vld [vmem:[%s20046_s5 + $0x130] ss:$28 sps:$4 sm:$0xff]  }
 0x3bd   : > { %14090 = vmatprep.subr.bf16.mxu0 %v16096_v0  ;;  %14186 = vmatprep.subr.bf16.mxu1 %v16096_v0 }
 0x3c0   : > { %14091 = vmatpush3.bf16.msra.mxu0 %v3669_v9  ;;  %14187 = vmatpush3.bf16.msra.mxu1 %v3758_v10  ;;  %v14793_v9 = vld [vmem:[%s20046_s5 + $0x164] ss:$28 sps:$4 sm:$0xff]  }
 0x3c1   : > { %14096 = vmatprep.subr.bf16.mxu0 %v16096_v0  ;;  %14192 = vmatprep.subr.bf16.mxu1 %v16096_v0 }
 0x3c3   : > { %14093 = vmatmul.mubr.msk.bf16.vlgmr.msra.gmra.mrb[20].mxu0 %vm2822_vm3, %v17162_v57  ;;  %14189 = vmatmul.mubr.msk.bf16.vlgmr.msra.gmra.mrb[20].mxu1 %vm2822_vm3, %v17280_v41  ;;  %v14753_v57 = vld [vmem:[%s20044_s3 + $0x19c] sm:$0xff]  }
 0x3c4   : > { %14097 = vmatpush3.bf16.msra.mxu0 %v14745_v11  ;;  %14193 = vmatpush3.bf16.msra.mxu1 %v14751_v27  ;;  %v14791_v11 = vld [vmem:[%s20046_s5 + $0x160] ss:$28 sps:$4 sm:$0xff]  }
 0x3c5   : > { %14098 = vmatprep.subr.bf16.mxu0 %v16096_v0  ;;  %14194 = vmatprep.subr.bf16.mxu1 %v16096_v0 }
 0x3c6   : > { %14108 = vmatprep.mubr.msk.bf16.mxu0 %vm16097_vm0, %v16096_v0  ;;  %14204 = vmatprep.mubr.msk.bf16.mxu1 %vm16097_vm0, %v16096_v0 }
 0x3c8   : > { %14099 = vmatpush3.bf16.msra.mxu0 %v14746_v12  ;;  %14195 = vmatpush3.bf16.msra.mxu1 %v14752_v16  ;;  %v14794_v12 = vld [vmem:[%s20046_s5 + $0x168] ss:$28 sps:$4 sm:$0xff]  }
 0x3c9   : > { %14100 = vmatprep.subr.bf16.mxu0 %v16096_v0  ;;  %14196 = vmatprep.subr.bf16.mxu1 %v16096_v0 }
 0x3cc   : > { %14101 = vmatpush3.bf16.msra.mxu0 %v14747_v49  ;;  %14197 = vmatpush3.bf16.msra.mxu1 %v14753_v57  ;;  %v14797_v49 = vld [vmem:[%s20046_s5 + $0x19c] ss:$28 sps:$4 sm:$0xff]  }
 0x3cd   : > { %14102 = vmatprep.subr.bf16.mxu0 %v16096_v0  ;;  %14198 = vmatprep.subr.bf16.mxu1 %v16096_v0 }
 0x3d0   : > { %14103 = vmatpush3.bf16.msra.mxu0 %v14748_v13  ;;  %14199 = vmatpush3.bf16.msra.mxu1 %v14754_v17  ;;  %v14795_v13 = vld [vmem:[%s20046_s5 + $0x198] ss:$28 sps:$4 sm:$0xff]  }
 0x3d1   : > { %14104 = vmatprep.subr.bf16.mxu0 %v16096_v0  ;;  %14200 = vmatprep.subr.bf16.mxu1 %v16096_v0 }
 0x3d4   : > { %14105 = vmatpush3.bf16.msra.mxu0 %v14749_v14  ;;  %14201 = vmatpush3.bf16.msra.mxu1 %v14755_v18  ;;  %v14798_v14 = vld [vmem:[%s20046_s5 + $0x1a0] ss:$28 sps:$4 sm:$0xff]  }
 0x3d5   : > { %14106 = vmatprep.subr.bf16.mxu0 %v16096_v0  ;;  %14202 = vmatprep.subr.bf16.mxu1 %v16096_v0 }
 0x3d8   : > { %14107 = vmatpush3.bf16.msra.mxu0 %v3758_v10  ;;  %14203 = vmatpush3.bf16.msra.mxu1 %v3847_v37  ;;  %v14799_v10 = vld [vmem:[%s20046_s5 + $0x1d0] ss:$28 sps:$4 sm:$0xff]  }
 0x3d9   : > { %14112 = vmatprep.subr.bf16.mxu0 %v16096_v0  ;;  %4415 = vmatprep.subr.bf16.mxu1 %v14762_v23  ;;  %v14813_v23 = vld [vmem:[%s20046_s5 + $0x38] ss:$28 sps:$4 sm:$0xff]  }
 0x3db   : > { %14109 = vmatmul.mubr.msk.bf16.vlgmr.msra.gmra.mrb[20].mxu0 %vm2822_vm3, %v17238_v33  ;;  %14205 = vmatmul.mubr.msk.bf16.vlgmr.msra.gmra.mrb[20].mxu1 %vm2822_vm3, %v3402_v51  ;;  %v14771_v33 = vld [vmem:[%s20046_s5 + $0x18c] ss:$28 sps:$4 sm:$0xff]  }
 0x3dc   : > { %14113 = vmatpush3.bf16.msra.mxu0 %v14751_v27  ;;  %14124 = vmatprep.mubr.msk.bf16.mxu0 %vm16097_vm0, %v16096_v0  ;;  %v14802_v27 = vld [vmem:[%s20046_s5 + $0x1d8] ss:$28 sps:$4 sm:$0xff]  }
 0x3dd   : > { %14114 = vmatprep.subr.bf16.mxu0 %v16096_v0  ;;  %4416 = vmatpush1.bf16.msra.mxu1 %v14760_v22  ;;  %v14818_v22 = vld [vmem:[%s20046_s5 + $0x44] ss:$28 sps:$4 sm:$0xff]  }
 0x3de   : > { %4417 = vmatprep.subr.bf16.mxu1 %v14768_v25  ;;  %4447 = vmatprep.mubr.bf16.mxu1 %v16098_v52  ;;  %v14821_v25 = vld [vmem:[%s20046_s5 + $0x74] ss:$28 sps:$4 sm:$0xff]  }
 0x3e0   : > { %14115 = vmatpush3.bf16.msra.mxu0 %v14752_v16  ;;  %v14805_v16 = vld [vmem:[%s20046_s5 + $0x20c] ss:$28 sps:$4 sm:$0xff]  }
 0x3e1   : > { %14116 = vmatprep.subr.bf16.mxu0 %v16096_v0  ;;  %4418 = vmatpush1.bf16.msra.mxu1 %v14766_v28  ;;  %v14819_v28 = vld [vmem:[%s20046_s5 + $0x70] ss:$28 sps:$4 sm:$0xff]  }
 0x3e2   : > { %4419 = vmatprep.subr.bf16.mxu1 %v14774_v34  ;;  %v14833_v34 = vld [vmem:[%s20046_s5 + $0xe4] ss:$28 sps:$4 sm:$0xff]  }
 0x3e4   : > { %14117 = vmatpush3.bf16.msra.mxu0 %v14753_v57  ;;  %v14803_v57 = vld [vmem:[%s20046_s5 + $0x208] ss:$28 sps:$4 sm:$0xff]  }
 0x3e5   : > { %14118 = vmatprep.subr.bf16.mxu0 %v16096_v0  ;;  %4420 = vmatpush1.bf16.msra.mxu1 %v14772_v47  ;;  %v14831_v47 = vld [vmem:[%s20046_s5 + $0xe0] ss:$28 sps:$4 sm:$0xff]  }
 0x3e6   : > { %4421 = vmatprep.subr.bf16.mxu1 %v14780_v38  ;;  %v14839_v38 = vld [vmem:[%s20046_s5 + $0x14] ss:$28 sps:$4 sm:$0xff]  }
 0x3e8   : > { %14119 = vmatpush3.bf16.msra.mxu0 %v14754_v17  ;;  %v14806_v17 = vld [vmem:[%s20046_s5 + $0x210] ss:$28 sps:$4 sm:$0xff]  }
 0x3e9   : > { %14120 = vmatprep.subr.bf16.mxu0 %v16096_v0  ;;  %4422 = vmatpush1.bf16.msra.mxu1 %v14778_v40  ;;  %v14840_v40 = vld [vmem:[%s20046_s5 + $0x18] ss:$28 sps:$4 sm:$0xff]  }
 0x3ea   : > { %4423 = vmatprep.subr.bf16.mxu1 %v14786_v42  ;;  %v14841_v42 = vld [vmem:[%s20046_s5 + $0x48] ss:$28 sps:$4 sm:$0xff]  }
 0x3ec   : > { %14121 = vmatpush3.bf16.msra.mxu0 %v14755_v18  ;;  %v14809_v18 = vld [vmem:[%s20046_s5 + $0x4] ss:$28 sps:$4 sm:$0xff]  }
 0x3ed   : > { %14122 = vmatprep.subr.bf16.mxu0 %v16096_v0  ;;  %4424 = vmatpush1.bf16.msra.mxu1 %v14784_v44  ;;  %v14847_v44 = vld [vmem:[%s20046_s5 + $0x84] ss:$28 sps:$4 sm:$0xff]  }
 0x3ee   : > { %14208 = vmatprep.subr.bf16.mxu1 %v16096_v0 }
 0x3f0   : > { %14123 = vmatpush3.bf16.msra.mxu0 %v3847_v37  ;;  %v14807_v37 = vld [vmem:[%s20046_s5] ss:$28 sps:$4 sm:$0xff]  }
 0x3f1   : > { %4374 = vmatprep.subr.bf16.mxu0 %v14759_v21  ;;  %v14815_v21 = vld [vmem:[%s20046_s5 + $0x3c] ss:$28 sps:$4 sm:$0xff]  }
 0x3f3   : > { %14125 = vmatmul.mubr.msk.bf16.vlgmr.msra.gmra.mrb[20].mxu0 %vm2822_vm3, %v17280_v41  ;;  %v14783_v41 = vld [vmem:[%s20046_s5 + $0x1fc] ss:$28 sps:$4 sm:$0xff]  }
 0x3f4   : > { %4375 = vmatpush1.bf16.msra.mxu0 %v14757_v20  ;;  %4406 = vmatprep.mubr.bf16.mxu0 %v16098_v52  ;;  %v14810_v20 = vld [vmem:[%s20046_s5 + $0x8] ss:$28 sps:$4 sm:$0xff]  }
 0x3f5   : > { %4376 = vmatprep.subr.bf16.mxu0 %v14765_v24  ;;  %v14816_v24 = vld [vmem:[%s20046_s5 + $0x40] ss:$28 sps:$4 sm:$0xff]  }
 0x3f8   : > { %4377 = vmatpush1.bf16.msra.mxu0 %v14763_v26  ;;  %v14824_v26 = vld [vmem:[%s20046_s5 + $0x7c] ss:$28 sps:$4 sm:$0xff]  }
 0x3f9   : > { %4378 = vmatprep.subr.bf16.mxu0 %v14771_v33  ;;  %v14828_v33 = vld [vmem:[%s20046_s5 + $0xb0] ss:$28 sps:$4 sm:$0xff]  }
 0x3fc   : > { %4379 = vmatpush1.bf16.msra.mxu0 %v14769_v35  ;;  %v14836_v35 = vld [vmem:[%s20046_s5 + $0xec] ss:$28 sps:$4 sm:$0xff]  }
 0x3fd   : > { %4380 = vmatprep.subr.bf16.mxu0 %v14777_v36  ;;  %v14834_v36 = vld [vmem:[%s20046_s5 + $0xe8] ss:$28 sps:$4 sm:$0xff]  }
 0x400   : > { %4381 = vmatpush1.bf16.msra.mxu0 %v14775_v39  ;;  %v14837_v39 = vld [vmem:[%s20046_s5 + $0x10] ss:$28 sps:$4 sm:$0xff]  }
 0x401   : > { %4382 = vmatprep.subr.bf16.mxu0 %v14783_v41  ;;  %v14843_v41 = vld [vmem:[%s20046_s5 + $0x4c] ss:$28 sps:$4 sm:$0xff]  }
 0x404   : > { %4383 = vmatpush1.bf16.msra.mxu0 %v14781_v43  ;;  %v14844_v43 = vld [vmem:[%s20046_s5 + $0x50] ss:$28 sps:$4 sm:$0xff]  }
 0x405   : > { %4456 = vmatprep.subr.bf16.mxu0 %v14789_v50  ;;  %v14849_v50 = vld [vmem:[%s20046_s5 + $0xb8] ss:$28 sps:$4 sm:$0xff]  }
 0x436   : > { %v3440_v29 = vpop.f32.mrb[16].mxu1 }
 0x437   : > { %v14046_v30 = vpop.f32.mrb[17].mxu1 }
 0x438   : > { %v3443_v31 = vpop.f32.mrb[18].mxu1  ;;  %v14827_v30 = vld [vmem:[%s20046_s5 + $0xac] ss:$28 sps:$4 sm:$0xff]  }
 0x439   : > { %v14047_v32 = vpop.f32.mrb[19].mxu1  ;;  %v14830_v31 = vld [vmem:[%s20046_s5 + $0xb4] ss:$28 sps:$4 sm:$0xff]  }
 0x43a   : > { %v14825_v32 = vld [vmem:[%s20046_s5 + $0xa8] ss:$28 sps:$4 sm:$0xff]  }
 0x44e   : > { %v3232_v45 = vpop.f32.mrb[16].mxu0 }
 0x44f   : > { %v4093_v46 = vmax.f32 %v3232_v45, %v3440_v29  ;;  %v13966_v48 = vpop.f32.mrb[17].mxu0  ;;  %v14822_v29 = vld [vmem:[%s20046_s5 + $0x78] ss:$28 sps:$4 sm:$0xff]   ;;  %v14845_v45 = vld [vmem:[%s20046_s5 + $0x80] ss:$28 sps:$4 sm:$0xff]  }
 0x450   : > { %v3235_v51 = vpop.f32.mrb[18].mxu0  ;;  %v14851_v48 = vld [vmem:[%s20046_s5 + $0xbc] ss:$28 sps:$4 sm:$0xff]  }
 0x451   : > { %v13967_v53 = vpop.f32.mrb[19].mxu0  ;;  %v14852_v51 = vld [vmem:[%s20046_s5 + $0xc0] ss:$28 sps:$4 sm:$0xff]  }
 0x452   : > { %v14855_v53 = vld [vmem:[%s20046_s5 + $0xf4] ss:$28 sps:$4 sm:$0xff]  }
 0x4ae   : > { %v4086_v54 = vpop.f32.mrb[20].mxu1 }
 0x4af   : > { %v14206_v55 = vpop.f32.mrb[21].mxu1 }
 0x4b0   : > { %v4089_v56 = vpop.f32.mrb[22].mxu1  ;;  %v14856_v55 = vld [vmem:[%s20046_s5 + $0xf8] ss:$28 sps:$4 sm:$0xff]  }
 0x4b1   : > { %v14207_v58 = vpop.f32.mrb[23].mxu1  ;;  %v14859_v56 = vld [vmem:[%s20046_s5 + $0x234] ss:$28 sps:$4 sm:$0xff]  }
 0x4b2   : > { %v14862_v58 = vld [vmem:[%s20046_s5 + $0x23c] ss:$28 sps:$4 sm:$0xff]  }
 0x4c6   : > { %v3883_v59 = vpop.f32.mrb[20].mxu0 }
 0x4c7   : > { %v4094_v60 = vmax.f32 %v3883_v59, %v4086_v54  ;;  %v14126_v61 = vpop.f32.mrb[21].mxu0  ;;  %v14853_v54 = vld [vmem:[%s20046_s5 + $0xf0] ss:$28 sps:$4 sm:$0xff]  }
 0x4c8   : > { %v3886_v63 = vpop.f32.mrb[22].mxu0  ;;  %v14857_v59 = vld [vmem:[%s20046_s5 + $0x230] ss:$28 sps:$4 sm:$0xff]  }
 0x4c9   : > { %v4095_v1 = vmax.f32 %v4093_v46, %v4094_v60  ;;  %v14127_v2 = vpop.f32.mrb[23].mxu0  ;;  %v14848_v46 = vld [vmem:[%s20046_s5 + $0x88] ss:$28 sps:$4 sm:$0xff]   ;;  %v14860_v60 = vld [vmem:[%s20046_s5 + $0x238] ss:$28 sps:$4 sm:$0xff]  }
 0x4ca   : > { %v14865_v61 = vld [vmem:[%s20046_s5 + $0x26c] ss:$28 sps:$4 sm:$0xff]   ;;  %v14871_v2 = vld [vmem:[%s20046_s5 + $0x2a4] ss:$28 sps:$4 sm:$0xff]  }
 0x4cb   : > { %v4103_v3 = vadd.f32 %v11732_v62, %v4095_v1  ;;  %v14868_v62 = vld [vmem:[%s20046_s5 + $0x274] ss:$28 sps:$4 sm:$0xff]   ;;  %v14863_v63 = vld [vmem:[%s20046_s5 + $0x268] ss:$28 sps:$4 sm:$0xff]  }
 0x4cc   : > { %v14866_v1 = vld [vmem:[%s20046_s5 + $0x270] ss:$28 sps:$4 sm:$0xff]  }
 0x4cd   : > { %v4104_v4 = vmax.f32 %v4103_v3, 0.0  ;;  %v14874_v3 = vld [vmem:[%s20046_s5 + $0x2ac] ss:$28 sps:$4 sm:$0xff]  }
 0x4cf   : > { %v17598_v5 = vpack.c.bf16 %v4104_v4, %v4104_v4  ;;  %v14869_v4 = vld [vmem:[%s20046_s5 + $0x2a0] ss:$28 sps:$4 sm:$0xff]  }
 0x4d1   : > { %v17607_v8 = vshrl.u32 %v17598_v5, 16 }
 0x4d3   : > { %11808 = vmatmul.mubr.msk.bf16.vlgmr.msra.gmra.mrb[24].mxu0 %vm4370_vm4, %v17607_v8  ;;  %11809 = vmatmul.mubr.msk.bf16.vlgmr.msra.gmra.mrb[24].mxu1 %vm4370_vm4, %v17607_v8 }
 0x4d4   : > { %4457 = vmatpush1.bf16.msra.mxu0 %v14787_v6  ;;  %14209 = vmatpush3.bf16.msra.mxu1 %v14790_v7  ;;  %v14872_v6 = vld [vmem:[%s20046_s5 + $0x2a8] ss:$28 sps:$4 sm:$0xff]   ;;  %v14877_v7 = vld [vmem:[%s20046_s5 + $0x2dc] ss:$28 sps:$4 sm:$0xff]  }
 0x4d5   : > { %4458 = vmatprep.subr.bf16.mxu0 %v14793_v9  ;;  %14210 = vmatprep.subr.bf16.mxu1 %v16096_v0  ;;  %v14880_v9 = vld [vmem:[%s20046_s5 + $0x2e4] ss:$28 sps:$4 sm:$0xff]  }
 0x4d6   : > { %4488 = vmatprep.mubr.bf16.mxu0 %v16098_v52  ;;  %14218 = vmatprep.mubr.msk.bf16.mxu1 %vm16097_vm0, %v16096_v0 }
 0x4d8   : > { %4459 = vmatpush1.bf16.msra.mxu0 %v14791_v11  ;;  %14211 = vmatpush3.bf16.msra.mxu1 %v14794_v12  ;;  %v14875_v11 = vld [vmem:[%s20046_s5 + $0x2d8] ss:$28 sps:$4 sm:$0xff]   ;;  %v14878_v12 = vld [vmem:[%s20046_s5 + $0x2e0] ss:$28 sps:$4 sm:$0xff]  }
 0x4d9   : > { %4460 = vmatprep.subr.bf16.mxu0 %v14797_v49  ;;  %14212 = vmatprep.subr.bf16.mxu1 %v16096_v0  ;;  %v14883_v49 = vld [vmem:[%s20046_s5 + $0x314] ss:$28 sps:$4 sm:$0xff]  }
 0x4dc   : > { %4461 = vmatpush1.bf16.msra.mxu0 %v14795_v13  ;;  %14213 = vmatpush3.bf16.msra.mxu1 %v14798_v14  ;;  %v14886_v13 = vld [vmem:[%s20046_s5 + $0x31c] ss:$28 sps:$4 sm:$0xff]   ;;  %v14881_v14 = vld [vmem:[%s20046_s5 + $0x310] ss:$28 sps:$4 sm:$0xff]  }
 0x4dd   : > { %4462 = vmatprep.subr.bf16.mxu0 %v14801_v15  ;;  %14214 = vmatprep.subr.bf16.mxu1 %v16096_v0  ;;  %v14884_v15 = vld [vmem:[%s20046_s5 + $0x318] ss:$28 sps:$4 sm:$0xff]  }
 0x4e0   : > { %4463 = vmatpush1.bf16.msra.mxu0 %v14799_v10  ;;  %14215 = vmatpush3.bf16.msra.mxu1 %v14802_v27  ;;  %v14889_v10 = vld [vmem:[%s20046_s5 + $0x244] ss:$28 sps:$4 sm:$0xff]  }
 0x4e1   : > { %4464 = vmatprep.subr.bf16.mxu0 %v14805_v16  ;;  %14216 = vmatprep.subr.bf16.mxu1 %v16096_v0  ;;  %v14887_v27 = vld [vmem:[%s20046_s5 + $0x240] ss:$28 sps:$4 sm:$0xff]   ;;  %v14890_v16 = vld [vmem:[%s20046_s5 + $0x248] ss:$28 sps:$4 sm:$0xff]  }
 0x4e4   : > { %4465 = vmatpush1.bf16.msra.mxu0 %v14803_v57  ;;  %14217 = vmatpush3.bf16.msra.mxu1 %v14806_v17  ;;  %v4924_v57 = vrot.slane %v17598_v5, 1  ;;  %v14893_v17 = vld [vmem:[%s20046_s5 + $0x27c] ss:$28 sps:$4 sm:$0xff]  }
 0x4e5   : > { %4719 = vmatprep.subr.bf16.mxu0 %v14809_v18  ;;  %4760 = vmatprep.subr.bf16.mxu1 %v14812_v19  ;;  %v14891_v18 = vld [vmem:[%s20046_s5 + $0x278] ss:$28 sps:$4 sm:$0xff]   ;;  %v14894_v19 = vld [vmem:[%s20046_s5 + $0x280] ss:$28 sps:$4 sm:$0xff]  }
 0x4e7   : > { %11810 = vmatmul.mubr.msk.bf16.vlgmr.msra.gmra.mrb[28].mxu0 %vm4370_vm4, %v17607_v8  ;;  %14219 = vmatmul.mubr.msk.bf16.vlgmr.msra.gmra.mrb[28].mxu1 %vm4370_vm4, %v17607_v8 }
 0x4e8   : > { %4720 = vmatpush1.bf16.msra.mxu0 %v14807_v37  ;;  %4761 = vmatpush1.bf16.msra.mxu1 %v14810_v20  ;;  %v14897_v37 = vld [vmem:[%s20046_s5 + $0x2b4] ss:$28 sps:$4 sm:$0xff]  }
 0x4e9   : > { %4721 = vmatprep.subr.bf16.mxu0 %v14815_v21  ;;  %4762 = vmatprep.subr.bf16.mxu1 %v14818_v22  ;;  %v14895_v20 = vld [vmem:[%s20046_s5 + $0x2b0] ss:$28 sps:$4 sm:$0xff]   ;;  %v14898_v21 = vld [vmem:[%s20046_s5 + $0x2b8] ss:$28 sps:$4 sm:$0xff]  }
 0x4ea   : > { %4751 = vmatprep.mubr.bf16.mxu0 %v16098_v52  ;;  %4792 = vmatprep.mubr.bf16.mxu1 %v16098_v52  ;;  %v14901_v22 = vld [vmem:[%s20046_s5 + $0x2ec] ss:$28 sps:$4 sm:$0xff]  }
 0x4ec   : > { %4722 = vmatpush1.bf16.msra.mxu0 %v14813_v23  ;;  %4763 = vmatpush1.bf16.msra.mxu1 %v14816_v24  ;;  %v14899_v23 = vld [vmem:[%s20046_s5 + $0x2e8] ss:$28 sps:$4 sm:$0xff]   ;;  %v14902_v24 = vld [vmem:[%s20046_s5 + $0x2f0] ss:$28 sps:$4 sm:$0xff]  }
 0x4ed   : > { %4723 = vmatprep.subr.bf16.mxu0 %v14821_v25  ;;  %4764 = vmatprep.subr.bf16.mxu1 %v14824_v26  ;;  %v14905_v25 = vld [vmem:[%s20046_s5 + $0x324] ss:$28 sps:$4 sm:$0xff]  }
 0x4ee   : > { %v14903_v26 = vld [vmem:[%s20046_s5 + $0x320] ss:$28 sps:$4 sm:$0xff]  }
 0x4f0   : > { %4724 = vmatpush1.bf16.msra.mxu0 %v14819_v28  ;;  %4765 = vmatpush1.bf16.msra.mxu1 %v14822_v29  ;;  %v14906_v28 = vld [vmem:[%s20046_s5 + $0x328] ss:$28 sps:$4 sm:$0xff]  }
 0x4f1   : > { %4725 = vmatprep.subr.bf16.mxu0 %v14827_v30  ;;  %4766 = vmatprep.subr.bf16.mxu1 %v14830_v31  ;;  %v14909_v29 = vld [vmem:[%s20046_s5 + $0x34c] ss:$28 sps:$4 sm:$0xff]   ;;  %v14912_v30 = vld [vmem:[%s20046_s5 + $0x354] ss:$28 sps:$4 sm:$0xff]  }
 0x4f2   : > { %v14907_v31 = vld [vmem:[%s20046_s5 + $0x348] ss:$28 sps:$4 sm:$0xff]  }
 0x4f4   : > { %4726 = vmatpush1.bf16.msra.mxu0 %v14825_v32  ;;  %4767 = vmatpush1.bf16.msra.mxu1 %v14828_v33  ;;  %v14910_v32 = vld [vmem:[%s20046_s5 + $0x350] ss:$28 sps:$4 sm:$0xff]   ;;  %v14915_v33 = vld [vmem:[%s20046_s5 + $0x384] ss:$28 sps:$4 sm:$0xff]  }
 0x4f5   : > { %4727 = vmatprep.subr.bf16.mxu0 %v14833_v34  ;;  %4768 = vmatprep.subr.bf16.mxu1 %v14836_v35  ;;  %v14918_v34 = vld [vmem:[%s20046_s5 + $0x38c] ss:$28 sps:$4 sm:$0xff]   ;;  %v14913_v35 = vld [vmem:[%s20046_s5 + $0x380] ss:$28 sps:$4 sm:$0xff]  }
 0x4f8   : > { %4728 = vmatpush1.bf16.msra.mxu0 %v14831_v47  ;;  %4769 = vmatpush1.bf16.msra.mxu1 %v14834_v36  ;;  %v14916_v47 = vld [vmem:[%s20046_s5 + $0x388] ss:$28 sps:$4 sm:$0xff]   ;;  %v14921_v36 = vld [vmem:[%s20046_s5 + $0x3bc] ss:$28 sps:$4 sm:$0xff]  }
 0x4f9   : > { %4801 = vmatprep.subr.bf16.mxu0 %v14839_v38  ;;  %14222 = vmatprep.subr.bf16.mxu1 %v16096_v0  ;;  %v14924_v38 = vld [vmem:[%s20046_s5 + $0x3c4] ss:$28 sps:$4 sm:$0xff]  }
 0x4fb   : > { %11847 = vmatmul.mubr.msk.bf16.vlgmr.msra.gmra.mrb[32].mxu0 %vm4370_vm4, %v17598_v5  ;;  %11848 = vmatmul.mubr.msk.bf16.vlgmr.msra.gmra.mrb[32].mxu1 %vm4370_vm4, %v17598_v5 }
 0x4fc   : > { %4802 = vmatpush1.bf16.msra.mxu0 %v14837_v39  ;;  %14223 = vmatpush3.bf16.msra.mxu1 %v14840_v40  ;;  %v14919_v39 = vld [vmem:[%s20046_s5 + $0x3b8] ss:$28 sps:$4 sm:$0xff]   ;;  %v14922_v40 = vld [vmem:[%s20046_s5 + $0x3c0] ss:$28 sps:$4 sm:$0xff]  }
 0x4fd   : > { %4803 = vmatprep.subr.bf16.mxu0 %v14843_v41  ;;  %14224 = vmatprep.subr.bf16.mxu1 %v16096_v0  ;;  %v14927_v41 = vld [vmem:[%s20046_s5 + $0x3f4] ss:$28 sps:$4 sm:$0xff]  }
 0x4fe   : > { %4833 = vmatprep.mubr.bf16.mxu0 %v16098_v52  ;;  %14232 = vmatprep.mubr.msk.bf16.mxu1 %vm16097_vm0, %v16096_v0 }
 0x500   : > { %4804 = vmatpush1.bf16.msra.mxu0 %v14841_v42  ;;  %14225 = vmatpush3.bf16.msra.mxu1 %v14844_v43  ;;  %v14930_v42 = vld [vmem:[%s20046_s5 + $0x3fc] ss:$28 sps:$4 sm:$0xff]   ;;  %v14925_v43 = vld [vmem:[%s20046_s5 + $0x3f0] ss:$28 sps:$4 sm:$0xff]  }
 0x501   : > { %4805 = vmatprep.subr.bf16.mxu0 %v14847_v44  ;;  %14226 = vmatprep.subr.bf16.mxu1 %v16096_v0  ;;  %v14928_v44 = vld [vmem:[%s20046_s5 + $0x3f8] ss:$28 sps:$4 sm:$0xff]  }
 0x504   : > { %4806 = vmatpush1.bf16.msra.mxu0 %v14845_v45  ;;  %14227 = vmatpush3.bf16.msra.mxu1 %v14848_v46  ;;  %v14933_v45 = vld [vmem:[%s20046_s5 + $0x42c] ss:$28 sps:$4 sm:$0xff]   ;;  %v14936_v46 = vld [vmem:[%s20046_s5 + $0x434] ss:$28 sps:$4 sm:$0xff]  }
 0x505   : > { %4807 = vmatprep.subr.bf16.mxu0 %v14851_v48  ;;  %14228 = vmatprep.subr.bf16.mxu1 %v16096_v0  ;;  %v14931_v48 = vld [vmem:[%s20046_s5 + $0x428] ss:$28 sps:$4 sm:$0xff]  }
 0x508   : > { %4808 = vmatpush1.bf16.msra.mxu0 %v14849_v50  ;;  %14229 = vmatpush3.bf16.msra.mxu1 %v14852_v51  ;;  %v14934_v50 = vld [vmem:[%s20046_s5 + $0x430] ss:$28 sps:$4 sm:$0xff]   ;;  %v14939_v51 = vld [vmem:[%s20046_s5 + $0x35c] ss:$28 sps:$4 sm:$0xff]  }
 0x509   : > { %4809 = vmatprep.subr.bf16.mxu0 %v14855_v53  ;;  %14230 = vmatprep.subr.bf16.mxu1 %v16096_v0  ;;  %v14937_v53 = vld [vmem:[%s20046_s5 + $0x358] ss:$28 sps:$4 sm:$0xff]  }
 0x50c   : > { %4810 = vmatpush1.bf16.msra.mxu0 %v14853_v54  ;;  %14231 = vmatpush3.bf16.msra.mxu1 %v14856_v55  ;;  %v14940_v54 = vld [vmem:[%s20046_s5 + $0x360] ss:$28 sps:$4 sm:$0xff]   ;;  %v5319_v55 = vrot.slane %v17607_v8, 1  ;;  %v14944_v8 = vld [vmem:[%s20046_s5 + $0x398] ss:$28 sps:$4 sm:$0xff]  }
 0x50d   : > { %5108 = vmatprep.subr.bf16.mxu0 %v14859_v56  ;;  %5149 = vmatprep.subr.bf16.mxu1 %v14862_v58  ;;  %v14943_v56 = vld [vmem:[%s20046_s5 + $0x394] ss:$28 sps:$4 sm:$0xff]  }
 0x50e   : > { %v14941_v58 = vld [vmem:[%s20046_s5 + $0x390] ss:$28 sps:$4 sm:$0xff]  }
 0x50f   : > { %11849 = vmatmul.mubr.msk.bf16.vlgmr.msra.gmra.mrb[36].mxu0 %vm4370_vm4, %v17598_v5  ;;  %14233 = vmatmul.mubr.msk.bf16.vlgmr.msra.gmra.mrb[36].mxu1 %vm4370_vm4, %v17598_v5 }
 0x510   : > { %5109 = vmatpush1.bf16.msra.mxu0 %v14857_v59  ;;  %5150 = vmatpush1.bf16.msra.mxu1 %v14860_v60  ;;  %v14947_v59 = vld [vmem:[%s20046_s5 + $0x3cc] ss:$28 sps:$4 sm:$0xff]  }
 0x511   : > { %5110 = vmatprep.subr.bf16.mxu0 %v14865_v61  ;;  %5151 = vmatprep.subr.bf16.mxu1 %v14868_v62  ;;  %v14945_v60 = vld [vmem:[%s20046_s5 + $0x3c8] ss:$28 sps:$4 sm:$0xff]   ;;  %v14948_v61 = vld [vmem:[%s20046_s5 + $0x3d0] ss:$28 sps:$4 sm:$0xff]  }
 0x512   : > { %5140 = vmatprep.mubr.bf16.mxu0 %v16098_v52  ;;  %5181 = vmatprep.mubr.bf16.mxu1 %v16098_v52  ;;  %v14951_v62 = vld [vmem:[%s20046_s5 + $0x404] ss:$28 sps:$4 sm:$0xff]  }
 0x514   : > { %5111 = vmatpush1.bf16.msra.mxu0 %v14863_v63  ;;  %5152 = vmatpush1.bf16.msra.mxu1 %v14866_v1  ;;  %v14949_v63 = vld [vmem:[%s20046_s5 + $0x400] ss:$28 sps:$4 sm:$0xff]   ;;  %v14952_v1 = vld [vmem:[%s20046_s5 + $0x408] ss:$28 sps:$4 sm:$0xff]  }
 0x515   : > { %5112 = vmatprep.subr.bf16.mxu0 %v14871_v2  ;;  %5153 = vmatprep.subr.bf16.mxu1 %v14874_v3  ;;  %v14955_v2 = vld [vmem:[%s20046_s5 + $0x43c] ss:$28 sps:$4 sm:$0xff]  }
 0x516   : > { %v14953_v3 = vld [vmem:[%s20046_s5 + $0x438] ss:$28 sps:$4 sm:$0xff]  }
 0x518   : > { %5113 = vmatpush1.bf16.msra.mxu0 %v14869_v4  ;;  %5154 = vmatpush1.bf16.msra.mxu1 %v14872_v6  ;;  %v14956_v4 = vld [vmem:[%s20046_s5 + $0x440] ss:$28 sps:$4 sm:$0xff]  }
 0x519   : > { %5114 = vmatprep.subr.bf16.mxu0 %v14877_v7  ;;  %5155 = vmatprep.subr.bf16.mxu1 %v14880_v9  ;;  %v14959_v6 = vld [vmem:[%s20046_s5 + $0x464] ss:$28 sps:$4 sm:$0xff]   ;;  %v14962_v7 = vld [vmem:[%s20046_s5 + $0x46c] ss:$28 sps:$4 sm:$0xff]  }
 0x51a   : > { %v14957_v9 = vld [vmem:[%s20046_s5 + $0x460] ss:$28 sps:$4 sm:$0xff]  }
 0x51c   : > { %5115 = vmatpush1.bf16.msra.mxu0 %v14875_v11  ;;  %5156 = vmatpush1.bf16.msra.mxu1 %v14878_v12  ;;  %v14960_v11 = vld [vmem:[%s20046_s5 + $0x468] ss:$28 sps:$4 sm:$0xff]   ;;  %v14965_v12 = vld [vmem:[%s20046_s5 + $0x49c] ss:$28 sps:$4 sm:$0xff]  }
 0x51d   : > { %5116 = vmatprep.subr.bf16.mxu0 %v14883_v49  ;;  %5157 = vmatprep.subr.bf16.mxu1 %v14886_v13  ;;  %v14968_v49 = vld [vmem:[%s20046_s5 + $0x4a4] ss:$28 sps:$4 sm:$0xff]   ;;  %v14963_v13 = vld [vmem:[%s20046_s5 + $0x498] ss:$28 sps:$4 sm:$0xff]  }
 0x520   : > { %5117 = vmatpush1.bf16.msra.mxu0 %v14881_v14  ;;  %5158 = vmatpush1.bf16.msra.mxu1 %v14884_v15  ;;  %v14966_v14 = vld [vmem:[%s20046_s5 + $0x4a0] ss:$28 sps:$4 sm:$0xff]   ;;  %v14971_v15 = vld [vmem:[%s20046_s5 + $0x4d4] ss:$28 sps:$4 sm:$0xff]  }
 0x521   : > { %5190 = vmatprep.subr.bf16.mxu0 %v14889_v10  ;;  %14236 = vmatprep.subr.bf16.mxu1 %v16096_v0  ;;  %v14974_v10 = vld [vmem:[%s20046_s5 + $0x4dc] ss:$28 sps:$4 sm:$0xff]  }
 0x523   : > { %11926 = vmatmul.mubr.msk.bf16.vlgmr.msra.gmra.mrb[40].mxu0 %vm4370_vm4, %v4924_v57  ;;  %11927 = vmatmul.mubr.msk.bf16.vlgmr.msra.gmra.mrb[40].mxu1 %vm4370_vm4, %v4924_v57 }
 0x524   : > { %5191 = vmatpush1.bf16.msra.mxu0 %v14887_v27  ;;  %14237 = vmatpush3.bf16.msra.mxu1 %v14890_v16  ;;  %v14969_v27 = vld [vmem:[%s20046_s5 + $0x4d0] ss:$28 sps:$4 sm:$0xff]   ;;  %v14972_v16 = vld [vmem:[%s20046_s5 + $0x4d8] ss:$28 sps:$4 sm:$0xff]  }
 0x525   : > { %5192 = vmatprep.subr.bf16.mxu0 %v14893_v17  ;;  %14238 = vmatprep.subr.bf16.mxu1 %v16096_v0  ;;  %v14980_v17 = vld [vmem:[%s20046_s5 + $0x514] ss:$28 sps:$4 sm:$0xff]  }
 0x526   : > { %5222 = vmatprep.mubr.bf16.mxu0 %v16098_v52  ;;  %14246 = vmatprep.mubr.msk.bf16.mxu1 %vm16097_vm0, %v16096_v0 }
 0x528   : > { %5193 = vmatpush1.bf16.msra.mxu0 %v14891_v18  ;;  %14239 = vmatpush3.bf16.msra.mxu1 %v14894_v19  ;;  %v14975_v18 = vld [vmem:[%s20046_s5 + $0x508] ss:$28 sps:$4 sm:$0xff]   ;;  %v14978_v19 = vld [vmem:[%s20046_s5 + $0x510] ss:$28 sps:$4 sm:$0xff]  }
 0x529   : > { %5194 = vmatprep.subr.bf16.mxu0 %v14897_v37  ;;  %14240 = vmatprep.subr.bf16.mxu1 %v16096_v0  ;;  %v14983_v37 = vld [vmem:[%s20046_s5 + $0x544] ss:$28 sps:$4 sm:$0xff]  }
 0x52c   : > { %5195 = vmatpush1.bf16.msra.mxu0 %v14895_v20  ;;  %14241 = vmatpush3.bf16.msra.mxu1 %v14898_v21  ;;  %v14986_v20 = vld [vmem:[%s20046_s5 + $0x54c] ss:$28 sps:$4 sm:$0xff]   ;;  %v14981_v21 = vld [vmem:[%s20046_s5 + $0x540] ss:$28 sps:$4 sm:$0xff]  }
 0x52d   : > { %5196 = vmatprep.subr.bf16.mxu0 %v14901_v22  ;;  %14242 = vmatprep.subr.bf16.mxu1 %v16096_v0  ;;  %v14984_v22 = vld [vmem:[%s20046_s5 + $0x548] ss:$28 sps:$4 sm:$0xff]  }
 0x530   : > { %5197 = vmatpush1.bf16.msra.mxu0 %v14899_v23  ;;  %14243 = vmatpush3.bf16.msra.mxu1 %v14902_v24  ;;  %v14989_v23 = vld [vmem:[%s20046_s5 + $0x474] ss:$28 sps:$4 sm:$0xff]  }
 0x531   : > { %5198 = vmatprep.subr.bf16.mxu0 %v14905_v25  ;;  %14244 = vmatprep.subr.bf16.mxu1 %v16096_v0  ;;  %v14987_v24 = vld [vmem:[%s20046_s5 + $0x470] ss:$28 sps:$4 sm:$0xff]   ;;  %v14990_v25 = vld [vmem:[%s20046_s5 + $0x478] ss:$28 sps:$4 sm:$0xff]  }
 0x534   : > { %5199 = vmatpush1.bf16.msra.mxu0 %v14903_v26  ;;  %14245 = vmatpush3.bf16.msra.mxu1 %v14906_v28  ;;  %v5714_v26 = vrot.slane %v17598_v5, 2  ;;  %v14993_v28 = vld [vmem:[%s20046_s5 + $0x4ac] ss:$28 sps:$4 sm:$0xff]  }
 0x535   : > { %5503 = vmatprep.subr.bf16.mxu0 %v14909_v29  ;;  %5544 = vmatprep.subr.bf16.mxu1 %v14912_v30  ;;  %v14991_v29 = vld [vmem:[%s20046_s5 + $0x4a8] ss:$28 sps:$4 sm:$0xff]   ;;  %v14994_v5 = vld [vmem:[%s20046_s5 + $0x4b0] ss:$28 sps:$4 sm:$0xff]  }
 0x536   : > { %v14997_v30 = vld [vmem:[%s20046_s5 + $0x4e4] ss:$28 sps:$4 sm:$0xff]  }
 0x537   : > { %11928 = vmatmul.mubr.msk.bf16.vlgmr.msra.gmra.mrb[44].mxu0 %vm4370_vm4, %v4924_v57  ;;  %14247 = vmatmul.mubr.msk.bf16.vlgmr.msra.gmra.mrb[44].mxu1 %vm4370_vm4, %v4924_v57  ;;  %v14977_v57 = vld [vmem:[%s20046_s5 + $0x50c] ss:$28 sps:$4 sm:$0xff]  }
 0x538   : > { %5504 = vmatpush1.bf16.msra.mxu0 %v14907_v31  ;;  %5545 = vmatpush1.bf16.msra.mxu1 %v14910_v32  ;;  %v14995_v31 = vld [vmem:[%s20046_s5 + $0x4e0] ss:$28 sps:$4 sm:$0xff]   ;;  %v14998_v32 = vld [vmem:[%s20046_s5 + $0x4e8] ss:$28 sps:$4 sm:$0xff]  }
 0x539   : > { %5505 = vmatprep.subr.bf16.mxu0 %v14915_v33  ;;  %5546 = vmatprep.subr.bf16.mxu1 %v14918_v34  ;;  %v15001_v33 = vld [vmem:[%s20046_s5 + $0x51c] ss:$28 sps:$4 sm:$0xff]  }
 0x53a   : > { %5535 = vmatprep.mubr.bf16.mxu0 %v16098_v52  ;;  %5576 = vmatprep.mubr.bf16.mxu1 %v16098_v52  ;;  %v14999_v34 = vld [vmem:[%s20046_s5 + $0x518] ss:$28 sps:$4 sm:$0xff]  }
 0x53c   : > { %5506 = vmatpush1.bf16.msra.mxu0 %v14913_v35  ;;  %5547 = vmatpush1.bf16.msra.mxu1 %v14916_v47  ;;  %v15002_v35 = vld [vmem:[%s20046_s5 + $0x520] ss:$28 sps:$4 sm:$0xff]   ;;  %v15005_v47 = vld [vmem:[%s20046_s5 + $0x554] ss:$28 sps:$4 sm:$0xff]  }
 0x53d   : > { %5507 = vmatprep.subr.bf16.mxu0 %v14921_v36  ;;  %5548 = vmatprep.subr.bf16.mxu1 %v14924_v38  ;;  %v15003_v36 = vld [vmem:[%s20046_s5 + $0x550] ss:$28 sps:$4 sm:$0xff]   ;;  %v15006_v38 = vld [vmem:[%s20046_s5 + $0x558] ss:$28 sps:$4 sm:$0xff]  }
 0x540   : > { %5508 = vmatpush1.bf16.msra.mxu0 %v14919_v39  ;;  %5549 = vmatpush1.bf16.msra.mxu1 %v14922_v40  ;;  %v15007_v39 = vld [vmem:[%s20048_s7] ss:$28 sps:$4 sm:$0xff]  }
 0x541   : > { %5509 = vmatprep.subr.bf16.mxu0 %v14927_v41  ;;  %5550 = vmatprep.subr.bf16.mxu1 %v14930_v42  ;;  %v15009_v40 = vld [vmem:[%s20048_s7 + $0x4] ss:$28 sps:$4 sm:$0xff]   ;;  %v15012_v41 = vld [vmem:[%s20048_s7 + $0x3c] ss:$28 sps:$4 sm:$0xff]  }
 0x542   : > { %v15010_v42 = vld [vmem:[%s20048_s7 + $0x38] ss:$28 sps:$4 sm:$0xff]  }
 0x544   : > { %5510 = vmatpush1.bf16.msra.mxu0 %v14925_v43  ;;  %5551 = vmatpush1.bf16.msra.mxu1 %v14928_v44  ;;  %v15015_v43 = vld [vmem:[%s20048_s7 + $0x74] ss:$28 sps:$4 sm:$0xff]  }
 0x545   : > { %5511 = vmatprep.subr.bf16.mxu0 %v14933_v45  ;;  %5552 = vmatprep.subr.bf16.mxu1 %v14936_v46  ;;  %v15013_v44 = vld [vmem:[%s20048_s7 + $0x70] ss:$28 sps:$4 sm:$0xff]   ;;  %v15016_v46 = vld [vmem:[%s20048_s7 + $0xa8] ss:$28 sps:$4 sm:$0xff]  }
 0x546   : > { %v15018_v45 = vld [vmem:[%s20048_s7 + $0xac] ss:$28 sps:$4 sm:$0xff]  }
 0x548   : > { %5512 = vmatpush1.bf16.msra.mxu0 %v14931_v48  ;;  %5553 = vmatpush1.bf16.msra.mxu1 %v14934_v50  ;;  %v15021_v48 = vld [vmem:[%s20048_s7 + $0xe4] ss:$28 sps:$4 sm:$0xff]  }
 0x549   : > { %5585 = vmatprep.subr.bf16.mxu0 %v14939_v51  ;;  %14250 = vmatprep.subr.bf16.mxu1 %v16096_v0  ;;  %v15019_v50 = vld [vmem:[%s20048_s7 + $0xe0] ss:$28 sps:$4 sm:$0xff]   ;;  %v15022_v51 = vld [vmem:[%s20048_s7 + $0x118] ss:$28 sps:$4 sm:$0xff]  }
 0x54b   : > { %12005 = vmatmul.mubr.msk.bf16.vlgmr.msra.gmra.mrb[48].mxu0 %vm4370_vm4, %v5319_v55  ;;  %12006 = vmatmul.mubr.msk.bf16.vlgmr.msra.gmra.mrb[48].mxu1 %vm4370_vm4, %v5319_v55 }
 0x54c   : > { %5586 = vmatpush1.bf16.msra.mxu0 %v14937_v53  ;;  %14251 = vmatpush3.bf16.msra.mxu1 %v14940_v54  ;;  %v15024_v53 = vld [vmem:[%s20048_s7 + $0x11c] ss:$28 sps:$4 sm:$0xff]   ;;  %v15027_v54 = vld [vmem:[%s20048_s7 + $0x154] ss:$28 sps:$4 sm:$0xff]  }
 0x54d   : > { %5587 = vmatprep.subr.bf16.mxu0 %v14943_v56  ;;  %14252 = vmatprep.subr.bf16.mxu1 %v16096_v0 }
 0x54e   : > { %5617 = vmatprep.mubr.bf16.mxu0 %v16098_v52  ;;  %14260 = vmatprep.mubr.msk.bf16.mxu1 %vm16097_vm0, %v16096_v0 }
 0x550   : > { %5588 = vmatpush1.bf16.msra.mxu0 %v14941_v58  ;;  %14253 = vmatpush3.bf16.msra.mxu1 %v14944_v8  ;;  %v15030_v8 = vld [vmem:[%s20048_s7 + $0x18c] ss:$28 sps:$4 sm:$0xff]  }
 0x551   : > { %5589 = vmatprep.subr.bf16.mxu0 %v14947_v59  ;;  %14254 = vmatprep.subr.bf16.mxu1 %v16096_v0 }
 0x554   : > { %5590 = vmatpush1.bf16.msra.mxu0 %v14945_v60  ;;  %14255 = vmatpush3.bf16.msra.mxu1 %v14948_v61 }
 0x555   : > { %5591 = vmatprep.subr.bf16.mxu0 %v14951_v62  ;;  %14256 = vmatprep.subr.bf16.mxu1 %v16096_v0 }
 0x558   : > { %5592 = vmatpush1.bf16.msra.mxu0 %v14949_v63  ;;  %14257 = vmatpush3.bf16.msra.mxu1 %v14952_v1 }
 0x559   : > { %5593 = vmatprep.subr.bf16.mxu0 %v14955_v2  ;;  %14258 = vmatprep.subr.bf16.mxu1 %v16096_v0  ;;  %v15028_v2 = vld [vmem:[%s20048_s7 + $0x188] ss:$28 sps:$4 sm:$0xff]  }
 0x55c   : > { %5594 = vmatpush1.bf16.msra.mxu0 %v14953_v3  ;;  %14259 = vmatpush3.bf16.msra.mxu1 %v14956_v4  ;;  %v15033_v3 = vld [vmem:[%s20048_s7 + $0x1c4] ss:$28 sps:$4 sm:$0xff]  }
 0x55d   : > { %5898 = vmatprep.subr.bf16.mxu0 %v14959_v6  ;;  %5939 = vmatprep.subr.bf16.mxu1 %v14962_v7  ;;  %v15031_v4 = vld [vmem:[%s20048_s7 + $0x1c0] ss:$28 sps:$4 sm:$0xff]   ;;  %v15034_v7 = vld [vmem:[%s20048_s7 + $0x1f8] ss:$28 sps:$4 sm:$0xff]  }
 0x55e   : > { %v15036_v6 = vld [vmem:[%s20048_s7 + $0x1fc] ss:$28 sps:$4 sm:$0xff]  }
 0x55f   : > { %12007 = vmatmul.mubr.msk.bf16.vlgmr.msra.gmra.mrb[52].mxu0 %vm4370_vm4, %v5319_v55  ;;  %14261 = vmatmul.mubr.msk.bf16.vlgmr.msra.gmra.mrb[52].mxu1 %vm4370_vm4, %v5319_v55  ;;  %v15025_v55 = vld [vmem:[%s20048_s7 + $0x150] ss:$28 sps:$4 sm:$0xff]  }
 0x560   : > { %5899 = vmatpush1.bf16.msra.mxu0 %v14957_v9  ;;  %5940 = vmatpush1.bf16.msra.mxu1 %v14960_v11  ;;  %v15037_v9 = vld [vmem:[%s20048_s7 + $0x230] ss:$28 sps:$4 sm:$0xff]  }
 0x561   : > { %5900 = vmatprep.subr.bf16.mxu0 %v14965_v12  ;;  %5941 = vmatprep.subr.bf16.mxu1 %v14968_v49  ;;  %v15039_v11 = vld [vmem:[%s20048_s7 + $0x234] ss:$28 sps:$4 sm:$0xff]   ;;  %v15042_v12 = vld [vmem:[%s20048_s7 + $0x26c] ss:$28 sps:$4 sm:$0xff]  }
 0x562   : > { %5930 = vmatprep.mubr.bf16.mxu0 %v16098_v52  ;;  %5971 = vmatprep.mubr.bf16.mxu1 %v16098_v52  ;;  %v15040_v49 = vld [vmem:[%s20048_s7 + $0x268] ss:$28 sps:$4 sm:$0xff]  }
 0x564   : > { %5901 = vmatpush1.bf16.msra.mxu0 %v14963_v13  ;;  %5942 = vmatpush1.bf16.msra.mxu1 %v14966_v14 }
 0x565   : > { %5902 = vmatprep.subr.bf16.mxu0 %v14971_v15  ;;  %5943 = vmatprep.subr.bf16.mxu1 %v14974_v10  ;;  %v15045_v15 = vld [vmem:[%s20048_s7 + $0x2a4] ss:$28 sps:$4 sm:$0xff]  }
 0x568   : > { %5903 = vmatpush1.bf16.msra.mxu0 %v14969_v27  ;;  %5944 = vmatpush1.bf16.msra.mxu1 %v14972_v16 }
 0x569   : > { %5904 = vmatprep.subr.bf16.mxu0 %v14977_v57  ;;  %5945 = vmatprep.subr.bf16.mxu1 %v14980_v17 }
 0x56c   : > { %5905 = vmatpush1.bf16.msra.mxu0 %v14975_v18  ;;  %5946 = vmatpush1.bf16.msra.mxu1 %v14978_v19  ;;  %v15043_v19 = vld [vmem:[%s20048_s7 + $0x2a0] ss:$28 sps:$4 sm:$0xff]  }
 0x56d   : > { %5906 = vmatprep.subr.bf16.mxu0 %v14983_v37  ;;  %5947 = vmatprep.subr.bf16.mxu1 %v14986_v20  ;;  %v15048_v37 = vld [vmem:[%s20048_s7 + $0x2dc] ss:$28 sps:$4 sm:$0xff]  }
 0x56e   : > { %v15046_v20 = vld [vmem:[%s20048_s7 + $0x2d8] ss:$28 sps:$4 sm:$0xff]  }
 0x570   : > { %5907 = vmatpush1.bf16.msra.mxu0 %v14981_v21  ;;  %5948 = vmatpush1.bf16.msra.mxu1 %v14984_v22  ;;  %v15051_v21 = vld [vmem:[%s20048_s7 + $0x314] ss:$28 sps:$4 sm:$0xff]  }
 0x571   : > { %5980 = vmatprep.subr.bf16.mxu0 %v14989_v23  ;;  %14264 = vmatprep.subr.bf16.mxu1 %v16096_v0  ;;  %v15049_v22 = vld [vmem:[%s20048_s7 + $0x310] ss:$28 sps:$4 sm:$0xff]  }
 0x572   : > { %v15054_v23 = vld [vmem:[%s20048_s7 + $0x34c] ss:$28 sps:$4 sm:$0xff]  }
 0x573   : > { %12084 = vmatmul.mubr.msk.bf16.vlgmr.msra.gmra.mrb[56].mxu0 %vm4370_vm4, %v5714_v26  ;;  %12085 = vmatmul.mubr.msk.bf16.vlgmr.msra.gmra.mrb[56].mxu1 %vm4370_vm4, %v5714_v26 }
 0x574   : > { %5981 = vmatpush1.bf16.msra.mxu0 %v14987_v24  ;;  %14265 = vmatpush3.bf16.msra.mxu1 %v14990_v25  ;;  %v15052_v24 = vld [vmem:[%s20048_s7 + $0x348] ss:$28 sps:$4 sm:$0xff]  }
 0x575   : > { %5982 = vmatprep.subr.bf16.mxu0 %v14993_v28  ;;  %14266 = vmatprep.subr.bf16.mxu1 %v16096_v0  ;;  %v15057_v28 = vld [vmem:[%s20048_s7 + $0x384] ss:$28 sps:$4 sm:$0xff]  }
 0x576   : > { %6012 = vmatprep.mubr.bf16.mxu0 %v16098_v52  ;;  %14274 = vmatprep.mubr.msk.bf16.mxu1 %vm16097_vm0, %v16096_v0 }
 0x578   : > { %5983 = vmatpush1.bf16.msra.mxu0 %v14991_v29  ;;  %14267 = vmatpush3.bf16.msra.mxu1 %v14994_v5 }
 0x579   : > { %5984 = vmatprep.subr.bf16.mxu0 %v14997_v30  ;;  %14268 = vmatprep.subr.bf16.mxu1 %v16096_v0 }
 0x57c   : > { %5985 = vmatpush1.bf16.msra.mxu0 %v14995_v31  ;;  %14269 = vmatpush3.bf16.msra.mxu1 %v14998_v32 }
 0x57d   : > { %5986 = vmatprep.subr.bf16.mxu0 %v15001_v33  ;;  %14270 = vmatprep.subr.bf16.mxu1 %v16096_v0 }
 0x580   : > { %5987 = vmatpush1.bf16.msra.mxu0 %v14999_v34  ;;  %14271 = vmatpush3.bf16.msra.mxu1 %v15002_v35 }
 0x581   : > { %5988 = vmatprep.subr.bf16.mxu0 %v15005_v47  ;;  %14272 = vmatprep.subr.bf16.mxu1 %v16096_v0 }
 0x584   : > { %5989 = vmatpush1.bf16.msra.mxu0 %v15003_v36  ;;  %14273 = vmatpush3.bf16.msra.mxu1 %v15006_v38  ;;  %v15066_v38 = vld [vmem:[%s20048_s7 + $0xa84] ss:$28 sps:$4 sm:$0xff]  }
 0x585   : > { %8367 = vmatprep.subr.bf16.mxu0 %v15009_v40  ;;  %8490 = vmatprep.subr.bf16.mxu1 %v15066_v38  ;;  %v15072_v40 = vld [vmem:[%s20048_s7 + $0xabc] ss:$28 sps:$4 sm:$0xff]   ;;  %v6070_v38 = vlaneseq }
 0x587   : > { %12086 = vmatmul.mubr.msk.bf16.vlgmr.msra.gmra.mrb[60].mxu0 %vm4370_vm4, %v5714_v26  ;;  %14275 = vmatmul.mubr.msk.bf16.vlgmr.msra.gmra.mrb[60].mxu1 %vm4370_vm4, %v5714_v26 }
 0x588   : > { %8522 = vmatprep.mubr.bf16.mxu1 %v16098_v52  ;;  %8368 = vmatpush1.bf16.msra.mxu0 %v15007_v39  ;;  %v15064_v39 = vld [vmem:[%s20048_s7 + $0xa80] ss:$28 sps:$4 sm:$0xff]  }
 0x589   : > { %8369 = vmatprep.subr.bf16.mxu0 %v15012_v41  ;;  %8491 = vmatpush1.bf16.msra.mxu1 %v15064_v39  ;;  %v15070_v41 = vld [vmem:[%s20048_s7 + $0xab8] ss:$28 sps:$4 sm:$0xff]   ;;  %v18264_v39 = vshrl.u32 %v6070_v38, 7 }
 0x58a   : > { %8492 = vmatprep.subr.bf16.mxu1 %v15072_v40 }
 0x58b   : > { %v18267_v40 = vsub.s32 0, %v18264_v39 }
 0x58c   : > { %8370 = vmatpush1.bf16.msra.mxu0 %v15010_v42  ;;  %v15078_v42 = vld [vmem:[%s20048_s7 + $0xc] ss:$28 sps:$4 sm:$0xff]  }
 0x58d   : > { %8371 = vmatprep.subr.bf16.mxu0 %v15015_v43  ;;  %8493 = vmatpush1.bf16.msra.mxu1 %v15070_v41  ;;  %v18270_v41 = vsub.s32 2, %v18264_v39 }
 0x58e   : > { %8531 = vmatprep.subr.bf16.mxu1 %v15078_v42  ;;  %v6068_v42 = vld [vmem:[%s20047_s6] sm:$0x7f] }
 0x590   : > { %8372 = vmatpush1.bf16.msra.mxu0 %v15013_v44 }
 0x591   : > { %8373 = vmatprep.subr.bf16.mxu0 %v15018_v45 }
 0x594   : > { %8374 = vmatpush1.bf16.msra.mxu0 %v15016_v46 }
 0x595   : > { %8375 = vmatprep.subr.bf16.mxu0 %v15021_v48 }
 0x598   : > { %8376 = vmatpush1.bf16.msra.mxu0 %v15019_v50 }
 0x599   : > { %8377 = vmatprep.subr.bf16.mxu0 %v15024_v53 }
 0x59c   : > { %8378 = vmatpush1.bf16.msra.mxu0 %v15022_v51 }
 0x59d   : > { %8379 = vmatprep.subr.bf16.mxu0 %v15027_v54 }
 0x5a0   : > { %8380 = vmatpush1.bf16.msra.mxu0 %v15025_v55 }
 0x5a1   : > { %8381 = vmatprep.subr.bf16.mxu0 %v15030_v8 }
 0x5a4   : > { %8382 = vmatpush1.bf16.msra.mxu0 %v15028_v2 }
 0x5a5   : > { %8383 = vmatprep.subr.bf16.mxu0 %v15033_v3 }
 0x5a6   : > { %v4408_v56 = vpop.f32.mrb[24].mxu0  ;;  %v4449_v58 = vpop.f32.mrb[24].mxu1 }
 0x5a7   : > { %v4410_v59 = vpop.f32.mrb[25].mxu0  ;;  %v4451_v60 = vpop.f32.mrb[25].mxu1 }
 0x5a8   : > { %v4412_v61 = vpop.f32.mrb[26].mxu0  ;;  %v4453_v62 = vpop.f32.mrb[26].mxu1  ;;  %8384 = vmatpush1.bf16.msra.mxu0 %v15031_v4 }
 0x5a9   : > { %v4413_v63 = vpop.f32.mrb[27].mxu0  ;;  %v4454_v1 = vpop.f32.mrb[27].mxu1  ;;  %8385 = vmatprep.subr.bf16.mxu0 %v15036_v6 }
 0x5ac   : > { %8386 = vmatpush1.bf16.msra.mxu0 %v15034_v7 }
 0x5ad   : > { %8387 = vmatprep.subr.bf16.mxu0 %v15039_v11 }
 0x5b0   : > { %8388 = vmatpush1.bf16.msra.mxu0 %v15037_v9 }
 0x5b1   : > { %8389 = vmatprep.subr.bf16.mxu0 %v15042_v12 }
 0x5b4   : > { %8390 = vmatpush1.bf16.msra.mxu0 %v15040_v49 }
 0x5b5   : > { %8391 = vmatprep.subr.bf16.mxu0 %v15045_v15 }
 0x5b8   : > { %8392 = vmatpush1.bf16.msra.mxu0 %v15043_v19 }
 0x5b9   : > { %8393 = vmatprep.subr.bf16.mxu0 %v15048_v37 }
 0x5ba   : > { %v4490_v13 = vpop.f32.mrb[28].mxu0  ;;  %v4531_v14 = vpop.f32.mrb[28].mxu1 }
 0x5bb   : > { %v4492_v10 = vpop.f32.mrb[29].mxu0  ;;  %v14220_v27 = vpop.f32.mrb[29].mxu1 }
 0x5bc   : > { %v4494_v16 = vpop.f32.mrb[30].mxu0  ;;  %v4534_v57 = vpop.f32.mrb[30].mxu1  ;;  %8394 = vmatpush1.bf16.msra.mxu0 %v15046_v20 }
 0x5bd   : > { %v4495_v17 = vpop.f32.mrb[31].mxu0  ;;  %v14221_v18 = vpop.f32.mrb[31].mxu1  ;;  %8395 = vmatprep.subr.bf16.mxu0 %v15051_v21 }
 0x5c0   : > { %8396 = vmatpush1.bf16.msra.mxu0 %v15049_v22 }
 0x5c1   : > { %8397 = vmatprep.subr.bf16.mxu0 %v15054_v23 }
 0x5c4   : > { %8398 = vmatpush1.bf16.msra.mxu0 %v15052_v24 }
 0x5c5   : > { %8408 = vmatprep.subr.bf16.mxu0 %v15057_v28 }
 0x5ce   : > { %v4753_v25 = vpop.f32.mrb[32].mxu0  ;;  %v4794_v26 = vpop.f32.mrb[32].mxu1 }
 0x5cf   : > { %v4754_v29 = vadd.f32 %v4753_v25, %v4408_v56  ;;  %v4795_v5 = vadd.f32 %v4794_v26, %v4449_v58  ;;  %v4755_v30 = vpop.f32.mrb[33].mxu0  ;;  %v4796_v31 = vpop.f32.mrb[33].mxu1 }
 0x5d0   : > { %v4756_v32 = vadd.f32 %v4755_v30, %v4410_v59  ;;  %v4797_v33 = vadd.f32 %v4796_v31, %v4451_v60  ;;  %v4757_v34 = vpop.f32.mrb[34].mxu0  ;;  %v4798_v35 = vpop.f32.mrb[34].mxu1 }
 0x5d1   : > { %v4758_v47 = vpop.f32.mrb[35].mxu0  ;;  %v4799_v36 = vpop.f32.mrb[35].mxu1 }
 0x5e2   : > { %v4835_v43 = vpop.f32.mrb[36].mxu0  ;;  %v4876_v44 = vpop.f32.mrb[36].mxu1 }
 0x5e3   : > { %v4836_v45 = vadd.f32 %v4835_v43, %v4490_v13  ;;  %v4877_v46 = vadd.f32 %v4876_v44, %v4531_v14  ;;  %v4837_v48 = vpop.f32.mrb[37].mxu0  ;;  %v14234_v50 = vpop.f32.mrb[37].mxu1  ;;  %v18276_v43 = vsub.s32 1, %v18264_v39  ;;  %v18279_v44 = vsub.s32 3, %v18264_v39 }
 0x5e4   : > { %v4838_v51 = vadd.f32 %v4837_v48, %v4492_v10  ;;  %v4839_v53 = vpop.f32.mrb[38].mxu0  ;;  %v4879_v54 = vpop.f32.mrb[38].mxu1 }
 0x5e5   : > { %v4840_v55 = vpop.f32.mrb[39].mxu0  ;;  %v14235_v56 = vpop.f32.mrb[39].mxu1  ;;  %v6085_v53 = vrot.slane %v6068_v42, %v18279_v44 }
 0x5f6   : > { %v5142_v58 = vpop.f32.mrb[40].mxu0  ;;  %v5183_v8 = vpop.f32.mrb[40].mxu1 }
 0x5f7   : > { %v5271_v59 = vadd.f32 %v5142_v58, %v4754_v29  ;;  %v5273_v60 = vadd.f32 %v5183_v8, %v4795_v5  ;;  %v5144_v61 = vpop.f32.mrb[41].mxu0  ;;  %v5185_v62 = vpop.f32.mrb[41].mxu1 }
 0x5f8   : > { %v5272_v63 = vadd.f32 %v5144_v61, %v4756_v32  ;;  %v5274_v1 = vadd.f32 %v5185_v62, %v4797_v33  ;;  %v5146_v2 = vpop.f32.mrb[42].mxu0  ;;  %v5187_v3 = vpop.f32.mrb[42].mxu1 }
 0x5f9   : > { %v5147_v4 = vpop.f32.mrb[43].mxu0  ;;  %v5188_v6 = vpop.f32.mrb[43].mxu1 }
 0x60a   : > { %v5224_v7 = vpop.f32.mrb[44].mxu0  ;;  %v5265_v9 = vpop.f32.mrb[44].mxu1 }
 0x60b   : > { %v5275_v11 = vadd.f32 %v5224_v7, %v4836_v45  ;;  %v5277_v12 = vadd.f32 %v5265_v9, %v4877_v46  ;;  %v5226_v49 = vpop.f32.mrb[45].mxu0  ;;  %v14248_v13 = vpop.f32.mrb[45].mxu1  ;;  %v6073_v45 = vrot.slane %v6068_v42, %v18267_v40  ;;  %v6081_v46 = vrot.slane %v6068_v42, %v18270_v41 }
 0x60c   : > { %v5276_v14 = vadd.f32 %v5226_v49, %v4838_v51  ;;  %v5228_v15 = vpop.f32.mrb[46].mxu0  ;;  %v5268_v10 = vpop.f32.mrb[46].mxu1  ;;  %v6077_v51 = vrot.slane %v6068_v42, %v18276_v43  ;;  %v15060_v13 = vld [vmem:[%s20048_s7 + $0x3bc] ss:$28 sps:$4 sm:$0xff]  }
 0x60d   : > { %v5229_v27 = vpop.f32.mrb[47].mxu0  ;;  %v14249_v16 = vpop.f32.mrb[47].mxu1  ;;  %v15058_v15 = vld [vmem:[%s20048_s7 + $0x3b8] ss:$28 sps:$4 sm:$0xff]  }
 0x60e   : > { %v15063_v10 = vld [vmem:[%s20048_s7 + $0x3f4] ss:$28 sps:$4 sm:$0xff]   ;;  %v6088_v27 = vsub.s32 4, %v18264_v39  ;;  %v6096_v16 = vsub.s32 6, %v18264_v39 }
 0x61e   : > { %v5537_v57 = vpop.f32.mrb[48].mxu0  ;;  %v5578_v17 = vpop.f32.mrb[48].mxu1 }
 0x61f   : > { %v5666_v18 = vadd.f32 %v5537_v57, %v5271_v59  ;;  %v5668_v19 = vadd.f32 %v5578_v17, %v5273_v60  ;;  %v5539_v37 = vpop.f32.mrb[49].mxu0  ;;  %v5580_v20 = vpop.f32.mrb[49].mxu1  ;;  %v15061_v57 = vld [vmem:[%s20048_s7 + $0x3f0] ss:$28 sps:$4 sm:$0xff]   ;;  %v6092_v17 = vsub.s32 5, %v18264_v39 }
 0x620   : > { %v5667_v21 = vadd.f32 %v5539_v37, %v5272_v63  ;;  %v5669_v22 = vadd.f32 %v5580_v20, %v5274_v1  ;;  %v5541_v23 = vpop.f32.mrb[50].mxu0  ;;  %v5582_v24 = vpop.f32.mrb[50].mxu1  ;;  %v6097_v37 = vrot.slane %v6068_v42, %v6096_v16 }
 0x621   : > { %v5542_v25 = vpop.f32.mrb[51].mxu0  ;;  %v5583_v26 = vpop.f32.mrb[51].mxu1  ;;  %v15067_v23 = vld [vmem:[%s20048_s7 + $0x428] ss:$28 sps:$4 sm:$0xff]  }
 0x632   : > { %v5619_v28 = vpop.f32.mrb[52].mxu0  ;;  %v5660_v29 = vpop.f32.mrb[52].mxu1 }
 0x633   : > { %v18258_v5 = vadd.f32 %v5619_v28, %v5275_v11  ;;  %v18260_v30 = vadd.f32 %v5660_v29, %v5277_v12  ;;  %v5621_v31 = vpop.f32.mrb[53].mxu0  ;;  %v14262_v32 = vpop.f32.mrb[53].mxu1  ;;  %v15055_v12 = vld [vmem:[%s20048_s7 + $0x380] ss:$28 sps:$4 sm:$0xff]  }
 0x634   : > { %v18262_v33 = vadd.f32 %v5621_v31, %v5276_v14  ;;  %v5623_v34 = vpop.f32.mrb[54].mxu0  ;;  %v5663_v35 = vpop.f32.mrb[54].mxu1  ;;  %v15075_v29 = vld [vmem:[%s20048_s7 + $0x464] ss:$28 sps:$4 sm:$0xff]  }
 0x635   : > { %v5624_v47 = vpop.f32.mrb[55].mxu0  ;;  %v14263_v36 = vpop.f32.mrb[55].mxu1 }
 0x646   : > { %v5932_v48 = vpop.f32.mrb[56].mxu0  ;;  %v5973_v50 = vpop.f32.mrb[56].mxu1 }
 0x647   : > { %v6061_v54 = vadd.f32 %v5932_v48, %v5666_v18  ;;  %v6063_v55 = vadd.f32 %v5973_v50, %v5668_v19  ;;  %v5934_v56 = vpop.f32.mrb[57].mxu0  ;;  %v5975_v58 = vpop.f32.mrb[57].mxu1  ;;  %v15069_v18 = vld [vmem:[%s20048_s7 + $0x42c] ss:$28 sps:$4 sm:$0xff]   ;;  %v6089_v19 = vrot.slane %v6068_v42, %v6088_v27  ;;  %v15084_v48 = vld [vmem:[%s20048_s7 + $0x44] ss:$28 sps:$4 sm:$0xff]  }
 0x648   : > { %v6062_v8 = vadd.f32 %v5934_v56, %v5667_v21  ;;  %v6064_v59 = vadd.f32 %v5975_v58, %v5669_v22  ;;  %v5936_v60 = vpop.f32.mrb[58].mxu0  ;;  %v5977_v61 = vpop.f32.mrb[58].mxu1  ;;  %v6093_v22 = vrot.slane %v6068_v42, %v6092_v17  ;;  %v15079_v50 = vld [vmem:[%s20048_s7 + $0x498] ss:$28 sps:$4 sm:$0xff]   ;;  %v15093_v56 = vld [vmem:[%s20048_s7 + $0x50c] ss:$28 sps:$4 sm:$0xff]  }
 0x649   : > { %v6105_v62 = vadd.f32 %v6073_v45, %v6061_v54  ;;  %v18285_v63 = vadd.f32 %v6081_v46, %v6063_v55  ;;  %v5937_v1 = vpop.f32.mrb[59].mxu0  ;;  %v5978_v2 = vpop.f32.mrb[59].mxu1  ;;  %v15076_v45 = vld [vmem:[%s20048_s7 + $0x8] ss:$28 sps:$4 sm:$0xff]   ;;  %v15090_v54 = vld [vmem:[%s20048_s7 + $0x7c] ss:$28 sps:$4 sm:$0xff]  }
 0x64a   : > { %v6106_v3 = vadd.f32 %v6077_v51, %v6062_v8  ;;  %v6108_v4 = vadd.f32 %v6085_v53, %v6064_v59  ;;  %v15087_v51 = vld [vmem:[%s20048_s7 + $0x4d4] ss:$28 sps:$4 sm:$0xff]   ;;  %v15082_v53 = vld [vmem:[%s20048_s7 + $0x40] ss:$28 sps:$4 sm:$0xff]   ;;  %v15091_v59 = vld [vmem:[%s20048_s7 + $0x508] ss:$28 sps:$4 sm:$0xff]  }
 0x64b   : > { %v6112_v6 = vmax.f32 %v6105_v62, 0.0  ;;  %v15085_v55 = vld [vmem:[%s20048_s7 + $0x4d0] ss:$28 sps:$4 sm:$0xff]   ;;  %v15088_v58 = vld [vmem:[%s20048_s7 + $0x78] ss:$28 sps:$4 sm:$0xff]  }
 0x64c   : > { %v6113_v7 = vmax.f32 %v6106_v3, 0.0  ;;  %v6115_v9 = vmax.f32 %v6108_v4, 0.0  ;;  %v15096_v8 = vld [vmem:[%s20048_s7 + $0xb4] ss:$28 sps:$4 sm:$0xff]   ;;  %v15099_v60 = vld [vmem:[%s20048_s7 + $0x544] ss:$28 sps:$4 sm:$0xff]  }
 0x64d   : > { %v18292_v49 = vpack.c.bf16 %v6112_v6, %v6112_v6  ;;  %v15094_v61 = vld [vmem:[%s20048_s7 + $0xb0] ss:$28 sps:$4 sm:$0xff]   ;;  %v15097_v1 = vld [vmem:[%s20048_s7 + $0x540] ss:$28 sps:$4 sm:$0xff]   ;;  %v15100_v3 = vld [vmem:[%s20048_s7 + $0xe8] ss:$28 sps:$4 sm:$0xff]  }
 0x64e   : > { %v18287_v11 = vpack.c.bf16 %v6113_v7, %v6113_v7  ;;  %v18297_v14 = vpack.c.bf16 %v6115_v9, %v6115_v9  ;;  %v15102_v62 = vld [vmem:[%s20048_s7 + $0xec] ss:$28 sps:$4 sm:$0xff]   ;;  %v15105_v2 = vld [vmem:[%s20048_s7 + $0x57c] ss:$28 sps:$4 sm:$0xff]   ;;  %v15108_v4 = vld [vmem:[%s20048_s7 + $0x124] ss:$28 sps:$4 sm:$0xff]  }
 0x64f   : > { %v15103_v6 = vld [vmem:[%s20048_s7 + $0x578] ss:$28 sps:$4 sm:$0xff]   ;;  %v15106_v9 = vld [vmem:[%s20048_s7 + $0x120] ss:$28 sps:$4 sm:$0xff]  }
 0x650   : > { %8399 = vmatprep.mubr.bf16.mxu0 %v18287_v11  ;;  %v15111_v7 = vld [vmem:[%s20048_s7 + $0x5b4] ss:$28 sps:$4 sm:$0xff]  }
 0x651   : > { %8400 = vmatmul.mubr.bf16.vlgmr.msra.gmra.mrb[64].mxu0 %v18292_v49 }
 0x652   : > { %8409 = vmatpush1.bf16.msra.mxu0 %v15055_v12  ;;  %8440 = vmatprep.mubr.bf16.mxu0 %v18297_v14  ;;  %v15114_v12 = vld [vmem:[%s20048_s7 + $0x15c] ss:$28 sps:$4 sm:$0xff]  }
 0x653   : > { %8410 = vmatprep.subr.bf16.mxu0 %v15060_v13  ;;  %v15109_v13 = vld [vmem:[%s20048_s7 + $0x5b0] ss:$28 sps:$4 sm:$0xff]  }
 0x656   : > { %8411 = vmatpush1.bf16.msra.mxu0 %v15058_v15  ;;  %v15117_v15 = vld [vmem:[%s20048_s7 + $0x5ec] ss:$28 sps:$4 sm:$0xff]  }
 0x657   : > { %8412 = vmatprep.subr.bf16.mxu0 %v15063_v10  ;;  %v15112_v10 = vld [vmem:[%s20048_s7 + $0x158] ss:$28 sps:$4 sm:$0xff]  }
 0x65a   : > { %8413 = vmatpush1.bf16.msra.mxu0 %v15061_v57  ;;  %v6014_v20 = vpop.f32.mrb[60].mxu0  ;;  %v6055_v21 = vpop.f32.mrb[60].mxu1  ;;  %v15120_v57 = vld [vmem:[%s20048_s7 + $0x194] ss:$28 sps:$4 sm:$0xff]  }
 0x65b   : > { %v6065_v24 = vadd.f32 %v6014_v20, %v18258_v5  ;;  %v6067_v25 = vadd.f32 %v6055_v21, %v18260_v30  ;;  %v6016_v26 = vpop.f32.mrb[61].mxu0  ;;  %v14276_v28 = vpop.f32.mrb[61].mxu1  ;;  %8414 = vmatprep.subr.bf16.mxu0 %v15069_v18  ;;  %v15073_v5 = vld [vmem:[%s20048_s7 + $0x460] ss:$28 sps:$4 sm:$0xff]   ;;  %v15115_v18 = vld [vmem:[%s20048_s7 + $0x5e8] ss:$28 sps:$4 sm:$0xff]  }
 0x65c   : > { %v6066_v31 = vadd.f32 %v6016_v26, %v18262_v33  ;;  %v6018_v32 = vpop.f32.mrb[62].mxu0  ;;  %v6058_v34 = vpop.f32.mrb[62].mxu1  ;;  %v15081_v33 = vld [vmem:[%s20048_s7 + $0x49c] ss:$28 sps:$4 sm:$0xff]   ;;  %v15126_v20 = vld [vmem:[%s20048_s7 + $0x1cc] ss:$28 sps:$4 sm:$0xff]  }
 0x65d   : > { %v18332_v35 = vadd.f32 %v6089_v19, %v6065_v24  ;;  %v6111_v47 = vadd.f32 %v6097_v37, %v6067_v25  ;;  %v6019_v36 = vpop.f32.mrb[63].mxu0  ;;  %v14277_v38 = vpop.f32.mrb[63].mxu1  ;;  %v15123_v19 = vld [vmem:[%s20048_s7 + $0x624] ss:$28 sps:$4 sm:$0xff]   ;;  %v15118_v37 = vld [vmem:[%s20048_s7 + $0x190] ss:$28 sps:$4 sm:$0xff]  }
 0x65e   : > { %v18334_v42 = vadd.f32 %v6093_v22, %v6066_v31  ;;  %8415 = vmatpush1.bf16.msra.mxu0 %v15067_v23  ;;  %v15121_v21 = vld [vmem:[%s20048_s7 + $0x620] ss:$28 sps:$4 sm:$0xff]   ;;  %v15124_v23 = vld [vmem:[%s20048_s7 + $0x1c8] ss:$28 sps:$4 sm:$0xff]   ;;  %v15127_v25 = vld [vmem:[%s20048_s7 + $0x658] ss:$28 sps:$4 sm:$0xff]  }
 0x65f   : > { %v6118_v30 = vmax.f32 %v6111_v47, 0.0  ;;  %8416 = vmatprep.subr.bf16.mxu0 %v15075_v29  ;;  %v15129_v22 = vld [vmem:[%s20048_s7 + $0x65c] ss:$28 sps:$4 sm:$0xff]   ;;  %v15132_v24 = vld [vmem:[%s20048_s7 + $0x204] ss:$28 sps:$4 sm:$0xff]   ;;  %v6114_v38 = vmax.f32 %v18285_v63, 0.0 }
 0x660   : > { %v15135_v26 = vld [vmem:[%s20048_s7 + $0x694] ss:$28 sps:$4 sm:$0xff]   ;;  %v15130_v28 = vld [vmem:[%s20048_s7 + $0x200] ss:$28 sps:$4 sm:$0xff]   ;;  %v15141_v32 = vld [vmem:[%s20048_s7 + $0x6cc] ss:$28 sps:$4 sm:$0xff]  }
 0x661   : > { %v18345_v46 = vpack.c.bf16 %v6118_v30, %v6118_v30  ;;  %v15138_v29 = vld [vmem:[%s20048_s7 + $0x23c] ss:$28 sps:$4 sm:$0xff]   ;;  %v15133_v31 = vld [vmem:[%s20048_s7 + $0x690] ss:$28 sps:$4 sm:$0xff]   ;;  %v15139_v36 = vld [vmem:[%s20048_s7 + $0x6c8] ss:$28 sps:$4 sm:$0xff]  }
 0x662   : > { %8417 = vmatpush1.bf16.msra.mxu0 %v15073_v5  ;;  %v15136_v34 = vld [vmem:[%s20048_s7 + $0x238] ss:$28 sps:$4 sm:$0xff]   ;;  %v15147_v5 = vld [vmem:[%s20048_s7 + $0x704] ss:$28 sps:$4 sm:$0xff]   ;;  %v6117_v30 = vmax.f32 %v18334_v42, 0.0 }
 0x663   : > { %12438 = vmatmul.mubr.msk.bf16.vlgmr.msra.gmra.mrb[64].mxu1 %vm8363_vm5, %v18345_v46  ;;  %8418 = vmatprep.subr.bf16.mxu0 %v15081_v33  ;;  %v15144_v47 = vld [vmem:[%s20048_s7 + $0x274] ss:$28 sps:$4 sm:$0xff]   ;;  %v15145_v63 = vld [vmem:[%s20048_s7 + $0x700] ss:$28 sps:$4 sm:$0xff]  }
 0x664   : > { %8532 = vmatpush1.bf16.msra.mxu1 %v15076_v45  ;;  %8563 = vmatprep.mubr.bf16.mxu1 %v18287_v11  ;;  %v15142_v33 = vld [vmem:[%s20048_s7 + $0x270] ss:$28 sps:$4 sm:$0xff]   ;;  %v15153_v42 = vld [vmem:[%s20048_s7 + $0x73c] ss:$28 sps:$4 sm:$0xff]  }
 0x665   : > { %8533 = vmatprep.subr.bf16.mxu1 %v15084_v48  ;;  %v15150_v45 = vld [vmem:[%s20048_s7 + $0x2ac] ss:$28 sps:$4 sm:$0xff]   ;;  %v18490_v48 = vpack.c.bf16 %v6114_v38, %v6114_v38  ;;  %v15208_v38 = vld [vmem:[%s20048_s7 + $0x4d8] ss:$28 sps:$4 sm:$0xff]  }
 0x666   : > { %8419 = vmatpush1.bf16.msra.mxu0 %v15079_v50  ;;  %v18495_v50 = vpack.c.bf16 %v6117_v30, %v6117_v30  ;;  %v15211_v30 = vld [vmem:[%s20048_s7 + $0x968] ss:$28 sps:$4 sm:$0xff]  }
 0x667   : > { %8420 = vmatprep.subr.bf16.mxu0 %v15087_v51  ;;  %v15148_v51 = vld [vmem:[%s20048_s7 + $0x2a8] ss:$28 sps:$4 sm:$0xff]  }
 0x668   : > { %8534 = vmatpush1.bf16.msra.mxu1 %v15082_v53  ;;  %v15156_v53 = vld [vmem:[%s20048_s7 + $0x2e4] ss:$28 sps:$4 sm:$0xff]  }
 0x669   : > { %8535 = vmatprep.subr.bf16.mxu1 %v15090_v54  ;;  %v15151_v54 = vld [vmem:[%s20048_s7 + $0x738] ss:$28 sps:$4 sm:$0xff]  }
 0x66a   : > { %8421 = vmatpush1.bf16.msra.mxu0 %v15085_v55  ;;  %v15159_v55 = vld [vmem:[%s20048_s7 + $0x774] ss:$28 sps:$4 sm:$0xff]  }
 0x66b   : > { %8422 = vmatprep.subr.bf16.mxu0 %v15093_v56  ;;  %v15154_v56 = vld [vmem:[%s20048_s7 + $0x2e0] ss:$28 sps:$4 sm:$0xff]  }
 0x66c   : > { %8536 = vmatpush1.bf16.msra.mxu1 %v15088_v58  ;;  %v15162_v58 = vld [vmem:[%s20048_s7 + $0x31c] ss:$28 sps:$4 sm:$0xff]  }
 0x66d   : > { %8537 = vmatprep.subr.bf16.mxu1 %v15096_v8  ;;  %v15157_v8 = vld [vmem:[%s20048_s7 + $0x770] ss:$28 sps:$4 sm:$0xff]  }
 0x66e   : > { %8423 = vmatpush1.bf16.msra.mxu0 %v15091_v59  ;;  %v15165_v59 = vld [vmem:[%s20048_s7 + $0x7ac] ss:$28 sps:$4 sm:$0xff]  }
 0x66f   : > { %8424 = vmatprep.subr.bf16.mxu0 %v15099_v60  ;;  %v15160_v60 = vld [vmem:[%s20048_s7 + $0x318] ss:$28 sps:$4 sm:$0xff]  }
 0x670   : > { %8538 = vmatpush1.bf16.msra.mxu1 %v15094_v61  ;;  %v15168_v61 = vld [vmem:[%s20048_s7 + $0x354] ss:$28 sps:$4 sm:$0xff]  }
 0x671   : > { %8539 = vmatprep.subr.bf16.mxu1 %v15102_v62  ;;  %v15163_v62 = vld [vmem:[%s20048_s7 + $0x7a8] ss:$28 sps:$4 sm:$0xff]  }
 0x672   : > { %8425 = vmatpush1.bf16.msra.mxu0 %v15097_v1  ;;  %v15171_v1 = vld [vmem:[%s20048_s7 + $0x7e4] ss:$28 sps:$4 sm:$0xff]  }
 0x673   : > { %8426 = vmatprep.subr.bf16.mxu0 %v15105_v2  ;;  %v15166_v2 = vld [vmem:[%s20048_s7 + $0x350] ss:$28 sps:$4 sm:$0xff]  }
 0x674   : > { %8540 = vmatpush1.bf16.msra.mxu1 %v15100_v3  ;;  %v15174_v3 = vld [vmem:[%s20048_s7 + $0x38c] ss:$28 sps:$4 sm:$0xff]  }
 0x675   : > { %8541 = vmatprep.subr.bf16.mxu1 %v15108_v4  ;;  %v15169_v4 = vld [vmem:[%s20048_s7 + $0x7e0] ss:$28 sps:$4 sm:$0xff]  }
 0x676   : > { %8427 = vmatpush1.bf16.msra.mxu0 %v15103_v6  ;;  %v15177_v6 = vld [vmem:[%s20048_s7 + $0x81c] ss:$28 sps:$4 sm:$0xff]  }
 0x677   : > { %8428 = vmatprep.subr.bf16.mxu0 %v15111_v7  ;;  %v15172_v7 = vld [vmem:[%s20048_s7 + $0x388] ss:$28 sps:$4 sm:$0xff]  }
 0x678   : > { %8542 = vmatpush1.bf16.msra.mxu1 %v15106_v9  ;;  %v15180_v9 = vld [vmem:[%s20048_s7 + $0x3c4] ss:$28 sps:$4 sm:$0xff]  }
 0x679   : > { %8543 = vmatprep.subr.bf16.mxu1 %v15114_v12  ;;  %v15175_v12 = vld [vmem:[%s20048_s7 + $0x818] ss:$28 sps:$4 sm:$0xff]  }
 0x67a   : > { %8429 = vmatpush1.bf16.msra.mxu0 %v15109_v13  ;;  %v15183_v13 = vld [vmem:[%s20048_s7 + $0x854] ss:$28 sps:$4 sm:$0xff]  }
 0x67b   : > { %8430 = vmatprep.subr.bf16.mxu0 %v15117_v15  ;;  %v15178_v15 = vld [vmem:[%s20048_s7 + $0x3c0] ss:$28 sps:$4 sm:$0xff]  }
 0x67c   : > { %8544 = vmatpush1.bf16.msra.mxu1 %v15112_v10  ;;  %v15186_v10 = vld [vmem:[%s20048_s7 + $0x3fc] ss:$28 sps:$4 sm:$0xff]  }
 0x67d   : > { %8545 = vmatprep.subr.bf16.mxu1 %v15120_v57  ;;  %v15181_v57 = vld [vmem:[%s20048_s7 + $0x850] ss:$28 sps:$4 sm:$0xff]  }
 0x67e   : > { %8431 = vmatpush1.bf16.msra.mxu0 %v15115_v18  ;;  %v15189_v18 = vld [vmem:[%s20048_s7 + $0x88c] ss:$28 sps:$4 sm:$0xff]  }
 0x67f   : > { %8432 = vmatprep.subr.bf16.mxu0 %v15123_v19  ;;  %v15184_v19 = vld [vmem:[%s20048_s7 + $0x3f8] ss:$28 sps:$4 sm:$0xff]  }
 0x680   : > { %8546 = vmatpush1.bf16.msra.mxu1 %v15118_v37  ;;  %v15192_v37 = vld [vmem:[%s20048_s7 + $0x434] ss:$28 sps:$4 sm:$0xff]  }
 0x681   : > { %8547 = vmatprep.subr.bf16.mxu1 %v15126_v20  ;;  %v15187_v20 = vld [vmem:[%s20048_s7 + $0x888] ss:$28 sps:$4 sm:$0xff]  }
 0x682   : > { %8433 = vmatpush1.bf16.msra.mxu0 %v15121_v21  ;;  %v15195_v21 = vld [vmem:[%s20048_s7 + $0x8c4] ss:$28 sps:$4 sm:$0xff]  }
 0x683   : > { %8434 = vmatprep.subr.bf16.mxu0 %v15129_v22  ;;  %v15190_v22 = vld [vmem:[%s20048_s7 + $0x430] ss:$28 sps:$4 sm:$0xff]  }
 0x684   : > { %8548 = vmatpush1.bf16.msra.mxu1 %v15124_v23  ;;  %v15198_v23 = vld [vmem:[%s20048_s7 + $0x46c] ss:$28 sps:$4 sm:$0xff]  }
 0x685   : > { %8549 = vmatprep.subr.bf16.mxu1 %v15132_v24  ;;  %v15193_v24 = vld [vmem:[%s20048_s7 + $0x8c0] ss:$28 sps:$4 sm:$0xff]  }
 0x686   : > { %8435 = vmatpush1.bf16.msra.mxu0 %v15127_v25  ;;  %v15201_v25 = vld [vmem:[%s20048_s7 + $0x8fc] ss:$28 sps:$4 sm:$0xff]  }
 0x687   : > { %8436 = vmatprep.subr.bf16.mxu0 %v15135_v26  ;;  %v15196_v26 = vld [vmem:[%s20048_s7 + $0x468] ss:$28 sps:$4 sm:$0xff]  }
 0x688   : > { %8550 = vmatpush1.bf16.msra.mxu1 %v15130_v28  ;;  %v15204_v28 = vld [vmem:[%s20048_s7 + $0x4a4] ss:$28 sps:$4 sm:$0xff]  }
 0x689   : > { %8551 = vmatprep.subr.bf16.mxu1 %v15138_v29  ;;  %v15199_v29 = vld [vmem:[%s20048_s7 + $0x8f8] ss:$28 sps:$4 sm:$0xff]  }
 0x68a   : > { %8437 = vmatpush1.bf16.msra.mxu0 %v15133_v31  ;;  %v15207_v31 = vld [vmem:[%s20048_s7 + $0x934] ss:$28 sps:$4 sm:$0xff]  }
 0x68b   : > { %8438 = vmatprep.subr.bf16.mxu0 %v15141_v32  ;;  %v15202_v32 = vld [vmem:[%s20048_s7 + $0x4a0] ss:$28 sps:$4 sm:$0xff]  }
 0x68c   : > { %8552 = vmatpush1.bf16.msra.mxu1 %v15136_v34  ;;  %v15210_v34 = vld [vmem:[%s20048_s7 + $0x4dc] ss:$28 sps:$4 sm:$0xff]  }
 0x68d   : > { %8553 = vmatprep.subr.bf16.mxu1 %v15144_v47  ;;  %v15205_v47 = vld [vmem:[%s20048_s7 + $0x930] ss:$28 sps:$4 sm:$0xff]  }
 0x68e   : > { %8439 = vmatpush1.bf16.msra.mxu0 %v15139_v36  ;;  %v15213_v36 = vld [vmem:[%s20048_s7 + $0x96c] ss:$28 sps:$4 sm:$0xff]  }
 0x68f   : > { %8449 = vmatprep.subr.bf16.mxu0 %v15147_v5  ;;  %v15216_v5 = vld [vmem:[%s20048_s7 + $0x514] ss:$28 sps:$4 sm:$0xff]  }
 0x690   : > { %8554 = vmatpush1.bf16.msra.mxu1 %v15142_v33  ;;  %v15219_v33 = vld [vmem:[%s20048_s7 + $0x9a4] ss:$28 sps:$4 sm:$0xff]  }
 0x691   : > { %8441 = vmatmul.mubr.bf16.vlgmr.msra.gmra.mrb[64].mxu0 %v18490_v48  ;;  %8555 = vmatprep.subr.bf16.mxu1 %v15150_v45  ;;  %v15214_v45 = vld [vmem:[%s20048_s7 + $0x510] ss:$28 sps:$4 sm:$0xff]  }
 0x692   : > { %8450 = vmatpush1.bf16.msra.mxu0 %v15145_v63  ;;  %8481 = vmatprep.mubr.bf16.mxu0 %v18495_v50  ;;  %v15222_v63 = vld [vmem:[%s20048_s7 + $0x54c] ss:$28 sps:$4 sm:$0xff]  }
 0x693   : > { %8451 = vmatprep.subr.bf16.mxu0 %v15153_v42  ;;  %v15217_v42 = vld [vmem:[%s20048_s7 + $0x9a0] ss:$28 sps:$4 sm:$0xff]  }
 0x694   : > { %8556 = vmatpush1.bf16.msra.mxu1 %v15148_v51  ;;  %v15225_v51 = vld [vmem:[%s20048_s7 + $0x9dc] ss:$28 sps:$4 sm:$0xff]  }
 0x695   : > { %8557 = vmatprep.subr.bf16.mxu1 %v15156_v53  ;;  %v15220_v53 = vld [vmem:[%s20048_s7 + $0x548] ss:$28 sps:$4 sm:$0xff]  }
 0x696   : > { %8452 = vmatpush1.bf16.msra.mxu0 %v15151_v54  ;;  %v15228_v54 = vld [vmem:[%s20048_s7 + $0x584] ss:$28 sps:$4 sm:$0xff]  }
 0x697   : > { %8453 = vmatprep.subr.bf16.mxu0 %v15159_v55  ;;  %v15223_v55 = vld [vmem:[%s20048_s7 + $0x9d8] ss:$28 sps:$4 sm:$0xff]  }
 0x698   : > { %8558 = vmatpush1.bf16.msra.mxu1 %v15154_v56  ;;  %v15231_v56 = vld [vmem:[%s20048_s7 + $0xa14] ss:$28 sps:$4 sm:$0xff]  }
 0x699   : > { %8559 = vmatprep.subr.bf16.mxu1 %v15162_v58  ;;  %v15226_v58 = vld [vmem:[%s20048_s7 + $0x580] ss:$28 sps:$4 sm:$0xff]  }
 0x69a   : > { %8454 = vmatpush1.bf16.msra.mxu0 %v15157_v8  ;;  %v15234_v8 = vld [vmem:[%s20048_s7 + $0x5bc] ss:$28 sps:$4 sm:$0xff]  }
 0x69b   : > { %8455 = vmatprep.subr.bf16.mxu0 %v15165_v59  ;;  %v15229_v59 = vld [vmem:[%s20048_s7 + $0xa10] ss:$28 sps:$4 sm:$0xff]  }
 0x69c   : > { %8560 = vmatpush1.bf16.msra.mxu1 %v15160_v60  ;;  %v15237_v60 = vld [vmem:[%s20048_s7 + $0xa4c] ss:$28 sps:$4 sm:$0xff]  }
 0x69d   : > { %8561 = vmatprep.subr.bf16.mxu1 %v15168_v61  ;;  %v15232_v61 = vld [vmem:[%s20048_s7 + $0x5b8] ss:$28 sps:$4 sm:$0xff]  }
 0x69e   : > { %8456 = vmatpush1.bf16.msra.mxu0 %v15163_v62  ;;  %v15240_v62 = vld [vmem:[%s20048_s7 + $0x5f4] ss:$28 sps:$4 sm:$0xff]  }
 0x69f   : > { %8457 = vmatprep.subr.bf16.mxu0 %v15171_v1  ;;  %v15235_v1 = vld [vmem:[%s20048_s7 + $0xa48] ss:$28 sps:$4 sm:$0xff]  }
 0x6a0   : > { %8562 = vmatpush1.bf16.msra.mxu1 %v15166_v2  ;;  %v6116_v2 = vmax.f32 %v18332_v35, 0.0  ;;  %v15241_v35 = vld [vmem:[%s20048_s7 + $0x10] ss:$28 sps:$4 sm:$0xff]  }
 0x6a1   : > { %8572 = vmatprep.subr.bf16.mxu1 %v15174_v3  ;;  %v15243_v3 = vld [vmem:[%s20048_s7 + $0x14] ss:$28 sps:$4 sm:$0xff]  }
 0x6a2   : > { %8458 = vmatpush1.bf16.msra.mxu0 %v15169_v4  ;;  %v15238_v4 = vld [vmem:[%s20048_s7 + $0x5f0] ss:$28 sps:$4 sm:$0xff]  }
 0x6a3   : > { %8564 = vmatmul.mubr.bf16.vlgmr.msra.gmra.mrb[68].mxu1 %v18292_v49  ;;  %8459 = vmatprep.subr.bf16.mxu0 %v15177_v6  ;;  %v15246_v6 = vld [vmem:[%s20048_s7 + $0x62c] ss:$28 sps:$4 sm:$0xff]  }
 0x6a4   : > { %8573 = vmatpush1.bf16.msra.mxu1 %v15172_v7  ;;  %8604 = vmatprep.mubr.bf16.mxu1 %v18297_v14  ;;  %v18691_v7 = vpack.c.bf16 %v6116_v2, %v6116_v2  ;;  %v15312_v2 = vld [vmem:[%s20048_s7 + $0x894] ss:$28 sps:$4 sm:$0xff]  }
 0x6a5   : > { %8574 = vmatprep.subr.bf16.mxu1 %v15180_v9  ;;  %v15249_v9 = vld [vmem:[%s20048_s7 + $0x4c] ss:$28 sps:$4 sm:$0xff]  }
 0x6a6   : > { %8460 = vmatpush1.bf16.msra.mxu0 %v15175_v12  ;;  %v15244_v12 = vld [vmem:[%s20048_s7 + $0x628] ss:$28 sps:$4 sm:$0xff]  }
 0x6a7   : > { %8461 = vmatprep.subr.bf16.mxu0 %v15183_v13  ;;  %v15252_v13 = vld [vmem:[%s20048_s7 + $0x664] ss:$28 sps:$4 sm:$0xff]  }
 0x6a8   : > { %8575 = vmatpush1.bf16.msra.mxu1 %v15178_v15  ;;  %v15247_v15 = vld [vmem:[%s20048_s7 + $0x48] ss:$28 sps:$4 sm:$0xff]  }
 0x6a9   : > { %8576 = vmatprep.subr.bf16.mxu1 %v15186_v10  ;;  %v15255_v10 = vld [vmem:[%s20048_s7 + $0x84] ss:$28 sps:$4 sm:$0xff]  }
 0x6aa   : > { %8462 = vmatpush1.bf16.msra.mxu0 %v15181_v57  ;;  %v15250_v57 = vld [vmem:[%s20048_s7 + $0x660] ss:$28 sps:$4 sm:$0xff]  }
 0x6ab   : > { %8463 = vmatprep.subr.bf16.mxu0 %v15189_v18  ;;  %v15258_v18 = vld [vmem:[%s20048_s7 + $0x69c] ss:$28 sps:$4 sm:$0xff]  }
 0x6ac   : > { %8577 = vmatpush1.bf16.msra.mxu1 %v15184_v19  ;;  %v15253_v19 = vld [vmem:[%s20048_s7 + $0x80] ss:$28 sps:$4 sm:$0xff]  }
 0x6ad   : > { %8578 = vmatprep.subr.bf16.mxu1 %v15192_v37  ;;  %v15261_v37 = vld [vmem:[%s20048_s7 + $0xbc] ss:$28 sps:$4 sm:$0xff]  }
 0x6ae   : > { %8464 = vmatpush1.bf16.msra.mxu0 %v15187_v20  ;;  %v15256_v20 = vld [vmem:[%s20048_s7 + $0x698] ss:$28 sps:$4 sm:$0xff]  }
 0x6af   : > { %8465 = vmatprep.subr.bf16.mxu0 %v15195_v21  ;;  %v15264_v21 = vld [vmem:[%s20048_s7 + $0x6d4] ss:$28 sps:$4 sm:$0xff]  }
 0x6b0   : > { %8579 = vmatpush1.bf16.msra.mxu1 %v15190_v22  ;;  %v15259_v22 = vld [vmem:[%s20048_s7 + $0xb8] ss:$28 sps:$4 sm:$0xff]  }
 0x6b1   : > { %8580 = vmatprep.subr.bf16.mxu1 %v15198_v23  ;;  %v15267_v23 = vld [vmem:[%s20048_s7 + $0xf4] ss:$28 sps:$4 sm:$0xff]  }
 0x6b2   : > { %8466 = vmatpush1.bf16.msra.mxu0 %v15193_v24  ;;  %v15262_v24 = vld [vmem:[%s20048_s7 + $0x6d0] ss:$28 sps:$4 sm:$0xff]  }
 0x6b3   : > { %8467 = vmatprep.subr.bf16.mxu0 %v15201_v25  ;;  %v15270_v25 = vld [vmem:[%s20048_s7 + $0x70c] ss:$28 sps:$4 sm:$0xff]  }
 0x6b4   : > { %8581 = vmatpush1.bf16.msra.mxu1 %v15196_v26  ;;  %v15265_v26 = vld [vmem:[%s20048_s7 + $0xf0] ss:$28 sps:$4 sm:$0xff]  }
 0x6b5   : > { %8582 = vmatprep.subr.bf16.mxu1 %v15204_v28  ;;  %v15273_v28 = vld [vmem:[%s20048_s7 + $0x12c] ss:$28 sps:$4 sm:$0xff]  }
 0x6b6   : > { %8468 = vmatpush1.bf16.msra.mxu0 %v15199_v29  ;;  %v15268_v29 = vld [vmem:[%s20048_s7 + $0x708] ss:$28 sps:$4 sm:$0xff]  }
 0x6b7   : > { %8469 = vmatprep.subr.bf16.mxu0 %v15207_v31  ;;  %v15276_v31 = vld [vmem:[%s20048_s7 + $0x744] ss:$28 sps:$4 sm:$0xff]  }
 0x6b8   : > { %8583 = vmatpush1.bf16.msra.mxu1 %v15202_v32  ;;  %v15271_v32 = vld [vmem:[%s20048_s7 + $0x128] ss:$28 sps:$4 sm:$0xff]  }
 0x6b9   : > { %8584 = vmatprep.subr.bf16.mxu1 %v15210_v34  ;;  %v15279_v34 = vld [vmem:[%s20048_s7 + $0x164] ss:$28 sps:$4 sm:$0xff]  }
 0x6ba   : > { %8470 = vmatpush1.bf16.msra.mxu0 %v15205_v47  ;;  %v15274_v47 = vld [vmem:[%s20048_s7 + $0x740] ss:$28 sps:$4 sm:$0xff]  }
 0x6bb   : > { %8471 = vmatprep.subr.bf16.mxu0 %v15213_v36  ;;  %v15282_v36 = vld [vmem:[%s20048_s7 + $0x77c] ss:$28 sps:$4 sm:$0xff]  }
 0x6bc   : > { %8585 = vmatpush1.bf16.msra.mxu1 %v15208_v38  ;;  %v15277_v38 = vld [vmem:[%s20048_s7 + $0x160] ss:$28 sps:$4 sm:$0xff]  }
 0x6bd   : > { %8586 = vmatprep.subr.bf16.mxu1 %v15216_v5  ;;  %v15285_v5 = vld [vmem:[%s20048_s7 + $0x19c] ss:$28 sps:$4 sm:$0xff]  }
 0x6be   : > { %8472 = vmatpush1.bf16.msra.mxu0 %v15211_v30  ;;  %v15280_v30 = vld [vmem:[%s20048_s7 + $0x778] ss:$28 sps:$4 sm:$0xff]  }
 0x6bf   : > { %8473 = vmatprep.subr.bf16.mxu0 %v15219_v33  ;;  %v15288_v33 = vld [vmem:[%s20048_s7 + $0x7b4] ss:$28 sps:$4 sm:$0xff]  }
 0x6c0   : > { %8587 = vmatpush1.bf16.msra.mxu1 %v15214_v45  ;;  %v15283_v45 = vld [vmem:[%s20048_s7 + $0x198] ss:$28 sps:$4 sm:$0xff]  }
 0x6c1   : > { %8588 = vmatprep.subr.bf16.mxu1 %v15222_v63  ;;  %v15291_v63 = vld [vmem:[%s20048_s7 + $0x1d4] ss:$28 sps:$4 sm:$0xff]  }
 0x6c2   : > { %8474 = vmatpush1.bf16.msra.mxu0 %v15217_v42  ;;  %v15286_v42 = vld [vmem:[%s20048_s7 + $0x7b0] ss:$28 sps:$4 sm:$0xff]  }
 0x6c3   : > { %8475 = vmatprep.subr.bf16.mxu0 %v15225_v51  ;;  %v15294_v51 = vld [vmem:[%s20048_s7 + $0x7ec] ss:$28 sps:$4 sm:$0xff]  }
 0x6c4   : > { %8589 = vmatpush1.bf16.msra.mxu1 %v15220_v53  ;;  %v15289_v53 = vld [vmem:[%s20048_s7 + $0x1d0] ss:$28 sps:$4 sm:$0xff]  }
 0x6c5   : > { %8590 = vmatprep.subr.bf16.mxu1 %v15228_v54  ;;  %v15297_v54 = vld [vmem:[%s20048_s7 + $0x20c] ss:$28 sps:$4 sm:$0xff]  }
 0x6c6   : > { %8476 = vmatpush1.bf16.msra.mxu0 %v15223_v55  ;;  %v15292_v55 = vld [vmem:[%s20048_s7 + $0x7e8] ss:$28 sps:$4 sm:$0xff]  }
 0x6c7   : > { %8477 = vmatprep.subr.bf16.mxu0 %v15231_v56  ;;  %v15300_v56 = vld [vmem:[%s20048_s7 + $0x824] ss:$28 sps:$4 sm:$0xff]  }
 0x6c8   : > { %8591 = vmatpush1.bf16.msra.mxu1 %v15226_v58  ;;  %v15295_v58 = vld [vmem:[%s20048_s7 + $0x208] ss:$28 sps:$4 sm:$0xff]  }
 0x6c9   : > { %8592 = vmatprep.subr.bf16.mxu1 %v15234_v8  ;;  %v15303_v8 = vld [vmem:[%s20048_s7 + $0x244] ss:$28 sps:$4 sm:$0xff]  }
 0x6ca   : > { %8478 = vmatpush1.bf16.msra.mxu0 %v15229_v59  ;;  %v15298_v59 = vld [vmem:[%s20048_s7 + $0x820] ss:$28 sps:$4 sm:$0xff]  }
 0x6cb   : > { %8479 = vmatprep.subr.bf16.mxu0 %v15237_v60  ;;  %v15306_v60 = vld [vmem:[%s20048_s7 + $0x85c] ss:$28 sps:$4 sm:$0xff]  }
 0x6cc   : > { %8593 = vmatpush1.bf16.msra.mxu1 %v15232_v61  ;;  %v15301_v61 = vld [vmem:[%s20048_s7 + $0x240] ss:$28 sps:$4 sm:$0xff]  }
 0x6cd   : > { %8594 = vmatprep.subr.bf16.mxu1 %v15240_v62  ;;  %v15309_v62 = vld [vmem:[%s20048_s7 + $0x27c] ss:$28 sps:$4 sm:$0xff]  }
 0x6ce   : > { %8480 = vmatpush1.bf16.msra.mxu0 %v15235_v1  ;;  %v15304_v1 = vld [vmem:[%s20048_s7 + $0x858] ss:$28 sps:$4 sm:$0xff]  }
 0x6cf   : > { %8695 = vmatprep.subr.bf16.mxu0 %v15243_v3  ;;  %v15307_v3 = vld [vmem:[%s20048_s7 + $0x278] ss:$28 sps:$4 sm:$0xff]  }
 0x6d0   : > { %8595 = vmatpush1.bf16.msra.mxu1 %v15238_v4  ;;  %v15315_v4 = vld [vmem:[%s20048_s7 + $0x2b4] ss:$28 sps:$4 sm:$0xff]  }
 0x6d1   : > { %8482 = vmatmul.mubr.bf16.vlgmr.msra.gmra.mrb[64].mxu0 %v18691_v7  ;;  %8596 = vmatprep.subr.bf16.mxu1 %v15246_v6  ;;  %v15310_v6 = vld [vmem:[%s20048_s7 + $0x890] ss:$28 sps:$4 sm:$0xff]  }
 0x6d2   : > { %8696 = vmatpush1.bf16.msra.mxu0 %v15241_v35  ;;  %8727 = vmatprep.mubr.bf16.mxu0 %v18287_v11  ;;  %v15318_v35 = vld [vmem:[%s20048_s7 + $0x8cc] ss:$28 sps:$4 sm:$0xff]  }
 0x6d3   : > { %8697 = vmatprep.subr.bf16.mxu0 %v15249_v9  ;;  %v15313_v9 = vld [vmem:[%s20048_s7 + $0x2b0] ss:$28 sps:$4 sm:$0xff]  }
 0x6d4   : > { %8597 = vmatpush1.bf16.msra.mxu1 %v15244_v12  ;;  %v15321_v12 = vld [vmem:[%s20048_s7 + $0x2ec] ss:$28 sps:$4 sm:$0xff]  }
 0x6d5   : > { %8598 = vmatprep.subr.bf16.mxu1 %v15252_v13  ;;  %v15316_v13 = vld [vmem:[%s20048_s7 + $0x8c8] ss:$28 sps:$4 sm:$0xff]  }
 0x6d6   : > { %8698 = vmatpush1.bf16.msra.mxu0 %v15247_v15  ;;  %v15324_v15 = vld [vmem:[%s20048_s7 + $0x904] ss:$28 sps:$4 sm:$0xff]  }
 0x6d7   : > { %8699 = vmatprep.subr.bf16.mxu0 %v15255_v10  ;;  %v15319_v10 = vld [vmem:[%s20048_s7 + $0x2e8] ss:$28 sps:$4 sm:$0xff]  }
 0x6d8   : > { %8599 = vmatpush1.bf16.msra.mxu1 %v15250_v57  ;;  %v15327_v57 = vld [vmem:[%s20048_s7 + $0x324] ss:$28 sps:$4 sm:$0xff]  }
 0x6d9   : > { %8600 = vmatprep.subr.bf16.mxu1 %v15258_v18  ;;  %v15322_v18 = vld [vmem:[%s20048_s7 + $0x900] ss:$28 sps:$4 sm:$0xff]  }
 0x6da   : > { %8700 = vmatpush1.bf16.msra.mxu0 %v15253_v19  ;;  %v15330_v19 = vld [vmem:[%s20048_s7 + $0x93c] ss:$28 sps:$4 sm:$0xff]  }
 0x6db   : > { %8701 = vmatprep.subr.bf16.mxu0 %v15261_v37  ;;  %v15325_v37 = vld [vmem:[%s20048_s7 + $0x320] ss:$28 sps:$4 sm:$0xff]  }
 0x6dc   : > { %8601 = vmatpush1.bf16.msra.mxu1 %v15256_v20  ;;  %v15333_v20 = vld [vmem:[%s20048_s7 + $0x35c] ss:$28 sps:$4 sm:$0xff]  }
 0x6dd   : > { %8602 = vmatprep.subr.bf16.mxu1 %v15264_v21  ;;  %v15328_v21 = vld [vmem:[%s20048_s7 + $0x938] ss:$28 sps:$4 sm:$0xff]  }
 0x6de   : > { %8702 = vmatpush1.bf16.msra.mxu0 %v15259_v22  ;;  %v15336_v22 = vld [vmem:[%s20048_s7 + $0x974] ss:$28 sps:$4 sm:$0xff]  }
 0x6df   : > { %8703 = vmatprep.subr.bf16.mxu0 %v15267_v23  ;;  %v15331_v23 = vld [vmem:[%s20048_s7 + $0x358] ss:$28 sps:$4 sm:$0xff]  }
 0x6e0   : > { %8603 = vmatpush1.bf16.msra.mxu1 %v15262_v24  ;;  %v15339_v24 = vld [vmem:[%s20048_s7 + $0x394] ss:$28 sps:$4 sm:$0xff]  }
 0x6e1   : > { %8613 = vmatprep.subr.bf16.mxu1 %v15270_v25  ;;  %v15334_v25 = vld [vmem:[%s20048_s7 + $0x970] ss:$28 sps:$4 sm:$0xff]  }
 0x6e2   : > { %8704 = vmatpush1.bf16.msra.mxu0 %v15265_v26  ;;  %v15342_v26 = vld [vmem:[%s20048_s7 + $0x9ac] ss:$28 sps:$4 sm:$0xff]  }
 0x6e3   : > { %8605 = vmatmul.mubr.bf16.vlgmr.msra.gmra.mrb[68].mxu1 %v18490_v48  ;;  %8705 = vmatprep.subr.bf16.mxu0 %v15273_v28  ;;  %v15337_v28 = vld [vmem:[%s20048_s7 + $0x390] ss:$28 sps:$4 sm:$0xff]  }
 0x6e4   : > { %8614 = vmatpush1.bf16.msra.mxu1 %v15268_v29  ;;  %8645 = vmatprep.mubr.bf16.mxu1 %v18495_v50  ;;  %v15345_v29 = vld [vmem:[%s20048_s7 + $0x3cc] ss:$28 sps:$4 sm:$0xff]  }
 0x6e5   : > { %8615 = vmatprep.subr.bf16.mxu1 %v15276_v31  ;;  %v15340_v31 = vld [vmem:[%s20048_s7 + $0x9a8] ss:$28 sps:$4 sm:$0xff]  }
 0x6e6   : > { %8706 = vmatpush1.bf16.msra.mxu0 %v15271_v32  ;;  %v15348_v32 = vld [vmem:[%s20048_s7 + $0x9e4] ss:$28 sps:$4 sm:$0xff]  }
 0x6e7   : > { %8707 = vmatprep.subr.bf16.mxu0 %v15279_v34  ;;  %v15343_v34 = vld [vmem:[%s20048_s7 + $0x3c8] ss:$28 sps:$4 sm:$0xff]  }
 0x6e8   : > { %8616 = vmatpush1.bf16.msra.mxu1 %v15274_v47  ;;  %v15351_v47 = vld [vmem:[%s20048_s7 + $0x404] ss:$28 sps:$4 sm:$0xff]  }
 0x6e9   : > { %8617 = vmatprep.subr.bf16.mxu1 %v15282_v36  ;;  %v15346_v36 = vld [vmem:[%s20048_s7 + $0x9e0] ss:$28 sps:$4 sm:$0xff]  }
 0x6ea   : > { %8708 = vmatpush1.bf16.msra.mxu0 %v15277_v38  ;;  %v15354_v38 = vld [vmem:[%s20048_s7 + $0xa1c] ss:$28 sps:$4 sm:$0xff]  }
 0x6eb   : > { %8709 = vmatprep.subr.bf16.mxu0 %v15285_v5  ;;  %v15349_v5 = vld [vmem:[%s20048_s7 + $0x400] ss:$28 sps:$4 sm:$0xff]  }
 0x6ec   : > { %8618 = vmatpush1.bf16.msra.mxu1 %v15280_v30  ;;  %v15357_v30 = vld [vmem:[%s20048_s7 + $0x43c] ss:$28 sps:$4 sm:$0xff]  }
 0x6ed   : > { %8619 = vmatprep.subr.bf16.mxu1 %v15288_v33  ;;  %v15352_v33 = vld [vmem:[%s20048_s7 + $0xa18] ss:$28 sps:$4 sm:$0xff]  }
 0x6ee   : > { %8710 = vmatpush1.bf16.msra.mxu0 %v15283_v45  ;;  %v15360_v45 = vld [vmem:[%s20048_s7 + $0xa54] ss:$28 sps:$4 sm:$0xff]  }
 0x6ef   : > { %8711 = vmatprep.subr.bf16.mxu0 %v15291_v63  ;;  %v15355_v63 = vld [vmem:[%s20048_s7 + $0x438] ss:$28 sps:$4 sm:$0xff]  }
 0x6f0   : > { %8620 = vmatpush1.bf16.msra.mxu1 %v15286_v42  ;;  %v15363_v42 = vld [vmem:[%s20048_s7 + $0x474] ss:$28 sps:$4 sm:$0xff]  }
 0x6f1   : > { %8621 = vmatprep.subr.bf16.mxu1 %v15294_v51  ;;  %v15358_v51 = vld [vmem:[%s20048_s7 + $0xa50] ss:$28 sps:$4 sm:$0xff]  }
 0x6f2   : > { %8712 = vmatpush1.bf16.msra.mxu0 %v15289_v53  ;;  %v15369_v53 = vld [vmem:[%s20048_s7 + $0xa8c] ss:$28 sps:$4 sm:$0xff]  }
 0x6f3   : > { %8713 = vmatprep.subr.bf16.mxu0 %v15297_v54  ;;  %v15361_v54 = vld [vmem:[%s20048_s7 + $0x470] ss:$28 sps:$4 sm:$0xff]  }
 0x6f4   : > { %8622 = vmatpush1.bf16.msra.mxu1 %v15292_v55  ;;  %v15366_v55 = vld [vmem:[%s20048_s7 + $0x4ac] ss:$28 sps:$4 sm:$0xff]  }
 0x6f5   : > { %8623 = vmatprep.subr.bf16.mxu1 %v15300_v56  ;;  %v15367_v56 = vld [vmem:[%s20048_s7 + $0xa88] ss:$28 sps:$4 sm:$0xff]  }
 0x6f6   : > { %8714 = vmatpush1.bf16.msra.mxu0 %v15295_v58  ;;  %v15375_v58 = vld [vmem:[%s20048_s7 + $0xac4] ss:$28 sps:$4 sm:$0xff]  }
 0x6f7   : > { %8715 = vmatprep.subr.bf16.mxu0 %v15303_v8  ;;  %v15364_v8 = vld [vmem:[%s20048_s7 + $0x4a8] ss:$28 sps:$4 sm:$0xff]  }
 0x6f8   : > { %8624 = vmatpush1.bf16.msra.mxu1 %v15298_v59  ;;  %v15372_v59 = vld [vmem:[%s20048_s7 + $0x4e4] ss:$28 sps:$4 sm:$0xff]  }
 0x6f9   : > { %8625 = vmatprep.subr.bf16.mxu1 %v15306_v60  ;;  %v15373_v60 = vld [vmem:[%s20048_s7 + $0xac0] ss:$28 sps:$4 sm:$0xff]  }
 0x6fa   : > { %8716 = vmatpush1.bf16.msra.mxu0 %v15301_v61  ;;  %v15379_v61 = vld [vmem:[%s20048_s7 + $0x1d8] ss:$28 sps:$4 sm:$0xff]  }
 0x6fb   : > { %8717 = vmatprep.subr.bf16.mxu0 %v15309_v62  ;;  %v15370_v62 = vld [vmem:[%s20048_s7 + $0x4e0] ss:$28 sps:$4 sm:$0xff]  }
 0x6fc   : > { %8626 = vmatpush1.bf16.msra.mxu1 %v15304_v1  ;;  %v15378_v1 = vld [vmem:[%s20048_s7 + $0x51c] ss:$28 sps:$4 sm:$0xff]  }
 0x6fd   : > { %8627 = vmatprep.subr.bf16.mxu1 %v15312_v2  ;;  %v15376_v2 = vld [vmem:[%s20048_s7 + $0x518] ss:$28 sps:$4 sm:$0xff]  }
 0x6fe   : > { %8718 = vmatpush1.bf16.msra.mxu0 %v15307_v3  ;;  %v15383_v3 = vld [vmem:[%s20048_s7 + $0x554] ss:$28 sps:$4 sm:$0xff]  }
 0x6ff   : > { %8719 = vmatprep.subr.bf16.mxu0 %v15315_v4  ;;  %v15380_v4 = vld [vmem:[%s20048_s7 + $0x18] ss:$28 sps:$4 sm:$0xff]  }
 0x700   : > { %8628 = vmatpush1.bf16.msra.mxu1 %v15310_v6  ;;  %v15384_v6 = vld [vmem:[%s20048_s7 + $0x210] ss:$28 sps:$4 sm:$0xff]  }
 0x701   : > { %8629 = vmatprep.subr.bf16.mxu1 %v15318_v35  ;;  %v15381_v35 = vld [vmem:[%s20048_s7 + $0x550] ss:$28 sps:$4 sm:$0xff]  }
 0x702   : > { %8720 = vmatpush1.bf16.msra.mxu0 %v15313_v9  ;;  %v15388_v9 = vld [vmem:[%s20048_s7 + $0x58c] ss:$28 sps:$4 sm:$0xff]  }
 0x703   : > { %8721 = vmatprep.subr.bf16.mxu0 %v15321_v12  ;;  %v15385_v12 = vld [vmem:[%s20048_s7 + $0x50] ss:$28 sps:$4 sm:$0xff]  }
 0x704   : > { %8630 = vmatpush1.bf16.msra.mxu1 %v15316_v13  ;;  %v15389_v13 = vld [vmem:[%s20048_s7 + $0x248] ss:$28 sps:$4 sm:$0xff]  }
 0x705   : > { %8631 = vmatprep.subr.bf16.mxu1 %v15324_v15  ;;  %v15386_v15 = vld [vmem:[%s20048_s7 + $0x588] ss:$28 sps:$4 sm:$0xff]  }
 0x706   : > { %8722 = vmatpush1.bf16.msra.mxu0 %v15319_v10  ;;  %v15393_v10 = vld [vmem:[%s20048_s7 + $0x5c4] ss:$28 sps:$4 sm:$0xff]  }
 0x707   : > { %8723 = vmatprep.subr.bf16.mxu0 %v15327_v57  ;;  %v15394_v57 = vld [vmem:[%s20048_s7 + $0x280] ss:$28 sps:$4 sm:$0xff]  }
 0x708   : > { %8632 = vmatpush1.bf16.msra.mxu1 %v15322_v18 }
 0x709   : > { %8633 = vmatprep.subr.bf16.mxu1 %v15330_v19  ;;  %v15391_v19 = vld [vmem:[%s20048_s7 + $0x5c0] ss:$28 sps:$4 sm:$0xff]  }
 0x70a   : > { %8724 = vmatpush1.bf16.msra.mxu0 %v15325_v37 }
 0x70b   : > { %8725 = vmatprep.subr.bf16.mxu0 %v15333_v20  ;;  %v15398_v20 = vld [vmem:[%s20048_s7 + $0x5fc] ss:$28 sps:$4 sm:$0xff]  }
 0x70c   : > { %8634 = vmatpush1.bf16.msra.mxu1 %v15328_v21 }
 0x70d   : > { %8635 = vmatprep.subr.bf16.mxu1 %v15336_v22  ;;  %v15395_v22 = vld [vmem:[%s20048_s7 + $0xc0] ss:$28 sps:$4 sm:$0xff]  }
 0x70e   : > { %8726 = vmatpush1.bf16.msra.mxu0 %v15331_v23 }
 0x70f   : > { %8736 = vmatprep.subr.bf16.mxu0 %v15339_v24  ;;  %v15399_v24 = vld [vmem:[%s20048_s7 + $0x2b8] ss:$28 sps:$4 sm:$0xff]  }
 0x710   : > { %8636 = vmatpush1.bf16.msra.mxu1 %v15334_v25  ;;  %v15396_v25 = vld [vmem:[%s20048_s7 + $0x5f8] ss:$28 sps:$4 sm:$0xff]  }
 0x711   : > { %8728 = vmatmul.mubr.bf16.vlgmr.msra.gmra.mrb[68].mxu0 %v18292_v49  ;;  %8637 = vmatprep.subr.bf16.mxu1 %v15342_v26  ;;  %v15403_v26 = vld [vmem:[%s20048_s7 + $0x634] ss:$28 sps:$4 sm:$0xff]  }
 0x712   : > { %8737 = vmatpush1.bf16.msra.mxu0 %v15337_v28  ;;  %8768 = vmatprep.mubr.bf16.mxu0 %v18297_v14  ;;  %v15400_v28 = vld [vmem:[%s20048_s7 + $0xf8] ss:$28 sps:$4 sm:$0xff]  }
 0x713   : > { %8738 = vmatprep.subr.bf16.mxu0 %v15345_v29  ;;  %v15404_v29 = vld [vmem:[%s20048_s7 + $0x2f0] ss:$28 sps:$4 sm:$0xff]  }
 0x714   : > { %8638 = vmatpush1.bf16.msra.mxu1 %v15340_v31  ;;  %v15401_v31 = vld [vmem:[%s20048_s7 + $0x630] ss:$28 sps:$4 sm:$0xff]  }
 0x715   : > { %8639 = vmatprep.subr.bf16.mxu1 %v15348_v32  ;;  %v15408_v32 = vld [vmem:[%s20048_s7 + $0x66c] ss:$28 sps:$4 sm:$0xff]  }
 0x716   : > { %8739 = vmatpush1.bf16.msra.mxu0 %v15343_v34  ;;  %v15405_v34 = vld [vmem:[%s20048_s7 + $0x130] ss:$28 sps:$4 sm:$0xff]  }
 0x717   : > { %8740 = vmatprep.subr.bf16.mxu0 %v15351_v47  ;;  %v15409_v47 = vld [vmem:[%s20048_s7 + $0x328] ss:$28 sps:$4 sm:$0xff]  }
 0x718   : > { %8640 = vmatpush1.bf16.msra.mxu1 %v15346_v36  ;;  %v15406_v36 = vld [vmem:[%s20048_s7 + $0x668] ss:$28 sps:$4 sm:$0xff]  }
 0x719   : > { %8641 = vmatprep.subr.bf16.mxu1 %v15354_v38  ;;  %v15413_v38 = vld [vmem:[%s20048_s7 + $0x6a4] ss:$28 sps:$4 sm:$0xff]  }
 0x71a   : > { %8741 = vmatpush1.bf16.msra.mxu0 %v15349_v5  ;;  %v15410_v5 = vld [vmem:[%s20048_s7 + $0x168] ss:$28 sps:$4 sm:$0xff]  }
 0x71b   : > { %8742 = vmatprep.subr.bf16.mxu0 %v15357_v30  ;;  %v15414_v30 = vld [vmem:[%s20048_s7 + $0x360] ss:$28 sps:$4 sm:$0xff]  }
 0x71c   : > { %8642 = vmatpush1.bf16.msra.mxu1 %v15352_v33  ;;  %v15411_v33 = vld [vmem:[%s20048_s7 + $0x6a0] ss:$28 sps:$4 sm:$0xff]  }
 0x71d   : > { %8643 = vmatprep.subr.bf16.mxu1 %v15360_v45  ;;  %v15418_v45 = vld [vmem:[%s20048_s7 + $0x6dc] ss:$28 sps:$4 sm:$0xff]  }
 0x71e   : > { %8743 = vmatpush1.bf16.msra.mxu0 %v15355_v63  ;;  %v15415_v63 = vld [vmem:[%s20048_s7 + $0x1a0] ss:$28 sps:$4 sm:$0xff]  }
 0x71f   : > { %8744 = vmatprep.subr.bf16.mxu0 %v15363_v42  ;;  %v15419_v42 = vld [vmem:[%s20048_s7 + $0x558] ss:$28 sps:$4 sm:$0xff]  }
 0x720   : > { %8644 = vmatpush1.bf16.msra.mxu1 %v15358_v51  ;;  %v15416_v51 = vld [vmem:[%s20048_s7 + $0x6d8] ss:$28 sps:$4 sm:$0xff]  }
 0x721   : > { %8654 = vmatprep.subr.bf16.mxu1 %v15369_v53  ;;  %v15423_v53 = vld [vmem:[%s20048_s7 + $0x714] ss:$28 sps:$4 sm:$0xff]  }
 0x722   : > { %8745 = vmatpush1.bf16.msra.mxu0 %v15361_v54  ;;  %v15420_v54 = vld [vmem:[%s20048_s7 + $0x398] ss:$28 sps:$4 sm:$0xff]  }
 0x723   : > { %8646 = vmatmul.mubr.bf16.vlgmr.msra.gmra.mrb[68].mxu1 %v18691_v7  ;;  %8746 = vmatprep.subr.bf16.mxu0 %v15366_v55  ;;  %v15424_v55 = vld [vmem:[%s20048_s7 + $0x590] ss:$28 sps:$4 sm:$0xff]  }
 0x724   : > { %8655 = vmatpush1.bf16.msra.mxu1 %v15367_v56  ;;  %8686 = vmatprep.mubr.bf16.mxu1 %v16098_v52  ;;  %v15421_v56 = vld [vmem:[%s20048_s7 + $0x710] ss:$28 sps:$4 sm:$0xff]  }
 0x725   : > { %8656 = vmatprep.subr.bf16.mxu1 %v15375_v58  ;;  %v15428_v58 = vld [vmem:[%s20048_s7 + $0x74c] ss:$28 sps:$4 sm:$0xff]  }
 0x726   : > { %8747 = vmatpush1.bf16.msra.mxu0 %v15364_v8  ;;  %v15425_v8 = vld [vmem:[%s20048_s7 + $0x3d0] ss:$28 sps:$4 sm:$0xff]  }
 0x727   : > { %8748 = vmatprep.subr.bf16.mxu0 %v15372_v59  ;;  %v15429_v59 = vld [vmem:[%s20048_s7 + $0x5c8] ss:$28 sps:$4 sm:$0xff]  }
 0x728   : > { %8657 = vmatpush1.bf16.msra.mxu1 %v15373_v60  ;;  %v15430_v60 = vld [vmem:[%s20048_s7 + $0x408] ss:$28 sps:$4 sm:$0xff]  }
 0x729   : > { %13171 = vmatprep.subr.bf16.mxu1 %v15379_v61  ;;  %v15434_v61 = vld [vmem:[%s20048_s7 + $0x600] ss:$28 sps:$4 sm:$0xff]  }
 0x72a   : > { %8749 = vmatpush1.bf16.msra.mxu0 %v15370_v62  ;;  %v15431_v62 = vld [vmem:[%s20048_s7 + $0x780] ss:$28 sps:$4 sm:$0xff]  }
 0x72b   : > { %8750 = vmatprep.subr.bf16.mxu0 %v15378_v1  ;;  %v15438_v1 = vld [vmem:[%s20048_s7 + $0x7bc] ss:$28 sps:$4 sm:$0xff]  }
 0x72e   : > { %8751 = vmatpush1.bf16.msra.mxu0 %v15376_v2  ;;  %v15435_v2 = vld [vmem:[%s20048_s7 + $0x440] ss:$28 sps:$4 sm:$0xff]  }
 0x72f   : > { %12439 = vmatmul.mubr.msk.bf16.vlgmr.msra.gmra.mrb[68].mxu1 %vm8363_vm5, %v18345_v46  ;;  %8752 = vmatprep.subr.bf16.mxu0 %v15383_v3  ;;  %v15439_v3 = vld [vmem:[%s20048_s7 + $0x638] ss:$28 sps:$4 sm:$0xff]  }
 0x730   : > { %13172 = vmatpush3.bf16.msra.mxu1 %v15380_v4  ;;  %8891 = vmatprep.mubr.bf16.mxu1 %v18287_v11  ;;  %v15390_v11 = vld [vmem:[%s20048_s7 + $0x88] ss:$28 sps:$4 sm:$0xff]   ;;  %v15436_v4 = vld [vmem:[%s20048_s7 + $0x7b8] ss:$28 sps:$4 sm:$0xff]  }
 0x731   : > { %13173 = vmatprep.subr.bf16.mxu1 %v15384_v6  ;;  %v15443_v6 = vld [vmem:[%s20048_s7 + $0x7f4] ss:$28 sps:$4 sm:$0xff]  }
 0x732   : > { %8753 = vmatpush1.bf16.msra.mxu0 %v15381_v35  ;;  %v15440_v35 = vld [vmem:[%s20048_s7 + $0x478] ss:$28 sps:$4 sm:$0xff]  }
 0x733   : > { %8754 = vmatprep.subr.bf16.mxu0 %v15388_v9  ;;  %v15444_v9 = vld [vmem:[%s20048_s7 + $0x670] ss:$28 sps:$4 sm:$0xff]  }
 0x734   : > { %13174 = vmatpush3.bf16.msra.mxu1 %v15385_v12  ;;  %v15441_v12 = vld [vmem:[%s20048_s7 + $0x7f0] ss:$28 sps:$4 sm:$0xff]  }
 0x735   : > { %13175 = vmatprep.subr.bf16.mxu1 %v15389_v13  ;;  %v15448_v13 = vld [vmem:[%s20048_s7 + $0x82c] ss:$28 sps:$4 sm:$0xff]  }
 0x736   : > { %8755 = vmatpush1.bf16.msra.mxu0 %v15386_v15  ;;  %v19007_v18 = vpop.f32.mrb[64].mxu1  ;;  %v15445_v15 = vld [vmem:[%s20048_s7 + $0x4b0] ss:$28 sps:$4 sm:$0xff]  }
 0x737   : > { %v19012_v37 = vpop.f32.mrb[65].mxu1  ;;  %8756 = vmatprep.subr.bf16.mxu0 %v15393_v10  ;;  %v15449_v10 = vld [vmem:[%s20048_s7 + $0x6a8] ss:$28 sps:$4 sm:$0xff]  }
 0x738   : > { %13176 = vmatpush3.bf16.msra.mxu1 %v15390_v11  ;;  %v8528_v21 = vpop.f32.mrb[66].mxu1  ;;  %v15446_v11 = vld [vmem:[%s20048_s7 + $0x828] ss:$28 sps:$4 sm:$0xff]  }
 0x739   : > { %v8529_v23 = vpop.f32.mrb[67].mxu1  ;;  %13177 = vmatprep.subr.bf16.mxu1 %v15394_v57  ;;  %v15453_v57 = vld [vmem:[%s20048_s7 + $0x864] ss:$28 sps:$4 sm:$0xff]  }
 0x73a   : > { %8757 = vmatpush1.bf16.msra.mxu0 %v15391_v19  ;;  %v15450_v19 = vld [vmem:[%s20048_s7 + $0x4e8] ss:$28 sps:$4 sm:$0xff]   ;;  %v15451_v21 = vld [vmem:[%s20048_s7 + $0x860] ss:$28 sps:$4 sm:$0xff]  }
 0x73b   : > { %8758 = vmatprep.subr.bf16.mxu0 %v15398_v20  ;;  %v15454_v20 = vld [vmem:[%s20048_s7 + $0x6e0] ss:$28 sps:$4 sm:$0xff]  }
 0x73c   : > { %13178 = vmatpush3.bf16.msra.mxu1 %v15395_v22  ;;  %v15458_v22 = vld [vmem:[%s20048_s7 + $0x89c] ss:$28 sps:$4 sm:$0xff]  }
 0x73d   : > { %13179 = vmatprep.subr.bf16.mxu1 %v15399_v24  ;;  %v15455_v23 = vld [vmem:[%s20048_s7 + $0x520] ss:$28 sps:$4 sm:$0xff]   ;;  %v15459_v24 = vld [vmem:[%s20048_s7 + $0x8d8] ss:$28 sps:$4 sm:$0xff]  }
 0x73e   : > { %8759 = vmatpush1.bf16.msra.mxu0 %v15396_v25  ;;  %v15456_v25 = vld [vmem:[%s20048_s7 + $0x898] ss:$28 sps:$4 sm:$0xff]  }
 0x73f   : > { %8760 = vmatprep.subr.bf16.mxu0 %v15403_v26  ;;  %v15463_v26 = vld [vmem:[%s20048_s7 + $0x8d4] ss:$28 sps:$4 sm:$0xff]  }
 0x740   : > { %13180 = vmatpush3.bf16.msra.mxu1 %v15400_v28  ;;  %v15460_v28 = vld [vmem:[%s20048_s7 + $0x718] ss:$28 sps:$4 sm:$0xff]  }
 0x741   : > { %13181 = vmatprep.subr.bf16.mxu1 %v15404_v29  ;;  %v15464_v29 = vld [vmem:[%s20048_s7 + $0x910] ss:$28 sps:$4 sm:$0xff]  }
 0x742   : > { %8761 = vmatpush1.bf16.msra.mxu0 %v15401_v31  ;;  %v15461_v31 = vld [vmem:[%s20048_s7 + $0x8d0] ss:$28 sps:$4 sm:$0xff]  }
 0x743   : > { %8762 = vmatprep.subr.bf16.mxu0 %v15408_v32  ;;  %v15468_v32 = vld [vmem:[%s20048_s7 + $0x90c] ss:$28 sps:$4 sm:$0xff]  }
 0x744   : > { %13182 = vmatpush3.bf16.msra.mxu1 %v15405_v34  ;;  %v15465_v34 = vld [vmem:[%s20048_s7 + $0x750] ss:$28 sps:$4 sm:$0xff]  }
 0x745   : > { %13183 = vmatprep.subr.bf16.mxu1 %v15409_v47  ;;  %v15469_v47 = vld [vmem:[%s20048_s7 + $0x948] ss:$28 sps:$4 sm:$0xff]  }
 0x746   : > { %8763 = vmatpush1.bf16.msra.mxu0 %v15406_v36  ;;  %v15473_v36 = vld [vmem:[%s20048_s7 + $0x944] ss:$28 sps:$4 sm:$0xff]  }
 0x747   : > { %8764 = vmatprep.subr.bf16.mxu0 %v15413_v38  ;;  %v15474_v38 = vld [vmem:[%s20048_s7 + $0x980] ss:$28 sps:$4 sm:$0xff]  }
 0x748   : > { %13184 = vmatpush3.bf16.msra.mxu1 %v15410_v5  ;;  %v15471_v5 = vld [vmem:[%s20048_s7 + $0x940] ss:$28 sps:$4 sm:$0xff]  }
 0x749   : > { %13185 = vmatprep.subr.bf16.mxu1 %v15414_v30  ;;  %v15478_v30 = vld [vmem:[%s20048_s7 + $0x97c] ss:$28 sps:$4 sm:$0xff]  }
 0x74a   : > { %8765 = vmatpush1.bf16.msra.mxu0 %v15411_v33  ;;  %v15475_v33 = vld [vmem:[%s20048_s7 + $0x7c0] ss:$28 sps:$4 sm:$0xff]  }
 0x74b   : > { %8766 = vmatprep.subr.bf16.mxu0 %v15418_v45  ;;  %v15479_v45 = vld [vmem:[%s20048_s7 + $0x9b8] ss:$28 sps:$4 sm:$0xff]  }
 0x74c   : > { %13186 = vmatpush3.bf16.msra.mxu1 %v15415_v63  ;;  %v15476_v63 = vld [vmem:[%s20048_s7 + $0x978] ss:$28 sps:$4 sm:$0xff]  }
 0x74d   : > { %13193 = vmatprep.subr.bf16.mxu1 %v15419_v42  ;;  %v15483_v42 = vld [vmem:[%s20048_s7 + $0x9b4] ss:$28 sps:$4 sm:$0xff]  }
 0x74e   : > { %8767 = vmatpush1.bf16.msra.mxu0 %v15416_v51  ;;  %v15480_v51 = vld [vmem:[%s20048_s7 + $0x7f8] ss:$28 sps:$4 sm:$0xff]  }
 0x74f   : > { %8892 = vmatmul.mubr.bf16.vlgmr.msra.gmra.mrb[72].mxu1 %v18292_v49  ;;  %8777 = vmatprep.subr.bf16.mxu0 %v15423_v53  ;;  %v15426_v49 = vld [vmem:[%s20048_s7 + $0x748] ss:$28 sps:$4 sm:$0xff]   ;;  %v15484_v53 = vld [vmem:[%s20048_s7 + $0x9f0] ss:$28 sps:$4 sm:$0xff]  }
 0x750   : > { %13194 = vmatpush3.bf16.msra.mxu1 %v15420_v54  ;;  %8931 = vmatprep.mubr.bf16.mxu1 %v18297_v14  ;;  %v15433_v14 = vld [vmem:[%s20048_s7 + $0x784] ss:$28 sps:$4 sm:$0xff]   ;;  %v15481_v54 = vld [vmem:[%s20048_s7 + $0x9b0] ss:$28 sps:$4 sm:$0xff]  }
 0x751   : > { %8769 = vmatmul.mubr.bf16.vlgmr.msra.gmra.mrb[68].mxu0 %v18490_v48  ;;  %13195 = vmatprep.subr.bf16.mxu1 %v15424_v55  ;;  %v15488_v55 = vld [vmem:[%s20048_s7 + $0x9ec] ss:$28 sps:$4 sm:$0xff]  }
 0x752   : > { %8778 = vmatpush1.bf16.msra.mxu0 %v15421_v56  ;;  %8809 = vmatprep.mubr.bf16.mxu0 %v18495_v50  ;;  %v15485_v56 = vld [vmem:[%s20048_s7 + $0x830] ss:$28 sps:$4 sm:$0xff]  }
 0x753   : > { %8779 = vmatprep.subr.bf16.mxu0 %v15428_v58  ;;  %v15489_v58 = vld [vmem:[%s20048_s7 + $0xa28] ss:$28 sps:$4 sm:$0xff]  }
 0x754   : > { %13196 = vmatpush3.bf16.msra.mxu1 %v15425_v8  ;;  %v15486_v8 = vld [vmem:[%s20048_s7 + $0x9e8] ss:$28 sps:$4 sm:$0xff]  }
 0x755   : > { %13197 = vmatprep.subr.bf16.mxu1 %v15429_v59  ;;  %v15493_v59 = vld [vmem:[%s20048_s7 + $0xa24] ss:$28 sps:$4 sm:$0xff]  }
 0x756   : > { %8780 = vmatpush1.bf16.msra.mxu0 %v15426_v49  ;;  %v15490_v49 = vld [vmem:[%s20048_s7 + $0x868] ss:$28 sps:$4 sm:$0xff]  }
 0x757   : > { %8781 = vmatprep.subr.bf16.mxu0 %v15433_v14  ;;  %v15494_v14 = vld [vmem:[%s20048_s7 + $0xa60] ss:$28 sps:$4 sm:$0xff]  }
 0x758   : > { %13198 = vmatpush3.bf16.msra.mxu1 %v15430_v60  ;;  %v15491_v60 = vld [vmem:[%s20048_s7 + $0xa20] ss:$28 sps:$4 sm:$0xff]  }
 0x759   : > { %13199 = vmatprep.subr.bf16.mxu1 %v15434_v61  ;;  %v15498_v61 = vld [vmem:[%s20048_s7 + $0xa5c] ss:$28 sps:$4 sm:$0xff]  }
 0x75a   : > { %8782 = vmatpush1.bf16.msra.mxu0 %v15431_v62  ;;  %v15495_v62 = vld [vmem:[%s20048_s7 + $0x8a0] ss:$28 sps:$4 sm:$0xff]  }
 0x75b   : > { %8783 = vmatprep.subr.bf16.mxu0 %v15438_v1  ;;  %v15496_v1 = vld [vmem:[%s20048_s7 + $0xa58] ss:$28 sps:$4 sm:$0xff]  }
 0x75c   : > { %13200 = vmatpush3.bf16.msra.mxu1 %v15435_v2  ;;  %v15502_v2 = vld [vmem:[%s20048_s7 + $0xa94] ss:$28 sps:$4 sm:$0xff]  }
 0x75d   : > { %13201 = vmatprep.subr.bf16.mxu1 %v15439_v3  ;;  %v15499_v3 = vld [vmem:[%s20048_s7 + $0xa98] ss:$28 sps:$4 sm:$0xff]  }
 0x75e   : > { %8784 = vmatpush1.bf16.msra.mxu0 %v15436_v4  ;;  %v15500_v4 = vld [vmem:[%s20048_s7 + $0xa90] ss:$28 sps:$4 sm:$0xff]  }
 0x75f   : > { %8785 = vmatprep.subr.bf16.mxu0 %v15443_v6  ;;  %v15509_v6 = vld [vmem:[%s20048_s7 + $0xacc] ss:$28 sps:$4 sm:$0xff]  }
 0x760   : > { %13202 = vmatpush3.bf16.msra.mxu1 %v15440_v35  ;;  %v15503_v35 = vld [vmem:[%s20048_s7 + $0xad0] ss:$28 sps:$4 sm:$0xff]  }
 0x761   : > { %13203 = vmatprep.subr.bf16.mxu1 %v15444_v9  ;;  %v15506_v9 = vld [vmem:[%s20050_s9 + $0x4] ss:$16 sps:$4 sm:$0xff]  }
 0x762   : > { %8786 = vmatpush1.bf16.msra.mxu0 %v15441_v12  ;;  %v15507_v12 = vld [vmem:[%s20048_s7 + $0xac8] ss:$28 sps:$4 sm:$0xff]  }
 0x763   : > { %8787 = vmatprep.subr.bf16.mxu0 %v15448_v13  ;;  %v15515_v13 = vld [vmem:[%s20050_s9 + $0xc] ss:$16 sps:$4 sm:$0xff]  }
 0x764   : > { %13204 = vmatpush3.bf16.msra.mxu1 %v15445_v15  ;;  %v15512_v15 = vld [vmem:[%s20050_s9 + $0x24] ss:$16 sps:$4 sm:$0xff]  }
 0x765   : > { %13205 = vmatprep.subr.bf16.mxu1 %v15449_v10  ;;  %v15510_v10 = vld [vmem:[%s20050_s9 + $0x20] ss:$16 sps:$4 sm:$0xff]  }
 0x766   : > { %8788 = vmatpush1.bf16.msra.mxu0 %v15446_v11  ;;  %v15518_v11 = vld [vmem:[%s20050_s9 + $0x44] ss:$16 sps:$4 sm:$0xff]  }
 0x767   : > { %8789 = vmatprep.subr.bf16.mxu0 %v15453_v57  ;;  %v15513_v57 = vld [vmem:[%s20050_s9 + $0x8] ss:$16 sps:$4 sm:$0xff]  }
 0x768   : > { %13206 = vmatpush3.bf16.msra.mxu1 %v15450_v19  ;;  %v15521_v19 = vld [vmem:[%s20050_s9 + $0x2c] ss:$16 sps:$4 sm:$0xff]  }
 0x769   : > { %13207 = vmatprep.subr.bf16.mxu1 %v15454_v20  ;;  %v15516_v20 = vld [vmem:[%s20050_s9 + $0x40] ss:$16 sps:$4 sm:$0xff]  }
 0x76a   : > { %8790 = vmatpush1.bf16.msra.mxu0 %v15451_v21  ;;  %v15524_v21 = vld [vmem:[%s20050_s9 + $0x64] ss:$16 sps:$4 sm:$0xff]  }
 0x76b   : > { %8791 = vmatprep.subr.bf16.mxu0 %v15458_v22  ;;  %v15519_v22 = vld [vmem:[%s20050_s9 + $0x28] ss:$16 sps:$4 sm:$0xff]  }
 0x76c   : > { %13208 = vmatpush3.bf16.msra.mxu1 %v15455_v23  ;;  %v19334_v23 = vld [vmem:[%s20049_s8] sm:$0x7f] }
 0x76d   : > { %13215 = vmatprep.subr.bf16.mxu1 %v15459_v24  ;;  %v15522_v24 = vld [vmem:[%s20050_s9 + $0x60] ss:$16 sps:$4 sm:$0xff]  }
 0x76e   : > { %8792 = vmatpush1.bf16.msra.mxu0 %v15456_v25  ;;  %v8331_v25 = vrot.slane %v19334_v23, %v18267_v40 }
 0x76f   : > { %8932 = vmatmul.mubr.bf16.vlgmr.msra.gmra.mrb[76].mxu1 %v18490_v48  ;;  %8793 = vmatprep.subr.bf16.mxu0 %v15463_v26  ;;  %v15466_v48 = vld [vmem:[%s20048_s7 + $0x908] ss:$28 sps:$4 sm:$0xff]  }
 0x770   : > { %13216 = vmatpush3.bf16.msra.mxu1 %v15460_v28  ;;  %8971 = vmatprep.mubr.bf16.mxu1 %v18495_v50  ;;  %v15470_v50 = vld [vmem:[%s20048_s7 + $0x788] ss:$28 sps:$4 sm:$0xff]  }
 0x771   : > { %13217 = vmatprep.subr.bf16.mxu1 %v15464_v29  ;;  %v15530_v26 = vld [vmem:[%s20050_s9 + $0x84] ss:$16 sps:$4 sm:$0xff]   ;;  %v15525_v28 = vld [vmem:[%s20050_s9 + $0x48] ss:$16 sps:$4 sm:$0xff]   ;;  %v8335_v29 = vrot.slane %v19334_v23, %v18276_v43 }
 0x772   : > { %8794 = vmatpush1.bf16.msra.mxu0 %v15461_v31  ;;  %v15533_v31 = vld [vmem:[%s20050_s9 + $0x6c] ss:$16 sps:$4 sm:$0xff]  }
 0x773   : > { %8795 = vmatprep.subr.bf16.mxu0 %v15468_v32 }
 0x774   : > { %13218 = vmatpush3.bf16.msra.mxu1 %v15465_v34  ;;  %v15528_v34 = vld [vmem:[%s20050_s9 + $0x80] ss:$16 sps:$4 sm:$0xff]  }
 0x775   : > { %13219 = vmatprep.subr.bf16.mxu1 %v15469_v47 }
 0x776   : > { %8796 = vmatpush1.bf16.msra.mxu0 %v15466_v48 }
 0x777   : > { %8797 = vmatprep.subr.bf16.mxu0 %v15473_v36  ;;  %v15536_v36 = vld [vmem:[%s20050_s9 + $0xa4] ss:$16 sps:$4 sm:$0xff]  }
 0x778   : > { %13220 = vmatpush3.bf16.msra.mxu1 %v15470_v50 }
 0x779   : > { %13221 = vmatprep.subr.bf16.mxu1 %v15474_v38 }
 0x77a   : > { %8798 = vmatpush1.bf16.msra.mxu0 %v15471_v5  ;;  %v15531_v5 = vld [vmem:[%s20050_s9 + $0x68] ss:$16 sps:$4 sm:$0xff]  }
 0x77b   : > { %8799 = vmatprep.subr.bf16.mxu0 %v15478_v30 }
 0x77c   : > { %13222 = vmatpush3.bf16.msra.mxu1 %v15475_v33 }
 0x77d   : > { %13223 = vmatprep.subr.bf16.mxu1 %v15479_v45  ;;  %v15539_v45 = vld [vmem:[%s20050_s9 + $0x8c] ss:$16 sps:$4 sm:$0xff]  }
 0x77e   : > { %8800 = vmatpush1.bf16.msra.mxu0 %v15476_v63 }
 0x77f   : > { %8801 = vmatprep.subr.bf16.mxu0 %v15483_v42  ;;  %v15534_v42 = vld [vmem:[%s20050_s9 + $0xa0] ss:$16 sps:$4 sm:$0xff]  }
 0x780   : > { %13224 = vmatpush3.bf16.msra.mxu1 %v15480_v51  ;;  %v15542_v51 = vld [vmem:[%s20050_s9 + $0xc4] ss:$16 sps:$4 sm:$0xff]  }
 0x781   : > { %13225 = vmatprep.subr.bf16.mxu1 %v15484_v53  ;;  %v15537_v53 = vld [vmem:[%s20050_s9 + $0x88] ss:$16 sps:$4 sm:$0xff]  }
 0x782   : > { %8802 = vmatpush1.bf16.msra.mxu0 %v15481_v54 }
 0x783   : > { %8803 = vmatprep.subr.bf16.mxu0 %v15488_v55  ;;  %v15540_v55 = vld [vmem:[%s20050_s9 + $0xc0] ss:$16 sps:$4 sm:$0xff]  }
 0x784   : > { %13226 = vmatpush3.bf16.msra.mxu1 %v15485_v56  ;;  %v15548_v56 = vld [vmem:[%s20050_s9 + $0xe4] ss:$16 sps:$4 sm:$0xff]  }
 0x785   : > { %13227 = vmatprep.subr.bf16.mxu1 %v15489_v58  ;;  %v15543_v58 = vld [vmem:[%s20050_s9 + $0xa8] ss:$16 sps:$4 sm:$0xff]  }
 0x786   : > { %8804 = vmatpush1.bf16.msra.mxu0 %v15486_v8  ;;  %v15551_v8 = vld [vmem:[%s20050_s9 + $0xcc] ss:$16 sps:$4 sm:$0xff]  }
 0x787   : > { %8805 = vmatprep.subr.bf16.mxu0 %v15493_v59  ;;  %v15546_v59 = vld [vmem:[%s20050_s9 + $0xe0] ss:$16 sps:$4 sm:$0xff]  }
 0x788   : > { %13228 = vmatpush3.bf16.msra.mxu1 %v15490_v49  ;;  %v15554_v49 = vld [vmem:[%s20050_s9 + $0x104] ss:$16 sps:$4 sm:$0xff]  }
 0x789   : > { %13229 = vmatprep.subr.bf16.mxu1 %v15494_v14  ;;  %v15549_v14 = vld [vmem:[%s20050_s9 + $0xc8] ss:$16 sps:$4 sm:$0xff]  }
 0x78a   : > { %8806 = vmatpush1.bf16.msra.mxu0 %v15491_v60  ;;  %v15557_v60 = vld [vmem:[%s20050_s9 + $0xec] ss:$16 sps:$4 sm:$0xff]  }
 0x78b   : > { %8807 = vmatprep.subr.bf16.mxu0 %v15498_v61  ;;  %v15552_v61 = vld [vmem:[%s20050_s9 + $0x100] ss:$16 sps:$4 sm:$0xff]  }
 0x78c   : > { %13230 = vmatpush3.bf16.msra.mxu1 %v15495_v62  ;;  %v15560_v62 = vld [vmem:[%s20050_s9 + $0x124] ss:$16 sps:$4 sm:$0xff]  }
 0x78d   : > { %14278 = vmatprep.subr.bf16.mxu1 %v16096_v0 }
 0x78e   : > { %8808 = vmatpush1.bf16.msra.mxu0 %v15496_v1  ;;  %v15555_v1 = vld [vmem:[%s20050_s9 + $0xe8] ss:$16 sps:$4 sm:$0xff]  }
 0x78f   : > { %8972 = vmatmul.mubr.bf16.vlgmr.msra.gmra.mrb[80].mxu1 %v18691_v7  ;;  %8818 = vmatprep.subr.bf16.mxu0 %v15502_v2  ;;  %v15563_v2 = vld [vmem:[%s20050_s9 + $0x10c] ss:$16 sps:$4 sm:$0xff]  }
 0x790   : > { %14279 = vmatpush3.bf16.msra.mxu1 %v15499_v3  ;;  %14282 = vmatprep.mubr.msk.bf16.mxu1 %vm16097_vm0, %v16096_v0  ;;  %v15558_v3 = vld [vmem:[%s20050_s9 + $0x120] ss:$16 sps:$4 sm:$0xff]  }
 0x791   : > { %8810 = vmatmul.mubr.bf16.vlgmr.msra.gmra.mrb[68].mxu0 %v18691_v7  ;;  %14280 = vmatprep.subr.bf16.mxu1 %v16096_v0  ;;  %v15504_v7 = vld [vmem:[%s20050_s9] ss:$16 sps:$4 sm:$0xff]  }
 0x792   : > { %8819 = vmatpush1.bf16.msra.mxu0 %v15500_v4  ;;  %8850 = vmatprep.mubr.bf16.mxu0 %v16098_v52  ;;  %v15566_v4 = vld [vmem:[%s20050_s9 + $0x144] ss:$16 sps:$4 sm:$0xff]  }
 0x793   : > { %8820 = vmatprep.subr.bf16.mxu0 %v15509_v6  ;;  %v15561_v6 = vld [vmem:[%s20050_s9 + $0x108] ss:$16 sps:$4 sm:$0xff]  }
 0x794   : > { %14281 = vmatpush3.bf16.msra.mxu1 %v15503_v35  ;;  %v15569_v35 = vld [vmem:[%s20050_s9 + $0x12c] ss:$16 sps:$4 sm:$0xff]  }
 0x795   : > { %10258 = vmatprep.subr.bf16.mxu1 %v15506_v9  ;;  %v15564_v9 = vld [vmem:[%s20050_s9 + $0x140] ss:$16 sps:$4 sm:$0xff]  }
 0x796   : > { %8821 = vmatpush1.bf16.msra.mxu0 %v15507_v12  ;;  %v15572_v12 = vld [vmem:[%s20050_s9 + $0x164] ss:$16 sps:$4 sm:$0xff]  }
 0x797   : > { %14283 = vmatmul.mubr.msk.bf16.vlgmr.msra.gmra.mrb[84].mxu1 %vm8363_vm5, %v18345_v46  ;;  %10422 = vmatprep.subr.bf16.mxu0 %v15515_v13  ;;  %v15567_v13 = vld [vmem:[%s20050_s9 + $0x128] ss:$16 sps:$4 sm:$0xff]  }
 0x798   : > { %10259 = vmatpush1.bf16.msra.mxu1 %v15504_v7  ;;  %v15575_v7 = vld [vmem:[%s20050_s9 + $0x14c] ss:$16 sps:$4 sm:$0xff]  }
 0x799   : > { %10260 = vmatprep.subr.bf16.mxu1 %v15512_v15  ;;  %v15570_v15 = vld [vmem:[%s20050_s9 + $0x160] ss:$16 sps:$4 sm:$0xff]  }
 0x79c   : > { %10261 = vmatpush1.bf16.msra.mxu1 %v15510_v10  ;;  %v15578_v10 = vld [vmem:[%s20050_s9 + $0x184] ss:$16 sps:$4 sm:$0xff]  }
 0x79d   : > { %12440 = vmatmul.mubr.msk.bf16.vlgmr.msra.gmra.mrb[68].mxu0 %vm8363_vm5, %v18345_v46  ;;  %10262 = vmatprep.subr.bf16.mxu1 %v15518_v11  ;;  %v15527_v46 = vld [vmem:[%s20050_s9 + $0x4c] ss:$16 sps:$4 sm:$0xff]   ;;  %v15573_v11 = vld [vmem:[%s20050_s9 + $0x148] ss:$16 sps:$4 sm:$0xff]  }
 0x79e   : > { %10423 = vmatpush1.bf16.msra.mxu0 %v15513_v57  ;;  %v15581_v57 = vld [vmem:[%s20050_s9 + $0x16c] ss:$16 sps:$4 sm:$0xff]  }
 0x79f   : > { %10424 = vmatprep.subr.bf16.mxu0 %v15521_v19  ;;  %v15576_v19 = vld [vmem:[%s20050_s9 + $0x180] ss:$16 sps:$4 sm:$0xff]  }
 0x7a0   : > { %10263 = vmatpush1.bf16.msra.mxu1 %v15516_v20  ;;  %v15584_v20 = vld [vmem:[%s20050_s9 + $0x1a4] ss:$16 sps:$4 sm:$0xff]  }
 0x7a1   : > { %10264 = vmatprep.subr.bf16.mxu1 %v15524_v21  ;;  %v15579_v21 = vld [vmem:[%s20050_s9 + $0x168] ss:$16 sps:$4 sm:$0xff]  }
 0x7a2   : > { %10425 = vmatpush1.bf16.msra.mxu0 %v15519_v22  ;;  %v15587_v22 = vld [vmem:[%s20050_s9 + $0x18c] ss:$16 sps:$4 sm:$0xff]  }
 0x7a3   : > { %10426 = vmatprep.subr.bf16.mxu0 %v15527_v46  ;;  %v15582_v46 = vld [vmem:[%s20050_s9 + $0x1a0] ss:$16 sps:$4 sm:$0xff]  }
 0x7a4   : > { %10265 = vmatpush1.bf16.msra.mxu1 %v15522_v24  ;;  %v8483_v32 = vpop.f32.mrb[64].mxu0  ;;  %v15590_v24 = vld [vmem:[%s20050_s9 + $0x1c4] ss:$16 sps:$4 sm:$0xff]  }
 0x7a5   : > { %v14304_v47 = vadd.f32 %v8483_v32, %v8331_v25  ;;  %v8485_v48 = vpop.f32.mrb[65].mxu0  ;;  %10266 = vmatprep.subr.bf16.mxu1 %v15530_v26  ;;  %v15585_v25 = vld [vmem:[%s20050_s9 + $0x188] ss:$16 sps:$4 sm:$0xff]   ;;  %v15593_v26 = vld [vmem:[%s20050_s9 + $0x1ac] ss:$16 sps:$4 sm:$0xff]  }
 0x7a6   : > { %v14306_v50 = vadd.f32 %v8485_v48, %v8335_v29  ;;  %10427 = vmatpush1.bf16.msra.mxu0 %v15525_v28  ;;  %v8487_v38 = vpop.f32.mrb[66].mxu0  ;;  %v15588_v28 = vld [vmem:[%s20050_s9 + $0x1c0] ss:$16 sps:$4 sm:$0xff]   ;;  %v15596_v29 = vld [vmem:[%s20050_s9 + $0x1e4] ss:$16 sps:$4 sm:$0xff]  }
 0x7a7   : > { %v19365_v30 = vadd.f32 %v14304_v47, %v19007_v18  ;;  %v8488_v33 = vpop.f32.mrb[67].mxu0  ;;  %10428 = vmatprep.subr.bf16.mxu0 %v15533_v31  ;;  %v15591_v31 = vld [vmem:[%s20050_s9 + $0x1a8] ss:$16 sps:$4 sm:$0xff]   ;;  %v15599_v32 = vld [vmem:[%s20050_s9 + $0x1cc] ss:$16 sps:$4 sm:$0xff]  }
 0x7a8   : > { %v14307_v63 = vadd.f32 %v14306_v50, %v19012_v37  ;;  %10267 = vmatpush1.bf16.msra.mxu1 %v15528_v34  ;;  %v15545_v37 = vld [vmem:[%s20050_s9 + $0xac] ss:$16 sps:$4 sm:$0xff]   ;;  %v15594_v34 = vld [vmem:[%s20050_s9 + $0x1e0] ss:$16 sps:$4 sm:$0xff]   ;;  %v15602_v48 = vld [vmem:[%s20050_s9 + $0x204] ss:$16 sps:$4 sm:$0xff]  }
 0x7a9   : > { %10268 = vmatprep.subr.bf16.mxu1 %v15536_v36  ;;  %v9019_v47 = vmax.f32 %v19365_v30, 0.0  ;;  %v15597_v36 = vld [vmem:[%s20050_s9 + $0x1c8] ss:$16 sps:$4 sm:$0xff]   ;;  %v15605_v50 = vld [vmem:[%s20050_s9 + $0x1ec] ss:$16 sps:$4 sm:$0xff]  }
 0x7aa   : > { %v9020_v18 = vmax.f32 %v14307_v63, 0.0  ;;  %10429 = vmatpush1.bf16.msra.mxu0 %v15531_v5  ;;  %v15600_v38 = vld [vmem:[%s20050_s9 + $0x200] ss:$16 sps:$4 sm:$0xff]   ;;  %v15608_v30 = vld [vmem:[%s20050_s9 + $0x224] ss:$16 sps:$4 sm:$0xff]  }
 0x7ab   : > { %10430 = vmatprep.subr.bf16.mxu0 %v15539_v45  ;;  %v9026_v5 = vpack.c.bf16 %v9019_v47, %v9019_v47  ;;  %v15603_v33 = vld [vmem:[%s20050_s9 + $0x1e8] ss:$16 sps:$4 sm:$0xff]   ;;  %v15611_v45 = vld [vmem:[%s20050_s9 + $0x20c] ss:$16 sps:$4 sm:$0xff]   ;;  %v15606_v63 = vld [vmem:[%s20050_s9 + $0x220] ss:$16 sps:$4 sm:$0xff]  }
 0x7ac   : > { %v9027_v54 = vpack.c.bf16 %v9020_v18, %v9020_v18  ;;  %10269 = vmatpush1.bf16.msra.mxu1 %v15534_v42  ;;  %v15614_v42 = vld [vmem:[%s20050_s9 + $0x244] ss:$16 sps:$4 sm:$0xff]   ;;  %v15617_v18 = vld [vmem:[%s20050_s9 + $0x22c] ss:$16 sps:$4 sm:$0xff]   ;;  %v15669_v47 = vld [vmem:[%s20050_s9 + $0x348] ss:$16 sps:$4 sm:$0xff]  }
 0x7ad   : > { %10270 = vmatprep.subr.bf16.mxu1 %v15542_v51  ;;  %v15609_v51 = vld [vmem:[%s20050_s9 + $0x208] ss:$16 sps:$4 sm:$0xff]  }
 0x7ae   : > { %10431 = vmatpush1.bf16.msra.mxu0 %v15537_v53  ;;  %10290 = vmatprep.mubr.bf16.mxu1 %v9027_v54  ;;  %v15612_v53 = vld [vmem:[%s20050_s9 + $0x240] ss:$16 sps:$4 sm:$0xff]  }
 0x7af   : > { %10454 = vmatprep.mubr.bf16.mxu0 %v9027_v54  ;;  %10432 = vmatprep.subr.bf16.mxu0 %v15545_v37  ;;  %v15620_v37 = vld [vmem:[%s20050_s9 + $0x264] ss:$16 sps:$4 sm:$0xff]   ;;  %v15615_v54 = vld [vmem:[%s20050_s9 + $0x228] ss:$16 sps:$4 sm:$0xff]  }
 0x7b0   : > { %10271 = vmatpush1.bf16.msra.mxu1 %v15540_v55  ;;  %v15623_v55 = vld [vmem:[%s20050_s9 + $0x24c] ss:$16 sps:$4 sm:$0xff]  }
 0x7b1   : > { %10272 = vmatprep.subr.bf16.mxu1 %v15548_v56  ;;  %v15618_v56 = vld [vmem:[%s20050_s9 + $0x260] ss:$16 sps:$4 sm:$0xff]  }
 0x7b2   : > { %10433 = vmatpush1.bf16.msra.mxu0 %v15543_v58  ;;  %v15626_v58 = vld [vmem:[%s20050_s9 + $0x284] ss:$16 sps:$4 sm:$0xff]  }
 0x7b3   : > { %10434 = vmatprep.subr.bf16.mxu0 %v15551_v8  ;;  %v15621_v8 = vld [vmem:[%s20050_s9 + $0x248] ss:$16 sps:$4 sm:$0xff]  }
 0x7b4   : > { %10273 = vmatpush1.bf16.msra.mxu1 %v15546_v59  ;;  %v15629_v59 = vld [vmem:[%s20050_s9 + $0x26c] ss:$16 sps:$4 sm:$0xff]  }
 0x7b5   : > { %10274 = vmatprep.subr.bf16.mxu1 %v15554_v49  ;;  %v15624_v49 = vld [vmem:[%s20050_s9 + $0x280] ss:$16 sps:$4 sm:$0xff]  }
 0x7b6   : > { %10435 = vmatpush1.bf16.msra.mxu0 %v15549_v14  ;;  %v15632_v14 = vld [vmem:[%s20050_s9 + $0x2a4] ss:$16 sps:$4 sm:$0xff]  }
 0x7b7   : > { %10436 = vmatprep.subr.bf16.mxu0 %v15557_v60  ;;  %v15627_v60 = vld [vmem:[%s20050_s9 + $0x268] ss:$16 sps:$4 sm:$0xff]  }
 0x7b8   : > { %10275 = vmatpush1.bf16.msra.mxu1 %v15552_v61  ;;  %v15635_v61 = vld [vmem:[%s20050_s9 + $0x28c] ss:$16 sps:$4 sm:$0xff]  }
 0x7b9   : > { %10276 = vmatprep.subr.bf16.mxu1 %v15560_v62  ;;  %v15630_v62 = vld [vmem:[%s20050_s9 + $0x2a0] ss:$16 sps:$4 sm:$0xff]  }
 0x7ba   : > { %10437 = vmatpush1.bf16.msra.mxu0 %v15555_v1  ;;  %v15638_v1 = vld [vmem:[%s20050_s9 + $0x2c4] ss:$16 sps:$4 sm:$0xff]  }
 0x7bb   : > { %10438 = vmatprep.subr.bf16.mxu0 %v15563_v2  ;;  %v15633_v2 = vld [vmem:[%s20050_s9 + $0x288] ss:$16 sps:$4 sm:$0xff]  }
 0x7bc   : > { %10277 = vmatpush1.bf16.msra.mxu1 %v15558_v3  ;;  %v15641_v3 = vld [vmem:[%s20050_s9 + $0x2ac] ss:$16 sps:$4 sm:$0xff]  }
 0x7bd   : > { %10278 = vmatprep.subr.bf16.mxu1 %v15566_v4  ;;  %v15636_v4 = vld [vmem:[%s20050_s9 + $0x2c0] ss:$16 sps:$4 sm:$0xff]  }
 0x7be   : > { %10439 = vmatpush1.bf16.msra.mxu0 %v15561_v6  ;;  %v15644_v6 = vld [vmem:[%s20050_s9 + $0x2e4] ss:$16 sps:$4 sm:$0xff]  }
 0x7bf   : > { %10440 = vmatprep.subr.bf16.mxu0 %v15569_v35  ;;  %v15639_v35 = vld [vmem:[%s20050_s9 + $0x2a8] ss:$16 sps:$4 sm:$0xff]  }
 0x7c0   : > { %10279 = vmatpush1.bf16.msra.mxu1 %v15564_v9  ;;  %v15647_v9 = vld [vmem:[%s20050_s9 + $0x2cc] ss:$16 sps:$4 sm:$0xff]  }
 0x7c1   : > { %10280 = vmatprep.subr.bf16.mxu1 %v15572_v12  ;;  %v15642_v12 = vld [vmem:[%s20050_s9 + $0x2e0] ss:$16 sps:$4 sm:$0xff]  }
 0x7c2   : > { %10441 = vmatpush1.bf16.msra.mxu0 %v15567_v13  ;;  %v15650_v13 = vld [vmem:[%s20050_s9 + $0x304] ss:$16 sps:$4 sm:$0xff]  }
 0x7c3   : > { %10442 = vmatprep.subr.bf16.mxu0 %v15575_v7  ;;  %v15645_v7 = vld [vmem:[%s20050_s9 + $0x2c8] ss:$16 sps:$4 sm:$0xff]  }
 0x7c4   : > { %10281 = vmatpush1.bf16.msra.mxu1 %v15570_v15  ;;  %v15653_v15 = vld [vmem:[%s20050_s9 + $0x2ec] ss:$16 sps:$4 sm:$0xff]  }
 0x7c5   : > { %10282 = vmatprep.subr.bf16.mxu1 %v15578_v10  ;;  %v15648_v10 = vld [vmem:[%s20050_s9 + $0x300] ss:$16 sps:$4 sm:$0xff]  }
 0x7c6   : > { %10443 = vmatpush1.bf16.msra.mxu0 %v15573_v11  ;;  %v15656_v11 = vld [vmem:[%s20050_s9 + $0x324] ss:$16 sps:$4 sm:$0xff]  }
 0x7c7   : > { %10444 = vmatprep.subr.bf16.mxu0 %v15581_v57  ;;  %v15651_v57 = vld [vmem:[%s20050_s9 + $0x2e8] ss:$16 sps:$4 sm:$0xff]  }
 0x7c8   : > { %10283 = vmatpush1.bf16.msra.mxu1 %v15576_v19  ;;  %v15659_v19 = vld [vmem:[%s20050_s9 + $0x30c] ss:$16 sps:$4 sm:$0xff]  }
 0x7c9   : > { %10284 = vmatprep.subr.bf16.mxu1 %v15584_v20  ;;  %v15654_v20 = vld [vmem:[%s20050_s9 + $0x320] ss:$16 sps:$4 sm:$0xff]  }
 0x7ca   : > { %10445 = vmatpush1.bf16.msra.mxu0 %v15579_v21  ;;  %v15662_v21 = vld [vmem:[%s20050_s9 + $0x344] ss:$16 sps:$4 sm:$0xff]  }
 0x7cb   : > { %10446 = vmatprep.subr.bf16.mxu0 %v15587_v22  ;;  %v15657_v22 = vld [vmem:[%s20050_s9 + $0x308] ss:$16 sps:$4 sm:$0xff]  }
 0x7cc   : > { %10285 = vmatpush1.bf16.msra.mxu1 %v15582_v46  ;;  %v15665_v46 = vld [vmem:[%s20050_s9 + $0x32c] ss:$16 sps:$4 sm:$0xff]  }
 0x7cd   : > { %10286 = vmatprep.subr.bf16.mxu1 %v15590_v24  ;;  %v15660_v24 = vld [vmem:[%s20050_s9 + $0x340] ss:$16 sps:$4 sm:$0xff]  }
 0x7ce   : > { %10447 = vmatpush1.bf16.msra.mxu0 %v15585_v25  ;;  %v15668_v25 = vld [vmem:[%s20050_s9 + $0x364] ss:$16 sps:$4 sm:$0xff]  }
 0x7cf   : > { %10448 = vmatprep.subr.bf16.mxu0 %v15593_v26  ;;  %v15663_v26 = vld [vmem:[%s20050_s9 + $0x328] ss:$16 sps:$4 sm:$0xff]  }
 0x7d0   : > { %10287 = vmatpush1.bf16.msra.mxu1 %v15588_v28  ;;  %v15671_v28 = vld [vmem:[%s20050_s9 + $0x34c] ss:$16 sps:$4 sm:$0xff]  }
 0x7d1   : > { %10288 = vmatprep.subr.bf16.mxu1 %v15596_v29  ;;  %v15666_v29 = vld [vmem:[%s20050_s9 + $0x360] ss:$16 sps:$4 sm:$0xff]  }
 0x7d2   : > { %10449 = vmatpush1.bf16.msra.mxu0 %v15591_v31  ;;  %v8343_v31 = vrot.slane %v19334_v23, %v18279_v44 }
 0x7d3   : > { %10450 = vmatprep.subr.bf16.mxu0 %v15599_v32  ;;  %v15674_v32 = vld [vmem:[%s20050_s9 + $0x384] ss:$16 sps:$4 sm:$0xff]  }
 0x7d4   : > { %10289 = vmatpush1.bf16.msra.mxu1 %v15594_v34 }
 0x7d5   : > { %10299 = vmatprep.subr.bf16.mxu1 %v15602_v48 }
 0x7d6   : > { %10451 = vmatpush1.bf16.msra.mxu0 %v15597_v36  ;;  %v15677_v36 = vld [vmem:[%s20050_s9 + $0x36c] ss:$16 sps:$4 sm:$0xff]  }
 0x7d7   : > { %10291 = vmatmul.mubr.bf16.vlgmr.msra.gmra.mrb[88].mxu1 %v9026_v5  ;;  %10452 = vmatprep.subr.bf16.mxu0 %v15605_v50 }
 0x7d8   : > { %10300 = vmatpush1.bf16.msra.mxu1 %v15600_v38 }
 0x7d9   : > { %10301 = vmatprep.subr.bf16.mxu1 %v15608_v30 }
 0x7da   : > { %10453 = vmatpush1.bf16.msra.mxu0 %v15603_v33  ;;  %v15680_v33 = vld [vmem:[%s20050_s9 + $0x3a4] ss:$16 sps:$4 sm:$0xff]  }
 0x7db   : > { %10463 = vmatprep.subr.bf16.mxu0 %v15611_v45 }
 0x7dc   : > { %10302 = vmatpush1.bf16.msra.mxu1 %v15606_v63  ;;  %v15675_v63 = vld [vmem:[%s20050_s9 + $0x368] ss:$16 sps:$4 sm:$0xff]  }
 0x7dd   : > { %10455 = vmatmul.mubr.bf16.vlgmr.msra.gmra.mrb[72].mxu0 %v9026_v5  ;;  %10303 = vmatprep.subr.bf16.mxu1 %v15614_v42  ;;  %v15672_v5 = vld [vmem:[%s20050_s9 + $0x380] ss:$16 sps:$4 sm:$0xff]   ;;  %v15683_v42 = vld [vmem:[%s20050_s9 + $0x38c] ss:$16 sps:$4 sm:$0xff]  }
 0x7de   : > { %10464 = vmatpush1.bf16.msra.mxu0 %v15609_v51 }
 0x7df   : > { %10465 = vmatprep.subr.bf16.mxu0 %v15617_v18  ;;  %v15678_v18 = vld [vmem:[%s20050_s9 + $0x3a0] ss:$16 sps:$4 sm:$0xff]  }
 0x7e0   : > { %10304 = vmatpush1.bf16.msra.mxu1 %v15612_v53  ;;  %v8339_v53 = vrot.slane %v19334_v23, %v18270_v41 }
 0x7e1   : > { %10305 = vmatprep.subr.bf16.mxu1 %v15620_v37  ;;  %v15686_v37 = vld [vmem:[%s20050_s9 + $0x3c4] ss:$16 sps:$4 sm:$0xff]  }
 0x7e2   : > { %10466 = vmatpush1.bf16.msra.mxu0 %v15615_v54  ;;  %v15681_v54 = vld [vmem:[%s20050_s9 + $0x388] ss:$16 sps:$4 sm:$0xff]  }
 0x7e3   : > { %10467 = vmatprep.subr.bf16.mxu0 %v15623_v55  ;;  %v15689_v55 = vld [vmem:[%s20050_s9 + $0x3ac] ss:$16 sps:$4 sm:$0xff]  }
 0x7e4   : > { %10306 = vmatpush1.bf16.msra.mxu1 %v15618_v56  ;;  %v15684_v56 = vld [vmem:[%s20050_s9 + $0x3c0] ss:$16 sps:$4 sm:$0xff]  }
 0x7e5   : > { %10307 = vmatprep.subr.bf16.mxu1 %v15626_v58 }
 0x7e6   : > { %10468 = vmatpush1.bf16.msra.mxu0 %v15621_v8  ;;  %v15692_v8 = vld [vmem:[%s20050_s9 + $0x3e4] ss:$16 sps:$4 sm:$0xff]  }
 0x7e7   : > { %10469 = vmatprep.subr.bf16.mxu0 %v15629_v59  ;;  %v15687_v59 = vld [vmem:[%s20050_s9 + $0x3a8] ss:$16 sps:$4 sm:$0xff]  }
 0x7e8   : > { %10308 = vmatpush1.bf16.msra.mxu1 %v15624_v49  ;;  %v15695_v49 = vld [vmem:[%s20050_s9 + $0x3cc] ss:$16 sps:$4 sm:$0xff]  }
 0x7e9   : > { %10309 = vmatprep.subr.bf16.mxu1 %v15632_v14  ;;  %v15690_v14 = vld [vmem:[%s20050_s9 + $0x3e0] ss:$16 sps:$4 sm:$0xff]  }
 0x7ea   : > { %10470 = vmatpush1.bf16.msra.mxu0 %v15627_v60 }
 0x7eb   : > { %10471 = vmatprep.subr.bf16.mxu0 %v15635_v61  ;;  %v15701_v61 = vld [vmem:[%s20050_s9 + $0x404] ss:$16 sps:$4 sm:$0xff]  }
 0x7ec   : > { %10310 = vmatpush1.bf16.msra.mxu1 %v15630_v62  ;;  %v15693_v62 = vld [vmem:[%s20050_s9 + $0x3c8] ss:$16 sps:$4 sm:$0xff]  }
 0x7ed   : > { %10311 = vmatprep.subr.bf16.mxu1 %v15638_v1  ;;  %v15698_v1 = vld [vmem:[%s20050_s9 + $0x3ec] ss:$16 sps:$4 sm:$0xff]  }
 0x7ee   : > { %10472 = vmatpush1.bf16.msra.mxu0 %v15633_v2  ;;  %v15699_v2 = vld [vmem:[%s20050_s9 + $0x400] ss:$16 sps:$4 sm:$0xff]  }
 0x7ef   : > { %10473 = vmatprep.subr.bf16.mxu0 %v15641_v3 }
 0x7f0   : > { %10312 = vmatpush1.bf16.msra.mxu1 %v15636_v4  ;;  %v15707_v4 = vld [vmem:[%s20050_s9 + $0x424] ss:$16 sps:$4 sm:$0xff]  }
 0x7f1   : > { %10313 = vmatprep.subr.bf16.mxu1 %v15644_v6  ;;  %v15696_v6 = vld [vmem:[%s20050_s9 + $0x3e8] ss:$16 sps:$4 sm:$0xff]  }
 0x7f2   : > { %10474 = vmatpush1.bf16.msra.mxu0 %v15639_v35  ;;  %v15704_v35 = vld [vmem:[%s20050_s9 + $0x40c] ss:$16 sps:$4 sm:$0xff]  }
 0x7f3   : > { %10475 = vmatprep.subr.bf16.mxu0 %v15647_v9  ;;  %v15705_v9 = vld [vmem:[%s20050_s9 + $0x420] ss:$16 sps:$4 sm:$0xff]  }
 0x7f4   : > { %10314 = vmatpush1.bf16.msra.mxu1 %v15642_v12  ;;  %v15713_v12 = vld [vmem:[%s20050_s9 + $0x444] ss:$16 sps:$4 sm:$0xff]  }
 0x7f5   : > { %10315 = vmatprep.subr.bf16.mxu1 %v15650_v13  ;;  %v15702_v13 = vld [vmem:[%s20050_s9 + $0x408] ss:$16 sps:$4 sm:$0xff]  }
 0x7f6   : > { %10476 = vmatpush1.bf16.msra.mxu0 %v15645_v7  ;;  %v15710_v7 = vld [vmem:[%s20050_s9 + $0x42c] ss:$16 sps:$4 sm:$0xff]  }
 0x7f7   : > { %10477 = vmatprep.subr.bf16.mxu0 %v15653_v15  ;;  %v15711_v15 = vld [vmem:[%s20050_s9 + $0x440] ss:$16 sps:$4 sm:$0xff]  }
 0x7f8   : > { %10316 = vmatpush1.bf16.msra.mxu1 %v15648_v10  ;;  %v15719_v10 = vld [vmem:[%s20050_s9 + $0x464] ss:$16 sps:$4 sm:$0xff]  }
 0x7f9   : > { %10317 = vmatprep.subr.bf16.mxu1 %v15656_v11  ;;  %v15708_v11 = vld [vmem:[%s20050_s9 + $0x428] ss:$16 sps:$4 sm:$0xff]  }
 0x7fa   : > { %10478 = vmatpush1.bf16.msra.mxu0 %v15651_v57  ;;  %v15716_v57 = vld [vmem:[%s20050_s9 + $0x44c] ss:$16 sps:$4 sm:$0xff]  }
 0x7fb   : > { %10479 = vmatprep.subr.bf16.mxu0 %v15659_v19  ;;  %v15717_v19 = vld [vmem:[%s20050_s9 + $0x460] ss:$16 sps:$4 sm:$0xff]  }
 0x7fc   : > { %10318 = vmatpush1.bf16.msra.mxu1 %v15654_v20  ;;  %v15725_v20 = vld [vmem:[%s20050_s9 + $0x484] ss:$16 sps:$4 sm:$0xff]  }
 0x7fd   : > { %10319 = vmatprep.subr.bf16.mxu1 %v15662_v21 }
 0x7fe   : > { %10480 = vmatpush1.bf16.msra.mxu0 %v15657_v22  ;;  %v15714_v22 = vld [vmem:[%s20050_s9 + $0x448] ss:$16 sps:$4 sm:$0xff]  }
 0x7ff   : > { %10481 = vmatprep.subr.bf16.mxu0 %v15665_v46 }
 0x800   : > { %10320 = vmatpush1.bf16.msra.mxu1 %v15660_v24  ;;  %v15722_v24 = vld [vmem:[%s20050_s9 + $0x46c] ss:$16 sps:$4 sm:$0xff]  }
 0x801   : > { %10321 = vmatprep.subr.bf16.mxu1 %v15668_v25 }
 0x802   : > { %10482 = vmatpush1.bf16.msra.mxu0 %v15663_v26  ;;  %v8688_v34 = vpop.f32.mrb[68].mxu1 }
 0x803   : > { %v8690_v48 = vpop.f32.mrb[69].mxu1  ;;  %10483 = vmatprep.subr.bf16.mxu0 %v15671_v28  ;;  %v14308_v58 = vadd.f32 %v8688_v34, %v8339_v53  ;;  %v15723_v28 = vld [vmem:[%s20050_s9 + $0x480] ss:$16 sps:$4 sm:$0xff]   ;;  %v15728_v34 = vld [vmem:[%s20050_s9 + $0x48c] ss:$16 sps:$4 sm:$0xff]  }
 0x804   : > { %v14309_v50 = vadd.f32 %v8690_v48, %v8343_v31  ;;  %10322 = vmatpush1.bf16.msra.mxu1 %v15666_v29  ;;  %v8692_v38 = vpop.f32.mrb[70].mxu1  ;;  %v15731_v31 = vld [vmem:[%s20050_s9 + $0x4a4] ss:$16 sps:$4 sm:$0xff]  }
 0x805   : > { %v8693_v30 = vpop.f32.mrb[71].mxu1  ;;  %10323 = vmatprep.subr.bf16.mxu1 %v15674_v32  ;;  %v9021_v60 = vmax.f32 %v14308_v58, 0.0  ;;  %v15720_v32 = vld [vmem:[%s20050_s9 + $0x468] ss:$16 sps:$4 sm:$0xff]   ;;  %v15737_v48 = vld [vmem:[%s20050_s9 + $0x4c4] ss:$16 sps:$4 sm:$0xff]  }
 0x806   : > { %v9022_v45 = vmax.f32 %v14309_v50, 0.0  ;;  %10484 = vmatpush1.bf16.msra.mxu0 %v15669_v47  ;;  %v15729_v47 = vld [vmem:[%s20050_s9 + $0x4a0] ss:$16 sps:$4 sm:$0xff]   ;;  %v15734_v50 = vld [vmem:[%s20050_s9 + $0x4ac] ss:$16 sps:$4 sm:$0xff]  }
 0x807   : > { %10485 = vmatprep.subr.bf16.mxu0 %v15677_v36  ;;  %v9028_v3 = vpack.c.bf16 %v9021_v60, %v9021_v60  ;;  %v15726_v36 = vld [vmem:[%s20050_s9 + $0x488] ss:$16 sps:$4 sm:$0xff]   ;;  %v15735_v38 = vld [vmem:[%s20050_s9 + $0x4c0] ss:$16 sps:$4 sm:$0xff]   ;;  %v15755_v53 = vld [vmem:[%s20050_s9 + $0x524] ss:$16 sps:$4 sm:$0xff]  }
 0x808   : > { %v9029_v51 = vpack.c.bf16 %v9022_v45, %v9022_v45  ;;  %10324 = vmatpush1.bf16.msra.mxu1 %v15672_v5  ;;  %v15743_v5 = vld [vmem:[%s20050_s9 + $0x4e4] ss:$16 sps:$4 sm:$0xff]   ;;  %v15732_v30 = vld [vmem:[%s20050_s9 + $0x4a8] ss:$16 sps:$4 sm:$0xff]   ;;  %v15741_v45 = vld [vmem:[%s20050_s9 + $0x4e0] ss:$16 sps:$4 sm:$0xff]  }
 0x809   : > { %10325 = vmatprep.subr.bf16.mxu1 %v15680_v33  ;;  %v15740_v33 = vld [vmem:[%s20050_s9 + $0x4cc] ss:$16 sps:$4 sm:$0xff]   ;;  %v15750_v58 = vld [vmem:[%s20050_s9 + $0x508] ss:$16 sps:$4 sm:$0xff]  }
 0x80a   : > { %10486 = vmatpush1.bf16.msra.mxu0 %v15675_v63  ;;  %10331 = vmatprep.mubr.bf16.mxu1 %v9029_v51  ;;  %v15749_v63 = vld [vmem:[%s20050_s9 + $0x504] ss:$16 sps:$4 sm:$0xff]   ;;  %v15764_v60 = vld [vmem:[%s20050_s9 + $0x54c] ss:$16 sps:$4 sm:$0xff]  }
 0x80b   : > { %10495 = vmatprep.mubr.bf16.mxu0 %v9029_v51  ;;  %10487 = vmatprep.subr.bf16.mxu0 %v15683_v42  ;;  %v15738_v42 = vld [vmem:[%s20050_s9 + $0x4c8] ss:$16 sps:$4 sm:$0xff]   ;;  %v15746_v51 = vld [vmem:[%s20050_s9 + $0x4ec] ss:$16 sps:$4 sm:$0xff]  }
 0x80c   : > { %10326 = vmatpush1.bf16.msra.mxu1 %v15678_v18  ;;  %v15747_v18 = vld [vmem:[%s20050_s9 + $0x500] ss:$16 sps:$4 sm:$0xff]  }
 0x80d   : > { %10327 = vmatprep.subr.bf16.mxu1 %v15686_v37  ;;  %v15744_v37 = vld [vmem:[%s20050_s9 + $0x4e8] ss:$16 sps:$4 sm:$0xff]  }
 0x80e   : > { %10488 = vmatpush1.bf16.msra.mxu0 %v15681_v54  ;;  %v15752_v54 = vld [vmem:[%s20050_s9 + $0x50c] ss:$16 sps:$4 sm:$0xff]  }
 0x80f   : > { %10489 = vmatprep.subr.bf16.mxu0 %v15689_v55  ;;  %v15753_v55 = vld [vmem:[%s20050_s9 + $0x520] ss:$16 sps:$4 sm:$0xff]  }
 0x810   : > { %10328 = vmatpush1.bf16.msra.mxu1 %v15684_v56  ;;  %v15761_v56 = vld [vmem:[%s20050_s9 + $0x544] ss:$16 sps:$4 sm:$0xff]  }
 0x811   : > { %10329 = vmatprep.subr.bf16.mxu1 %v15692_v8  ;;  %v15758_v8 = vld [vmem:[%s20050_s9 + $0x52c] ss:$16 sps:$4 sm:$0xff]  }
 0x812   : > { %10490 = vmatpush1.bf16.msra.mxu0 %v15687_v59  ;;  %v15759_v59 = vld [vmem:[%s20050_s9 + $0x540] ss:$16 sps:$4 sm:$0xff]  }
 0x813   : > { %10491 = vmatprep.subr.bf16.mxu0 %v15695_v49  ;;  %v15767_v49 = vld [vmem:[%s20050_s9 + $0x564] ss:$16 sps:$4 sm:$0xff]  }
 0x814   : > { %10330 = vmatpush1.bf16.msra.mxu1 %v15690_v14  ;;  %v15756_v14 = vld [vmem:[%s20050_s9 + $0x528] ss:$16 sps:$4 sm:$0xff]  }
 0x815   : > { %10340 = vmatprep.subr.bf16.mxu1 %v15701_v61  ;;  %v8355_v61 = vrot.slane %v19334_v23, %v6096_v16  ;;  %v15770_v16 = vld [vmem:[%s20050_s9 + $0x56c] ss:$16 sps:$4 sm:$0xff]  }
 0x816   : > { %10492 = vmatpush1.bf16.msra.mxu0 %v15693_v62  ;;  %v15765_v62 = vld [vmem:[%s20050_s9 + $0x560] ss:$16 sps:$4 sm:$0xff]  }
 0x817   : > { %10332 = vmatmul.mubr.bf16.vlgmr.msra.gmra.mrb[88].mxu1 %v9028_v3  ;;  %10493 = vmatprep.subr.bf16.mxu0 %v15698_v1  ;;  %v15773_v1 = vld [vmem:[%s20050_s9 + $0x584] ss:$16 sps:$4 sm:$0xff]  }
 0x818   : > { %10341 = vmatpush1.bf16.msra.mxu1 %v15699_v2 }
 0x819   : > { %10342 = vmatprep.subr.bf16.mxu1 %v15707_v4 }
 0x81a   : > { %10494 = vmatpush1.bf16.msra.mxu0 %v15696_v6 }
 0x81b   : > { %10504 = vmatprep.subr.bf16.mxu0 %v15704_v35 }
 0x81c   : > { %10343 = vmatpush1.bf16.msra.mxu1 %v15705_v9 }
 0x81d   : > { %10496 = vmatmul.mubr.bf16.vlgmr.msra.gmra.mrb[72].mxu0 %v9028_v3  ;;  %10344 = vmatprep.subr.bf16.mxu1 %v15713_v12  ;;  %v15762_v3 = vld [vmem:[%s20050_s9 + $0x548] ss:$16 sps:$4 sm:$0xff]   ;;  %v15771_v12 = vld [vmem:[%s20050_s9 + $0x580] ss:$16 sps:$4 sm:$0xff]  }
 0x81e   : > { %10505 = vmatpush1.bf16.msra.mxu0 %v15702_v13 }
 0x81f   : > { %10506 = vmatprep.subr.bf16.mxu0 %v15710_v7  ;;  %v15779_v7 = vld [vmem:[%s20050_s9 + $0x5a4] ss:$16 sps:$4 sm:$0xff]  }
 0x820   : > { %10345 = vmatpush1.bf16.msra.mxu1 %v15711_v15 }
 0x821   : > { %10346 = vmatprep.subr.bf16.mxu1 %v15719_v10  ;;  %v15768_v10 = vld [vmem:[%s20050_s9 + $0x568] ss:$16 sps:$4 sm:$0xff]  }
 0x822   : > { %v13187_v21 = vpop.f32.mrb[72].mxu1  ;;  %10507 = vmatpush1.bf16.msra.mxu0 %v15708_v11  ;;  %v15776_v11 = vld [vmem:[%s20050_s9 + $0x58c] ss:$16 sps:$4 sm:$0xff]  }
 0x823   : > { %v13188_v46 = vpop.f32.mrb[73].mxu1  ;;  %10508 = vmatprep.subr.bf16.mxu0 %v15716_v57  ;;  %v15777_v57 = vld [vmem:[%s20050_s9 + $0x5a0] ss:$16 sps:$4 sm:$0xff]  }
 0x824   : > { %v19748_v25 = vadd.f32 %v13188_v46, %v13187_v21  ;;  %v13190_v26 = vpop.f32.mrb[74].mxu1  ;;  %10347 = vmatpush1.bf16.msra.mxu1 %v15717_v19  ;;  %v15785_v19 = vld [vmem:[%s20050_s9 + $0x5c4] ss:$16 sps:$4 sm:$0xff]   ;;  %v15782_v21 = vld [vmem:[%s20050_s9 + $0x5ac] ss:$16 sps:$4 sm:$0xff]  }
 0x825   : > { %v13191_v29 = vpop.f32.mrb[75].mxu1  ;;  %10348 = vmatprep.subr.bf16.mxu1 %v15725_v20  ;;  %v15774_v20 = vld [vmem:[%s20050_s9 + $0x588] ss:$16 sps:$4 sm:$0xff]   ;;  %v15791_v46 = vld [vmem:[%s20050_s9 + $0x5e4] ss:$16 sps:$4 sm:$0xff]  }
 0x826   : > { %10509 = vmatpush1.bf16.msra.mxu0 %v15714_v22  ;;  %v8894_v6 = vadd.f32 %v19748_v25, %v8355_v61  ;;  %v15783_v22 = vld [vmem:[%s20050_s9 + $0x5c0] ss:$16 sps:$4 sm:$0xff]   ;;  %v15788_v25 = vld [vmem:[%s20050_s9 + $0x5cc] ss:$16 sps:$4 sm:$0xff]   ;;  %v15786_v29 = vld [vmem:[%s20050_s9 + $0x5c8] ss:$16 sps:$4 sm:$0xff]  }
 0x827   : > { %10510 = vmatprep.subr.bf16.mxu0 %v15722_v24  ;;  %v15780_v24 = vld [vmem:[%s20050_s9 + $0x5a8] ss:$16 sps:$4 sm:$0xff]   ;;  %v15789_v26 = vld [vmem:[%s20050_s9 + $0x5e0] ss:$16 sps:$4 sm:$0xff]  }
 0x828   : > { %10349 = vmatpush1.bf16.msra.mxu1 %v15723_v28  ;;  %v15797_v28 = vld [vmem:[%s20050_s9 + $0x604] ss:$16 sps:$4 sm:$0xff]   ;;  %v15804_v61 = vld [vmem:[%s20050_s9 + $0x628] ss:$16 sps:$4 sm:$0xff]  }
 0x829   : > { %10350 = vmatprep.subr.bf16.mxu1 %v15731_v31  ;;  %v15794_v31 = vld [vmem:[%s20050_s9 + $0x5ec] ss:$16 sps:$4 sm:$0xff]  }
 0x82a   : > { %10511 = vmatpush1.bf16.msra.mxu0 %v15720_v32  ;;  %v15792_v32 = vld [vmem:[%s20050_s9 + $0x5e8] ss:$16 sps:$4 sm:$0xff]  }
 0x82b   : > { %10512 = vmatprep.subr.bf16.mxu0 %v15728_v34  ;;  %v15800_v34 = vld [vmem:[%s20050_s9 + $0x60c] ss:$16 sps:$4 sm:$0xff]  }
 0x82c   : > { %10351 = vmatpush1.bf16.msra.mxu1 %v15729_v47 }
 0x82d   : > { %10352 = vmatprep.subr.bf16.mxu1 %v15737_v48 }
 0x82e   : > { %10513 = vmatpush1.bf16.msra.mxu0 %v15726_v36 }
 0x82f   : > { %10514 = vmatprep.subr.bf16.mxu0 %v15734_v50 }
 0x830   : > { %10353 = vmatpush1.bf16.msra.mxu1 %v15735_v38 }
 0x831   : > { %10354 = vmatprep.subr.bf16.mxu1 %v15743_v5 }
 0x832   : > { %10515 = vmatpush1.bf16.msra.mxu0 %v15732_v30 }
 0x833   : > { %10516 = vmatprep.subr.bf16.mxu0 %v15740_v33 }
 0x834   : > { %10355 = vmatpush1.bf16.msra.mxu1 %v15741_v45 }
 0x835   : > { %10356 = vmatprep.subr.bf16.mxu1 %v15749_v63 }
 0x836   : > { %10517 = vmatpush1.bf16.msra.mxu0 %v15738_v42 }
 0x837   : > { %10518 = vmatprep.subr.bf16.mxu0 %v15746_v51  ;;  %v8347_v51 = vrot.slane %v19334_v23, %v6088_v27  ;;  %v15798_v27 = vld [vmem:[%s20050_s9 + $0x608] ss:$16 sps:$4 sm:$0xff]  }
 0x838   : > { %10357 = vmatpush1.bf16.msra.mxu1 %v15747_v18  ;;  %v8351_v18 = vrot.slane %v19334_v23, %v6092_v17  ;;  %v15803_v17 = vld [vmem:[%s20050_s9 + $0x624] ss:$16 sps:$4 sm:$0xff]   ;;  %v15806_v23 = vld [vmem:[%s20050_s9 + $0x62c] ss:$16 sps:$4 sm:$0xff]  }
 0x839   : > { %10358 = vmatprep.subr.bf16.mxu1 %v15755_v53 }
 0x83a   : > { %10519 = vmatpush1.bf16.msra.mxu0 %v15744_v37 }
 0x83b   : > { %10520 = vmatprep.subr.bf16.mxu0 %v15752_v54 }
 0x83c   : > { %10359 = vmatpush1.bf16.msra.mxu1 %v15753_v55 }
 0x83d   : > { %10360 = vmatprep.subr.bf16.mxu1 %v15761_v56 }
 0x83e   : > { %10521 = vmatpush1.bf16.msra.mxu0 %v15750_v58 }
 0x83f   : > { %10522 = vmatprep.subr.bf16.mxu0 %v15758_v8 }
 0x840   : > { %10361 = vmatpush1.bf16.msra.mxu1 %v15759_v59 }
 0x841   : > { %10362 = vmatprep.subr.bf16.mxu1 %v15767_v49 }
 0x842   : > { %v13209_v2 = vpop.f32.mrb[76].mxu1  ;;  %10523 = vmatpush1.bf16.msra.mxu0 %v15756_v14  ;;  %v15795_v14 = vld [vmem:[%s20050_s9 + $0x600] ss:$16 sps:$4 sm:$0xff]  }
 0x843   : > { %v13210_v4 = vpop.f32.mrb[77].mxu1  ;;  %10524 = vmatprep.subr.bf16.mxu0 %v15764_v60  ;;  %v15801_v60 = vld [vmem:[%s20050_s9 + $0x620] ss:$16 sps:$4 sm:$0xff]  }
 0x844   : > { %v13211_v35 = vadd.f32 %v13210_v4, %v13209_v2  ;;  %v13212_v9 = vpop.f32.mrb[78].mxu1  ;;  %10363 = vmatpush1.bf16.msra.mxu1 %v15765_v62  ;;  %v15809_v62 = vld [vmem:[#allocation2 + $0x4] ss:$8 sps:$4 sm:$0xff]   ;;  %v15807_v2 = vld [vmem:[#allocation2] ss:$8 sps:$4 sm:$0xff]  }
 0x845   : > { %v13213_v13 = vpop.f32.mrb[79].mxu1  ;;  %10364 = vmatprep.subr.bf16.mxu1 %v15773_v1  ;;  %v15812_v4 = vld [vmem:[#allocation2 + $0x14] ss:$8 sps:$4 sm:$0xff]  }
 0x846   : > { %v8934_v15 = vadd.f32 %v13211_v35, %v8894_v6  ;;  %10525 = vmatpush1.bf16.msra.mxu0 %v15762_v3  ;;  %v15815_v6 = vld [vmem:[#allocation2 + $0x24] ss:$8 sps:$4 sm:$0xff]   ;;  %v15813_v35 = vld [vmem:[#allocation2 + $0x20] ss:$8 sps:$4 sm:$0xff]   ;;  %v15818_v9 = vld [vmem:[#allocation2 + $0x34] ss:$8 sps:$4 sm:$0xff]  }
 0x847   : > { %10526 = vmatprep.subr.bf16.mxu0 %v15770_v16  ;;  %v15810_v16 = vld [vmem:[#allocation2 + $0x10] ss:$8 sps:$4 sm:$0xff]   ;;  %v15821_v13 = vld [vmem:[#allocation2 + $0x44] ss:$8 sps:$4 sm:$0xff]  }
 0x848   : > { %10365 = vmatpush1.bf16.msra.mxu1 %v15771_v12  ;;  %v15816_v12 = vld [vmem:[#allocation2 + $0x30] ss:$8 sps:$4 sm:$0xff]  }
 0x849   : > { %10366 = vmatprep.subr.bf16.mxu1 %v15779_v7  ;;  %v15819_v7 = vld [vmem:[#allocation2 + $0x40] ss:$8 sps:$4 sm:$0xff]  }
 0x84a   : > { %10527 = vmatpush1.bf16.msra.mxu0 %v15768_v10  ;;  %v15822_v10 = vld [vmem:[#allocation2 + $0x50] ss:$8 sps:$4 sm:$0xff]  }
 0x84b   : > { %10528 = vmatprep.subr.bf16.mxu0 %v15776_v11  ;;  %v15827_v11 = vld [vmem:[#allocation2 + $0x64] ss:$8 sps:$4 sm:$0xff]  }
 0x84c   : > { %10367 = vmatpush1.bf16.msra.mxu1 %v15777_v57  ;;  %v15825_v57 = vld [vmem:[#allocation2 + $0x60] ss:$8 sps:$4 sm:$0xff]  }
 0x84d   : > { %10368 = vmatprep.subr.bf16.mxu1 %v15785_v19  ;;  %v15830_v19 = vld [vmem:[#allocation2 + $0x74] ss:$8 sps:$4 sm:$0xff]  }
 0x84e   : > { %10529 = vmatpush1.bf16.msra.mxu0 %v15774_v20  ;;  %v15828_v20 = vld [vmem:[#allocation2 + $0x70] ss:$8 sps:$4 sm:$0xff]  }
 0x84f   : > { %10530 = vmatprep.subr.bf16.mxu0 %v15782_v21  ;;  %v15833_v21 = vld [vmem:[#allocation2 + $0x84] ss:$8 sps:$4 sm:$0xff]  }
 0x850   : > { %10369 = vmatpush1.bf16.msra.mxu1 %v15783_v22  ;;  %v15831_v22 = vld [vmem:[#allocation2 + $0x80] ss:$8 sps:$4 sm:$0xff]  }
 0x851   : > { %10370 = vmatprep.subr.bf16.mxu1 %v15791_v46  ;;  %v15836_v46 = vld [vmem:[#allocation2 + $0x94] ss:$8 sps:$4 sm:$0xff]  }
 0x852   : > { %10531 = vmatpush1.bf16.msra.mxu0 %v15780_v24  ;;  %v15834_v24 = vld [vmem:[#allocation2 + $0x90] ss:$8 sps:$4 sm:$0xff]  }
 0x853   : > { %10532 = vmatprep.subr.bf16.mxu0 %v15788_v25  ;;  %v15839_v25 = vld [vmem:[#allocation2 + $0xa4] ss:$8 sps:$4 sm:$0xff]  }
 0x854   : > { %10371 = vmatpush1.bf16.msra.mxu1 %v15789_v26  ;;  %v15837_v26 = vld [vmem:[#allocation2 + $0xa0] ss:$8 sps:$4 sm:$0xff]  }
 0x855   : > { %10381 = vmatprep.subr.bf16.mxu1 %v15797_v28  ;;  %v15842_v28 = vld [vmem:[#allocation2 + $0xb4] ss:$8 sps:$4 sm:$0xff]  }
 0x856   : > { %10533 = vmatpush1.bf16.msra.mxu0 %v15786_v29  ;;  %v15840_v29 = vld [vmem:[#allocation2 + $0xb0] ss:$8 sps:$4 sm:$0xff]  }
 0x857   : > { %10534 = vmatprep.subr.bf16.mxu0 %v15794_v31  ;;  %v15845_v31 = vld [vmem:[#allocation2 + $0xc4] ss:$8 sps:$4 sm:$0xff]  }
 0x85a   : > { %10535 = vmatpush1.bf16.msra.mxu0 %v15792_v32  ;;  %v15843_v32 = vld [vmem:[#allocation2 + $0xc0] ss:$8 sps:$4 sm:$0xff]  }
 0x85b   : > { %10545 = vmatprep.subr.bf16.mxu0 %v15800_v34  ;;  %v15848_v34 = vld [vmem:[#allocation2 + $0xd4] ss:$8 sps:$4 sm:$0xff]  }
 0x862   : > { %v13231_v47 = vpop.f32.mrb[80].mxu1 }
 0x863   : > { %v13232_v48 = vpop.f32.mrb[81].mxu1 }
 0x864   : > { %v13233_v36 = vadd.f32 %v13232_v48, %v13231_v47  ;;  %v13234_v50 = vpop.f32.mrb[82].mxu1  ;;  %v15846_v47 = vld [vmem:[#allocation2 + $0xd0] ss:$8 sps:$4 sm:$0xff]   ;;  %v15851_v48 = vld [vmem:[#allocation2 + $0xe4] ss:$8 sps:$4 sm:$0xff]  }
 0x865   : > { %v13235_v38 = vpop.f32.mrb[83].mxu1  ;;  %v15854_v50 = vld [vmem:[#allocation2 + $0xf4] ss:$8 sps:$4 sm:$0xff]  }
 0x866   : > { %v8974_v5 = vadd.f32 %v13233_v36, %v8934_v15  ;;  %v15824_v15 = vld [vmem:[#allocation2 + $0x54] ss:$8 sps:$4 sm:$0xff]   ;;  %v15849_v36 = vld [vmem:[#allocation2 + $0xe0] ss:$8 sps:$4 sm:$0xff]   ;;  %v15852_v38 = vld [vmem:[#allocation2 + $0xf0] ss:$8 sps:$4 sm:$0xff]  }
 0x86a   : > { %v9013_v30 = vpop.f32.mrb[84].mxu1 }
 0x86b   : > { %v9014_v33 = vadd.f32 %v9013_v30, %v8974_v5  ;;  %v14284_v45 = vpop.f32.mrb[85].mxu1  ;;  %v15857_v5 = vld [vmem:[#allocation2 + $0x104] ss:$8 sps:$4 sm:$0xff]   ;;  %v15882_v30 = vld [vmem:[#allocation5] sm:$0xff]  }
 0x86c   : > { %v9016_v63 = vpop.f32.mrb[86].mxu1  ;;  %v15884_v45 = vld [vmem:[#allocation5 + $0x10] sm:$0xff]  }
 0x86d   : > { %v14285_v42 = vpop.f32.mrb[87].mxu1  ;;  %v9025_v1 = vmax.f32 %v9014_v33, 0.0  ;;  %v15883_v33 = vld [vmem:[#allocation5 + $0x8] sm:$0xff]   ;;  %v15885_v63 = vld [vmem:[#allocation5 + $0x18] sm:$0xff]  }
 0x86e   : > { %v15886_v42 = vld [vmem:[#allocation5 + $0x20] sm:$0xff]  }
 0x86f   : > { %v9032_v3 = vpack.c.bf16 %v9025_v1, %v9025_v1 }
 0x870   : > { %v8852_v53 = vpop.f32.mrb[68].mxu0 }
 0x871   : > { %v14310_v37 = vadd.f32 %v8852_v53, %v8347_v51  ;;  %v8854_v54 = vpop.f32.mrb[69].mxu0  ;;  %v15887_v51 = vld [vmem:[#allocation5 + $0x28] sm:$0xff]   ;;  %v15889_v53 = vld [vmem:[#allocation5 + $0x38] sm:$0xff]  }
 0x872   : > { %v14311_v55 = vadd.f32 %v8854_v54, %v8351_v18  ;;  %v8856_v56 = vpop.f32.mrb[70].mxu0  ;;  %v15888_v18 = vld [vmem:[#allocation5 + $0x30] sm:$0xff]   ;;  %v15891_v54 = vld [vmem:[#allocation5 + $0x48] sm:$0xff]  }
 0x873   : > { %v9023_v58 = vmax.f32 %v14310_v37, 0.0  ;;  %v8857_v8 = vpop.f32.mrb[71].mxu0  ;;  %v15890_v37 = vld [vmem:[#allocation5 + $0x40] sm:$0xff]   ;;  %v9233_v56 = vld [vmem:[%s20051_s10] sm:$0xf] }
 0x874   : > { %v9024_v59 = vmax.f32 %v14311_v55, 0.0  ;;  %v15892_v55 = vld [vmem:[#allocation5 + $0x50] sm:$0xff]   ;;  %v10242_v8 = vrot.slane %v9233_v56, %v18276_v43 }
 0x875   : > { %v9030_v39 = vpack.c.bf16 %v9023_v58, %v9023_v58  ;;  %v10238_v58 = vrot.slane %v9233_v56, %v18267_v40 }
 0x876   : > { %v9031_v49 = vpack.c.bf16 %v9024_v59, %v9024_v59  ;;  %v10250_v59 = vrot.slane %v9233_v56, %v18279_v44  ;;  %v15858_v44 = vld [vmem:[#allocation2 + $0x110] ss:$8 sps:$4 sm:$0xff]  }
 0x878   : > { %10372 = vmatprep.mubr.bf16.mxu1 %v9031_v49  ;;  %10536 = vmatprep.mubr.bf16.mxu0 %v9031_v49 }
 0x879   : > { %10373 = vmatmul.mubr.bf16.vlgmr.msra.gmra.mrb[88].mxu1 %v9030_v39  ;;  %10537 = vmatmul.mubr.bf16.vlgmr.msra.gmra.mrb[72].mxu0 %v9030_v39 }
 0x87a   : > { %10382 = vmatpush1.bf16.msra.mxu1 %v15795_v14  ;;  %10546 = vmatpush1.bf16.msra.mxu0 %v15798_v27 }
 0x87b   : > { %10383 = vmatprep.subr.bf16.mxu1 %v15803_v17  ;;  %10547 = vmatprep.subr.bf16.mxu0 %v15806_v23 }
 0x87c   : > { %10413 = vmatprep.mubr.bf16.mxu1 %v16098_v52  ;;  %10577 = vmatprep.mubr.bf16.mxu0 %v16098_v52 }
 0x87e   : > { %10384 = vmatpush1.bf16.msra.mxu1 %v15801_v60  ;;  %10548 = vmatpush1.bf16.msra.mxu0 %v15804_v61 }
 0x87f   : > { %10906 = vmatprep.subr.bf16.mxu1 %v15809_v62  ;;  %11101 = vmatprep.subr.bf16.mxu0 %v16098_v52 }
 0x885   : > { %12642 = vmatmul.mubr.msk.bf16.vlgmr.msra.gmra.mrb[88].mxu1 %vm8363_vm5, %v9032_v3  ;;  %12643 = vmatmul.mubr.msk.bf16.vlgmr.msra.gmra.mrb[72].mxu0 %vm8363_vm5, %v9032_v3 }
 0x886   : > { %10907 = vmatpush1.bf16.msra.mxu1 %v15807_v2  ;;  %11102 = vmatpush1.bf16.msra.mxu0 %v15882_v30 }
 0x887   : > { %10908 = vmatprep.subr.bf16.mxu1 %v15812_v4  ;;  %11103 = vmatprep.subr.bf16.mxu0 %v16098_v52  ;;  %v15855_v4 = vld [vmem:[#allocation2 + $0x100] ss:$8 sps:$4 sm:$0xff]  }
 0x88a   : > { %10909 = vmatpush1.bf16.msra.mxu1 %v15810_v16  ;;  %11104 = vmatpush1.bf16.msra.mxu0 %v15883_v33 }
 0x88b   : > { %10910 = vmatprep.subr.bf16.mxu1 %v15815_v6  ;;  %11105 = vmatprep.subr.bf16.mxu0 %v16098_v52  ;;  %v15860_v6 = vld [vmem:[#allocation2 + $0x114] ss:$8 sps:$4 sm:$0xff]  }
 0x88e   : > { %10911 = vmatpush1.bf16.msra.mxu1 %v15813_v35  ;;  %11106 = vmatpush1.bf16.msra.mxu0 %v15884_v45 }
 0x88f   : > { %10912 = vmatprep.subr.bf16.mxu1 %v15818_v9  ;;  %11107 = vmatprep.subr.bf16.mxu0 %v16098_v52  ;;  %v15863_v9 = vld [vmem:[#allocation2 + $0x124] ss:$8 sps:$4 sm:$0xff]  }
 0x892   : > { %10913 = vmatpush1.bf16.msra.mxu1 %v15816_v12  ;;  %11108 = vmatpush1.bf16.msra.mxu0 %v15885_v63  ;;  %v15861_v12 = vld [vmem:[#allocation2 + $0x120] ss:$8 sps:$4 sm:$0xff]  }
 0x893   : > { %10914 = vmatprep.subr.bf16.mxu1 %v15821_v13  ;;  %11109 = vmatprep.subr.bf16.mxu0 %v16098_v52  ;;  %v15866_v13 = vld [vmem:[#allocation2 + $0x134] ss:$8 sps:$4 sm:$0xff]  }
 0x896   : > { %10915 = vmatpush1.bf16.msra.mxu1 %v15819_v7  ;;  %11110 = vmatpush1.bf16.msra.mxu0 %v15886_v42  ;;  %v15864_v7 = vld [vmem:[#allocation2 + $0x130] ss:$8 sps:$4 sm:$0xff]  }
 0x897   : > { %10916 = vmatprep.subr.bf16.mxu1 %v15824_v15  ;;  %11111 = vmatprep.subr.bf16.mxu0 %v16098_v52  ;;  %v15869_v15 = vld [vmem:[#allocation2 + $0x144] ss:$8 sps:$4 sm:$0xff]  }
 0x89a   : > { %10917 = vmatpush1.bf16.msra.mxu1 %v15822_v10  ;;  %11112 = vmatpush1.bf16.msra.mxu0 %v15887_v51  ;;  %v15867_v10 = vld [vmem:[#allocation2 + $0x140] ss:$8 sps:$4 sm:$0xff]  }
 0x89b   : > { %10918 = vmatprep.subr.bf16.mxu1 %v15827_v11  ;;  %11113 = vmatprep.subr.bf16.mxu0 %v16098_v52  ;;  %v15872_v11 = vld [vmem:[#allocation2 + $0x154] ss:$8 sps:$4 sm:$0xff]  }
 0x89e   : > { %10919 = vmatpush1.bf16.msra.mxu1 %v15825_v57  ;;  %11114 = vmatpush1.bf16.msra.mxu0 %v15888_v18  ;;  %v15870_v57 = vld [vmem:[#allocation2 + $0x150] ss:$8 sps:$4 sm:$0xff]  }
 0x89f   : > { %10920 = vmatprep.subr.bf16.mxu1 %v15830_v19  ;;  %11115 = vmatprep.subr.bf16.mxu0 %v16098_v52  ;;  %v15875_v19 = vld [vmem:[#allocation2 + $0x164] ss:$8 sps:$4 sm:$0xff]  }
 0x8a2   : > { %10921 = vmatpush1.bf16.msra.mxu1 %v15828_v20  ;;  %11116 = vmatpush1.bf16.msra.mxu0 %v15889_v53  ;;  %v15873_v20 = vld [vmem:[#allocation2 + $0x160] ss:$8 sps:$4 sm:$0xff]  }
 0x8a3   : > { %10922 = vmatprep.subr.bf16.mxu1 %v15833_v21  ;;  %11117 = vmatprep.subr.bf16.mxu0 %v16098_v52  ;;  %v15878_v21 = vld [vmem:[#allocation2 + $0x174] ss:$8 sps:$4 sm:$0xff]  }
 0x8a6   : > { %10923 = vmatpush1.bf16.msra.mxu1 %v15831_v22  ;;  %11118 = vmatpush1.bf16.msra.mxu0 %v15890_v37  ;;  %v15876_v22 = vld [vmem:[#allocation2 + $0x170] ss:$8 sps:$4 sm:$0xff]  }
 0x8a7   : > { %10924 = vmatprep.subr.bf16.mxu1 %v15836_v46  ;;  %11119 = vmatprep.subr.bf16.mxu0 %v16098_v52  ;;  %v10246_v46 = vrot.slane %v9233_v56, %v18270_v41 }
 0x8aa   : > { %10925 = vmatpush1.bf16.msra.mxu1 %v15834_v24  ;;  %11120 = vmatpush1.bf16.msra.mxu0 %v15891_v54  ;;  %v15881_v24 = vld [vmem:[#allocation2 + $0x184] ss:$8 sps:$4 sm:$0xff]  }
 0x8ab   : > { %10926 = vmatprep.subr.bf16.mxu1 %v15839_v25  ;;  %11121 = vmatprep.subr.bf16.mxu0 %v16098_v52  ;;  %v15879_v25 = vld [vmem:[#allocation2 + $0x180] ss:$8 sps:$4 sm:$0xff]  }
 0x8ac   : > { %v15900_v54 = vld [vmem:[%s20056_s15 + $0x28] sm:$0xff]  }
 0x8ae   : > { %10927 = vmatpush1.bf16.msra.mxu1 %v15837_v26  ;;  %11122 = vmatpush1.bf16.msra.mxu0 %v15892_v55  ;;  %v11017_v55 = vld [vmem:[%s20055_s14] sm:$0x1] }
 0x8af   : > { %10928 = vmatprep.subr.bf16.mxu1 %v15842_v28  ;;  %11123 = vmatprep.subr.bf16.mxu0 %v16098_v52 }
 0x8b2   : > { %10929 = vmatpush1.bf16.msra.mxu1 %v15840_v29  ;;  %v15893_v29 = vld [vmem:[#allocation5 + $0x58] sm:$0xff]  }
 0x8b3   : > { %10930 = vmatprep.subr.bf16.mxu1 %v15845_v31  ;;  %11124 = vmatpush1.bf16.msra.mxu0 %v15893_v29  ;;  %v15894_v31 = vld [vmem:[#allocation5 + $0x60] ss:$0 sps:$4 sm:$0xff]  }
 0x8b4   : > { %11125 = vmatprep.subr.bf16.mxu0 %v16098_v52  ;;  %v11099_v41 = vsel %vm11097_vm7, %v15894_v31, 0  ;;  %v15897_v52 = vld [vmem:[%s20056_s15 + $0x10] sm:$0xff]  }
 0x8b6   : > { %10931 = vmatpush1.bf16.msra.mxu1 %v15843_v32  ;;  %v15895_v32 = vld [vmem:[%s20056_s15] sm:$0xff]  }
 0x8b7   : > { %10932 = vmatprep.subr.bf16.mxu1 %v15848_v34  ;;  %11126 = vmatpush1.bf16.msra.mxu0 %v11099_v41  ;;  %v15896_v34 = vld [vmem:[%s20056_s15 + $0x8] sm:$0xff]  }
 0x8ba   : > { %10933 = vmatpush1.bf16.msra.mxu1 %v15846_v47  ;;  %v15898_v47 = vld [vmem:[%s20056_s15 + $0x18] sm:$0xff]  }
 0x8bb   : > { %10934 = vmatprep.subr.bf16.mxu1 %v15851_v48  ;;  %v15899_v48 = vld [vmem:[%s20056_s15 + $0x20] sm:$0xff]  }
 0x8be   : > { %10935 = vmatpush1.bf16.msra.mxu1 %v15849_v36  ;;  %v10640_v36 = vld [vmem:[%s20053_s12] sm:$0x3] }
 0x8bf   : > { %10936 = vmatprep.subr.bf16.mxu1 %v15854_v50  ;;  %v10895_v50 = vrot.slane %v10640_v36, %v18267_v40  ;;  %v15901_v40 = vld [vmem:[%s20056_s15 + $0x30] ss:$0 sps:$4 sm:$0x33]  }
 0x8c2   : > { %10937 = vmatpush1.bf16.msra.mxu1 %v15852_v38  ;;  %v10899_v38 = vrot.slane %v10640_v36, %v18276_v43  ;;  %v11201_v43 = vsel %vm2826_vm2, %v15901_v40, 0 }
 0x8c3   : > { %10947 = vmatprep.subr.bf16.mxu1 %v15857_v5 }
 0x958   : > { %v10415_v49 = vpop.f32.mrb[88].mxu1  ;;  %v10579_v14 = vpop.f32.mrb[72].mxu0 }
 0x959   : > { %v14312_v27 = vadd.f32 %v10415_v49, %v10238_v58  ;;  %v10417_v39 = vpop.f32.mrb[89].mxu1  ;;  %v10581_v17 = vpop.f32.mrb[73].mxu0  ;;  %v14314_v26 = vadd.f32 %v10579_v14, %v10246_v46 }
 0x95a   : > { %v14313_v23 = vadd.f32 %v10417_v39, %v10242_v8  ;;  %v14315_v60 = vadd.f32 %v10581_v17, %v10250_v59  ;;  %v10419_v61 = vpop.f32.mrb[90].mxu1  ;;  %v10583_v62 = vpop.f32.mrb[74].mxu0 }
 0x95b   : > { %v10420_v1 = vpop.f32.mrb[91].mxu1  ;;  %v10584_v2 = vpop.f32.mrb[75].mxu0  ;;  %v10586_v16 = vpack.c.bf16 %v14312_v27, %v14312_v27  ;;  %v10588_v28 = vpack.c.bf16 %v14314_v26, %v14314_v26  ;;  %v11156_v27 = vld [vmem:[%s20094_s29] sm:$0x1] }
 0x95c   : > { %v10587_v3 = vpack.c.bf16 %v14313_v23, %v14313_v23  ;;  %v10589_v35 = vpack.c.bf16 %v14315_v60, %v14315_v60 }
 0x95e   : > { %10938 = vmatprep.mubr.bf16.mxu1 %v10587_v3 }
 0x95f   : > { %10939 = vmatmul.mubr.bf16.vlgmr.msra.gmra.mrb[92].mxu1 %v10586_v16 }
 0x960   : > { %10948 = vmatpush1.bf16.msra.mxu1 %v15855_v4  ;;  %12694 = vmatprep.mubr.msk.bf16.mxu1 %vm10902_vm6, %v10589_v35 }
 0x961   : > { %10949 = vmatprep.subr.bf16.mxu1 %v15860_v6 }
 0x964   : > { %10950 = vmatpush1.bf16.msra.mxu1 %v15858_v44 }
 0x965   : > { %10951 = vmatprep.subr.bf16.mxu1 %v15863_v9 }
 0x968   : > { %10952 = vmatpush1.bf16.msra.mxu1 %v15861_v12 }
 0x969   : > { %10953 = vmatprep.subr.bf16.mxu1 %v15866_v13 }
 0x96c   : > { %10954 = vmatpush1.bf16.msra.mxu1 %v15864_v7 }
 0x96d   : > { %10955 = vmatprep.subr.bf16.mxu1 %v15869_v15 }
 0x970   : > { %10956 = vmatpush1.bf16.msra.mxu1 %v15867_v10 }
 0x971   : > { %10957 = vmatprep.subr.bf16.mxu1 %v15872_v11 }
 0x974   : > { %10958 = vmatpush1.bf16.msra.mxu1 %v15870_v57 }
 0x975   : > { %10959 = vmatprep.subr.bf16.mxu1 %v15875_v19 }
 0x978   : > { %10960 = vmatpush1.bf16.msra.mxu1 %v15873_v20 }
 0x979   : > { %10961 = vmatprep.subr.bf16.mxu1 %v15878_v21 }
 0x97c   : > { %10962 = vmatpush1.bf16.msra.mxu1 %v15876_v22 }
 0x97d   : > { %10963 = vmatprep.subr.bf16.mxu1 %v15881_v24 }
 0x980   : > { %10964 = vmatpush1.bf16.msra.mxu1 %v15879_v25 }
 0x981   : > { %14286 = vmatprep.subr.bf16.mxu1 %v16096_v0 }
 0x983   : > { %10980 = vmatmul.mubr.bf16.vlgmr.msra.gmra.mrb[92].mxu1 %v10588_v28 }
 0x984   : > { %14300 = vmatprep.mubr.msk.bf16.mxu1 %vm16097_vm0, %v16096_v0  ;;  %14287 = vmatpush3.bf16.msra.mxu1 %v15895_v32 }
 0x985   : > { %14288 = vmatprep.subr.bf16.mxu1 %v16096_v0 }
 0x988   : > { %14289 = vmatpush3.bf16.msra.mxu1 %v15896_v34 }
 0x989   : > { %14290 = vmatprep.subr.bf16.mxu1 %v16096_v0 }
 0x98c   : > { %14291 = vmatpush3.bf16.msra.mxu1 %v15897_v52 }
 0x98d   : > { %14292 = vmatprep.subr.bf16.mxu1 %v16096_v0 }
 0x990   : > { %14293 = vmatpush3.bf16.msra.mxu1 %v15898_v47 }
 0x991   : > { %14294 = vmatprep.subr.bf16.mxu1 %v16096_v0 }
 0x994   : > { %14295 = vmatpush3.bf16.msra.mxu1 %v15899_v48 }
 0x995   : > { %14296 = vmatprep.subr.bf16.mxu1 %v16096_v0 }
 0x998   : > { %14297 = vmatpush3.bf16.msra.mxu1 %v15900_v54 }
 0x999   : > { %14298 = vmatprep.subr.bf16.mxu1 %v16096_v0 }
 0x99c   : > { %14299 = vmatpush3.bf16.msra.mxu1 %v11201_v43 }
 0xa56   : > { %v10981_v5 = vpop.f32.mrb[92].mxu1 }
 0xa57   : > { %v14316_v30 = vadd.f32 %v10981_v5, %v10895_v50  ;;  %v10983_v33 = vpop.f32.mrb[93].mxu1 }
 0xa58   : > { %v14317_v45 = vadd.f32 %v10983_v33, %v10899_v38  ;;  %v10985_v63 = vpop.f32.mrb[94].mxu1 }
 0xa59   : > { %v10988_v42 = vmax.f32 %v14316_v30, 0.0  ;;  %v10986_v51 = vpop.f32.mrb[95].mxu1 }
 0xa5a   : > { %v10989_v18 = vmax.f32 %v14317_v45, 0.0 }
 0xa5b   : > { %v10990_v37 = vpack.c.bf16 %v10988_v42, %v10988_v42 }
 0xa5c   : > { %v10991_v53 = vpack.c.bf16 %v10989_v18, %v10989_v18 }
 0xa5e   : > { %12708 = vmatprep.mubr.msk.bf16.mxu0 %vm11093_vm8, %v10991_v53 }
 0xa5f   : > { %11134 = vmatmul.mubr.bf16.vlgmr.msra.gmra.mrb[76].mxu0 %v10990_v37 }
 0xb32   : > { %v11135_v56 = vpop.f32.mrb[76].mxu0 }
 0xb33   : > { %v11136_v58 = vadd.f32 %v11135_v56, %v11017_v55  ;;  %v11137_v8 = vpop.f32.mrb[77].mxu0 }
 0xb34   : > { %v11138_v59 = vpop.f32.mrb[78].mxu0 }
 0xb35   : > { %v11141_v49 = vmax.f32 %v11136_v58, 0.0  ;;  %v11139_v14 = vpop.f32.mrb[79].mxu0 }
 0xb37   : > { %v11142_v0 = vpack.c.bf16 %v11141_v49, %v11141_v49 }
 0xb39   : > { %14301 = vmatmul.mubr.msk.bf16.vlgmr.msra.gmra.mrb[96].mxu1 %vm11196_vm9, %v11142_v0 }
 0xc0c   : > { %v11237_v39 = vpop.f32.mrb[96].mxu1 }
 0xc0d   : > { %v11238_v17 = vadd.f32 %v11237_v39, %v11156_v27  ;;  %v14302_v23 = vpop.f32.mrb[97].mxu1 }
 0xc0e   : > { %v11240_v60 = vpop.f32.mrb[98].mxu1 }
 0xc0f   : > { %11243 = vst [vmem:[%s570_s26] sm:$0x1] %v11238_v17  ;;  %v14303_v61 = vpop.f32.mrb[99].mxu1 }
 0xc10   : > { %16031 = shalt.err (!%p16028_p11)
}
 0xc11   : > { %s16032_s17 = scalar_lea.hbm %s19999_s30, 16  ;;  %s16036_s26 = scalar_lea.hbm %s20096_s22, 32 }
 0xc12   : > { %p16033_p13 = scmp.ne.s32.totalorder %s19999_s30, %s16032_s17  ;;  %p16037_p6 = scmp.lt.u32.totalorder %s19999_s30, %s20096_s22 }
 0xc13   : > { %p16038_p9 = scmp.lt.u32.totalorder %s16036_s26, %s16032_s17  ;;  %p16040_p10 = scmp.lt.u32.totalorder %s16032_s17, %s19999_s30 }
 0xc14   : > { %p16034_p0 = pnand %p16033_p13, %p20097_p1 }
 0xc15   : > { %p16039_p12 = por %p16038_p9, %p16037_p6 }
 0xc16   : > { %p16035_p5 = pneg %p16034_p0 }
 0xc17   : > { %p16041_p2 = por %p16040_p10, %p16039_p12 }
 0xc19   : > { %p16042_p3 = pnand %p16041_p2, %p16035_p5 }
 0xc1b   : > { %16045 = shalt.err (!%p16042_p3)
}
 0xc1c   : > { %14578 = dma.vmem_to_hbm [thread:$0]  (%p20097_p1), %s20001_s27, 16, %s19999_s30, %s11245_s23  }
 0xc1d PF: > { %s20098_s28 = sld [smem:[#allocation13_spill]]  ;;  %s20099_s16 = sld [smem:[#allocation11_spill]] }
 0xc1e   : > { %s20100_s1 = sld [smem:[#allocation17_spill]] }
 0xc23   : > { %p14595_p4 = scmp.ge.s32.totalorder %s20098_s28, 2  ;;  %s11269_s21 = sand.u32 1, %s20099_s16  }
 0xc24   : > { %p20101_p7 = scmp.ne.s32.totalorder %s20100_s1, 0  ;;  %s11270_s29 = scalar_lea.sflag [#allocation4], %s11269_s21 }
 0xc26   : > { %p14588_p8 = pnand %p14595_p4, %p20101_p7 }
 0xc28   : > { %16071 = dma.done.wait (!%p14588_p8), %s11270_s29, 16  }
 0xc29   : > { %16073 = vsyncadd (!%p14588_p8), %s11270_s29, 4294967280  ;;  %s20102_s27 = sld [smem:[#allocation14_spill]]  ;;  %s20103_s17 = sld [smem:[#allocation12_spill]] }
 0xc2a   : > { %s20104_s26 = sld [smem:[#allocation15_spill]]  ;;  %s20105_s24 = smov %s16080_s25 }
 0xc2f   : > { %p29_p11 = scmp.ge.s32.totalorder %s20102_s27, 4   ;;  %s20106_s25 = smov %s20103_s17 }
 0xc31   :  { %31 = sbr.rel (!%p29_p11) target bundleno = 10 (0xa), region = 154 }
 0xc38   :  { %11274 = vsyncpa [#allocation3], 1 }
 0xc39   :  { %11276 = vsyncpa [#allocation3 + $0x1], 1 }
 0xc3a   :  { %11277 = vsyncpa [#allocation6], 1 }
 0xc3b   :  { %11278 = vsyncpa [#allocation4], 1 }
 0xc3c   :  { %11280 = vsyncpa [#allocation4 + $0x1], 1 }

</bundles_post_ra>
